<compile_context>
chip_gen: v7x
topology: tpu7x:2x2x1
jax: 0.10.0
libtpu: 0.0.40
codegen_flags: <defaults>
</compile_context>

<pallas_src>
import numpy as np

import jax
import jax.numpy as jnp
from jax import lax
from jax.experimental import pallas as pl
from jax.experimental.pallas import tpu as pltpu


_INV_SQRT2 = 0.7071067811865475


# ---------------------------------------------------------------------------
# Sinusoid positional table (same math as the PyTorch helper)
# ---------------------------------------------------------------------------
def get_sinusoid_encoding_table(n_seq, d_hidn):
    def cal_angle(position, i_hidn):
        return position / np.power(10000, 2 * (i_hidn // 2) / d_hidn)

    table = np.array(
        [[cal_angle(pos, i) for i in range(d_hidn)] for pos in range(n_seq)],
        dtype=np.float64,
    )
    table[:, 0::2] = np.sin(table[:, 0::2])
    table[:, 1::2] = np.cos(table[:, 1::2])
    return table.astype(np.float32)


# ---------------------------------------------------------------------------
# One-time host-side weight packing (QKV fusion, KV fusion, tail fusion,
# bias/gamma/beta reshaped to lane-friendly (1, N) rows).
# ---------------------------------------------------------------------------
def prepare_fused_params(params):
    enc = params["encoder"]
    dec = params["decoder"]
    row = lambda b: b.reshape(1, -1)

    w = dict(
        emb_w=enc["input_embedding_w"], emb_b=row(enc["input_embedding_b"]),
        fc1_w=enc["fc1_w"], fc1_b=row(enc["fc1_b"]),
        enc_proj_w=enc["proj_w"], enc_proj_b=row(enc["proj_b"]),
        deproj_w=dec["deproj_w"], deproj_b=row(dec["deproj_b"]),
        # de_embedding (E->out) and MotionGenerator.projection (out->out)
        # folded into one matmul (mathematically identical).
        tail_w=dec["de_emb_w"] @ params["proj_w"],
        tail_b=row(dec["de_emb_b"] @ params["proj_w"] + params["proj_b"]),
        enc_layers=[], dec_layers=[],
    )
    for lp in enc["layers"]:
        a, f = lp["self_attn"], lp["ffn"]
        w["enc_layers"].append(dict(
            qkv_w=jnp.concatenate([a["wq"], a["wk"], a["wv"]], axis=1),
            qkv_b=row(jnp.concatenate([a["bq"], a["bk"], a["bv"]], axis=0)),
            wo=a["wo"], bo=row(a["bo"]),
            ln1_g=row(lp["ln1_g"]), ln1_b=row(lp["ln1_b"]),
            w1=f["w1"], b1=row(f["b1"]), w2=f["w2"], b2=row(f["b2"]),
            ln2_g=row(lp["ln2_g"]), ln2_b=row(lp["ln2_b"]),
        ))
    for lp in dec["layers"]:
        a, c, f = lp["self_attn"], lp["cross_attn"], lp["ffn"]
        w["dec_layers"].append(dict(
            self_qkv_w=jnp.concatenate([a["wq"], a["wk"], a["wv"]], axis=1),
            self_qkv_b=row(jnp.concatenate([a["bq"], a["bk"], a["bv"]], axis=0)),
            self_wo=a["wo"], self_bo=row(a["bo"]),
            ln1_g=row(lp["ln1_g"]), ln1_b=row(lp["ln1_b"]),
            cross_q_w=c["wq"], cross_q_b=row(c["bq"]),
            cross_kv_w=jnp.concatenate([c["wk"], c["wv"]], axis=1),
            cross_kv_b=row(jnp.concatenate([c["bk"], c["bv"]], axis=0)),
            cross_wo=c["wo"], cross_bo=row(c["bo"]),
            ln2_g=row(lp["ln2_g"]), ln2_b=row(lp["ln2_b"]),
            w1=f["w1"], b1=row(f["b1"]), w2=f["w2"], b2=row(f["b2"]),
            ln3_g=row(lp["ln3_g"]), ln3_b=row(lp["ln3_b"]),
        ))
    return w


# ---------------------------------------------------------------------------
# Fused forward kernel (whole model, single invocation, all-VMEM)
# ---------------------------------------------------------------------------
def _make_fused_kernel(treedef, n_in, *, B, S, H, D, eps):
    HD = H * D
    scale = 1.0 / (D ** 0.5)

    def matmul(x, w_ref, b_ref):
        return jnp.dot(x, w_ref[...], preferred_element_type=jnp.float32) + b_ref[...]

    def layer_norm(x, g_ref, b_ref):
        mean = jnp.mean(x, axis=-1, keepdims=True)
        c = x - mean
        var = jnp.mean(c * c, axis=-1, keepdims=True)
        return c * lax.rsqrt(var + eps) * g_ref[...] + b_ref[...]

    def gelu(x):  # exact erf form (matches torch.nn.functional.gelu default)
        return 0.5 * x * (1.0 + lax.erf(x * _INV_SQRT2))

    def attention(q2d, k2d, v2d, wo_ref, bo_ref, prob_ref, layer_idx):
        """q2d/k2d/v2d: (B*S, H*D) VMEM slabs.  Writes per-head softmax probs
        to prob_ref[layer_idx*H + h] (shape (B,S,S)); returns (B*S, E)."""
        wo = wo_ref[...]
        acc = None
        for h in range(H):                      # static head loop, H=2
            c0, c1 = h * D, (h + 1) * D
            qh = q2d[:, c0:c1].reshape(B, S, D)
            kh = k2d[:, c0:c1].reshape(B, S, D)
            vh = v2d[:, c0:c1].reshape(B, S, D)
            s = jnp.einsum("bqd,bkd->bqk", qh, kh,
                           preferred_element_type=jnp.float32) * scale
            m = jnp.max(s, axis=-1, keepdims=True)
            e = jnp.exp(s - m)
            denom = jnp.sum(e, axis=-1, keepdims=True)
            p = e * pl.reciprocal(denom, approx=True)   # EUP slot, not VALU div
            prob_ref[layer_idx * H + h] = p.astype(prob_ref.dtype)
            ctx = jnp.einsum("bqk,bkd->bqd", p, vh,
                             preferred_element_type=jnp.float32)
            # output projection applied per-head slab -> avoids a lane concat
            part = jnp.dot(ctx.reshape(B * S, D), wo[c0:c1, :],
                           preferred_element_type=jnp.float32)
            acc = part if acc is None else acc + part
        return acc + bo_ref[...]

    def kernel(*refs):
        in_refs = refs[:n_in]
        out_ref, enc_prob_ref, dec_self_prob_ref, dec_cross_prob_ref = refs[n_in:]
        tree = jax.tree_util.tree_unflatten(treedef, in_refs)
        x_ref, pos_ref, w = tree["x"], tree["pos"], tree["w"]

        # ----- encoder: embedding (+ fused positional encoding) + fc1 -----
        x = matmul(x_ref[...], w["emb_w"], w["emb_b"]) + pos_ref[...]
        x = matmul(x, w["fc1_w"], w["fc1_b"])

        for li, lw in enumerate(w["enc_layers"]):          # static layer loop
            qkv = matmul(x, lw["qkv_w"], lw["qkv_b"])
            att = attention(qkv[:, :HD], qkv[:, HD:2 * HD], qkv[:, 2 * HD:],
                            lw["wo"], lw["bo"], enc_prob_ref, li)
            x1 = layer_norm(x + att, lw["ln1_g"], lw["ln1_b"])
            h1 = gelu(matmul(x1, lw["w1"], lw["b1"]))
            ff = matmul(h1, lw["w2"], lw["b2"])
            x = layer_norm(ff + x1, lw["ln2_g"], lw["ln2_b"])

        enc_out = matmul(x, w["enc_proj_w"], w["enc_proj_b"])

        # ----- decoder (inputs = deprojected encoder outputs) -----
        enc_dep = matmul(enc_out, w["deproj_w"], w["deproj_b"])
        dec = enc_dep
        for li, lw in enumerate(w["dec_layers"]):
            qkv = matmul(dec, lw["self_qkv_w"], lw["self_qkv_b"])
            sa = attention(qkv[:, :HD], qkv[:, HD:2 * HD], qkv[:, 2 * HD:],
                           lw["self_wo"], lw["self_bo"], dec_self_prob_ref, li)
            sa = layer_norm(dec + sa, lw["ln1_g"], lw["ln1_b"])
            q2d = matmul(sa, lw["cross_q_w"], lw["cross_q_b"])
            kv = matmul(enc_dep, lw["cross_kv_w"], lw["cross_kv_b"])
            ca = attention(q2d, kv[:, :HD], kv[:, HD:],
                           lw["cross_wo"], lw["cross_bo"], dec_cross_prob_ref, li)
            ca = layer_norm(sa + ca, lw["ln2_g"], lw["ln2_b"])
            h1 = gelu(matmul(ca, lw["w1"], lw["b1"]))
            ff = matmul(h1, lw["w2"], lw["b2"])
            dec = layer_norm(ca + ff, lw["ln3_g"], lw["ln3_b"])

        # fused de_embedding + top-level projection
        out_ref[...] = matmul(dec, w["tail_w"], w["tail_b"]).astype(out_ref.dtype)

    return kernel


# ---------------------------------------------------------------------------
# Model forward (host wrapper: pack weights, one pallas_call, unpack probs)
# ---------------------------------------------------------------------------
def motion_generator_forward(
    params, input_character, output_character, enc_inputs, dec_inputs,
    sinusoid_table, args
):
    # TODO(synk): add_offset=True path (per-character offset gather + concat) and
    # swap_dim=1 ProjectionNet path not exercised (config disables both, matching
    # the PyTorch control flow for this config).
    del input_character, output_character, dec_inputs  # unused when add_offset=False

    B, S, _ = enc_inputs.shape
    H = args["n_head"]
    D = args["d_head"]
    L = args["n_layer"]
    out_size = args["output_size"]
    eps = args["layer_norm_epsilon"]

    # data_encoding: positions = arange(S) + 1, frozen sinusoid lookup
    positions = jnp.arange(S, dtype=jnp.int32) + 1
    pos2d = jnp.tile(sinusoid_table[positions], (B, 1))          # (B*S, E)
    enc2d = enc_inputs.reshape(B * S, -1)                        # (B*S, in_size)

    w = prepare_fused_params(params)
    leaves, treedef = jax.tree_util.tree_flatten({"x": enc2d, "pos": pos2d, "w": w})
    n_in = len(leaves)

    kernel = _make_fused_kernel(treedef, n_in, B=B, S=S, H=H, D=D, eps=eps)

    vmem = pl.BlockSpec(memory_space=pltpu.MemorySpace.VMEM)     # whole array, VMEM-resident
    out_shapes = (
        jax.ShapeDtypeStruct((B * S, out_size), jnp.float32),    # final output
        jax.ShapeDtypeStruct((L * H, B, S, S), jnp.float32),     # enc self-attn probs
        jax.ShapeDtypeStruct((L * H, B, S, S), jnp.float32),     # dec self-attn probs
        jax.ShapeDtypeStruct((L * H, B, S, S), jnp.float32),     # dec cross-attn probs
    )
    out2d, enc_p, dec_sp, dec_cp = pl.pallas_call(
        kernel,
        out_shape=out_shapes,
        in_specs=[vmem] * n_in,
        out_specs=(vmem, vmem, vmem, vmem),
        # TODO(synk): for v7x / larger batches, expose a leading "parallel" grid
        # axis over batch so the second TensorCore is used; unnecessary at B=2.
    )(*leaves)

    def split_probs(stacked):
        r = stacked.reshape(L, H, B, S, S).transpose(0, 2, 1, 3, 4)  # (L,B,H,S,S)
        return [r[l] for l in range(L)]

    out = out2d.reshape(B, S, out_size)
    return out, split_probs(enc_p), split_probs(dec_sp), split_probs(dec_cp)


# ---------------------------------------------------------------------------
# Deterministic parameter initialization (same structure as before)
# ---------------------------------------------------------------------------
def init_params(key, args):
    E = args["embedding_dim"]
    H = args["n_head"]
    D = args["d_head"]
    in_size = args["input_size"]
    out_size = args["output_size"]
    n_layer = args["n_layer"]

    keys = iter(jax.random.split(key, 512))

    def lin(in_dim, out_dim):
        w = jax.random.normal(next(keys), (in_dim, out_dim), jnp.float32) * 0.02
        b = jnp.zeros((out_dim,), jnp.float32)
        return w, b

    def mha():
        wq, bq = lin(E, H * D)
        wk, bk = lin(E, H * D)
        wv, bv = lin(E, H * D)
        wo, bo = lin(H * D, E)
        return dict(wq=wq, bq=bq, wk=wk, bk=bk, wv=wv, bv=bv, wo=wo, bo=bo)

    def ffn_params():
        w1, b1 = lin(E, 4 * E)
        w2, b2 = lin(4 * E, E)
        return dict(w1=w1, b1=b1, w2=w2, b2=b2)

    def ln():
        return jnp.ones((E,), jnp.float32), jnp.zeros((E,), jnp.float32)

    def enc_layer():
        g1, b1 = ln()
        g2, b2 = ln()
        return dict(self_attn=mha(), ln1_g=g1, ln1_b=b1, ffn=ffn_params(),
                    ln2_g=g2, ln2_b=b2)

    def dec_layer():
        g1, b1 = ln()
        g2, b2 = ln()
        g3, b3 = ln()
        return dict(self_attn=mha(), cross_attn=mha(), ffn=ffn_params(),
                    ln1_g=g1, ln1_b=b1, ln2_g=g2, ln2_b=b2, ln3_g=g3, ln3_b=b3)

    enc_emb_w, enc_emb_b = lin(in_size, E)
    enc_fc1_w, enc_fc1_b = lin(E, E)
    enc_proj_w, enc_proj_b = lin(E, E)
    dec_deproj_w, dec_deproj_b = lin(E, E)
    dec_de_emb_w, dec_de_emb_b = lin(E, out_size)
    proj_w, proj_b = lin(out_size, out_size)

    return dict(
        encoder=dict(
            input_embedding_w=enc_emb_w, input_embedding_b=enc_emb_b,
            fc1_w=enc_fc1_w, fc1_b=enc_fc1_b,
            proj_w=enc_proj_w, proj_b=enc_proj_b,
            layers=[enc_layer() for _ in range(n_layer)],
        ),
        decoder=dict(
            deproj_w=dec_deproj_w, deproj_b=dec_deproj_b,
            de_emb_w=dec_de_emb_w, de_emb_b=dec_de_emb_b,
            layers=[dec_layer() for _ in range(n_layer)],
        ),
        proj_w=proj_w, proj_b=proj_b,
    )


# ---------------------------------------------------------------------------
if __name__ == "__main__":
    args = dict(
        window_size=8,
        input_size=16,
        output_size=16,
        embedding_dim=32,
        d_hidn=32,
        n_head=2,
        d_head=16,
        n_layer=2,
        layer_norm_epsilon=1e-6,
        swap_dim=0,
        add_offset=False,
        data_encoding=True,
    )

    B, S = 2, args["window_size"]

    key = jax.random.PRNGKey(0)
    k_param, k_enc, k_dec = jax.random.split(key, 3)

    params = init_params(k_param, args)
    sinusoid_table = jnp.asarray(
        get_sinusoid_encoding_table(args["window_size"] + 1, args["embedding_dim"])
    )

    enc_inputs = jax.random.normal(k_enc, (B, S, args["input_size"]), jnp.float32)
    dec_inputs = jax.random.normal(k_dec, (B, S, args["input_size"]), jnp.float32)
    input_character = 0
    output_character = 0

    out, enc_probs, dec_self_probs, dec_enc_probs = motion_generator_forward(
        params, input_character, output_character, enc_inputs, dec_inputs,
        sinusoid_table, args,
    )

    jax.block_until_ready(out)
    jax.block_until_ready(enc_probs)
    jax.block_until_ready(dec_self_probs)
    jax.block_until_ready(dec_enc_probs)

    assert out.shape == (B, S, args["output_size"])
    assert all(p.shape == (B, args["n_head"], S, S) for p in enc_probs)
    assert all(p.shape == (B, args["n_head"], S, S) for p in dec_self_probs)
    assert all(p.shape == (B, args["n_head"], S, S) for p in dec_enc_probs)
    assert bool(jnp.isfinite(out).all())
    assert bool(jnp.isfinite(enc_probs[0]).all())
    print("KERNEL_OK")
</pallas_src>

<mosaic_0001>
module attributes {stable_mosaic.version = 11 : i64} {
  func.func @kernel(%arg0: memref<16x32xf32, #tpu.memory_space<vmem>>, %arg1: memref<1x128xf32, #tpu.memory_space<vmem>>, %arg2: memref<1x32xf32, #tpu.memory_space<vmem>>, %arg3: memref<1x32xf32, #tpu.memory_space<vmem>>, %arg4: memref<1x64xf32, #tpu.memory_space<vmem>>, %arg5: memref<32x64xf32, #tpu.memory_space<vmem>>, %arg6: memref<1x32xf32, #tpu.memory_space<vmem>>, %arg7: memref<32x32xf32, #tpu.memory_space<vmem>>, %arg8: memref<32x32xf32, #tpu.memory_space<vmem>>, %arg9: memref<1x32xf32, #tpu.memory_space<vmem>>, %arg10: memref<1x32xf32, #tpu.memory_space<vmem>>, %arg11: memref<1x32xf32, #tpu.memory_space<vmem>>, %arg12: memref<1x32xf32, #tpu.memory_space<vmem>>, %arg13: memref<1x32xf32, #tpu.memory_space<vmem>>, %arg14: memref<1x32xf32, #tpu.memory_space<vmem>>, %arg15: memref<1x32xf32, #tpu.memory_space<vmem>>, %arg16: memref<1x96xf32, #tpu.memory_space<vmem>>, %arg17: memref<32x96xf32, #tpu.memory_space<vmem>>, %arg18: memref<32x32xf32, #tpu.memory_space<vmem>>, %arg19: memref<32x128xf32, #tpu.memory_space<vmem>>, %arg20: memref<128x32xf32, #tpu.memory_space<vmem>>, %arg21: memref<1x128xf32, #tpu.memory_space<vmem>>, %arg22: memref<1x32xf32, #tpu.memory_space<vmem>>, %arg23: memref<1x32xf32, #tpu.memory_space<vmem>>, %arg24: memref<1x64xf32, #tpu.memory_space<vmem>>, %arg25: memref<32x64xf32, #tpu.memory_space<vmem>>, %arg26: memref<1x32xf32, #tpu.memory_space<vmem>>, %arg27: memref<32x32xf32, #tpu.memory_space<vmem>>, %arg28: memref<32x32xf32, #tpu.memory_space<vmem>>, %arg29: memref<1x32xf32, #tpu.memory_space<vmem>>, %arg30: memref<1x32xf32, #tpu.memory_space<vmem>>, %arg31: memref<1x32xf32, #tpu.memory_space<vmem>>, %arg32: memref<1x32xf32, #tpu.memory_space<vmem>>, %arg33: memref<1x32xf32, #tpu.memory_space<vmem>>, %arg34: memref<1x32xf32, #tpu.memory_space<vmem>>, %arg35: memref<1x32xf32, #tpu.memory_space<vmem>>, %arg36: memref<1x96xf32, #tpu.memory_space<vmem>>, %arg37: memref<32x96xf32, #tpu.memory_space<vmem>>, %arg38: memref<32x32xf32, #tpu.memory_space<vmem>>, %arg39: memref<32x128xf32, #tpu.memory_space<vmem>>, %arg40: memref<128x32xf32, #tpu.memory_space<vmem>>, %arg41: memref<1x32xf32, #tpu.memory_space<vmem>>, %arg42: memref<32x32xf32, #tpu.memory_space<vmem>>, %arg43: memref<1x32xf32, #tpu.memory_space<vmem>>, %arg44: memref<16x32xf32, #tpu.memory_space<vmem>>, %arg45: memref<1x128xf32, #tpu.memory_space<vmem>>, %arg46: memref<1x32xf32, #tpu.memory_space<vmem>>, %arg47: memref<1x32xf32, #tpu.memory_space<vmem>>, %arg48: memref<1x32xf32, #tpu.memory_space<vmem>>, %arg49: memref<1x32xf32, #tpu.memory_space<vmem>>, %arg50: memref<1x32xf32, #tpu.memory_space<vmem>>, %arg51: memref<1x32xf32, #tpu.memory_space<vmem>>, %arg52: memref<1x96xf32, #tpu.memory_space<vmem>>, %arg53: memref<32x96xf32, #tpu.memory_space<vmem>>, %arg54: memref<32x128xf32, #tpu.memory_space<vmem>>, %arg55: memref<128x32xf32, #tpu.memory_space<vmem>>, %arg56: memref<32x32xf32, #tpu.memory_space<vmem>>, %arg57: memref<1x128xf32, #tpu.memory_space<vmem>>, %arg58: memref<1x32xf32, #tpu.memory_space<vmem>>, %arg59: memref<1x32xf32, #tpu.memory_space<vmem>>, %arg60: memref<1x32xf32, #tpu.memory_space<vmem>>, %arg61: memref<1x32xf32, #tpu.memory_space<vmem>>, %arg62: memref<1x32xf32, #tpu.memory_space<vmem>>, %arg63: memref<1x32xf32, #tpu.memory_space<vmem>>, %arg64: memref<1x96xf32, #tpu.memory_space<vmem>>, %arg65: memref<32x96xf32, #tpu.memory_space<vmem>>, %arg66: memref<32x128xf32, #tpu.memory_space<vmem>>, %arg67: memref<128x32xf32, #tpu.memory_space<vmem>>, %arg68: memref<32x32xf32, #tpu.memory_space<vmem>>, %arg69: memref<1x32xf32, #tpu.memory_space<vmem>>, %arg70: memref<32x32xf32, #tpu.memory_space<vmem>>, %arg71: memref<1x32xf32, #tpu.memory_space<vmem>>, %arg72: memref<32x32xf32, #tpu.memory_space<vmem>>, %arg73: memref<1x16xf32, #tpu.memory_space<vmem>>, %arg74: memref<32x16xf32, #tpu.memory_space<vmem>>, %arg75: memref<16x16xf32, #tpu.memory_space<vmem>>, %arg76: memref<16x16xf32, #tpu.memory_space<vmem>>, %arg77: memref<4x2x8x8xf32, #tpu.memory_space<vmem>>, %arg78: memref<4x2x8x8xf32, #tpu.memory_space<vmem>>, %arg79: memref<4x2x8x8xf32, #tpu.memory_space<vmem>>) attributes {dimension_semantics = [], scalar_prefetch = 0 : i64, scratch_operands = 0 : i64, tpu.core_type = #tpu.core_type<tc>} {
    %c0 = arith.constant 0 : index
    %c0_0 = arith.constant 0 : index
    %0 = vector.load %arg75[%c0, %c0_0] : memref<16x16xf32, #tpu.memory_space<vmem>>, vector<16x16xf32>
    %c0_1 = arith.constant 0 : index
    %c0_2 = arith.constant 0 : index
    %1 = vector.load %arg44[%c0_1, %c0_2] : memref<16x32xf32, #tpu.memory_space<vmem>>, vector<16x32xf32>
    %cst = arith.constant dense<0.000000e+00> : vector<16x32xf32>
    %2 = tpu.matmul %0, %1, %cst {dimension_numbers = #tpu.dot_dimension_numbers<[1], [0], [0], [1], [0, 0, 1, 1], [], []>} : vector<16x16xf32>, vector<16x32xf32>, vector<16x32xf32> -> vector<16x32xf32>
    %c0_3 = arith.constant 0 : index
    %c0_4 = arith.constant 0 : index
    %3 = vector.load %arg43[%c0_3, %c0_4] : memref<1x32xf32, #tpu.memory_space<vmem>>, vector<1x32xf32>
    %4 = vector.broadcast %3 : vector<1x32xf32> to vector<16x32xf32>
    %5 = arith.addf %2, %4 : vector<16x32xf32>
    %c0_5 = arith.constant 0 : index
    %c0_6 = arith.constant 0 : index
    %6 = vector.load %arg0[%c0_5, %c0_6] : memref<16x32xf32, #tpu.memory_space<vmem>>, vector<16x32xf32>
    %7 = arith.addf %5, %6 : vector<16x32xf32>
    %c0_7 = arith.constant 0 : index
    %c0_8 = arith.constant 0 : index
    %8 = vector.load %arg72[%c0_7, %c0_8] : memref<32x32xf32, #tpu.memory_space<vmem>>, vector<32x32xf32>
    %cst_9 = arith.constant dense<0.000000e+00> : vector<16x32xf32>
    %9 = tpu.matmul %7, %8, %cst_9 {dimension_numbers = #tpu.dot_dimension_numbers<[1], [0], [0], [1], [0, 0, 1, 1], [], []>} : vector<16x32xf32>, vector<32x32xf32>, vector<16x32xf32> -> vector<16x32xf32>
    %c0_10 = arith.constant 0 : index
    %c0_11 = arith.constant 0 : index
    %10 = vector.load %arg71[%c0_10, %c0_11] : memref<1x32xf32, #tpu.memory_space<vmem>>, vector<1x32xf32>
    %11 = vector.broadcast %10 : vector<1x32xf32> to vector<16x32xf32>
    %12 = arith.addf %9, %11 : vector<16x32xf32>
    %c0_12 = arith.constant 0 : index
    %c0_13 = arith.constant 0 : index
    %13 = vector.load %arg53[%c0_12, %c0_13] : memref<32x96xf32, #tpu.memory_space<vmem>>, vector<32x96xf32>
    %cst_14 = arith.constant dense<0.000000e+00> : vector<16x96xf32>
    %14 = tpu.matmul %12, %13, %cst_14 {dimension_numbers = #tpu.dot_dimension_numbers<[1], [0], [0], [1], [0, 0, 1, 1], [], []>} : vector<16x32xf32>, vector<32x96xf32>, vector<16x96xf32> -> vector<16x96xf32>
    %c0_15 = arith.constant 0 : index
    %c0_16 = arith.constant 0 : index
    %15 = vector.load %arg52[%c0_15, %c0_16] : memref<1x96xf32, #tpu.memory_space<vmem>>, vector<1x96xf32>
    %16 = vector.broadcast %15 : vector<1x96xf32> to vector<16x96xf32>
    %17 = arith.addf %14, %16 : vector<16x96xf32>
    %18 = vector.extract_strided_slice %17 {offsets = [0, 0], sizes = [16, 32], strides = [1, 1]} : vector<16x96xf32> to vector<16x32xf32>
    %19 = vector.extract_strided_slice %17 {offsets = [0, 32], sizes = [16, 32], strides = [1, 1]} : vector<16x96xf32> to vector<16x32xf32>
    %20 = vector.extract_strided_slice %17 {offsets = [0, 64], sizes = [16, 32], strides = [1, 1]} : vector<16x96xf32> to vector<16x32xf32>
    %c0_17 = arith.constant 0 : index
    %c0_18 = arith.constant 0 : index
    %21 = vector.load %arg56[%c0_17, %c0_18] : memref<32x32xf32, #tpu.memory_space<vmem>>, vector<32x32xf32>
    %22 = vector.extract_strided_slice %18 {offsets = [0, 0], sizes = [16, 16], strides = [1, 1]} : vector<16x32xf32> to vector<16x16xf32>
    %23 = vector.shape_cast %22 : vector<16x16xf32> to vector<2x8x16xf32>
    %24 = vector.extract_strided_slice %19 {offsets = [0, 0], sizes = [16, 16], strides = [1, 1]} : vector<16x32xf32> to vector<16x16xf32>
    %25 = vector.shape_cast %24 : vector<16x16xf32> to vector<2x8x16xf32>
    %26 = vector.extract_strided_slice %20 {offsets = [0, 0], sizes = [16, 16], strides = [1, 1]} : vector<16x32xf32> to vector<16x16xf32>
    %27 = vector.shape_cast %26 : vector<16x16xf32> to vector<2x8x16xf32>
    "tpu.trace_start"() <{level = 10 : i32, message = "bqd,bkd->bqk"}> : () -> ()
    %cst_19 = arith.constant dense<0.000000e+00> : vector<2x8x8xf32>
    %28 = tpu.matmul %23, %25, %cst_19 {dimension_numbers = #tpu.dot_dimension_numbers<[2], [2], [1], [1], [0, 0, 0, 1, 1, 1], [0], [0]>} : vector<2x8x16xf32>, vector<2x8x16xf32>, vector<2x8x8xf32> -> vector<2x8x8xf32>
    "tpu.trace_stop"() : () -> ()
    %cst_20 = arith.constant 2.500000e-01 : f32
    %29 = vector.broadcast %cst_20 : f32 to vector<2x8x8xf32>
    %30 = arith.mulf %28, %29 : vector<2x8x8xf32>
    %cst_21 = arith.constant dense<0xFF800000> : vector<2x8xf32>
    %31 = vector.multi_reduction <maximumf>, %30, %cst_21 [2] : vector<2x8x8xf32> to vector<2x8xf32>
    %32 = vector.shape_cast %31 : vector<2x8xf32> to vector<2x8x1xf32>
    %33 = vector.broadcast %32 : vector<2x8x1xf32> to vector<2x8x8xf32>
    %34 = arith.subf %30, %33 : vector<2x8x8xf32>
    %35 = math.exp %34 : vector<2x8x8xf32>
    %cst_22 = arith.constant dense<0.000000e+00> : vector<2x8xf32>
    %36 = vector.multi_reduction <add>, %35, %cst_22 [2] : vector<2x8x8xf32> to vector<2x8xf32>
    %37 = vector.shape_cast %36 : vector<2x8xf32> to vector<2x8x1xf32>
    %38 = tpu.reciprocal %37 {approx = true} : vector<2x8x1xf32> -> vector<2x8x1xf32>
    %39 = vector.broadcast %38 : vector<2x8x1xf32> to vector<2x8x8xf32>
    %40 = arith.mulf %35, %39 : vector<2x8x8xf32>
    %c0_23 = arith.constant 0 : index
    %c0_24 = arith.constant 0 : index
    %c0_25 = arith.constant 0 : index
    %c0_26 = arith.constant 0 : index
    %41 = vector.load %arg77[%c0_23, %c0_24, %c0_25, %c0_26] : memref<4x2x8x8xf32, #tpu.memory_space<vmem>>, vector<1x2x8x8xf32>
    %42 = vector.shape_cast %41 : vector<1x2x8x8xf32> to vector<2x8x8xf32>
    %43 = vector.shape_cast %40 : vector<2x8x8xf32> to vector<1x2x8x8xf32>
    tpu.vector_store %arg77[%c0_23, %c0_24, %c0_25, %c0_26], %43 {strides = array<i32>} : memref<4x2x8x8xf32, #tpu.memory_space<vmem>>, vector<1x2x8x8xf32>,
    "tpu.trace_start"() <{level = 10 : i32, message = "bqk,bkd->bqd"}> : () -> ()
    %cst_27 = arith.constant dense<0.000000e+00> : vector<2x8x16xf32>
    %44 = tpu.matmul %40, %27, %cst_27 {dimension_numbers = #tpu.dot_dimension_numbers<[2], [1], [1], [2], [0, 0, 0, 1, 1, 2], [0], [0]>} : vector<2x8x8xf32>, vector<2x8x16xf32>, vector<2x8x16xf32> -> vector<2x8x16xf32>
    "tpu.trace_stop"() : () -> ()
    %45 = vector.shape_cast %44 : vector<2x8x16xf32> to vector<16x16xf32>
    %46 = vector.extract_strided_slice %21 {offsets = [0, 0], sizes = [16, 32], strides = [1, 1]} : vector<32x32xf32> to vector<16x32xf32>
    %cst_28 = arith.constant dense<0.000000e+00> : vector<16x32xf32>
    %47 = tpu.matmul %45, %46, %cst_28 {dimension_numbers = #tpu.dot_dimension_numbers<[1], [0], [0], [1], [0, 0, 1, 1], [], []>} : vector<16x16xf32>, vector<16x32xf32>, vector<16x32xf32> -> vector<16x32xf32>
    %48 = vector.extract_strided_slice %18 {offsets = [0, 16], sizes = [16, 16], strides = [1, 1]} : vector<16x32xf32> to vector<16x16xf32>
    %49 = vector.shape_cast %48 : vector<16x16xf32> to vector<2x8x16xf32>
    %50 = vector.extract_strided_slice %19 {offsets = [0, 16], sizes = [16, 16], strides = [1, 1]} : vector<16x32xf32> to vector<16x16xf32>
    %51 = vector.shape_cast %50 : vector<16x16xf32> to vector<2x8x16xf32>
    %52 = vector.extract_strided_slice %20 {offsets = [0, 16], sizes = [16, 16], strides = [1, 1]} : vector<16x32xf32> to vector<16x16xf32>
    %53 = vector.shape_cast %52 : vector<16x16xf32> to vector<2x8x16xf32>
    "tpu.trace_start"() <{level = 10 : i32, message = "bqd,bkd->bqk"}> : () -> ()
    %cst_29 = arith.constant dense<0.000000e+00> : vector<2x8x8xf32>
    %54 = tpu.matmul %49, %51, %cst_29 {dimension_numbers = #tpu.dot_dimension_numbers<[2], [2], [1], [1], [0, 0, 0, 1, 1, 1], [0], [0]>} : vector<2x8x16xf32>, vector<2x8x16xf32>, vector<2x8x8xf32> -> vector<2x8x8xf32>
    "tpu.trace_stop"() : () -> ()
    %cst_30 = arith.constant 2.500000e-01 : f32
    %55 = vector.broadcast %cst_30 : f32 to vector<2x8x8xf32>
    %56 = arith.mulf %54, %55 : vector<2x8x8xf32>
    %cst_31 = arith.constant dense<0xFF800000> : vector<2x8xf32>
    %57 = vector.multi_reduction <maximumf>, %56, %cst_31 [2] : vector<2x8x8xf32> to vector<2x8xf32>
    %58 = vector.shape_cast %57 : vector<2x8xf32> to vector<2x8x1xf32>
    %59 = vector.broadcast %58 : vector<2x8x1xf32> to vector<2x8x8xf32>
    %60 = arith.subf %56, %59 : vector<2x8x8xf32>
    %61 = math.exp %60 : vector<2x8x8xf32>
    %cst_32 = arith.constant dense<0.000000e+00> : vector<2x8xf32>
    %62 = vector.multi_reduction <add>, %61, %cst_32 [2] : vector<2x8x8xf32> to vector<2x8xf32>
    %63 = vector.shape_cast %62 : vector<2x8xf32> to vector<2x8x1xf32>
    %64 = tpu.reciprocal %63 {approx = true} : vector<2x8x1xf32> -> vector<2x8x1xf32>
    %65 = vector.broadcast %64 : vector<2x8x1xf32> to vector<2x8x8xf32>
    %66 = arith.mulf %61, %65 : vector<2x8x8xf32>
    %c1 = arith.constant 1 : index
    %c0_33 = arith.constant 0 : index
    %c0_34 = arith.constant 0 : index
    %c0_35 = arith.constant 0 : index
    %67 = vector.load %arg77[%c1, %c0_33, %c0_34, %c0_35] : memref<4x2x8x8xf32, #tpu.memory_space<vmem>>, vector<1x2x8x8xf32>
    %68 = vector.shape_cast %67 : vector<1x2x8x8xf32> to vector<2x8x8xf32>
    %69 = vector.shape_cast %66 : vector<2x8x8xf32> to vector<1x2x8x8xf32>
    tpu.vector_store %arg77[%c1, %c0_33, %c0_34, %c0_35], %69 {strides = array<i32>} : memref<4x2x8x8xf32, #tpu.memory_space<vmem>>, vector<1x2x8x8xf32>,
    "tpu.trace_start"() <{level = 10 : i32, message = "bqk,bkd->bqd"}> : () -> ()
    %cst_36 = arith.constant dense<0.000000e+00> : vector<2x8x16xf32>
    %70 = tpu.matmul %66, %53, %cst_36 {dimension_numbers = #tpu.dot_dimension_numbers<[2], [1], [1], [2], [0, 0, 0, 1, 1, 2], [0], [0]>} : vector<2x8x8xf32>, vector<2x8x16xf32>, vector<2x8x16xf32> -> vector<2x8x16xf32>
    "tpu.trace_stop"() : () -> ()
    %71 = vector.shape_cast %70 : vector<2x8x16xf32> to vector<16x16xf32>
    %72 = vector.extract_strided_slice %21 {offsets = [16, 0], sizes = [16, 32], strides = [1, 1]} : vector<32x32xf32> to vector<16x32xf32>
    %cst_37 = arith.constant dense<0.000000e+00> : vector<16x32xf32>
    %73 = tpu.matmul %71, %72, %cst_37 {dimension_numbers = #tpu.dot_dimension_numbers<[1], [0], [0], [1], [0, 0, 1, 1], [], []>} : vector<16x16xf32>, vector<16x32xf32>, vector<16x32xf32> -> vector<16x32xf32>
    %74 = arith.addf %47, %73 : vector<16x32xf32>
    %c0_38 = arith.constant 0 : index
    %c0_39 = arith.constant 0 : index
    %75 = vector.load %arg47[%c0_38, %c0_39] : memref<1x32xf32, #tpu.memory_space<vmem>>, vector<1x32xf32>
    %76 = vector.broadcast %75 : vector<1x32xf32> to vector<16x32xf32>
    %77 = arith.addf %74, %76 : vector<16x32xf32>
    %78 = arith.addf %12, %77 : vector<16x32xf32>
    %cst_40 = arith.constant dense<0.000000e+00> : vector<16xf32>
    %79 = vector.multi_reduction <add>, %78, %cst_40 [1] : vector<16x32xf32> to vector<16xf32>
    %80 = vector.shape_cast %79 : vector<16xf32> to vector<16x1xf32>
    %cst_41 = arith.constant 3.200000e+01 : f32
    %81 = vector.broadcast %cst_41 : f32 to vector<16x1xf32>
    %82 = arith.divf %80, %81 : vector<16x1xf32>
    %83 = vector.broadcast %82 : vector<16x1xf32> to vector<16x32xf32>
    %84 = arith.subf %78, %83 : vector<16x32xf32>
    %85 = arith.mulf %84, %84 : vector<16x32xf32>
    %cst_42 = arith.constant dense<0.000000e+00> : vector<16xf32>
    %86 = vector.multi_reduction <add>, %85, %cst_42 [1] : vector<16x32xf32> to vector<16xf32>
    %87 = vector.shape_cast %86 : vector<16xf32> to vector<16x1xf32>
    %cst_43 = arith.constant 3.200000e+01 : f32
    %88 = vector.broadcast %cst_43 : f32 to vector<16x1xf32>
    %89 = arith.divf %87, %88 : vector<16x1xf32>
    %cst_44 = arith.constant 9.99999997E-7 : f32
    %90 = vector.broadcast %cst_44 : f32 to vector<16x1xf32>
    %91 = arith.addf %89, %90 : vector<16x1xf32>
    %92 = math.rsqrt %91 : vector<16x1xf32>
    %93 = vector.broadcast %92 : vector<16x1xf32> to vector<16x32xf32>
    %94 = arith.mulf %84, %93 : vector<16x32xf32>
    %c0_45 = arith.constant 0 : index
    %c0_46 = arith.constant 0 : index
    %95 = vector.load %arg49[%c0_45, %c0_46] : memref<1x32xf32, #tpu.memory_space<vmem>>, vector<1x32xf32>
    %96 = vector.broadcast %95 : vector<1x32xf32> to vector<16x32xf32>
    %97 = arith.mulf %94, %96 : vector<16x32xf32>
    %c0_47 = arith.constant 0 : index
    %c0_48 = arith.constant 0 : index
    %98 = vector.load %arg48[%c0_47, %c0_48] : memref<1x32xf32, #tpu.memory_space<vmem>>, vector<1x32xf32>
    %99 = vector.broadcast %98 : vector<1x32xf32> to vector<16x32xf32>
    %100 = arith.addf %97, %99 : vector<16x32xf32>
    %c0_49 = arith.constant 0 : index
    %c0_50 = arith.constant 0 : index
    %101 = vector.load %arg54[%c0_49, %c0_50] : memref<32x128xf32, #tpu.memory_space<vmem>>, vector<32x128xf32>
    %cst_51 = arith.constant dense<0.000000e+00> : vector<16x128xf32>
    %102 = tpu.matmul %100, %101, %cst_51 {dimension_numbers = #tpu.dot_dimension_numbers<[1], [0], [0], [1], [0, 0, 1, 1], [], []>} : vector<16x32xf32>, vector<32x128xf32>, vector<16x128xf32> -> vector<16x128xf32>
    %c0_52 = arith.constant 0 : index
    %c0_53 = arith.constant 0 : index
    %103 = vector.load %arg45[%c0_52, %c0_53] : memref<1x128xf32, #tpu.memory_space<vmem>>, vector<1x128xf32>
    %104 = vector.broadcast %103 : vector<1x128xf32> to vector<16x128xf32>
    %105 = arith.addf %102, %104 : vector<16x128xf32>
    %cst_54 = arith.constant 5.000000e-01 : f32
    %106 = vector.broadcast %cst_54 : f32 to vector<16x128xf32>
    %107 = arith.mulf %106, %105 : vector<16x128xf32>
    %cst_55 = arith.constant 0.707106769 : f32
    %108 = vector.broadcast %cst_55 : f32 to vector<16x128xf32>
    %109 = arith.mulf %105, %108 : vector<16x128xf32>
    %110 = math.erf %109 : vector<16x128xf32>
    %cst_56 = arith.constant 1.000000e+00 : f32
    %111 = vector.broadcast %cst_56 : f32 to vector<16x128xf32>
    %112 = arith.addf %111, %110 : vector<16x128xf32>
    %113 = arith.mulf %107, %112 : vector<16x128xf32>
    %c0_57 = arith.constant 0 : index
    %c0_58 = arith.constant 0 : index
    %114 = vector.load %arg55[%c0_57, %c0_58] : memref<128x32xf32, #tpu.memory_space<vmem>>, vector<128x32xf32>
    %cst_59 = arith.constant dense<0.000000e+00> : vector<16x32xf32>
    %115 = tpu.matmul %113, %114, %cst_59 {dimension_numbers = #tpu.dot_dimension_numbers<[1], [0], [0], [1], [0, 0, 1, 1], [], []>} : vector<16x128xf32>, vector<128x32xf32>, vector<16x32xf32> -> vector<16x32xf32>
    %c0_60 = arith.constant 0 : index
    %c0_61 = arith.constant 0 : index
    %116 = vector.load %arg46[%c0_60, %c0_61] : memref<1x32xf32, #tpu.memory_space<vmem>>, vector<1x32xf32>
    %117 = vector.broadcast %116 : vector<1x32xf32> to vector<16x32xf32>
    %118 = arith.addf %115, %117 : vector<16x32xf32>
    %119 = arith.addf %118, %100 : vector<16x32xf32>
    %cst_62 = arith.constant dense<0.000000e+00> : vector<16xf32>
    %120 = vector.multi_reduction <add>, %119, %cst_62 [1] : vector<16x32xf32> to vector<16xf32>
    %121 = vector.shape_cast %120 : vector<16xf32> to vector<16x1xf32>
    %cst_63 = arith.constant 3.200000e+01 : f32
    %122 = vector.broadcast %cst_63 : f32 to vector<16x1xf32>
    %123 = arith.divf %121, %122 : vector<16x1xf32>
    %124 = vector.broadcast %123 : vector<16x1xf32> to vector<16x32xf32>
    %125 = arith.subf %119, %124 : vector<16x32xf32>
    %126 = arith.mulf %125, %125 : vector<16x32xf32>
    %cst_64 = arith.constant dense<0.000000e+00> : vector<16xf32>
    %127 = vector.multi_reduction <add>, %126, %cst_64 [1] : vector<16x32xf32> to vector<16xf32>
    %128 = vector.shape_cast %127 : vector<16xf32> to vector<16x1xf32>
    %cst_65 = arith.constant 3.200000e+01 : f32
    %129 = vector.broadcast %cst_65 : f32 to vector<16x1xf32>
    %130 = arith.divf %128, %129 : vector<16x1xf32>
    %cst_66 = arith.constant 9.99999997E-7 : f32
    %131 = vector.broadcast %cst_66 : f32 to vector<16x1xf32>
    %132 = arith.addf %130, %131 : vector<16x1xf32>
    %133 = math.rsqrt %132 : vector<16x1xf32>
    %134 = vector.broadcast %133 : vector<16x1xf32> to vector<16x32xf32>
    %135 = arith.mulf %125, %134 : vector<16x32xf32>
    %c0_67 = arith.constant 0 : index
    %c0_68 = arith.constant 0 : index
    %136 = vector.load %arg51[%c0_67, %c0_68] : memref<1x32xf32, #tpu.memory_space<vmem>>, vector<1x32xf32>
    %137 = vector.broadcast %136 : vector<1x32xf32> to vector<16x32xf32>
    %138 = arith.mulf %135, %137 : vector<16x32xf32>
    %c0_69 = arith.constant 0 : index
    %c0_70 = arith.constant 0 : index
    %139 = vector.load %arg50[%c0_69, %c0_70] : memref<1x32xf32, #tpu.memory_space<vmem>>, vector<1x32xf32>
    %140 = vector.broadcast %139 : vector<1x32xf32> to vector<16x32xf32>
    %141 = arith.addf %138, %140 : vector<16x32xf32>
    %c0_71 = arith.constant 0 : index
    %c0_72 = arith.constant 0 : index
    %142 = vector.load %arg65[%c0_71, %c0_72] : memref<32x96xf32, #tpu.memory_space<vmem>>, vector<32x96xf32>
    %cst_73 = arith.constant dense<0.000000e+00> : vector<16x96xf32>
    %143 = tpu.matmul %141, %142, %cst_73 {dimension_numbers = #tpu.dot_dimension_numbers<[1], [0], [0], [1], [0, 0, 1, 1], [], []>} : vector<16x32xf32>, vector<32x96xf32>, vector<16x96xf32> -> vector<16x96xf32>
    %c0_74 = arith.constant 0 : index
    %c0_75 = arith.constant 0 : index
    %144 = vector.load %arg64[%c0_74, %c0_75] : memref<1x96xf32, #tpu.memory_space<vmem>>, vector<1x96xf32>
    %145 = vector.broadcast %144 : vector<1x96xf32> to vector<16x96xf32>
    %146 = arith.addf %143, %145 : vector<16x96xf32>
    %147 = vector.extract_strided_slice %146 {offsets = [0, 0], sizes = [16, 32], strides = [1, 1]} : vector<16x96xf32> to vector<16x32xf32>
    %148 = vector.extract_strided_slice %146 {offsets = [0, 32], sizes = [16, 32], strides = [1, 1]} : vector<16x96xf32> to vector<16x32xf32>
    %149 = vector.extract_strided_slice %146 {offsets = [0, 64], sizes = [16, 32], strides = [1, 1]} : vector<16x96xf32> to vector<16x32xf32>
    %c0_76 = arith.constant 0 : index
    %c0_77 = arith.constant 0 : index
    %150 = vector.load %arg68[%c0_76, %c0_77] : memref<32x32xf32, #tpu.memory_space<vmem>>, vector<32x32xf32>
    %151 = vector.extract_strided_slice %147 {offsets = [0, 0], sizes = [16, 16], strides = [1, 1]} : vector<16x32xf32> to vector<16x16xf32>
    %152 = vector.shape_cast %151 : vector<16x16xf32> to vector<2x8x16xf32>
    %153 = vector.extract_strided_slice %148 {offsets = [0, 0], sizes = [16, 16], strides = [1, 1]} : vector<16x32xf32> to vector<16x16xf32>
    %154 = vector.shape_cast %153 : vector<16x16xf32> to vector<2x8x16xf32>
    %155 = vector.extract_strided_slice %149 {offsets = [0, 0], sizes = [16, 16], strides = [1, 1]} : vector<16x32xf32> to vector<16x16xf32>
    %156 = vector.shape_cast %155 : vector<16x16xf32> to vector<2x8x16xf32>
    "tpu.trace_start"() <{level = 10 : i32, message = "bqd,bkd->bqk"}> : () -> ()
    %cst_78 = arith.constant dense<0.000000e+00> : vector<2x8x8xf32>
    %157 = tpu.matmul %152, %154, %cst_78 {dimension_numbers = #tpu.dot_dimension_numbers<[2], [2], [1], [1], [0, 0, 0, 1, 1, 1], [0], [0]>} : vector<2x8x16xf32>, vector<2x8x16xf32>, vector<2x8x8xf32> -> vector<2x8x8xf32>
    "tpu.trace_stop"() : () -> ()
    %cst_79 = arith.constant 2.500000e-01 : f32
    %158 = vector.broadcast %cst_79 : f32 to vector<2x8x8xf32>
    %159 = arith.mulf %157, %158 : vector<2x8x8xf32>
    %cst_80 = arith.constant dense<0xFF800000> : vector<2x8xf32>
    %160 = vector.multi_reduction <maximumf>, %159, %cst_80 [2] : vector<2x8x8xf32> to vector<2x8xf32>
    %161 = vector.shape_cast %160 : vector<2x8xf32> to vector<2x8x1xf32>
    %162 = vector.broadcast %161 : vector<2x8x1xf32> to vector<2x8x8xf32>
    %163 = arith.subf %159, %162 : vector<2x8x8xf32>
    %164 = math.exp %163 : vector<2x8x8xf32>
    %cst_81 = arith.constant dense<0.000000e+00> : vector<2x8xf32>
    %165 = vector.multi_reduction <add>, %164, %cst_81 [2] : vector<2x8x8xf32> to vector<2x8xf32>
    %166 = vector.shape_cast %165 : vector<2x8xf32> to vector<2x8x1xf32>
    %167 = tpu.reciprocal %166 {approx = true} : vector<2x8x1xf32> -> vector<2x8x1xf32>
    %168 = vector.broadcast %167 : vector<2x8x1xf32> to vector<2x8x8xf32>
    %169 = arith.mulf %164, %168 : vector<2x8x8xf32>
    %c2 = arith.constant 2 : index
    %c0_82 = arith.constant 0 : index
    %c0_83 = arith.constant 0 : index
    %c0_84 = arith.constant 0 : index
    %170 = vector.load %arg77[%c2, %c0_82, %c0_83, %c0_84] : memref<4x2x8x8xf32, #tpu.memory_space<vmem>>, vector<1x2x8x8xf32>
    %171 = vector.shape_cast %170 : vector<1x2x8x8xf32> to vector<2x8x8xf32>
    %172 = vector.shape_cast %169 : vector<2x8x8xf32> to vector<1x2x8x8xf32>
    tpu.vector_store %arg77[%c2, %c0_82, %c0_83, %c0_84], %172 {strides = array<i32>} : memref<4x2x8x8xf32, #tpu.memory_space<vmem>>, vector<1x2x8x8xf32>,
    "tpu.trace_start"() <{level = 10 : i32, message = "bqk,bkd->bqd"}> : () -> ()
    %cst_85 = arith.constant dense<0.000000e+00> : vector<2x8x16xf32>
    %173 = tpu.matmul %169, %156, %cst_85 {dimension_numbers = #tpu.dot_dimension_numbers<[2], [1], [1], [2], [0, 0, 0, 1, 1, 2], [0], [0]>} : vector<2x8x8xf32>, vector<2x8x16xf32>, vector<2x8x16xf32> -> vector<2x8x16xf32>
    "tpu.trace_stop"() : () -> ()
    %174 = vector.shape_cast %173 : vector<2x8x16xf32> to vector<16x16xf32>
    %175 = vector.extract_strided_slice %150 {offsets = [0, 0], sizes = [16, 32], strides = [1, 1]} : vector<32x32xf32> to vector<16x32xf32>
    %cst_86 = arith.constant dense<0.000000e+00> : vector<16x32xf32>
    %176 = tpu.matmul %174, %175, %cst_86 {dimension_numbers = #tpu.dot_dimension_numbers<[1], [0], [0], [1], [0, 0, 1, 1], [], []>} : vector<16x16xf32>, vector<16x32xf32>, vector<16x32xf32> -> vector<16x32xf32>
    %177 = vector.extract_strided_slice %147 {offsets = [0, 16], sizes = [16, 16], strides = [1, 1]} : vector<16x32xf32> to vector<16x16xf32>
    %178 = vector.shape_cast %177 : vector<16x16xf32> to vector<2x8x16xf32>
    %179 = vector.extract_strided_slice %148 {offsets = [0, 16], sizes = [16, 16], strides = [1, 1]} : vector<16x32xf32> to vector<16x16xf32>
    %180 = vector.shape_cast %179 : vector<16x16xf32> to vector<2x8x16xf32>
    %181 = vector.extract_strided_slice %149 {offsets = [0, 16], sizes = [16, 16], strides = [1, 1]} : vector<16x32xf32> to vector<16x16xf32>
    %182 = vector.shape_cast %181 : vector<16x16xf32> to vector<2x8x16xf32>
    "tpu.trace_start"() <{level = 10 : i32, message = "bqd,bkd->bqk"}> : () -> ()
    %cst_87 = arith.constant dense<0.000000e+00> : vector<2x8x8xf32>
    %183 = tpu.matmul %178, %180, %cst_87 {dimension_numbers = #tpu.dot_dimension_numbers<[2], [2], [1], [1], [0, 0, 0, 1, 1, 1], [0], [0]>} : vector<2x8x16xf32>, vector<2x8x16xf32>, vector<2x8x8xf32> -> vector<2x8x8xf32>
    "tpu.trace_stop"() : () -> ()
    %cst_88 = arith.constant 2.500000e-01 : f32
    %184 = vector.broadcast %cst_88 : f32 to vector<2x8x8xf32>
    %185 = arith.mulf %183, %184 : vector<2x8x8xf32>
    %cst_89 = arith.constant dense<0xFF800000> : vector<2x8xf32>
    %186 = vector.multi_reduction <maximumf>, %185, %cst_89 [2] : vector<2x8x8xf32> to vector<2x8xf32>
    %187 = vector.shape_cast %186 : vector<2x8xf32> to vector<2x8x1xf32>
    %188 = vector.broadcast %187 : vector<2x8x1xf32> to vector<2x8x8xf32>
    %189 = arith.subf %185, %188 : vector<2x8x8xf32>
    %190 = math.exp %189 : vector<2x8x8xf32>
    %cst_90 = arith.constant dense<0.000000e+00> : vector<2x8xf32>
    %191 = vector.multi_reduction <add>, %190, %cst_90 [2] : vector<2x8x8xf32> to vector<2x8xf32>
    %192 = vector.shape_cast %191 : vector<2x8xf32> to vector<2x8x1xf32>
    %193 = tpu.reciprocal %192 {approx = true} : vector<2x8x1xf32> -> vector<2x8x1xf32>
    %194 = vector.broadcast %193 : vector<2x8x1xf32> to vector<2x8x8xf32>
    %195 = arith.mulf %190, %194 : vector<2x8x8xf32>
    %c3 = arith.constant 3 : index
    %c0_91 = arith.constant 0 : index
    %c0_92 = arith.constant 0 : index
    %c0_93 = arith.constant 0 : index
    %196 = vector.load %arg77[%c3, %c0_91, %c0_92, %c0_93] : memref<4x2x8x8xf32, #tpu.memory_space<vmem>>, vector<1x2x8x8xf32>
    %197 = vector.shape_cast %196 : vector<1x2x8x8xf32> to vector<2x8x8xf32>
    %198 = vector.shape_cast %195 : vector<2x8x8xf32> to vector<1x2x8x8xf32>
    tpu.vector_store %arg77[%c3, %c0_91, %c0_92, %c0_93], %198 {strides = array<i32>} : memref<4x2x8x8xf32, #tpu.memory_space<vmem>>, vector<1x2x8x8xf32>,
    "tpu.trace_start"() <{level = 10 : i32, message = "bqk,bkd->bqd"}> : () -> ()
    %cst_94 = arith.constant dense<0.000000e+00> : vector<2x8x16xf32>
    %199 = tpu.matmul %195, %182, %cst_94 {dimension_numbers = #tpu.dot_dimension_numbers<[2], [1], [1], [2], [0, 0, 0, 1, 1, 2], [0], [0]>} : vector<2x8x8xf32>, vector<2x8x16xf32>, vector<2x8x16xf32> -> vector<2x8x16xf32>
    "tpu.trace_stop"() : () -> ()
    %200 = vector.shape_cast %199 : vector<2x8x16xf32> to vector<16x16xf32>
    %201 = vector.extract_strided_slice %150 {offsets = [16, 0], sizes = [16, 32], strides = [1, 1]} : vector<32x32xf32> to vector<16x32xf32>
    %cst_95 = arith.constant dense<0.000000e+00> : vector<16x32xf32>
    %202 = tpu.matmul %200, %201, %cst_95 {dimension_numbers = #tpu.dot_dimension_numbers<[1], [0], [0], [1], [0, 0, 1, 1], [], []>} : vector<16x16xf32>, vector<16x32xf32>, vector<16x32xf32> -> vector<16x32xf32>
    %203 = arith.addf %176, %202 : vector<16x32xf32>
    %c0_96 = arith.constant 0 : index
    %c0_97 = arith.constant 0 : index
    %204 = vector.load %arg59[%c0_96, %c0_97] : memref<1x32xf32, #tpu.memory_space<vmem>>, vector<1x32xf32>
    %205 = vector.broadcast %204 : vector<1x32xf32> to vector<16x32xf32>
    %206 = arith.addf %203, %205 : vector<16x32xf32>
    %207 = arith.addf %141, %206 : vector<16x32xf32>
    %cst_98 = arith.constant dense<0.000000e+00> : vector<16xf32>
    %208 = vector.multi_reduction <add>, %207, %cst_98 [1] : vector<16x32xf32> to vector<16xf32>
    %209 = vector.shape_cast %208 : vector<16xf32> to vector<16x1xf32>
    %cst_99 = arith.constant 3.200000e+01 : f32
    %210 = vector.broadcast %cst_99 : f32 to vector<16x1xf32>
    %211 = arith.divf %209, %210 : vector<16x1xf32>
    %212 = vector.broadcast %211 : vector<16x1xf32> to vector<16x32xf32>
    %213 = arith.subf %207, %212 : vector<16x32xf32>
    %214 = arith.mulf %213, %213 : vector<16x32xf32>
    %cst_100 = arith.constant dense<0.000000e+00> : vector<16xf32>
    %215 = vector.multi_reduction <add>, %214, %cst_100 [1] : vector<16x32xf32> to vector<16xf32>
    %216 = vector.shape_cast %215 : vector<16xf32> to vector<16x1xf32>
    %cst_101 = arith.constant 3.200000e+01 : f32
    %217 = vector.broadcast %cst_101 : f32 to vector<16x1xf32>
    %218 = arith.divf %216, %217 : vector<16x1xf32>
    %cst_102 = arith.constant 9.99999997E-7 : f32
    %219 = vector.broadcast %cst_102 : f32 to vector<16x1xf32>
    %220 = arith.addf %218, %219 : vector<16x1xf32>
    %221 = math.rsqrt %220 : vector<16x1xf32>
    %222 = vector.broadcast %221 : vector<16x1xf32> to vector<16x32xf32>
    %223 = arith.mulf %213, %222 : vector<16x32xf32>
    %c0_103 = arith.constant 0 : index
    %c0_104 = arith.constant 0 : index
    %224 = vector.load %arg61[%c0_103, %c0_104] : memref<1x32xf32, #tpu.memory_space<vmem>>, vector<1x32xf32>
    %225 = vector.broadcast %224 : vector<1x32xf32> to vector<16x32xf32>
    %226 = arith.mulf %223, %225 : vector<16x32xf32>
    %c0_105 = arith.constant 0 : index
    %c0_106 = arith.constant 0 : index
    %227 = vector.load %arg60[%c0_105, %c0_106] : memref<1x32xf32, #tpu.memory_space<vmem>>, vector<1x32xf32>
    %228 = vector.broadcast %227 : vector<1x32xf32> to vector<16x32xf32>
    %229 = arith.addf %226, %228 : vector<16x32xf32>
    %c0_107 = arith.constant 0 : index
    %c0_108 = arith.constant 0 : index
    %230 = vector.load %arg66[%c0_107, %c0_108] : memref<32x128xf32, #tpu.memory_space<vmem>>, vector<32x128xf32>
    %cst_109 = arith.constant dense<0.000000e+00> : vector<16x128xf32>
    %231 = tpu.matmul %229, %230, %cst_109 {dimension_numbers = #tpu.dot_dimension_numbers<[1], [0], [0], [1], [0, 0, 1, 1], [], []>} : vector<16x32xf32>, vector<32x128xf32>, vector<16x128xf32> -> vector<16x128xf32>
    %c0_110 = arith.constant 0 : index
    %c0_111 = arith.constant 0 : index
    %232 = vector.load %arg57[%c0_110, %c0_111] : memref<1x128xf32, #tpu.memory_space<vmem>>, vector<1x128xf32>
    %233 = vector.broadcast %232 : vector<1x128xf32> to vector<16x128xf32>
    %234 = arith.addf %231, %233 : vector<16x128xf32>
    %cst_112 = arith.constant 5.000000e-01 : f32
    %235 = vector.broadcast %cst_112 : f32 to vector<16x128xf32>
    %236 = arith.mulf %235, %234 : vector<16x128xf32>
    %cst_113 = arith.constant 0.707106769 : f32
    %237 = vector.broadcast %cst_113 : f32 to vector<16x128xf32>
    %238 = arith.mulf %234, %237 : vector<16x128xf32>
    %239 = math.erf %238 : vector<16x128xf32>
    %cst_114 = arith.constant 1.000000e+00 : f32
    %240 = vector.broadcast %cst_114 : f32 to vector<16x128xf32>
    %241 = arith.addf %240, %239 : vector<16x128xf32>
    %242 = arith.mulf %236, %241 : vector<16x128xf32>
    %c0_115 = arith.constant 0 : index
    %c0_116 = arith.constant 0 : index
    %243 = vector.load %arg67[%c0_115, %c0_116] : memref<128x32xf32, #tpu.memory_space<vmem>>, vector<128x32xf32>
    %cst_117 = arith.constant dense<0.000000e+00> : vector<16x32xf32>
    %244 = tpu.matmul %242, %243, %cst_117 {dimension_numbers = #tpu.dot_dimension_numbers<[1], [0], [0], [1], [0, 0, 1, 1], [], []>} : vector<16x128xf32>, vector<128x32xf32>, vector<16x32xf32> -> vector<16x32xf32>
    %c0_118 = arith.constant 0 : index
    %c0_119 = arith.constant 0 : index
    %245 = vector.load %arg58[%c0_118, %c0_119] : memref<1x32xf32, #tpu.memory_space<vmem>>, vector<1x32xf32>
    %246 = vector.broadcast %245 : vector<1x32xf32> to vector<16x32xf32>
    %247 = arith.addf %244, %246 : vector<16x32xf32>
    %248 = arith.addf %247, %229 : vector<16x32xf32>
    %cst_120 = arith.constant dense<0.000000e+00> : vector<16xf32>
    %249 = vector.multi_reduction <add>, %248, %cst_120 [1] : vector<16x32xf32> to vector<16xf32>
    %250 = vector.shape_cast %249 : vector<16xf32> to vector<16x1xf32>
    %cst_121 = arith.constant 3.200000e+01 : f32
    %251 = vector.broadcast %cst_121 : f32 to vector<16x1xf32>
    %252 = arith.divf %250, %251 : vector<16x1xf32>
    %253 = vector.broadcast %252 : vector<16x1xf32> to vector<16x32xf32>
    %254 = arith.subf %248, %253 : vector<16x32xf32>
    %255 = arith.mulf %254, %254 : vector<16x32xf32>
    %cst_122 = arith.constant dense<0.000000e+00> : vector<16xf32>
    %256 = vector.multi_reduction <add>, %255, %cst_122 [1] : vector<16x32xf32> to vector<16xf32>
    %257 = vector.shape_cast %256 : vector<16xf32> to vector<16x1xf32>
    %cst_123 = arith.constant 3.200000e+01 : f32
    %258 = vector.broadcast %cst_123 : f32 to vector<16x1xf32>
    %259 = arith.divf %257, %258 : vector<16x1xf32>
    %cst_124 = arith.constant 9.99999997E-7 : f32
    %260 = vector.broadcast %cst_124 : f32 to vector<16x1xf32>
    %261 = arith.addf %259, %260 : vector<16x1xf32>
    %262 = math.rsqrt %261 : vector<16x1xf32>
    %263 = vector.broadcast %262 : vector<16x1xf32> to vector<16x32xf32>
    %264 = arith.mulf %254, %263 : vector<16x32xf32>
    %c0_125 = arith.constant 0 : index
    %c0_126 = arith.constant 0 : index
    %265 = vector.load %arg63[%c0_125, %c0_126] : memref<1x32xf32, #tpu.memory_space<vmem>>, vector<1x32xf32>
    %266 = vector.broadcast %265 : vector<1x32xf32> to vector<16x32xf32>
    %267 = arith.mulf %264, %266 : vector<16x32xf32>
    %c0_127 = arith.constant 0 : index
    %c0_128 = arith.constant 0 : index
    %268 = vector.load %arg62[%c0_127, %c0_128] : memref<1x32xf32, #tpu.memory_space<vmem>>, vector<1x32xf32>
    %269 = vector.broadcast %268 : vector<1x32xf32> to vector<16x32xf32>
    %270 = arith.addf %267, %269 : vector<16x32xf32>
    %c0_129 = arith.constant 0 : index
    %c0_130 = arith.constant 0 : index
    %271 = vector.load %arg70[%c0_129, %c0_130] : memref<32x32xf32, #tpu.memory_space<vmem>>, vector<32x32xf32>
    %cst_131 = arith.constant dense<0.000000e+00> : vector<16x32xf32>
    %272 = tpu.matmul %270, %271, %cst_131 {dimension_numbers = #tpu.dot_dimension_numbers<[1], [0], [0], [1], [0, 0, 1, 1], [], []>} : vector<16x32xf32>, vector<32x32xf32>, vector<16x32xf32> -> vector<16x32xf32>
    %c0_132 = arith.constant 0 : index
    %c0_133 = arith.constant 0 : index
    %273 = vector.load %arg69[%c0_132, %c0_133] : memref<1x32xf32, #tpu.memory_space<vmem>>, vector<1x32xf32>
    %274 = vector.broadcast %273 : vector<1x32xf32> to vector<16x32xf32>
    %275 = arith.addf %272, %274 : vector<16x32xf32>
    %c0_134 = arith.constant 0 : index
    %c0_135 = arith.constant 0 : index
    %276 = vector.load %arg42[%c0_134, %c0_135] : memref<32x32xf32, #tpu.memory_space<vmem>>, vector<32x32xf32>
    %cst_136 = arith.constant dense<0.000000e+00> : vector<16x32xf32>
    %277 = tpu.matmul %275, %276, %cst_136 {dimension_numbers = #tpu.dot_dimension_numbers<[1], [0], [0], [1], [0, 0, 1, 1], [], []>} : vector<16x32xf32>, vector<32x32xf32>, vector<16x32xf32> -> vector<16x32xf32>
    %c0_137 = arith.constant 0 : index
    %c0_138 = arith.constant 0 : index
    %278 = vector.load %arg41[%c0_137, %c0_138] : memref<1x32xf32, #tpu.memory_space<vmem>>, vector<1x32xf32>
    %279 = vector.broadcast %278 : vector<1x32xf32> to vector<16x32xf32>
    %280 = arith.addf %277, %279 : vector<16x32xf32>
    %c0_139 = arith.constant 0 : index
    %c0_140 = arith.constant 0 : index
    %281 = vector.load %arg17[%c0_139, %c0_140] : memref<32x96xf32, #tpu.memory_space<vmem>>, vector<32x96xf32>
    %cst_141 = arith.constant dense<0.000000e+00> : vector<16x96xf32>
    %282 = tpu.matmul %280, %281, %cst_141 {dimension_numbers = #tpu.dot_dimension_numbers<[1], [0], [0], [1], [0, 0, 1, 1], [], []>} : vector<16x32xf32>, vector<32x96xf32>, vector<16x96xf32> -> vector<16x96xf32>
    %c0_142 = arith.constant 0 : index
    %c0_143 = arith.constant 0 : index
    %283 = vector.load %arg16[%c0_142, %c0_143] : memref<1x96xf32, #tpu.memory_space<vmem>>, vector<1x96xf32>
    %284 = vector.broadcast %283 : vector<1x96xf32> to vector<16x96xf32>
    %285 = arith.addf %282, %284 : vector<16x96xf32>
    %286 = vector.extract_strided_slice %285 {offsets = [0, 0], sizes = [16, 32], strides = [1, 1]} : vector<16x96xf32> to vector<16x32xf32>
    %287 = vector.extract_strided_slice %285 {offsets = [0, 32], sizes = [16, 32], strides = [1, 1]} : vector<16x96xf32> to vector<16x32xf32>
    %288 = vector.extract_strided_slice %285 {offsets = [0, 64], sizes = [16, 32], strides = [1, 1]} : vector<16x96xf32> to vector<16x32xf32>
    %c0_144 = arith.constant 0 : index
    %c0_145 = arith.constant 0 : index
    %289 = vector.load %arg18[%c0_144, %c0_145] : memref<32x32xf32, #tpu.memory_space<vmem>>, vector<32x32xf32>
    %290 = vector.extract_strided_slice %286 {offsets = [0, 0], sizes = [16, 16], strides = [1, 1]} : vector<16x32xf32> to vector<16x16xf32>
    %291 = vector.shape_cast %290 : vector<16x16xf32> to vector<2x8x16xf32>
    %292 = vector.extract_strided_slice %287 {offsets = [0, 0], sizes = [16, 16], strides = [1, 1]} : vector<16x32xf32> to vector<16x16xf32>
    %293 = vector.shape_cast %292 : vector<16x16xf32> to vector<2x8x16xf32>
    %294 = vector.extract_strided_slice %288 {offsets = [0, 0], sizes = [16, 16], strides = [1, 1]} : vector<16x32xf32> to vector<16x16xf32>
    %295 = vector.shape_cast %294 : vector<16x16xf32> to vector<2x8x16xf32>
    "tpu.trace_start"() <{level = 10 : i32, message = "bqd,bkd->bqk"}> : () -> ()
    %cst_146 = arith.constant dense<0.000000e+00> : vector<2x8x8xf32>
    %296 = tpu.matmul %291, %293, %cst_146 {dimension_numbers = #tpu.dot_dimension_numbers<[2], [2], [1], [1], [0, 0, 0, 1, 1, 1], [0], [0]>} : vector<2x8x16xf32>, vector<2x8x16xf32>, vector<2x8x8xf32> -> vector<2x8x8xf32>
    "tpu.trace_stop"() : () -> ()
    %cst_147 = arith.constant 2.500000e-01 : f32
    %297 = vector.broadcast %cst_147 : f32 to vector<2x8x8xf32>
    %298 = arith.mulf %296, %297 : vector<2x8x8xf32>
    %cst_148 = arith.constant dense<0xFF800000> : vector<2x8xf32>
    %299 = vector.multi_reduction <maximumf>, %298, %cst_148 [2] : vector<2x8x8xf32> to vector<2x8xf32>
    %300 = vector.shape_cast %299 : vector<2x8xf32> to vector<2x8x1xf32>
    %301 = vector.broadcast %300 : vector<2x8x1xf32> to vector<2x8x8xf32>
    %302 = arith.subf %298, %301 : vector<2x8x8xf32>
    %303 = math.exp %302 : vector<2x8x8xf32>
    %cst_149 = arith.constant dense<0.000000e+00> : vector<2x8xf32>
    %304 = vector.multi_reduction <add>, %303, %cst_149 [2] : vector<2x8x8xf32> to vector<2x8xf32>
    %305 = vector.shape_cast %304 : vector<2x8xf32> to vector<2x8x1xf32>
    %306 = tpu.reciprocal %305 {approx = true} : vector<2x8x1xf32> -> vector<2x8x1xf32>
    %307 = vector.broadcast %306 : vector<2x8x1xf32> to vector<2x8x8xf32>
    %308 = arith.mulf %303, %307 : vector<2x8x8xf32>
    %c0_150 = arith.constant 0 : index
    %c0_151 = arith.constant 0 : index
    %c0_152 = arith.constant 0 : index
    %c0_153 = arith.constant 0 : index
    %309 = vector.load %arg78[%c0_150, %c0_151, %c0_152, %c0_153] : memref<4x2x8x8xf32, #tpu.memory_space<vmem>>, vector<1x2x8x8xf32>
    %310 = vector.shape_cast %309 : vector<1x2x8x8xf32> to vector<2x8x8xf32>
    %311 = vector.shape_cast %308 : vector<2x8x8xf32> to vector<1x2x8x8xf32>
    tpu.vector_store %arg78[%c0_150, %c0_151, %c0_152, %c0_153], %311 {strides = array<i32>} : memref<4x2x8x8xf32, #tpu.memory_space<vmem>>, vector<1x2x8x8xf32>,
    "tpu.trace_start"() <{level = 10 : i32, message = "bqk,bkd->bqd"}> : () -> ()
    %cst_154 = arith.constant dense<0.000000e+00> : vector<2x8x16xf32>
    %312 = tpu.matmul %308, %295, %cst_154 {dimension_numbers = #tpu.dot_dimension_numbers<[2], [1], [1], [2], [0, 0, 0, 1, 1, 2], [0], [0]>} : vector<2x8x8xf32>, vector<2x8x16xf32>, vector<2x8x16xf32> -> vector<2x8x16xf32>
    "tpu.trace_stop"() : () -> ()
    %313 = vector.shape_cast %312 : vector<2x8x16xf32> to vector<16x16xf32>
    %314 = vector.extract_strided_slice %289 {offsets = [0, 0], sizes = [16, 32], strides = [1, 1]} : vector<32x32xf32> to vector<16x32xf32>
    %cst_155 = arith.constant dense<0.000000e+00> : vector<16x32xf32>
    %315 = tpu.matmul %313, %314, %cst_155 {dimension_numbers = #tpu.dot_dimension_numbers<[1], [0], [0], [1], [0, 0, 1, 1], [], []>} : vector<16x16xf32>, vector<16x32xf32>, vector<16x32xf32> -> vector<16x32xf32>
    %316 = vector.extract_strided_slice %286 {offsets = [0, 16], sizes = [16, 16], strides = [1, 1]} : vector<16x32xf32> to vector<16x16xf32>
    %317 = vector.shape_cast %316 : vector<16x16xf32> to vector<2x8x16xf32>
    %318 = vector.extract_strided_slice %287 {offsets = [0, 16], sizes = [16, 16], strides = [1, 1]} : vector<16x32xf32> to vector<16x16xf32>
    %319 = vector.shape_cast %318 : vector<16x16xf32> to vector<2x8x16xf32>
    %320 = vector.extract_strided_slice %288 {offsets = [0, 16], sizes = [16, 16], strides = [1, 1]} : vector<16x32xf32> to vector<16x16xf32>
    %321 = vector.shape_cast %320 : vector<16x16xf32> to vector<2x8x16xf32>
    "tpu.trace_start"() <{level = 10 : i32, message = "bqd,bkd->bqk"}> : () -> ()
    %cst_156 = arith.constant dense<0.000000e+00> : vector<2x8x8xf32>
    %322 = tpu.matmul %317, %319, %cst_156 {dimension_numbers = #tpu.dot_dimension_numbers<[2], [2], [1], [1], [0, 0, 0, 1, 1, 1], [0], [0]>} : vector<2x8x16xf32>, vector<2x8x16xf32>, vector<2x8x8xf32> -> vector<2x8x8xf32>
    "tpu.trace_stop"() : () -> ()
    %cst_157 = arith.constant 2.500000e-01 : f32
    %323 = vector.broadcast %cst_157 : f32 to vector<2x8x8xf32>
    %324 = arith.mulf %322, %323 : vector<2x8x8xf32>
    %cst_158 = arith.constant dense<0xFF800000> : vector<2x8xf32>
    %325 = vector.multi_reduction <maximumf>, %324, %cst_158 [2] : vector<2x8x8xf32> to vector<2x8xf32>
    %326 = vector.shape_cast %325 : vector<2x8xf32> to vector<2x8x1xf32>
    %327 = vector.broadcast %326 : vector<2x8x1xf32> to vector<2x8x8xf32>
    %328 = arith.subf %324, %327 : vector<2x8x8xf32>
    %329 = math.exp %328 : vector<2x8x8xf32>
    %cst_159 = arith.constant dense<0.000000e+00> : vector<2x8xf32>
    %330 = vector.multi_reduction <add>, %329, %cst_159 [2] : vector<2x8x8xf32> to vector<2x8xf32>
    %331 = vector.shape_cast %330 : vector<2x8xf32> to vector<2x8x1xf32>
    %332 = tpu.reciprocal %331 {approx = true} : vector<2x8x1xf32> -> vector<2x8x1xf32>
    %333 = vector.broadcast %332 : vector<2x8x1xf32> to vector<2x8x8xf32>
    %334 = arith.mulf %329, %333 : vector<2x8x8xf32>
    %c1_160 = arith.constant 1 : index
    %c0_161 = arith.constant 0 : index
    %c0_162 = arith.constant 0 : index
    %c0_163 = arith.constant 0 : index
    %335 = vector.load %arg78[%c1_160, %c0_161, %c0_162, %c0_163] : memref<4x2x8x8xf32, #tpu.memory_space<vmem>>, vector<1x2x8x8xf32>
    %336 = vector.shape_cast %335 : vector<1x2x8x8xf32> to vector<2x8x8xf32>
    %337 = vector.shape_cast %334 : vector<2x8x8xf32> to vector<1x2x8x8xf32>
    tpu.vector_store %arg78[%c1_160, %c0_161, %c0_162, %c0_163], %337 {strides = array<i32>} : memref<4x2x8x8xf32, #tpu.memory_space<vmem>>, vector<1x2x8x8xf32>,
    "tpu.trace_start"() <{level = 10 : i32, message = "bqk,bkd->bqd"}> : () -> ()
    %cst_164 = arith.constant dense<0.000000e+00> : vector<2x8x16xf32>
    %338 = tpu.matmul %334, %321, %cst_164 {dimension_numbers = #tpu.dot_dimension_numbers<[2], [1], [1], [2], [0, 0, 0, 1, 1, 2], [0], [0]>} : vector<2x8x8xf32>, vector<2x8x16xf32>, vector<2x8x16xf32> -> vector<2x8x16xf32>
    "tpu.trace_stop"() : () -> ()
    %339 = vector.shape_cast %338 : vector<2x8x16xf32> to vector<16x16xf32>
    %340 = vector.extract_strided_slice %289 {offsets = [16, 0], sizes = [16, 32], strides = [1, 1]} : vector<32x32xf32> to vector<16x32xf32>
    %cst_165 = arith.constant dense<0.000000e+00> : vector<16x32xf32>
    %341 = tpu.matmul %339, %340, %cst_165 {dimension_numbers = #tpu.dot_dimension_numbers<[1], [0], [0], [1], [0, 0, 1, 1], [], []>} : vector<16x16xf32>, vector<16x32xf32>, vector<16x32xf32> -> vector<16x32xf32>
    %342 = arith.addf %315, %341 : vector<16x32xf32>
    %c0_166 = arith.constant 0 : index
    %c0_167 = arith.constant 0 : index
    %343 = vector.load %arg15[%c0_166, %c0_167] : memref<1x32xf32, #tpu.memory_space<vmem>>, vector<1x32xf32>
    %344 = vector.broadcast %343 : vector<1x32xf32> to vector<16x32xf32>
    %345 = arith.addf %342, %344 : vector<16x32xf32>
    %346 = arith.addf %280, %345 : vector<16x32xf32>
    %cst_168 = arith.constant dense<0.000000e+00> : vector<16xf32>
    %347 = vector.multi_reduction <add>, %346, %cst_168 [1] : vector<16x32xf32> to vector<16xf32>
    %348 = vector.shape_cast %347 : vector<16xf32> to vector<16x1xf32>
    %cst_169 = arith.constant 3.200000e+01 : f32
    %349 = vector.broadcast %cst_169 : f32 to vector<16x1xf32>
    %350 = arith.divf %348, %349 : vector<16x1xf32>
    %351 = vector.broadcast %350 : vector<16x1xf32> to vector<16x32xf32>
    %352 = arith.subf %346, %351 : vector<16x32xf32>
    %353 = arith.mulf %352, %352 : vector<16x32xf32>
    %cst_170 = arith.constant dense<0.000000e+00> : vector<16xf32>
    %354 = vector.multi_reduction <add>, %353, %cst_170 [1] : vector<16x32xf32> to vector<16xf32>
    %355 = vector.shape_cast %354 : vector<16xf32> to vector<16x1xf32>
    %cst_171 = arith.constant 3.200000e+01 : f32
    %356 = vector.broadcast %cst_171 : f32 to vector<16x1xf32>
    %357 = arith.divf %355, %356 : vector<16x1xf32>
    %cst_172 = arith.constant 9.99999997E-7 : f32
    %358 = vector.broadcast %cst_172 : f32 to vector<16x1xf32>
    %359 = arith.addf %357, %358 : vector<16x1xf32>
    %360 = math.rsqrt %359 : vector<16x1xf32>
    %361 = vector.broadcast %360 : vector<16x1xf32> to vector<16x32xf32>
    %362 = arith.mulf %352, %361 : vector<16x32xf32>
    %c0_173 = arith.constant 0 : index
    %c0_174 = arith.constant 0 : index
    %363 = vector.load %arg10[%c0_173, %c0_174] : memref<1x32xf32, #tpu.memory_space<vmem>>, vector<1x32xf32>
    %364 = vector.broadcast %363 : vector<1x32xf32> to vector<16x32xf32>
    %365 = arith.mulf %362, %364 : vector<16x32xf32>
    %c0_175 = arith.constant 0 : index
    %c0_176 = arith.constant 0 : index
    %366 = vector.load %arg9[%c0_175, %c0_176] : memref<1x32xf32, #tpu.memory_space<vmem>>, vector<1x32xf32>
    %367 = vector.broadcast %366 : vector<1x32xf32> to vector<16x32xf32>
    %368 = arith.addf %365, %367 : vector<16x32xf32>
    %c0_177 = arith.constant 0 : index
    %c0_178 = arith.constant 0 : index
    %369 = vector.load %arg7[%c0_177, %c0_178] : memref<32x32xf32, #tpu.memory_space<vmem>>, vector<32x32xf32>
    %cst_179 = arith.constant dense<0.000000e+00> : vector<16x32xf32>
    %370 = tpu.matmul %368, %369, %cst_179 {dimension_numbers = #tpu.dot_dimension_numbers<[1], [0], [0], [1], [0, 0, 1, 1], [], []>} : vector<16x32xf32>, vector<32x32xf32>, vector<16x32xf32> -> vector<16x32xf32>
    %c0_180 = arith.constant 0 : index
    %c0_181 = arith.constant 0 : index
    %371 = vector.load %arg6[%c0_180, %c0_181] : memref<1x32xf32, #tpu.memory_space<vmem>>, vector<1x32xf32>
    %372 = vector.broadcast %371 : vector<1x32xf32> to vector<16x32xf32>
    %373 = arith.addf %370, %372 : vector<16x32xf32>
    %c0_182 = arith.constant 0 : index
    %c0_183 = arith.constant 0 : index
    %374 = vector.load %arg5[%c0_182, %c0_183] : memref<32x64xf32, #tpu.memory_space<vmem>>, vector<32x64xf32>
    %cst_184 = arith.constant dense<0.000000e+00> : vector<16x64xf32>
    %375 = tpu.matmul %280, %374, %cst_184 {dimension_numbers = #tpu.dot_dimension_numbers<[1], [0], [0], [1], [0, 0, 1, 1], [], []>} : vector<16x32xf32>, vector<32x64xf32>, vector<16x64xf32> -> vector<16x64xf32>
    %c0_185 = arith.constant 0 : index
    %c0_186 = arith.constant 0 : index
    %376 = vector.load %arg4[%c0_185, %c0_186] : memref<1x64xf32, #tpu.memory_space<vmem>>, vector<1x64xf32>
    %377 = vector.broadcast %376 : vector<1x64xf32> to vector<16x64xf32>
    %378 = arith.addf %375, %377 : vector<16x64xf32>
    %379 = vector.extract_strided_slice %378 {offsets = [0, 0], sizes = [16, 32], strides = [1, 1]} : vector<16x64xf32> to vector<16x32xf32>
    %380 = vector.extract_strided_slice %378 {offsets = [0, 32], sizes = [16, 32], strides = [1, 1]} : vector<16x64xf32> to vector<16x32xf32>
    %c0_187 = arith.constant 0 : index
    %c0_188 = arith.constant 0 : index
    %381 = vector.load %arg8[%c0_187, %c0_188] : memref<32x32xf32, #tpu.memory_space<vmem>>, vector<32x32xf32>
    %382 = vector.extract_strided_slice %373 {offsets = [0, 0], sizes = [16, 16], strides = [1, 1]} : vector<16x32xf32> to vector<16x16xf32>
    %383 = vector.shape_cast %382 : vector<16x16xf32> to vector<2x8x16xf32>
    %384 = vector.extract_strided_slice %379 {offsets = [0, 0], sizes = [16, 16], strides = [1, 1]} : vector<16x32xf32> to vector<16x16xf32>
    %385 = vector.shape_cast %384 : vector<16x16xf32> to vector<2x8x16xf32>
    %386 = vector.extract_strided_slice %380 {offsets = [0, 0], sizes = [16, 16], strides = [1, 1]} : vector<16x32xf32> to vector<16x16xf32>
    %387 = vector.shape_cast %386 : vector<16x16xf32> to vector<2x8x16xf32>
    "tpu.trace_start"() <{level = 10 : i32, message = "bqd,bkd->bqk"}> : () -> ()
    %cst_189 = arith.constant dense<0.000000e+00> : vector<2x8x8xf32>
    %388 = tpu.matmul %383, %385, %cst_189 {dimension_numbers = #tpu.dot_dimension_numbers<[2], [2], [1], [1], [0, 0, 0, 1, 1, 1], [0], [0]>} : vector<2x8x16xf32>, vector<2x8x16xf32>, vector<2x8x8xf32> -> vector<2x8x8xf32>
    "tpu.trace_stop"() : () -> ()
    %cst_190 = arith.constant 2.500000e-01 : f32
    %389 = vector.broadcast %cst_190 : f32 to vector<2x8x8xf32>
    %390 = arith.mulf %388, %389 : vector<2x8x8xf32>
    %cst_191 = arith.constant dense<0xFF800000> : vector<2x8xf32>
    %391 = vector.multi_reduction <maximumf>, %390, %cst_191 [2] : vector<2x8x8xf32> to vector<2x8xf32>
    %392 = vector.shape_cast %391 : vector<2x8xf32> to vector<2x8x1xf32>
    %393 = vector.broadcast %392 : vector<2x8x1xf32> to vector<2x8x8xf32>
    %394 = arith.subf %390, %393 : vector<2x8x8xf32>
    %395 = math.exp %394 : vector<2x8x8xf32>
    %cst_192 = arith.constant dense<0.000000e+00> : vector<2x8xf32>
    %396 = vector.multi_reduction <add>, %395, %cst_192 [2] : vector<2x8x8xf32> to vector<2x8xf32>
    %397 = vector.shape_cast %396 : vector<2x8xf32> to vector<2x8x1xf32>
    %398 = tpu.reciprocal %397 {approx = true} : vector<2x8x1xf32> -> vector<2x8x1xf32>
    %399 = vector.broadcast %398 : vector<2x8x1xf32> to vector<2x8x8xf32>
    %400 = arith.mulf %395, %399 : vector<2x8x8xf32>
    %c0_193 = arith.constant 0 : index
    %c0_194 = arith.constant 0 : index
    %c0_195 = arith.constant 0 : index
    %c0_196 = arith.constant 0 : index
    %401 = vector.load %arg79[%c0_193, %c0_194, %c0_195, %c0_196] : memref<4x2x8x8xf32, #tpu.memory_space<vmem>>, vector<1x2x8x8xf32>
    %402 = vector.shape_cast %401 : vector<1x2x8x8xf32> to vector<2x8x8xf32>
    %403 = vector.shape_cast %400 : vector<2x8x8xf32> to vector<1x2x8x8xf32>
    tpu.vector_store %arg79[%c0_193, %c0_194, %c0_195, %c0_196], %403 {strides = array<i32>} : memref<4x2x8x8xf32, #tpu.memory_space<vmem>>, vector<1x2x8x8xf32>,
    "tpu.trace_start"() <{level = 10 : i32, message = "bqk,bkd->bqd"}> : () -> ()
    %cst_197 = arith.constant dense<0.000000e+00> : vector<2x8x16xf32>
    %404 = tpu.matmul %400, %387, %cst_197 {dimension_numbers = #tpu.dot_dimension_numbers<[2], [1], [1], [2], [0, 0, 0, 1, 1, 2], [0], [0]>} : vector<2x8x8xf32>, vector<2x8x16xf32>, vector<2x8x16xf32> -> vector<2x8x16xf32>
    "tpu.trace_stop"() : () -> ()
    %405 = vector.shape_cast %404 : vector<2x8x16xf32> to vector<16x16xf32>
    %406 = vector.extract_strided_slice %381 {offsets = [0, 0], sizes = [16, 32], strides = [1, 1]} : vector<32x32xf32> to vector<16x32xf32>
    %cst_198 = arith.constant dense<0.000000e+00> : vector<16x32xf32>
    %407 = tpu.matmul %405, %406, %cst_198 {dimension_numbers = #tpu.dot_dimension_numbers<[1], [0], [0], [1], [0, 0, 1, 1], [], []>} : vector<16x16xf32>, vector<16x32xf32>, vector<16x32xf32> -> vector<16x32xf32>
    %408 = vector.extract_strided_slice %373 {offsets = [0, 16], sizes = [16, 16], strides = [1, 1]} : vector<16x32xf32> to vector<16x16xf32>
    %409 = vector.shape_cast %408 : vector<16x16xf32> to vector<2x8x16xf32>
    %410 = vector.extract_strided_slice %379 {offsets = [0, 16], sizes = [16, 16], strides = [1, 1]} : vector<16x32xf32> to vector<16x16xf32>
    %411 = vector.shape_cast %410 : vector<16x16xf32> to vector<2x8x16xf32>
    %412 = vector.extract_strided_slice %380 {offsets = [0, 16], sizes = [16, 16], strides = [1, 1]} : vector<16x32xf32> to vector<16x16xf32>
    %413 = vector.shape_cast %412 : vector<16x16xf32> to vector<2x8x16xf32>
    "tpu.trace_start"() <{level = 10 : i32, message = "bqd,bkd->bqk"}> : () -> ()
    %cst_199 = arith.constant dense<0.000000e+00> : vector<2x8x8xf32>
    %414 = tpu.matmul %409, %411, %cst_199 {dimension_numbers = #tpu.dot_dimension_numbers<[2], [2], [1], [1], [0, 0, 0, 1, 1, 1], [0], [0]>} : vector<2x8x16xf32>, vector<2x8x16xf32>, vector<2x8x8xf32> -> vector<2x8x8xf32>
    "tpu.trace_stop"() : () -> ()
    %cst_200 = arith.constant 2.500000e-01 : f32
    %415 = vector.broadcast %cst_200 : f32 to vector<2x8x8xf32>
    %416 = arith.mulf %414, %415 : vector<2x8x8xf32>
    %cst_201 = arith.constant dense<0xFF800000> : vector<2x8xf32>
    %417 = vector.multi_reduction <maximumf>, %416, %cst_201 [2] : vector<2x8x8xf32> to vector<2x8xf32>
    %418 = vector.shape_cast %417 : vector<2x8xf32> to vector<2x8x1xf32>
    %419 = vector.broadcast %418 : vector<2x8x1xf32> to vector<2x8x8xf32>
    %420 = arith.subf %416, %419 : vector<2x8x8xf32>
    %421 = math.exp %420 : vector<2x8x8xf32>
    %cst_202 = arith.constant dense<0.000000e+00> : vector<2x8xf32>
    %422 = vector.multi_reduction <add>, %421, %cst_202 [2] : vector<2x8x8xf32> to vector<2x8xf32>
    %423 = vector.shape_cast %422 : vector<2x8xf32> to vector<2x8x1xf32>
    %424 = tpu.reciprocal %423 {approx = true} : vector<2x8x1xf32> -> vector<2x8x1xf32>
    %425 = vector.broadcast %424 : vector<2x8x1xf32> to vector<2x8x8xf32>
    %426 = arith.mulf %421, %425 : vector<2x8x8xf32>
    %c1_203 = arith.constant 1 : index
    %c0_204 = arith.constant 0 : index
    %c0_205 = arith.constant 0 : index
    %c0_206 = arith.constant 0 : index
    %427 = vector.load %arg79[%c1_203, %c0_204, %c0_205, %c0_206] : memref<4x2x8x8xf32, #tpu.memory_space<vmem>>, vector<1x2x8x8xf32>
    %428 = vector.shape_cast %427 : vector<1x2x8x8xf32> to vector<2x8x8xf32>
    %429 = vector.shape_cast %426 : vector<2x8x8xf32> to vector<1x2x8x8xf32>
    tpu.vector_store %arg79[%c1_203, %c0_204, %c0_205, %c0_206], %429 {strides = array<i32>} : memref<4x2x8x8xf32, #tpu.memory_space<vmem>>, vector<1x2x8x8xf32>,
    "tpu.trace_start"() <{level = 10 : i32, message = "bqk,bkd->bqd"}> : () -> ()
    %cst_207 = arith.constant dense<0.000000e+00> : vector<2x8x16xf32>
    %430 = tpu.matmul %426, %413, %cst_207 {dimension_numbers = #tpu.dot_dimension_numbers<[2], [1], [1], [2], [0, 0, 0, 1, 1, 2], [0], [0]>} : vector<2x8x8xf32>, vector<2x8x16xf32>, vector<2x8x16xf32> -> vector<2x8x16xf32>
    "tpu.trace_stop"() : () -> ()
    %431 = vector.shape_cast %430 : vector<2x8x16xf32> to vector<16x16xf32>
    %432 = vector.extract_strided_slice %381 {offsets = [16, 0], sizes = [16, 32], strides = [1, 1]} : vector<32x32xf32> to vector<16x32xf32>
    %cst_208 = arith.constant dense<0.000000e+00> : vector<16x32xf32>
    %433 = tpu.matmul %431, %432, %cst_208 {dimension_numbers = #tpu.dot_dimension_numbers<[1], [0], [0], [1], [0, 0, 1, 1], [], []>} : vector<16x16xf32>, vector<16x32xf32>, vector<16x32xf32> -> vector<16x32xf32>
    %434 = arith.addf %407, %433 : vector<16x32xf32>
    %c0_209 = arith.constant 0 : index
    %c0_210 = arith.constant 0 : index
    %435 = vector.load %arg3[%c0_209, %c0_210] : memref<1x32xf32, #tpu.memory_space<vmem>>, vector<1x32xf32>
    %436 = vector.broadcast %435 : vector<1x32xf32> to vector<16x32xf32>
    %437 = arith.addf %434, %436 : vector<16x32xf32>
    %438 = arith.addf %368, %437 : vector<16x32xf32>
    %cst_211 = arith.constant dense<0.000000e+00> : vector<16xf32>
    %439 = vector.multi_reduction <add>, %438, %cst_211 [1] : vector<16x32xf32> to vector<16xf32>
    %440 = vector.shape_cast %439 : vector<16xf32> to vector<16x1xf32>
    %cst_212 = arith.constant 3.200000e+01 : f32
    %441 = vector.broadcast %cst_212 : f32 to vector<16x1xf32>
    %442 = arith.divf %440, %441 : vector<16x1xf32>
    %443 = vector.broadcast %442 : vector<16x1xf32> to vector<16x32xf32>
    %444 = arith.subf %438, %443 : vector<16x32xf32>
    %445 = arith.mulf %444, %444 : vector<16x32xf32>
    %cst_213 = arith.constant dense<0.000000e+00> : vector<16xf32>
    %446 = vector.multi_reduction <add>, %445, %cst_213 [1] : vector<16x32xf32> to vector<16xf32>
    %447 = vector.shape_cast %446 : vector<16xf32> to vector<16x1xf32>
    %cst_214 = arith.constant 3.200000e+01 : f32
    %448 = vector.broadcast %cst_214 : f32 to vector<16x1xf32>
    %449 = arith.divf %447, %448 : vector<16x1xf32>
    %cst_215 = arith.constant 9.99999997E-7 : f32
    %450 = vector.broadcast %cst_215 : f32 to vector<16x1xf32>
    %451 = arith.addf %449, %450 : vector<16x1xf32>
    %452 = math.rsqrt %451 : vector<16x1xf32>
    %453 = vector.broadcast %452 : vector<16x1xf32> to vector<16x32xf32>
    %454 = arith.mulf %444, %453 : vector<16x32xf32>
    %c0_216 = arith.constant 0 : index
    %c0_217 = arith.constant 0 : index
    %455 = vector.load %arg12[%c0_216, %c0_217] : memref<1x32xf32, #tpu.memory_space<vmem>>, vector<1x32xf32>
    %456 = vector.broadcast %455 : vector<1x32xf32> to vector<16x32xf32>
    %457 = arith.mulf %454, %456 : vector<16x32xf32>
    %c0_218 = arith.constant 0 : index
    %c0_219 = arith.constant 0 : index
    %458 = vector.load %arg11[%c0_218, %c0_219] : memref<1x32xf32, #tpu.memory_space<vmem>>, vector<1x32xf32>
    %459 = vector.broadcast %458 : vector<1x32xf32> to vector<16x32xf32>
    %460 = arith.addf %457, %459 : vector<16x32xf32>
    %c0_220 = arith.constant 0 : index
    %c0_221 = arith.constant 0 : index
    %461 = vector.load %arg19[%c0_220, %c0_221] : memref<32x128xf32, #tpu.memory_space<vmem>>, vector<32x128xf32>
    %cst_222 = arith.constant dense<0.000000e+00> : vector<16x128xf32>
    %462 = tpu.matmul %460, %461, %cst_222 {dimension_numbers = #tpu.dot_dimension_numbers<[1], [0], [0], [1], [0, 0, 1, 1], [], []>} : vector<16x32xf32>, vector<32x128xf32>, vector<16x128xf32> -> vector<16x128xf32>
    %c0_223 = arith.constant 0 : index
    %c0_224 = arith.constant 0 : index
    %463 = vector.load %arg1[%c0_223, %c0_224] : memref<1x128xf32, #tpu.memory_space<vmem>>, vector<1x128xf32>
    %464 = vector.broadcast %463 : vector<1x128xf32> to vector<16x128xf32>
    %465 = arith.addf %462, %464 : vector<16x128xf32>
    %cst_225 = arith.constant 5.000000e-01 : f32
    %466 = vector.broadcast %cst_225 : f32 to vector<16x128xf32>
    %467 = arith.mulf %466, %465 : vector<16x128xf32>
    %cst_226 = arith.constant 0.707106769 : f32
    %468 = vector.broadcast %cst_226 : f32 to vector<16x128xf32>
    %469 = arith.mulf %465, %468 : vector<16x128xf32>
    %470 = math.erf %469 : vector<16x128xf32>
    %cst_227 = arith.constant 1.000000e+00 : f32
    %471 = vector.broadcast %cst_227 : f32 to vector<16x128xf32>
    %472 = arith.addf %471, %470 : vector<16x128xf32>
    %473 = arith.mulf %467, %472 : vector<16x128xf32>
    %c0_228 = arith.constant 0 : index
    %c0_229 = arith.constant 0 : index
    %474 = vector.load %arg20[%c0_228, %c0_229] : memref<128x32xf32, #tpu.memory_space<vmem>>, vector<128x32xf32>
    %cst_230 = arith.constant dense<0.000000e+00> : vector<16x32xf32>
    %475 = tpu.matmul %473, %474, %cst_230 {dimension_numbers = #tpu.dot_dimension_numbers<[1], [0], [0], [1], [0, 0, 1, 1], [], []>} : vector<16x128xf32>, vector<128x32xf32>, vector<16x32xf32> -> vector<16x32xf32>
    %c0_231 = arith.constant 0 : index
    %c0_232 = arith.constant 0 : index
    %476 = vector.load %arg2[%c0_231, %c0_232] : memref<1x32xf32, #tpu.memory_space<vmem>>, vector<1x32xf32>
    %477 = vector.broadcast %476 : vector<1x32xf32> to vector<16x32xf32>
    %478 = arith.addf %475, %477 : vector<16x32xf32>
    %479 = arith.addf %460, %478 : vector<16x32xf32>
    %cst_233 = arith.constant dense<0.000000e+00> : vector<16xf32>
    %480 = vector.multi_reduction <add>, %479, %cst_233 [1] : vector<16x32xf32> to vector<16xf32>
    %481 = vector.shape_cast %480 : vector<16xf32> to vector<16x1xf32>
    %cst_234 = arith.constant 3.200000e+01 : f32
    %482 = vector.broadcast %cst_234 : f32 to vector<16x1xf32>
    %483 = arith.divf %481, %482 : vector<16x1xf32>
    %484 = vector.broadcast %483 : vector<16x1xf32> to vector<16x32xf32>
    %485 = arith.subf %479, %484 : vector<16x32xf32>
    %486 = arith.mulf %485, %485 : vector<16x32xf32>
    %cst_235 = arith.constant dense<0.000000e+00> : vector<16xf32>
    %487 = vector.multi_reduction <add>, %486, %cst_235 [1] : vector<16x32xf32> to vector<16xf32>
    %488 = vector.shape_cast %487 : vector<16xf32> to vector<16x1xf32>
    %cst_236 = arith.constant 3.200000e+01 : f32
    %489 = vector.broadcast %cst_236 : f32 to vector<16x1xf32>
    %490 = arith.divf %488, %489 : vector<16x1xf32>
    %cst_237 = arith.constant 9.99999997E-7 : f32
    %491 = vector.broadcast %cst_237 : f32 to vector<16x1xf32>
    %492 = arith.addf %490, %491 : vector<16x1xf32>
    %493 = math.rsqrt %492 : vector<16x1xf32>
    %494 = vector.broadcast %493 : vector<16x1xf32> to vector<16x32xf32>
    %495 = arith.mulf %485, %494 : vector<16x32xf32>
    %c0_238 = arith.constant 0 : index
    %c0_239 = arith.constant 0 : index
    %496 = vector.load %arg14[%c0_238, %c0_239] : memref<1x32xf32, #tpu.memory_space<vmem>>, vector<1x32xf32>
    %497 = vector.broadcast %496 : vector<1x32xf32> to vector<16x32xf32>
    %498 = arith.mulf %495, %497 : vector<16x32xf32>
    %c0_240 = arith.constant 0 : index
    %c0_241 = arith.constant 0 : index
    %499 = vector.load %arg13[%c0_240, %c0_241] : memref<1x32xf32, #tpu.memory_space<vmem>>, vector<1x32xf32>
    %500 = vector.broadcast %499 : vector<1x32xf32> to vector<16x32xf32>
    %501 = arith.addf %498, %500 : vector<16x32xf32>
    %c0_242 = arith.constant 0 : index
    %c0_243 = arith.constant 0 : index
    %502 = vector.load %arg37[%c0_242, %c0_243] : memref<32x96xf32, #tpu.memory_space<vmem>>, vector<32x96xf32>
    %cst_244 = arith.constant dense<0.000000e+00> : vector<16x96xf32>
    %503 = tpu.matmul %501, %502, %cst_244 {dimension_numbers = #tpu.dot_dimension_numbers<[1], [0], [0], [1], [0, 0, 1, 1], [], []>} : vector<16x32xf32>, vector<32x96xf32>, vector<16x96xf32> -> vector<16x96xf32>
    %c0_245 = arith.constant 0 : index
    %c0_246 = arith.constant 0 : index
    %504 = vector.load %arg36[%c0_245, %c0_246] : memref<1x96xf32, #tpu.memory_space<vmem>>, vector<1x96xf32>
    %505 = vector.broadcast %504 : vector<1x96xf32> to vector<16x96xf32>
    %506 = arith.addf %503, %505 : vector<16x96xf32>
    %507 = vector.extract_strided_slice %506 {offsets = [0, 0], sizes = [16, 32], strides = [1, 1]} : vector<16x96xf32> to vector<16x32xf32>
    %508 = vector.extract_strided_slice %506 {offsets = [0, 32], sizes = [16, 32], strides = [1, 1]} : vector<16x96xf32> to vector<16x32xf32>
    %509 = vector.extract_strided_slice %506 {offsets = [0, 64], sizes = [16, 32], strides = [1, 1]} : vector<16x96xf32> to vector<16x32xf32>
    %c0_247 = arith.constant 0 : index
    %c0_248 = arith.constant 0 : index
    %510 = vector.load %arg38[%c0_247, %c0_248] : memref<32x32xf32, #tpu.memory_space<vmem>>, vector<32x32xf32>
    %511 = vector.extract_strided_slice %507 {offsets = [0, 0], sizes = [16, 16], strides = [1, 1]} : vector<16x32xf32> to vector<16x16xf32>
    %512 = vector.shape_cast %511 : vector<16x16xf32> to vector<2x8x16xf32>
    %513 = vector.extract_strided_slice %508 {offsets = [0, 0], sizes = [16, 16], strides = [1, 1]} : vector<16x32xf32> to vector<16x16xf32>
    %514 = vector.shape_cast %513 : vector<16x16xf32> to vector<2x8x16xf32>
    %515 = vector.extract_strided_slice %509 {offsets = [0, 0], sizes = [16, 16], strides = [1, 1]} : vector<16x32xf32> to vector<16x16xf32>
    %516 = vector.shape_cast %515 : vector<16x16xf32> to vector<2x8x16xf32>
    "tpu.trace_start"() <{level = 10 : i32, message = "bqd,bkd->bqk"}> : () -> ()
    %cst_249 = arith.constant dense<0.000000e+00> : vector<2x8x8xf32>
    %517 = tpu.matmul %512, %514, %cst_249 {dimension_numbers = #tpu.dot_dimension_numbers<[2], [2], [1], [1], [0, 0, 0, 1, 1, 1], [0], [0]>} : vector<2x8x16xf32>, vector<2x8x16xf32>, vector<2x8x8xf32> -> vector<2x8x8xf32>
    "tpu.trace_stop"() : () -> ()
    %cst_250 = arith.constant 2.500000e-01 : f32
    %518 = vector.broadcast %cst_250 : f32 to vector<2x8x8xf32>
    %519 = arith.mulf %517, %518 : vector<2x8x8xf32>
    %cst_251 = arith.constant dense<0xFF800000> : vector<2x8xf32>
    %520 = vector.multi_reduction <maximumf>, %519, %cst_251 [2] : vector<2x8x8xf32> to vector<2x8xf32>
    %521 = vector.shape_cast %520 : vector<2x8xf32> to vector<2x8x1xf32>
    %522 = vector.broadcast %521 : vector<2x8x1xf32> to vector<2x8x8xf32>
    %523 = arith.subf %519, %522 : vector<2x8x8xf32>
    %524 = math.exp %523 : vector<2x8x8xf32>
    %cst_252 = arith.constant dense<0.000000e+00> : vector<2x8xf32>
    %525 = vector.multi_reduction <add>, %524, %cst_252 [2] : vector<2x8x8xf32> to vector<2x8xf32>
    %526 = vector.shape_cast %525 : vector<2x8xf32> to vector<2x8x1xf32>
    %527 = tpu.reciprocal %526 {approx = true} : vector<2x8x1xf32> -> vector<2x8x1xf32>
    %528 = vector.broadcast %527 : vector<2x8x1xf32> to vector<2x8x8xf32>
    %529 = arith.mulf %524, %528 : vector<2x8x8xf32>
    %c2_253 = arith.constant 2 : index
    %c0_254 = arith.constant 0 : index
    %c0_255 = arith.constant 0 : index
    %c0_256 = arith.constant 0 : index
    %530 = vector.load %arg78[%c2_253, %c0_254, %c0_255, %c0_256] : memref<4x2x8x8xf32, #tpu.memory_space<vmem>>, vector<1x2x8x8xf32>
    %531 = vector.shape_cast %530 : vector<1x2x8x8xf32> to vector<2x8x8xf32>
    %532 = vector.shape_cast %529 : vector<2x8x8xf32> to vector<1x2x8x8xf32>
    tpu.vector_store %arg78[%c2_253, %c0_254, %c0_255, %c0_256], %532 {strides = array<i32>} : memref<4x2x8x8xf32, #tpu.memory_space<vmem>>, vector<1x2x8x8xf32>,
    "tpu.trace_start"() <{level = 10 : i32, message = "bqk,bkd->bqd"}> : () -> ()
    %cst_257 = arith.constant dense<0.000000e+00> : vector<2x8x16xf32>
    %533 = tpu.matmul %529, %516, %cst_257 {dimension_numbers = #tpu.dot_dimension_numbers<[2], [1], [1], [2], [0, 0, 0, 1, 1, 2], [0], [0]>} : vector<2x8x8xf32>, vector<2x8x16xf32>, vector<2x8x16xf32> -> vector<2x8x16xf32>
    "tpu.trace_stop"() : () -> ()
    %534 = vector.shape_cast %533 : vector<2x8x16xf32> to vector<16x16xf32>
    %535 = vector.extract_strided_slice %510 {offsets = [0, 0], sizes = [16, 32], strides = [1, 1]} : vector<32x32xf32> to vector<16x32xf32>
    %cst_258 = arith.constant dense<0.000000e+00> : vector<16x32xf32>
    %536 = tpu.matmul %534, %535, %cst_258 {dimension_numbers = #tpu.dot_dimension_numbers<[1], [0], [0], [1], [0, 0, 1, 1], [], []>} : vector<16x16xf32>, vector<16x32xf32>, vector<16x32xf32> -> vector<16x32xf32>
    %537 = vector.extract_strided_slice %507 {offsets = [0, 16], sizes = [16, 16], strides = [1, 1]} : vector<16x32xf32> to vector<16x16xf32>
    %538 = vector.shape_cast %537 : vector<16x16xf32> to vector<2x8x16xf32>
    %539 = vector.extract_strided_slice %508 {offsets = [0, 16], sizes = [16, 16], strides = [1, 1]} : vector<16x32xf32> to vector<16x16xf32>
    %540 = vector.shape_cast %539 : vector<16x16xf32> to vector<2x8x16xf32>
    %541 = vector.extract_strided_slice %509 {offsets = [0, 16], sizes = [16, 16], strides = [1, 1]} : vector<16x32xf32> to vector<16x16xf32>
    %542 = vector.shape_cast %541 : vector<16x16xf32> to vector<2x8x16xf32>
    "tpu.trace_start"() <{level = 10 : i32, message = "bqd,bkd->bqk"}> : () -> ()
    %cst_259 = arith.constant dense<0.000000e+00> : vector<2x8x8xf32>
    %543 = tpu.matmul %538, %540, %cst_259 {dimension_numbers = #tpu.dot_dimension_numbers<[2], [2], [1], [1], [0, 0, 0, 1, 1, 1], [0], [0]>} : vector<2x8x16xf32>, vector<2x8x16xf32>, vector<2x8x8xf32> -> vector<2x8x8xf32>
    "tpu.trace_stop"() : () -> ()
    %cst_260 = arith.constant 2.500000e-01 : f32
    %544 = vector.broadcast %cst_260 : f32 to vector<2x8x8xf32>
    %545 = arith.mulf %543, %544 : vector<2x8x8xf32>
    %cst_261 = arith.constant dense<0xFF800000> : vector<2x8xf32>
    %546 = vector.multi_reduction <maximumf>, %545, %cst_261 [2] : vector<2x8x8xf32> to vector<2x8xf32>
    %547 = vector.shape_cast %546 : vector<2x8xf32> to vector<2x8x1xf32>
    %548 = vector.broadcast %547 : vector<2x8x1xf32> to vector<2x8x8xf32>
    %549 = arith.subf %545, %548 : vector<2x8x8xf32>
    %550 = math.exp %549 : vector<2x8x8xf32>
    %cst_262 = arith.constant dense<0.000000e+00> : vector<2x8xf32>
    %551 = vector.multi_reduction <add>, %550, %cst_262 [2] : vector<2x8x8xf32> to vector<2x8xf32>
    %552 = vector.shape_cast %551 : vector<2x8xf32> to vector<2x8x1xf32>
    %553 = tpu.reciprocal %552 {approx = true} : vector<2x8x1xf32> -> vector<2x8x1xf32>
    %554 = vector.broadcast %553 : vector<2x8x1xf32> to vector<2x8x8xf32>
    %555 = arith.mulf %550, %554 : vector<2x8x8xf32>
    %c3_263 = arith.constant 3 : index
    %c0_264 = arith.constant 0 : index
    %c0_265 = arith.constant 0 : index
    %c0_266 = arith.constant 0 : index
    %556 = vector.load %arg78[%c3_263, %c0_264, %c0_265, %c0_266] : memref<4x2x8x8xf32, #tpu.memory_space<vmem>>, vector<1x2x8x8xf32>
    %557 = vector.shape_cast %556 : vector<1x2x8x8xf32> to vector<2x8x8xf32>
    %558 = vector.shape_cast %555 : vector<2x8x8xf32> to vector<1x2x8x8xf32>
    tpu.vector_store %arg78[%c3_263, %c0_264, %c0_265, %c0_266], %558 {strides = array<i32>} : memref<4x2x8x8xf32, #tpu.memory_space<vmem>>, vector<1x2x8x8xf32>,
    "tpu.trace_start"() <{level = 10 : i32, message = "bqk,bkd->bqd"}> : () -> ()
    %cst_267 = arith.constant dense<0.000000e+00> : vector<2x8x16xf32>
    %559 = tpu.matmul %555, %542, %cst_267 {dimension_numbers = #tpu.dot_dimension_numbers<[2], [1], [1], [2], [0, 0, 0, 1, 1, 2], [0], [0]>} : vector<2x8x8xf32>, vector<2x8x16xf32>, vector<2x8x16xf32> -> vector<2x8x16xf32>
    "tpu.trace_stop"() : () -> ()
    %560 = vector.shape_cast %559 : vector<2x8x16xf32> to vector<16x16xf32>
    %561 = vector.extract_strided_slice %510 {offsets = [16, 0], sizes = [16, 32], strides = [1, 1]} : vector<32x32xf32> to vector<16x32xf32>
    %cst_268 = arith.constant dense<0.000000e+00> : vector<16x32xf32>
    %562 = tpu.matmul %560, %561, %cst_268 {dimension_numbers = #tpu.dot_dimension_numbers<[1], [0], [0], [1], [0, 0, 1, 1], [], []>} : vector<16x16xf32>, vector<16x32xf32>, vector<16x32xf32> -> vector<16x32xf32>
    %563 = arith.addf %536, %562 : vector<16x32xf32>
    %c0_269 = arith.constant 0 : index
    %c0_270 = arith.constant 0 : index
    %564 = vector.load %arg35[%c0_269, %c0_270] : memref<1x32xf32, #tpu.memory_space<vmem>>, vector<1x32xf32>
    %565 = vector.broadcast %564 : vector<1x32xf32> to vector<16x32xf32>
    %566 = arith.addf %563, %565 : vector<16x32xf32>
    %567 = arith.addf %501, %566 : vector<16x32xf32>
    %cst_271 = arith.constant dense<0.000000e+00> : vector<16xf32>
    %568 = vector.multi_reduction <add>, %567, %cst_271 [1] : vector<16x32xf32> to vector<16xf32>
    %569 = vector.shape_cast %568 : vector<16xf32> to vector<16x1xf32>
    %cst_272 = arith.constant 3.200000e+01 : f32
    %570 = vector.broadcast %cst_272 : f32 to vector<16x1xf32>
    %571 = arith.divf %569, %570 : vector<16x1xf32>
    %572 = vector.broadcast %571 : vector<16x1xf32> to vector<16x32xf32>
    %573 = arith.subf %567, %572 : vector<16x32xf32>
    %574 = arith.mulf %573, %573 : vector<16x32xf32>
    %cst_273 = arith.constant dense<0.000000e+00> : vector<16xf32>
    %575 = vector.multi_reduction <add>, %574, %cst_273 [1] : vector<16x32xf32> to vector<16xf32>
    %576 = vector.shape_cast %575 : vector<16xf32> to vector<16x1xf32>
    %cst_274 = arith.constant 3.200000e+01 : f32
    %577 = vector.broadcast %cst_274 : f32 to vector<16x1xf32>
    %578 = arith.divf %576, %577 : vector<16x1xf32>
    %cst_275 = arith.constant 9.99999997E-7 : f32
    %579 = vector.broadcast %cst_275 : f32 to vector<16x1xf32>
    %580 = arith.addf %578, %579 : vector<16x1xf32>
    %581 = math.rsqrt %580 : vector<16x1xf32>
    %582 = vector.broadcast %581 : vector<16x1xf32> to vector<16x32xf32>
    %583 = arith.mulf %573, %582 : vector<16x32xf32>
    %c0_276 = arith.constant 0 : index
    %c0_277 = arith.constant 0 : index
    %584 = vector.load %arg30[%c0_276, %c0_277] : memref<1x32xf32, #tpu.memory_space<vmem>>, vector<1x32xf32>
    %585 = vector.broadcast %584 : vector<1x32xf32> to vector<16x32xf32>
    %586 = arith.mulf %583, %585 : vector<16x32xf32>
    %c0_278 = arith.constant 0 : index
    %c0_279 = arith.constant 0 : index
    %587 = vector.load %arg29[%c0_278, %c0_279] : memref<1x32xf32, #tpu.memory_space<vmem>>, vector<1x32xf32>
    %588 = vector.broadcast %587 : vector<1x32xf32> to vector<16x32xf32>
    %589 = arith.addf %586, %588 : vector<16x32xf32>
    %c0_280 = arith.constant 0 : index
    %c0_281 = arith.constant 0 : index
    %590 = vector.load %arg27[%c0_280, %c0_281] : memref<32x32xf32, #tpu.memory_space<vmem>>, vector<32x32xf32>
    %cst_282 = arith.constant dense<0.000000e+00> : vector<16x32xf32>
    %591 = tpu.matmul %589, %590, %cst_282 {dimension_numbers = #tpu.dot_dimension_numbers<[1], [0], [0], [1], [0, 0, 1, 1], [], []>} : vector<16x32xf32>, vector<32x32xf32>, vector<16x32xf32> -> vector<16x32xf32>
    %c0_283 = arith.constant 0 : index
    %c0_284 = arith.constant 0 : index
    %592 = vector.load %arg26[%c0_283, %c0_284] : memref<1x32xf32, #tpu.memory_space<vmem>>, vector<1x32xf32>
    %593 = vector.broadcast %592 : vector<1x32xf32> to vector<16x32xf32>
    %594 = arith.addf %591, %593 : vector<16x32xf32>
    %c0_285 = arith.constant 0 : index
    %c0_286 = arith.constant 0 : index
    %595 = vector.load %arg25[%c0_285, %c0_286] : memref<32x64xf32, #tpu.memory_space<vmem>>, vector<32x64xf32>
    %cst_287 = arith.constant dense<0.000000e+00> : vector<16x64xf32>
    %596 = tpu.matmul %280, %595, %cst_287 {dimension_numbers = #tpu.dot_dimension_numbers<[1], [0], [0], [1], [0, 0, 1, 1], [], []>} : vector<16x32xf32>, vector<32x64xf32>, vector<16x64xf32> -> vector<16x64xf32>
    %c0_288 = arith.constant 0 : index
    %c0_289 = arith.constant 0 : index
    %597 = vector.load %arg24[%c0_288, %c0_289] : memref<1x64xf32, #tpu.memory_space<vmem>>, vector<1x64xf32>
    %598 = vector.broadcast %597 : vector<1x64xf32> to vector<16x64xf32>
    %599 = arith.addf %596, %598 : vector<16x64xf32>
    %600 = vector.extract_strided_slice %599 {offsets = [0, 0], sizes = [16, 32], strides = [1, 1]} : vector<16x64xf32> to vector<16x32xf32>
    %601 = vector.extract_strided_slice %599 {offsets = [0, 32], sizes = [16, 32], strides = [1, 1]} : vector<16x64xf32> to vector<16x32xf32>
    %c0_290 = arith.constant 0 : index
    %c0_291 = arith.constant 0 : index
    %602 = vector.load %arg28[%c0_290, %c0_291] : memref<32x32xf32, #tpu.memory_space<vmem>>, vector<32x32xf32>
    %603 = vector.extract_strided_slice %594 {offsets = [0, 0], sizes = [16, 16], strides = [1, 1]} : vector<16x32xf32> to vector<16x16xf32>
    %604 = vector.shape_cast %603 : vector<16x16xf32> to vector<2x8x16xf32>
    %605 = vector.extract_strided_slice %600 {offsets = [0, 0], sizes = [16, 16], strides = [1, 1]} : vector<16x32xf32> to vector<16x16xf32>
    %606 = vector.shape_cast %605 : vector<16x16xf32> to vector<2x8x16xf32>
    %607 = vector.extract_strided_slice %601 {offsets = [0, 0], sizes = [16, 16], strides = [1, 1]} : vector<16x32xf32> to vector<16x16xf32>
    %608 = vector.shape_cast %607 : vector<16x16xf32> to vector<2x8x16xf32>
    "tpu.trace_start"() <{level = 10 : i32, message = "bqd,bkd->bqk"}> : () -> ()
    %cst_292 = arith.constant dense<0.000000e+00> : vector<2x8x8xf32>
    %609 = tpu.matmul %604, %606, %cst_292 {dimension_numbers = #tpu.dot_dimension_numbers<[2], [2], [1], [1], [0, 0, 0, 1, 1, 1], [0], [0]>} : vector<2x8x16xf32>, vector<2x8x16xf32>, vector<2x8x8xf32> -> vector<2x8x8xf32>
    "tpu.trace_stop"() : () -> ()
    %cst_293 = arith.constant 2.500000e-01 : f32
    %610 = vector.broadcast %cst_293 : f32 to vector<2x8x8xf32>
    %611 = arith.mulf %609, %610 : vector<2x8x8xf32>
    %cst_294 = arith.constant dense<0xFF800000> : vector<2x8xf32>
    %612 = vector.multi_reduction <maximumf>, %611, %cst_294 [2] : vector<2x8x8xf32> to vector<2x8xf32>
    %613 = vector.shape_cast %612 : vector<2x8xf32> to vector<2x8x1xf32>
    %614 = vector.broadcast %613 : vector<2x8x1xf32> to vector<2x8x8xf32>
    %615 = arith.subf %611, %614 : vector<2x8x8xf32>
    %616 = math.exp %615 : vector<2x8x8xf32>
    %cst_295 = arith.constant dense<0.000000e+00> : vector<2x8xf32>
    %617 = vector.multi_reduction <add>, %616, %cst_295 [2] : vector<2x8x8xf32> to vector<2x8xf32>
    %618 = vector.shape_cast %617 : vector<2x8xf32> to vector<2x8x1xf32>
    %619 = tpu.reciprocal %618 {approx = true} : vector<2x8x1xf32> -> vector<2x8x1xf32>
    %620 = vector.broadcast %619 : vector<2x8x1xf32> to vector<2x8x8xf32>
    %621 = arith.mulf %616, %620 : vector<2x8x8xf32>
    %c2_296 = arith.constant 2 : index
    %c0_297 = arith.constant 0 : index
    %c0_298 = arith.constant 0 : index
    %c0_299 = arith.constant 0 : index
    %622 = vector.load %arg79[%c2_296, %c0_297, %c0_298, %c0_299] : memref<4x2x8x8xf32, #tpu.memory_space<vmem>>, vector<1x2x8x8xf32>
    %623 = vector.shape_cast %622 : vector<1x2x8x8xf32> to vector<2x8x8xf32>
    %624 = vector.shape_cast %621 : vector<2x8x8xf32> to vector<1x2x8x8xf32>
    tpu.vector_store %arg79[%c2_296, %c0_297, %c0_298, %c0_299], %624 {strides = array<i32>} : memref<4x2x8x8xf32, #tpu.memory_space<vmem>>, vector<1x2x8x8xf32>,
    "tpu.trace_start"() <{level = 10 : i32, message = "bqk,bkd->bqd"}> : () -> ()
    %cst_300 = arith.constant dense<0.000000e+00> : vector<2x8x16xf32>
    %625 = tpu.matmul %621, %608, %cst_300 {dimension_numbers = #tpu.dot_dimension_numbers<[2], [1], [1], [2], [0, 0, 0, 1, 1, 2], [0], [0]>} : vector<2x8x8xf32>, vector<2x8x16xf32>, vector<2x8x16xf32> -> vector<2x8x16xf32>
    "tpu.trace_stop"() : () -> ()
    %626 = vector.shape_cast %625 : vector<2x8x16xf32> to vector<16x16xf32>
    %627 = vector.extract_strided_slice %602 {offsets = [0, 0], sizes = [16, 32], strides = [1, 1]} : vector<32x32xf32> to vector<16x32xf32>
    %cst_301 = arith.constant dense<0.000000e+00> : vector<16x32xf32>
    %628 = tpu.matmul %626, %627, %cst_301 {dimension_numbers = #tpu.dot_dimension_numbers<[1], [0], [0], [1], [0, 0, 1, 1], [], []>} : vector<16x16xf32>, vector<16x32xf32>, vector<16x32xf32> -> vector<16x32xf32>
    %629 = vector.extract_strided_slice %594 {offsets = [0, 16], sizes = [16, 16], strides = [1, 1]} : vector<16x32xf32> to vector<16x16xf32>
    %630 = vector.shape_cast %629 : vector<16x16xf32> to vector<2x8x16xf32>
    %631 = vector.extract_strided_slice %600 {offsets = [0, 16], sizes = [16, 16], strides = [1, 1]} : vector<16x32xf32> to vector<16x16xf32>
    %632 = vector.shape_cast %631 : vector<16x16xf32> to vector<2x8x16xf32>
    %633 = vector.extract_strided_slice %601 {offsets = [0, 16], sizes = [16, 16], strides = [1, 1]} : vector<16x32xf32> to vector<16x16xf32>
    %634 = vector.shape_cast %633 : vector<16x16xf32> to vector<2x8x16xf32>
    "tpu.trace_start"() <{level = 10 : i32, message = "bqd,bkd->bqk"}> : () -> ()
    %cst_302 = arith.constant dense<0.000000e+00> : vector<2x8x8xf32>
    %635 = tpu.matmul %630, %632, %cst_302 {dimension_numbers = #tpu.dot_dimension_numbers<[2], [2], [1], [1], [0, 0, 0, 1, 1, 1], [0], [0]>} : vector<2x8x16xf32>, vector<2x8x16xf32>, vector<2x8x8xf32> -> vector<2x8x8xf32>
    "tpu.trace_stop"() : () -> ()
    %cst_303 = arith.constant 2.500000e-01 : f32
    %636 = vector.broadcast %cst_303 : f32 to vector<2x8x8xf32>
    %637 = arith.mulf %635, %636 : vector<2x8x8xf32>
    %cst_304 = arith.constant dense<0xFF800000> : vector<2x8xf32>
    %638 = vector.multi_reduction <maximumf>, %637, %cst_304 [2] : vector<2x8x8xf32> to vector<2x8xf32>
    %639 = vector.shape_cast %638 : vector<2x8xf32> to vector<2x8x1xf32>
    %640 = vector.broadcast %639 : vector<2x8x1xf32> to vector<2x8x8xf32>
    %641 = arith.subf %637, %640 : vector<2x8x8xf32>
    %642 = math.exp %641 : vector<2x8x8xf32>
    %cst_305 = arith.constant dense<0.000000e+00> : vector<2x8xf32>
    %643 = vector.multi_reduction <add>, %642, %cst_305 [2] : vector<2x8x8xf32> to vector<2x8xf32>
    %644 = vector.shape_cast %643 : vector<2x8xf32> to vector<2x8x1xf32>
    %645 = tpu.reciprocal %644 {approx = true} : vector<2x8x1xf32> -> vector<2x8x1xf32>
    %646 = vector.broadcast %645 : vector<2x8x1xf32> to vector<2x8x8xf32>
    %647 = arith.mulf %642, %646 : vector<2x8x8xf32>
    %c3_306 = arith.constant 3 : index
    %c0_307 = arith.constant 0 : index
    %c0_308 = arith.constant 0 : index
    %c0_309 = arith.constant 0 : index
    %648 = vector.load %arg79[%c3_306, %c0_307, %c0_308, %c0_309] : memref<4x2x8x8xf32, #tpu.memory_space<vmem>>, vector<1x2x8x8xf32>
    %649 = vector.shape_cast %648 : vector<1x2x8x8xf32> to vector<2x8x8xf32>
    %650 = vector.shape_cast %647 : vector<2x8x8xf32> to vector<1x2x8x8xf32>
    tpu.vector_store %arg79[%c3_306, %c0_307, %c0_308, %c0_309], %650 {strides = array<i32>} : memref<4x2x8x8xf32, #tpu.memory_space<vmem>>, vector<1x2x8x8xf32>,
    "tpu.trace_start"() <{level = 10 : i32, message = "bqk,bkd->bqd"}> : () -> ()
    %cst_310 = arith.constant dense<0.000000e+00> : vector<2x8x16xf32>
    %651 = tpu.matmul %647, %634, %cst_310 {dimension_numbers = #tpu.dot_dimension_numbers<[2], [1], [1], [2], [0, 0, 0, 1, 1, 2], [0], [0]>} : vector<2x8x8xf32>, vector<2x8x16xf32>, vector<2x8x16xf32> -> vector<2x8x16xf32>
    "tpu.trace_stop"() : () -> ()
    %652 = vector.shape_cast %651 : vector<2x8x16xf32> to vector<16x16xf32>
    %653 = vector.extract_strided_slice %602 {offsets = [16, 0], sizes = [16, 32], strides = [1, 1]} : vector<32x32xf32> to vector<16x32xf32>
    %cst_311 = arith.constant dense<0.000000e+00> : vector<16x32xf32>
    %654 = tpu.matmul %652, %653, %cst_311 {dimension_numbers = #tpu.dot_dimension_numbers<[1], [0], [0], [1], [0, 0, 1, 1], [], []>} : vector<16x16xf32>, vector<16x32xf32>, vector<16x32xf32> -> vector<16x32xf32>
    %655 = arith.addf %628, %654 : vector<16x32xf32>
    %c0_312 = arith.constant 0 : index
    %c0_313 = arith.constant 0 : index
    %656 = vector.load %arg23[%c0_312, %c0_313] : memref<1x32xf32, #tpu.memory_space<vmem>>, vector<1x32xf32>
    %657 = vector.broadcast %656 : vector<1x32xf32> to vector<16x32xf32>
    %658 = arith.addf %655, %657 : vector<16x32xf32>
    %659 = arith.addf %589, %658 : vector<16x32xf32>
    %cst_314 = arith.constant dense<0.000000e+00> : vector<16xf32>
    %660 = vector.multi_reduction <add>, %659, %cst_314 [1] : vector<16x32xf32> to vector<16xf32>
    %661 = vector.shape_cast %660 : vector<16xf32> to vector<16x1xf32>
    %cst_315 = arith.constant 3.200000e+01 : f32
    %662 = vector.broadcast %cst_315 : f32 to vector<16x1xf32>
    %663 = arith.divf %661, %662 : vector<16x1xf32>
    %664 = vector.broadcast %663 : vector<16x1xf32> to vector<16x32xf32>
    %665 = arith.subf %659, %664 : vector<16x32xf32>
    %666 = arith.mulf %665, %665 : vector<16x32xf32>
    %cst_316 = arith.constant dense<0.000000e+00> : vector<16xf32>
    %667 = vector.multi_reduction <add>, %666, %cst_316 [1] : vector<16x32xf32> to vector<16xf32>
    %668 = vector.shape_cast %667 : vector<16xf32> to vector<16x1xf32>
    %cst_317 = arith.constant 3.200000e+01 : f32
    %669 = vector.broadcast %cst_317 : f32 to vector<16x1xf32>
    %670 = arith.divf %668, %669 : vector<16x1xf32>
    %cst_318 = arith.constant 9.99999997E-7 : f32
    %671 = vector.broadcast %cst_318 : f32 to vector<16x1xf32>
    %672 = arith.addf %670, %671 : vector<16x1xf32>
    %673 = math.rsqrt %672 : vector<16x1xf32>
    %674 = vector.broadcast %673 : vector<16x1xf32> to vector<16x32xf32>
    %675 = arith.mulf %665, %674 : vector<16x32xf32>
    %c0_319 = arith.constant 0 : index
    %c0_320 = arith.constant 0 : index
    %676 = vector.load %arg32[%c0_319, %c0_320] : memref<1x32xf32, #tpu.memory_space<vmem>>, vector<1x32xf32>
    %677 = vector.broadcast %676 : vector<1x32xf32> to vector<16x32xf32>
    %678 = arith.mulf %675, %677 : vector<16x32xf32>
    %c0_321 = arith.constant 0 : index
    %c0_322 = arith.constant 0 : index
    %679 = vector.load %arg31[%c0_321, %c0_322] : memref<1x32xf32, #tpu.memory_space<vmem>>, vector<1x32xf32>
    %680 = vector.broadcast %679 : vector<1x32xf32> to vector<16x32xf32>
    %681 = arith.addf %678, %680 : vector<16x32xf32>
    %c0_323 = arith.constant 0 : index
    %c0_324 = arith.constant 0 : index
    %682 = vector.load %arg39[%c0_323, %c0_324] : memref<32x128xf32, #tpu.memory_space<vmem>>, vector<32x128xf32>
    %cst_325 = arith.constant dense<0.000000e+00> : vector<16x128xf32>
    %683 = tpu.matmul %681, %682, %cst_325 {dimension_numbers = #tpu.dot_dimension_numbers<[1], [0], [0], [1], [0, 0, 1, 1], [], []>} : vector<16x32xf32>, vector<32x128xf32>, vector<16x128xf32> -> vector<16x128xf32>
    %c0_326 = arith.constant 0 : index
    %c0_327 = arith.constant 0 : index
    %684 = vector.load %arg21[%c0_326, %c0_327] : memref<1x128xf32, #tpu.memory_space<vmem>>, vector<1x128xf32>
    %685 = vector.broadcast %684 : vector<1x128xf32> to vector<16x128xf32>
    %686 = arith.addf %683, %685 : vector<16x128xf32>
    %cst_328 = arith.constant 5.000000e-01 : f32
    %687 = vector.broadcast %cst_328 : f32 to vector<16x128xf32>
    %688 = arith.mulf %687, %686 : vector<16x128xf32>
    %cst_329 = arith.constant 0.707106769 : f32
    %689 = vector.broadcast %cst_329 : f32 to vector<16x128xf32>
    %690 = arith.mulf %686, %689 : vector<16x128xf32>
    %691 = math.erf %690 : vector<16x128xf32>
    %cst_330 = arith.constant 1.000000e+00 : f32
    %692 = vector.broadcast %cst_330 : f32 to vector<16x128xf32>
    %693 = arith.addf %692, %691 : vector<16x128xf32>
    %694 = arith.mulf %688, %693 : vector<16x128xf32>
    %c0_331 = arith.constant 0 : index
    %c0_332 = arith.constant 0 : index
    %695 = vector.load %arg40[%c0_331, %c0_332] : memref<128x32xf32, #tpu.memory_space<vmem>>, vector<128x32xf32>
    %cst_333 = arith.constant dense<0.000000e+00> : vector<16x32xf32>
    %696 = tpu.matmul %694, %695, %cst_333 {dimension_numbers = #tpu.dot_dimension_numbers<[1], [0], [0], [1], [0, 0, 1, 1], [], []>} : vector<16x128xf32>, vector<128x32xf32>, vector<16x32xf32> -> vector<16x32xf32>
    %c0_334 = arith.constant 0 : index
    %c0_335 = arith.constant 0 : index
    %697 = vector.load %arg22[%c0_334, %c0_335] : memref<1x32xf32, #tpu.memory_space<vmem>>, vector<1x32xf32>
    %698 = vector.broadcast %697 : vector<1x32xf32> to vector<16x32xf32>
    %699 = arith.addf %696, %698 : vector<16x32xf32>
    %700 = arith.addf %681, %699 : vector<16x32xf32>
    %cst_336 = arith.constant dense<0.000000e+00> : vector<16xf32>
    %701 = vector.multi_reduction <add>, %700, %cst_336 [1] : vector<16x32xf32> to vector<16xf32>
    %702 = vector.shape_cast %701 : vector<16xf32> to vector<16x1xf32>
    %cst_337 = arith.constant 3.200000e+01 : f32
    %703 = vector.broadcast %cst_337 : f32 to vector<16x1xf32>
    %704 = arith.divf %702, %703 : vector<16x1xf32>
    %705 = vector.broadcast %704 : vector<16x1xf32> to vector<16x32xf32>
    %706 = arith.subf %700, %705 : vector<16x32xf32>
    %707 = arith.mulf %706, %706 : vector<16x32xf32>
    %cst_338 = arith.constant dense<0.000000e+00> : vector<16xf32>
    %708 = vector.multi_reduction <add>, %707, %cst_338 [1] : vector<16x32xf32> to vector<16xf32>
    %709 = vector.shape_cast %708 : vector<16xf32> to vector<16x1xf32>
    %cst_339 = arith.constant 3.200000e+01 : f32
    %710 = vector.broadcast %cst_339 : f32 to vector<16x1xf32>
    %711 = arith.divf %709, %710 : vector<16x1xf32>
    %cst_340 = arith.constant 9.99999997E-7 : f32
    %712 = vector.broadcast %cst_340 : f32 to vector<16x1xf32>
    %713 = arith.addf %711, %712 : vector<16x1xf32>
    %714 = math.rsqrt %713 : vector<16x1xf32>
    %715 = vector.broadcast %714 : vector<16x1xf32> to vector<16x32xf32>
    %716 = arith.mulf %706, %715 : vector<16x32xf32>
    %c0_341 = arith.constant 0 : index
    %c0_342 = arith.constant 0 : index
    %717 = vector.load %arg34[%c0_341, %c0_342] : memref<1x32xf32, #tpu.memory_space<vmem>>, vector<1x32xf32>
    %718 = vector.broadcast %717 : vector<1x32xf32> to vector<16x32xf32>
    %719 = arith.mulf %716, %718 : vector<16x32xf32>
    %c0_343 = arith.constant 0 : index
    %c0_344 = arith.constant 0 : index
    %720 = vector.load %arg33[%c0_343, %c0_344] : memref<1x32xf32, #tpu.memory_space<vmem>>, vector<1x32xf32>
    %721 = vector.broadcast %720 : vector<1x32xf32> to vector<16x32xf32>
    %722 = arith.addf %719, %721 : vector<16x32xf32>
    %c0_345 = arith.constant 0 : index
    %c0_346 = arith.constant 0 : index
    %723 = vector.load %arg74[%c0_345, %c0_346] : memref<32x16xf32, #tpu.memory_space<vmem>>, vector<32x16xf32>
    %cst_347 = arith.constant dense<0.000000e+00> : vector<16x16xf32>
    %724 = tpu.matmul %722, %723, %cst_347 {dimension_numbers = #tpu.dot_dimension_numbers<[1], [0], [0], [1], [0, 0, 1, 1], [], []>} : vector<16x32xf32>, vector<32x16xf32>, vector<16x16xf32> -> vector<16x16xf32>
    %c0_348 = arith.constant 0 : index
    %c0_349 = arith.constant 0 : index
    %725 = vector.load %arg73[%c0_348, %c0_349] : memref<1x16xf32, #tpu.memory_space<vmem>>, vector<1x16xf32>
    %726 = vector.broadcast %725 : vector<1x16xf32> to vector<16x16xf32>
    %727 = arith.addf %724, %726 : vector<16x16xf32>
    %c0_350 = arith.constant 0 : index
    %c0_351 = arith.constant 0 : index
    %728 = vector.load %arg76[%c0_350, %c0_351] : memref<16x16xf32, #tpu.memory_space<vmem>>, vector<16x16xf32>
    tpu.vector_store %arg76[%c0_350, %c0_351], %727 {strides = array<i32>} : memref<16x16xf32, #tpu.memory_space<vmem>>, vector<16x16xf32>,
    return
  }
}

</mosaic_0001>

<bundles_post_ra>
// kernel: tpu_custom_call.1
= control target key start
LH: loop header
LB: loop body
LE: loop exit
PB: predicated region body
PF: predicated region fallthrough
CT: control target
= control target key end

     0   :  { %s11067_s6 = smov 1   ;;  %s11068_s10 = smov 2   ;;  %s12549_s0 = inlined_call_operand.smem [shape: u32[80], index: -1, kind: input, shape index: {}] }
   0x1   :  { %s11203_s5 = sld [smem:[%s12549_s0]]   ;;  %s11069_s14 = smov 3  }
   0x2   :  { %s11208_s9 = sld [smem:[%s12549_s0 + %s11067_s6]]   ;;  %s11070_s18 = smov 4  }
   0x3   :  { %s11213_s13 = sld [smem:[%s12549_s0 + %s11068_s10]]   ;;  %s11071_s22 = smov 5  }
   0x4   :  { %s11218_s17 = sld [smem:[%s12549_s0 + %s11069_s14]]   ;;  %s11072_s26 = smov 6  }
   0x5   :  { %s11223_s21 = sld [smem:[%s12549_s0 + %s11070_s18]]   ;;  %s11073_s30 = smov 7  }
   0x6   :  { %s11228_s25 = sld [smem:[%s12549_s0 + %s11071_s22]]   ;;  %s11074_s4 = smov 8  }
   0x7   :  { %12600 = sst [smem:[#allocation86_spill]] %s11203_s5  ;;  %s11075_s10 = smov 9  }
   0x8   :  { %12601 = sst [smem:[#allocation87_spill]] %s11208_s9  ;;  %s11076_s15 = smov 10  }
   0x9   :  { %s11233_s29 = sld [smem:[%s12549_s0 + %s11072_s26]]   ;;  %s11077_s20 = smov 11  }
   0xa   :  { %12602 = sst [smem:[#allocation88_spill]] %s11218_s17  ;;  %s11078_s26 = smov 12  }
   0xb   :  { %s11238_s3 = sld [smem:[%s12549_s0 + %s11073_s30]]   ;;  %s11079_s1 = smov 13  }
   0xc   :  { %12603 = sst [smem:[#allocation89_spill]] %s11228_s25  ;;  %s11080_s7 = smov 14  }
   0xd   :  { %s11243_s8 = sld [smem:[%s12549_s0 + %s11074_s4]]   ;;  %s11082_s22 = smov 16  }
   0xe   :  { %s11248_s14 = sld [smem:[%s12549_s0 + %s11075_s10]]   ;;  %s11083_s28 = smov 17  }
   0xf   :  { %12604 = sst [smem:[#allocation90_spill]] %s11233_s29 }
  0x10   :  { %s11253_s19 = sld [smem:[%s12549_s0 + %s11076_s15]]   ;;  %s11081_s15 = smov 15  }
  0x11   :  { %12605 = sst [smem:[#allocation91_spill]] %s11238_s3 }
  0x12   :  { %s11258_s24 = sld [smem:[%s12549_s0 + %s11077_s20]]  }
  0x13   :  { %12606 = sst [smem:[#allocation92_spill]] %s11243_s8 }
  0x14   :  { %s11263_s30 = sld [smem:[%s12549_s0 + %s11078_s26]]  }
  0x15   :  { %s11268_s6 = sld [smem:[%s12549_s0 + %s11079_s1]]  }
  0x16   :  { %12607 = sst [smem:[#allocation93_spill]] %s11253_s19 }
  0x17   :  { %s11273_s12 = sld [smem:[%s12549_s0 + %s11080_s7]]   ;;  %s11084_s7 = smov 18  }
  0x18   :  { %s11278_s20 = sld [smem:[%s12549_s0 + %s11081_s15]]   ;;  %s11085_s15 = smov 19  }
  0x19   :  { %s11283_s27 = sld [smem:[%s12549_s0 + %s11082_s22]]   ;;  %s11086_s22 = smov 20  }
  0x1a   :  { %12608 = sst [smem:[#allocation94_spill]] %s11263_s30 }
  0x1b   :  { %s11288_s4 = sld [smem:[%s12549_s0 + %s11083_s28]]   ;;  %s11087_s28 = smov 21  }
  0x1c   :  { %s11293_s9 = sld [smem:[%s12549_s0 + %s11084_s7]]   ;;  %s11088_s7 = smov 22  }
  0x1d   :  { %12609 = sst [smem:[#allocation95_spill]] %s11273_s12 }
  0x1e   :  { %s11298_s8 = sld [smem:[%s12549_s0 + %s11085_s15]]   ;;  %s11089_s15 = smov 23  }
  0x1f   :  { %12610 = sst [smem:[#allocation96_spill]] %s11283_s27 }
  0x20   :  { %s11303_s3 = sld [smem:[%s12549_s0 + %s11086_s22]]   ;;  %s11090_s22 = smov 24  }
  0x21   :  { %12611 = sst [smem:[#allocation97_spill]] %s11288_s4 }
  0x22   :  { %12612 = sst [smem:[#allocation98_spill]] %s11293_s9 }
  0x23   :  { %s11308_s25 = sld [smem:[%s12549_s0 + %s11087_s28]]   ;;  %s11091_s28 = smov 25  }
  0x24   :  { %12613 = sst [smem:[#allocation99_spill]] %s11298_s8 }
  0x25   :  { %s11313_s9 = sld [smem:[%s12549_s0 + %s11088_s7]]   ;;  %s11092_s7 = smov 26  }
  0x26   :  { %12614 = sst [smem:[#allocation100_spill]] %s11303_s3 }
  0x27   :  { %s11318_s8 = sld [smem:[%s12549_s0 + %s11089_s15]]   ;;  %s11093_s15 = smov 27  }
  0x28   :  { %s11323_s3 = sld [smem:[%s12549_s0 + %s11090_s22]]   ;;  %s11094_s22 = smov 28  }
  0x29   :  { %s11328_s4 = sld [smem:[%s12549_s0 + %s11091_s28]]   ;;  %s11095_s28 = smov 29  }
  0x2a   :  { %s11338_s27 = sld [smem:[%s12549_s0 + %s11093_s15]]   ;;  %s11097_s15 = smov 31  }
  0x2b   :  { %12615 = sst [smem:[#allocation101_spill]] %s11313_s9 }
  0x2c   :  { %s11333_s9 = sld [smem:[%s12549_s0 + %s11092_s7]]   ;;  %s11096_s7 = smov 30  }
  0x2d   :  { %s11353_s12 = sld [smem:[%s12549_s0 + %s11096_s7]]   ;;  %s11100_s7 = smov 34  }
  0x2e   :  { %12616 = sst [smem:[#allocation102_spill]] %s11323_s3 }
  0x2f   :  { %12617 = sst [smem:[#allocation103_spill]] %s11328_s4 }
  0x30   :  { %12618 = sst [smem:[#allocation104_spill]] %s11338_s27 }
  0x31   :  { %s11343_s3 = sld [smem:[%s12549_s0 + %s11094_s22]]   ;;  %s11098_s22 = smov 32  }
  0x32   :  { %s11348_s4 = sld [smem:[%s12549_s0 + %s11095_s28]]   ;;  %s11099_s28 = smov 33  }
  0x33   :  { %s11358_s27 = sld [smem:[%s12549_s0 + %s11097_s15]]   ;;  %s11101_s15 = smov 35  }
  0x34   :  { %s11373_s30 = sld [smem:[%s12549_s0 + %s11100_s7]]   ;;  %s11104_s7 = smov 38  }
  0x37   :  { %12619 = sst [smem:[#allocation105_spill]] %s11343_s3 }
  0x38   :  { %12620 = sst [smem:[#allocation106_spill]] %s11348_s4 }
  0x39   :  { %12621 = sst [smem:[#allocation107_spill]] %s11358_s27 }
  0x3a   :  { %s11363_s3 = sld [smem:[%s12549_s0 + %s11098_s22]]   ;;  %s11102_s22 = smov 36  }
  0x3b   :  { %s11368_s4 = sld [smem:[%s12549_s0 + %s11099_s28]]   ;;  %s11103_s28 = smov 37  }
  0x3c   :  { %12623 = sst [smem:[#allocation109_spill]] %s11373_s30 }
  0x3d   :  { %s11378_s27 = sld [smem:[%s12549_s0 + %s11101_s15]]   ;;  %s11105_s15 = smov 39  }
  0x3e   :  { %s11383_s19 = sld [smem:[%s12549_s0 + %s11102_s22]]   ;;  %s11106_s22 = smov 40  }
  0x3f   :  { %s11393_s30 = sld [smem:[%s12549_s0 + %s11104_s7]]   ;;  %s11108_s7 = smov 42  }
  0x40   :  { %s11398_s29 = sld [smem:[%s12549_s0 + %s11105_s15]]   ;;  %s11109_s15 = smov 43  }
  0x41   :  { %12622 = sst [smem:[#allocation108_spill]] %s11368_s4 }
  0x42   :  { %s11388_s4 = sld [smem:[%s12549_s0 + %s11103_s28]]   ;;  %s11107_s28 = smov 41  }
  0x44   :  { %12624 = sst [smem:[#allocation110_spill]] %s11383_s19 }
  0x45   :  { %12626 = sst [smem:[#allocation112_spill]] %s11393_s30 }
  0x46   :  { %12627 = sst [smem:[#allocation113_spill]] %s11398_s29 }
  0x47   :  { %s11403_s19 = sld [smem:[%s12549_s0 + %s11106_s22]]   ;;  %s11110_s22 = smov 44  }
  0x48   :  { %12625 = sst [smem:[#allocation111_spill]] %s11388_s4 }
  0x49   :  { %s11408_s4 = sld [smem:[%s12549_s0 + %s11107_s28]]   ;;  %s11111_s28 = smov 45  }
  0x4a   :  { %s11413_s30 = sld [smem:[%s12549_s0 + %s11108_s7]]   ;;  %s11112_s7 = smov 46  }
  0x4b   :  { %s11418_s29 = sld [smem:[%s12549_s0 + %s11109_s15]]   ;;  %s11113_s15 = smov 47  }
  0x4c   :  { %s11428_s17 = sld [smem:[%s12549_s0 + %s11111_s28]]   ;;  %s11115_s28 = smov 49  }
  0x4d   :  { %12628 = sst [smem:[#allocation114_spill]] %s11403_s19 }
  0x4e   :  { %s11423_s19 = sld [smem:[%s12549_s0 + %s11110_s22]]   ;;  %s11114_s22 = smov 48  }
  0x50   :  { %12629 = sst [smem:[#allocation115_spill]] %s11413_s30 }
  0x51   :  { %12630 = sst [smem:[#allocation116_spill]] %s11418_s29 }
  0x52   :  { %12632 = sst [smem:[#allocation118_spill]] %s11428_s17 }
  0x53   :  { %s11433_s30 = sld [smem:[%s12549_s0 + %s11112_s7]]   ;;  %s11116_s7 = smov 50  }
  0x54   :  { %12631 = sst [smem:[#allocation117_spill]] %s11423_s19 }
  0x55   :  { %s11438_s29 = sld [smem:[%s12549_s0 + %s11113_s15]]   ;;  %s11117_s15 = smov 51  }
  0x56   :  { %s11443_s19 = sld [smem:[%s12549_s0 + %s11114_s22]]   ;;  %s11118_s22 = smov 52  }
  0x57   :  { %s11448_s17 = sld [smem:[%s12549_s0 + %s11115_s28]]   ;;  %s11119_s28 = smov 53  }
  0x59   :  { %12633 = sst [smem:[#allocation119_spill]] %s11433_s30 }
  0x5a   :  { %s11453_s30 = sld [smem:[%s12549_s0 + %s11116_s7]]   ;;  %s11120_s7 = smov 54  }
  0x5b   :  { %12634 = sst [smem:[#allocation120_spill]] %s11438_s29 }
  0x5c   :  { %12635 = sst [smem:[#allocation121_spill]] %s11443_s19 }
  0x5d   :  { %12636 = sst [smem:[#allocation122_spill]] %s11448_s17 }
  0x5e   :  { %s11458_s29 = sld [smem:[%s12549_s0 + %s11117_s15]]   ;;  %s11121_s15 = smov 55  }
  0x5f   :  { %s11463_s19 = sld [smem:[%s12549_s0 + %s11118_s22]]   ;;  %s11122_s22 = smov 56  }
  0x60   :  { %12637 = sst [smem:[#allocation123_spill]] %s11453_s30 }
  0x61   :  { %s11468_s17 = sld [smem:[%s12549_s0 + %s11119_s28]]   ;;  %s11123_s28 = smov 57  }
  0x62   :  { %s11473_s30 = sld [smem:[%s12549_s0 + %s11120_s7]]   ;;  %s11124_s7 = smov 58  }
  0x64   :  { %12638 = sst [smem:[#allocation124_spill]] %s11458_s29 }
  0x65   :  { %12639 = sst [smem:[#allocation125_spill]] %s11463_s19 }
  0x66   :  { %s11478_s29 = sld [smem:[%s12549_s0 + %s11121_s15]]   ;;  %s11125_s15 = smov 59  }
  0x67   :  { %12640 = sst [smem:[#allocation126_spill]] %s11468_s17 }
  0x68   :  { %12641 = sst [smem:[#allocation127_spill]] %s11473_s30 }
  0x69   :  { %s11483_s19 = sld [smem:[%s12549_s0 + %s11122_s22]]   ;;  %s11126_s22 = smov 60  }
  0x6a   :  { %s11488_s17 = sld [smem:[%s12549_s0 + %s11123_s28]]   ;;  %s11127_s28 = smov 61  }
  0x6b   :  { %s11493_s30 = sld [smem:[%s12549_s0 + %s11124_s7]]   ;;  %s11128_s7 = smov 62  }
  0x6c   :  { %12642 = sst [smem:[#allocation128_spill]] %s11478_s29 }
  0x6d   :  { %s11498_s29 = sld [smem:[%s12549_s0 + %s11125_s15]]   ;;  %s11129_s15 = smov 63  }
  0x6e   :  { %s11518_s5 = sld [smem:[%s12549_s0 + %s11129_s15]]   ;;  %s11133_s15 = smov 67  }
  0x6f   :  { %12643 = sst [smem:[#allocation129_spill]] %s11483_s19 }
  0x70   :  { %12644 = sst [smem:[#allocation130_spill]] %s11488_s17 }
  0x71   :  { %12645 = sst [smem:[#allocation131_spill]] %s11493_s30 }
  0x72   :  { %s11503_s19 = sld [smem:[%s12549_s0 + %s11126_s22]]   ;;  %s11130_s22 = smov 64  }
  0x73   :  { %s11508_s17 = sld [smem:[%s12549_s0 + %s11127_s28]]   ;;  %s11131_s28 = smov 65  }
  0x74   :  { %s11513_s30 = sld [smem:[%s12549_s0 + %s11128_s7]]   ;;  %s11132_s7 = smov 66  }
  0x75   :  { %12649 = sst [smem:[#allocation135_spill]] %s11518_s5 }
  0x76   :  { %s11538_s5 = sld [smem:[%s12549_s0 + %s11133_s15]]   ;;  %s11137_s15 = smov 71  }
  0x78   :  { %12646 = sst [smem:[#allocation132_spill]] %s11503_s19 }
  0x79   :  { %12647 = sst [smem:[#allocation133_spill]] %s11508_s17 }
  0x7a   :  { %12648 = sst [smem:[#allocation134_spill]] %s11513_s30 }
  0x7b   :  { %s11523_s19 = sld [smem:[%s12549_s0 + %s11130_s22]]   ;;  %s11134_s22 = smov 68  }
  0x7c   :  { %s11528_s17 = sld [smem:[%s12549_s0 + %s11131_s28]]   ;;  %s11135_s28 = smov 69  }
  0x7d   :  { %s11533_s30 = sld [smem:[%s12549_s0 + %s11132_s7]]   ;;  %s11136_s7 = smov 70  }
  0x7e   :  { %12653 = sst [smem:[#allocation139_spill]] %s11538_s5 }
  0x7f   :  { %s11558_s5 = sld [smem:[%s12549_s0 + %s11137_s15]]   ;;  %s11141_s15 = smov 75  }
  0x81   :  { %12650 = sst [smem:[#allocation136_spill]] %s11523_s19 }
  0x82   :  { %12651 = sst [smem:[#allocation137_spill]] %s11528_s17 }
  0x83   :  { %12652 = sst [smem:[#allocation138_spill]] %s11533_s30 }
  0x84   :  { %s11543_s19 = sld [smem:[%s12549_s0 + %s11134_s22]]   ;;  %s11138_s22 = smov 72  }
  0x85   :  { %s11548_s17 = sld [smem:[%s12549_s0 + %s11135_s28]]   ;;  %s11139_s28 = smov 73  }
  0x86   :  { %s11553_s30 = sld [smem:[%s12549_s0 + %s11136_s7]]   ;;  %s11140_s7 = smov 74  }
  0x87   :  { %12657 = sst [smem:[#allocation143_spill]] %s11558_s5 }
  0x88   :  { %s11578_s5 = sld [smem:[%s12549_s0 + %s11141_s15]]   ;;  %s11145_s15 = smov 79  }
  0x8a   :  { %12654 = sst [smem:[#allocation140_spill]] %s11543_s19 }
  0x8b   :  { %12655 = sst [smem:[#allocation141_spill]] %s11548_s17 }
  0x8c   :  { %12656 = sst [smem:[#allocation142_spill]] %s11553_s30 }
  0x8d   :  { %s11563_s19 = sld [smem:[%s12549_s0 + %s11138_s22]]   ;;  %s11142_s22 = smov 76  }
  0x8e   :  { %s11568_s17 = sld [smem:[%s12549_s0 + %s11139_s28]]   ;;  %s11143_s28 = smov 77  }
  0x8f   :  { %s11573_s30 = sld [smem:[%s12549_s0 + %s11140_s7]]   ;;  %s11144_s7 = smov 78  }
  0x90   :  { %12661 = sst [smem:[#allocation147_spill]] %s11578_s5 }
  0x91   :  { %s11598_s5 = sld [smem:[%s12549_s0 + %s11145_s15]]  }
  0x93   :  { %12658 = sst [smem:[#allocation144_spill]] %s11563_s19 }
  0x94   :  { %12659 = sst [smem:[#allocation145_spill]] %s11568_s17 }
  0x95   :  { %12660 = sst [smem:[#allocation146_spill]] %s11573_s30 }
  0x96   :  { %s11583_s19 = sld [smem:[%s12549_s0 + %s11142_s22]]  }
  0x97   :  { %s11588_s17 = sld [smem:[%s12549_s0 + %s11143_s28]]  }
  0x98   :  { %s11593_s30 = sld [smem:[%s12549_s0 + %s11144_s7]]  }
  0x99   :  { %165 = vsyncpa [#allocation3], 0 }
  0x9a   :  { %166 = vsyncpa [#allocation6], 0 }
  0x9b   :  { %167 = vsyncpa [#allocation9], 0 }
  0x9c   :  { %168 = vsyncpa [#allocation12], 0 }
  0x9d   :  { %169 = vsyncpa [#allocation15], 0 }
  0x9e   :  { %170 = vsyncpa [#allocation18], 0 }
  0x9f   :  { %171 = vsyncpa [#allocation21], 0 }
  0xa0   :  { %172 = vsyncpa [#allocation24], 0 }
  0xa1   :  { %173 = vsyncpa [#allocation27], 0 }
  0xa2   :  { %174 = vsyncpa [#allocation30], 0 }
  0xa3   :  { %175 = vsyncpa [#allocation33], 0 }
  0xa4   :  { %176 = vsyncpa [#allocation36], 0 }
  0xa5   :  { %177 = vsyncpa [#allocation39], 0 }
  0xa6   :  { %178 = vsyncpa [#allocation42], 0 }
  0xa7   :  { %179 = vsyncpa [#allocation45], 0 }
  0xa8   :  { %180 = vsyncpa [#allocation48], 0 }
  0xa9   :  { %181 = vsyncpa [#allocation51], 0 }
  0xaa   :  { %182 = vsyncpa [#allocation54], 0 }
  0xab   :  { %183 = vsyncpa [#allocation57], 0 }
  0xac   :  { %184 = vsyncpa [#allocation4], 0 }
  0xad   :  { %185 = vsyncpa [#allocation60], 0 }
  0xae   :  { %186 = vsyncpa [#allocation63], 0  ;;  %s11146_s0 = smov [#allocation5]   ;;  %s11147_s23 = smov [#allocation8]  }
  0xaf   :  { %s207_s22 = sshll.u32 %s11146_s0, 4  ;;  %s227_s26 = sshll.u32 %s11147_s23, 4  ;;  %s208_s22 = int_to_ptr.vmem [resolvable:$true] %s207_s22  ;;  %s228_s26 = int_to_ptr.vmem [resolvable:$true] %s227_s26 }
  0xb0   :  { %s10143_s28 = scalar_lea.hbm %s11213_s13, 16 }
  0xb1   :  { %p10144_p0 = scmp.ne.s32.totalorder %s11213_s13, %s10143_s28  ;;  %p10147_p1 = scmp.lt.u32.totalorder %s10143_s28, %s11213_s13 }
  0xb3   :  { %p10149_p2 = pnand %p10147_p1, %p10144_p0 }
  0xb5   :  { %10152 = shalt.err (!%p10149_p2)
}
  0xb6   :  { %s10153_s1 = scalar_lea.vmem %s208_s22, 16  ;;  %s10157_s2 = scalar_lea.vmem %s208_s22, 32 }
  0xb7   :  { %p10154_p3 = scmp.ne.s32.totalorder %s208_s22, %s10153_s1  ;;  %p10158_p4 = scmp.lt.s32.totalorder %s208_s22, %s208_s22 }
  0xb8   :  { %p10159_p5 = scmp.lt.s32.totalorder %s10157_s2, %s10153_s1 }
  0xba   :  { %p10160_p6 = por %p10159_p5, %p10158_p4 }
  0xbc   :  { %p10161_p7 = pnand %p10160_p6, %p10154_p3 }
  0xbe   :  { %10164 = shalt.err (!%p10161_p7)
}
  0xbf   :  { %210 = dma.hbm_to_vmem [thread:$0]  %s11213_s13, 16, %s208_s22, [#allocation6]  }
  0xc0   :  { %s10165_s7 = scalar_lea.hbm %s11223_s21, 16 }
  0xc1   :  { %p10166_p8 = scmp.ne.s32.totalorder %s11223_s21, %s10165_s7  ;;  %p10169_p9 = scmp.lt.u32.totalorder %s10165_s7, %s11223_s21 }
  0xc3   :  { %p10171_p10 = pnand %p10169_p9, %p10166_p8 }
  0xc5   :  { %10174 = shalt.err (!%p10171_p10)
}
  0xc6   :  { %s10175_s10 = scalar_lea.vmem %s228_s26, 16  ;;  %s10179_s11 = scalar_lea.vmem %s228_s26, 32 }
  0xc7   :  { %p10176_p11 = scmp.ne.s32.totalorder %s228_s26, %s10175_s10  ;;  %p10180_p12 = scmp.lt.s32.totalorder %s228_s26, %s228_s26 }
  0xc8   :  { %p10181_p13 = scmp.lt.s32.totalorder %s10179_s11, %s10175_s10 }
  0xca   :  { %p10182_p0 = por %p10181_p13, %p10180_p12 }
  0xcc   :  { %p10183_p1 = pnand %p10182_p0, %p10176_p11 }
  0xce   :  { %10186 = shalt.err (!%p10183_p1)
}
  0xcf   :  { %230 = dma.hbm_to_vmem [thread:$0]  %s11223_s21, 16, %s228_s26, [#allocation9]  }
  0xd0   :  { %s11148_s15 = smov [#allocation11]   ;;  %s11149_s16 = smov [#allocation14]  }
  0xd1   :  { %s253_s13 = sshll.u32 %s11148_s15, 4  ;;  %s273_s18 = sshll.u32 %s11149_s16, 4  ;;  %s254_s13 = int_to_ptr.vmem [resolvable:$true] %s253_s13  ;;  %s274_s18 = int_to_ptr.vmem [resolvable:$true] %s273_s18 }
  0xd2   :  { %s10187_s0 = scalar_lea.hbm %s11248_s14, 16 }
  0xd3   :  { %p10188_p2 = scmp.ne.s32.totalorder %s11248_s14, %s10187_s0  ;;  %p10191_p3 = scmp.lt.u32.totalorder %s10187_s0, %s11248_s14 }
  0xd5   :  { %p10193_p4 = pnand %p10191_p3, %p10188_p2 }
  0xd7   :  { %10196 = shalt.err (!%p10193_p4)
}
  0xd8   :  { %s10197_s22 = scalar_lea.vmem %s254_s13, 16  ;;  %s10201_s23 = scalar_lea.vmem %s254_s13, 32 }
  0xd9   :  { %p10198_p5 = scmp.ne.s32.totalorder %s254_s13, %s10197_s22  ;;  %p10202_p6 = scmp.lt.s32.totalorder %s254_s13, %s254_s13 }
  0xda   :  { %p10203_p7 = scmp.lt.s32.totalorder %s10201_s23, %s10197_s22 }
  0xdc   :  { %p10204_p8 = por %p10203_p7, %p10202_p6 }
  0xde   :  { %p10205_p9 = pnand %p10204_p8, %p10198_p5 }
  0xe0   :  { %10208 = shalt.err (!%p10205_p9)
}
  0xe1   :  { %256 = dma.hbm_to_vmem [thread:$0]  %s11248_s14, 16, %s254_s13, [#allocation12]  }
  0xe2   :  { %s10209_s21 = scalar_lea.hbm %s11258_s24, 16 }
  0xe3   :  { %p10210_p10 = scmp.ne.s32.totalorder %s11258_s24, %s10209_s21  ;;  %p10213_p11 = scmp.lt.u32.totalorder %s10209_s21, %s11258_s24 }
  0xe5   :  { %p10215_p12 = pnand %p10213_p11, %p10210_p10 }
  0xe7   :  { %10218 = shalt.err (!%p10215_p12)
}
  0xe8   :  { %s10219_s26 = scalar_lea.vmem %s274_s18, 16  ;;  %s10223_s28 = scalar_lea.vmem %s274_s18, 32 }
  0xe9   :  { %p10220_p13 = scmp.ne.s32.totalorder %s274_s18, %s10219_s26  ;;  %p10224_p0 = scmp.lt.s32.totalorder %s274_s18, %s274_s18 }
  0xea   :  { %p10225_p1 = scmp.lt.s32.totalorder %s10223_s28, %s10219_s26 }
  0xec   :  { %p10226_p2 = por %p10225_p1, %p10224_p0 }
  0xee   :  { %p10227_p3 = pnand %p10226_p2, %p10220_p13 }
  0xf0   :  { %10230 = shalt.err (!%p10227_p3)
}
  0xf1   :  { %276 = dma.hbm_to_vmem [thread:$0]  %s11258_s24, 16, %s274_s18, [#allocation15]  }
  0xf2   :  { %s11150_s1 = smov [#allocation17]   ;;  %s11151_s2 = smov [#allocation20]  }
  0xf3   :  { %s293_s14 = sshll.u32 %s11150_s1, 4  ;;  %s313_s7 = sshll.u32 %s11151_s2, 4  ;;  %s294_s14 = int_to_ptr.vmem [resolvable:$true] %s293_s14  ;;  %s314_s7 = int_to_ptr.vmem [resolvable:$true] %s313_s7 }
  0xf4   :  { %s10231_s10 = scalar_lea.hbm %s11268_s6, 16 }
  0xf5   :  { %p10232_p4 = scmp.ne.s32.totalorder %s11268_s6, %s10231_s10  ;;  %p10235_p5 = scmp.lt.u32.totalorder %s10231_s10, %s11268_s6 }
  0xf7   :  { %p10237_p6 = pnand %p10235_p5, %p10232_p4 }
  0xf9   :  { %10240 = shalt.err (!%p10237_p6)
}
  0xfa   :  { %s10241_s11 = scalar_lea.vmem %s294_s14, 16  ;;  %s10245_s15 = scalar_lea.vmem %s294_s14, 32 }
  0xfb   :  { %p10242_p7 = scmp.ne.s32.totalorder %s294_s14, %s10241_s11  ;;  %p10246_p8 = scmp.lt.s32.totalorder %s294_s14, %s294_s14 }
  0xfc   :  { %p10247_p9 = scmp.lt.s32.totalorder %s10245_s15, %s10241_s11 }
  0xfe   :  { %p10248_p10 = por %p10247_p9, %p10246_p8 }
 0x100   :  { %p10249_p11 = pnand %p10248_p10, %p10242_p7 }
 0x102   :  { %10252 = shalt.err (!%p10249_p11)
}
 0x103   :  { %296 = dma.hbm_to_vmem [thread:$0]  %s11268_s6, 16, %s294_s14, [#allocation18]  }
 0x104   :  { %s10253_s24 = scalar_lea.hbm %s11278_s20, 16 }
 0x105   :  { %p10254_p12 = scmp.ne.s32.totalorder %s11278_s20, %s10253_s24  ;;  %p10257_p13 = scmp.lt.u32.totalorder %s10253_s24, %s11278_s20 }
 0x107   :  { %p10259_p0 = pnand %p10257_p13, %p10254_p12 }
 0x109   :  { %10262 = shalt.err (!%p10259_p0)
}
 0x10a   :  { %s10263_s13 = scalar_lea.vmem %s314_s7, 16  ;;  %s10267_s16 = scalar_lea.vmem %s314_s7, 32 }
 0x10b   :  { %p10264_p1 = scmp.ne.s32.totalorder %s314_s7, %s10263_s13  ;;  %p10268_p2 = scmp.lt.s32.totalorder %s314_s7, %s314_s7 }
 0x10c   :  { %p10269_p3 = scmp.lt.s32.totalorder %s10267_s16, %s10263_s13 }
 0x10e   :  { %p10270_p4 = por %p10269_p3, %p10268_p2 }
 0x110   :  { %p10271_p5 = pnand %p10270_p4, %p10264_p1 }
 0x112   :  { %10274 = shalt.err (!%p10271_p5)
}
 0x113   :  { %316 = dma.hbm_to_vmem [thread:$0]  %s11278_s20, 16, %s314_s7, [#allocation21]  }
 0x114   :  { %s11152_s18 = smov [#allocation23]   ;;  %s11153_s0 = smov [#allocation26]  }
 0x115   :  { %s341_s6 = sshll.u32 %s11152_s18, 4  ;;  %s361_s22 = sshll.u32 %s11153_s0, 4  ;;  %s342_s6 = int_to_ptr.vmem [resolvable:$true] %s341_s6  ;;  %s362_s22 = int_to_ptr.vmem [resolvable:$true] %s361_s22 }
 0x116   :  { %s10275_s23 = scalar_lea.hbm %s11308_s25, 16 }
 0x117   :  { %p10276_p6 = scmp.ne.s32.totalorder %s11308_s25, %s10275_s23  ;;  %p10279_p7 = scmp.lt.u32.totalorder %s10275_s23, %s11308_s25 }
 0x119   :  { %p10281_p8 = pnand %p10279_p7, %p10276_p6 }
 0x11b   :  { %10284 = shalt.err (!%p10281_p8)
}
 0x11c   :  { %s10285_s21 = scalar_lea.vmem %s342_s6, 16  ;;  %s10289_s26 = scalar_lea.vmem %s342_s6, 32 }
 0x11d   :  { %p10286_p9 = scmp.ne.s32.totalorder %s342_s6, %s10285_s21  ;;  %p10290_p10 = scmp.lt.s32.totalorder %s342_s6, %s342_s6 }
 0x11e   :  { %p10291_p11 = scmp.lt.s32.totalorder %s10289_s26, %s10285_s21 }
 0x120   :  { %p10292_p12 = por %p10291_p11, %p10290_p10 }
 0x122   :  { %p10293_p13 = pnand %p10292_p12, %p10286_p9 }
 0x124   :  { %10296 = shalt.err (!%p10293_p13)
}
 0x125   :  { %344 = dma.hbm_to_vmem [thread:$0]  %s11308_s25, 16, %s342_s6, [#allocation24]  }
 0x126   :  { %s10297_s20 = scalar_lea.hbm %s11318_s8, 16 }
 0x127   :  { %p10298_p0 = scmp.ne.s32.totalorder %s11318_s8, %s10297_s20  ;;  %p10301_p1 = scmp.lt.u32.totalorder %s10297_s20, %s11318_s8 }
 0x129   :  { %p10303_p2 = pnand %p10301_p1, %p10298_p0 }
 0x12b   :  { %10306 = shalt.err (!%p10303_p2)
}
 0x12c   :  { %s10307_s28 = scalar_lea.vmem %s362_s22, 16  ;;  %s10311_s1 = scalar_lea.vmem %s362_s22, 32 }
 0x12d   :  { %p10308_p3 = scmp.ne.s32.totalorder %s362_s22, %s10307_s28  ;;  %p10312_p4 = scmp.lt.s32.totalorder %s362_s22, %s362_s22 }
 0x12e   :  { %p10313_p5 = scmp.lt.s32.totalorder %s10311_s1, %s10307_s28 }
 0x130   :  { %p10314_p6 = por %p10313_p5, %p10312_p4 }
 0x132   :  { %p10315_p7 = pnand %p10314_p6, %p10308_p3 }
 0x134   :  { %10318 = shalt.err (!%p10315_p7)
}
 0x135   :  { %364 = dma.hbm_to_vmem [thread:$0]  %s11318_s8, 16, %s362_s22, [#allocation27]  }
 0x136   :  { %s11154_s14 = smov [#allocation29]   ;;  %s11155_s2 = smov [#allocation32]  }
 0x137   :  { %s383_s25 = sshll.u32 %s11154_s14, 4  ;;  %s407_s7 = sshll.u32 %s11155_s2, 4  ;;  %s384_s25 = int_to_ptr.vmem [resolvable:$true] %s383_s25  ;;  %s408_s7 = int_to_ptr.vmem [resolvable:$true] %s407_s7 }
 0x138   :  { %s10319_s10 = scalar_lea.hbm %s11333_s9, 16 }
 0x139   :  { %p10320_p8 = scmp.ne.s32.totalorder %s11333_s9, %s10319_s10  ;;  %p10323_p9 = scmp.lt.u32.totalorder %s10319_s10, %s11333_s9 }
 0x13b   :  { %p10325_p10 = pnand %p10323_p9, %p10320_p8 }
 0x13d   :  { %10328 = shalt.err (!%p10325_p10)
}
 0x13e   :  { %s10329_s11 = scalar_lea.vmem %s384_s25, 16  ;;  %s10333_s15 = scalar_lea.vmem %s384_s25, 32 }
 0x13f   :  { %p10330_p11 = scmp.ne.s32.totalorder %s384_s25, %s10329_s11  ;;  %p10334_p12 = scmp.lt.s32.totalorder %s384_s25, %s384_s25 }
 0x140   :  { %p10335_p13 = scmp.lt.s32.totalorder %s10333_s15, %s10329_s11 }
 0x142   :  { %p10336_p0 = por %p10335_p13, %p10334_p12 }
 0x144   :  { %p10337_p1 = pnand %p10336_p0, %p10330_p11 }
 0x146   :  { %10340 = shalt.err (!%p10337_p1)
}
 0x147   :  { %386 = dma.hbm_to_vmem [thread:$0]  %s11333_s9, 16, %s384_s25, [#allocation30]  }
 0x148   :  { %s10341_s8 = scalar_lea.hbm %s11353_s12, 16 }
 0x149   :  { %p10342_p2 = scmp.ne.s32.totalorder %s11353_s12, %s10341_s8  ;;  %p10345_p3 = scmp.lt.u32.totalorder %s10341_s8, %s11353_s12 }
 0x14b   :  { %p10347_p4 = pnand %p10345_p3, %p10342_p2 }
 0x14d   :  { %10350 = shalt.err (!%p10347_p4)
}
 0x14e   :  { %s10351_s24 = scalar_lea.vmem %s408_s7, 16  ;;  %s10355_s13 = scalar_lea.vmem %s408_s7, 32 }
 0x14f   :  { %p10352_p5 = scmp.ne.s32.totalorder %s408_s7, %s10351_s24  ;;  %p10356_p6 = scmp.lt.s32.totalorder %s408_s7, %s408_s7 }
 0x150   :  { %p10357_p7 = scmp.lt.s32.totalorder %s10355_s13, %s10351_s24 }
 0x152   :  { %p10358_p8 = por %p10357_p7, %p10356_p6 }
 0x154   :  { %p10359_p9 = pnand %p10358_p8, %p10352_p5 }
 0x156   :  { %10362 = shalt.err (!%p10359_p9)
}
 0x157   :  { %410 = dma.hbm_to_vmem [thread:$0]  %s11353_s12, 16, %s408_s7, [#allocation33]  }
 0x158   :  { %s11156_s16 = smov [#allocation35]   ;;  %s11157_s18 = smov [#allocation38]  }
 0x159   :  { %s427_s9 = sshll.u32 %s11156_s16, 4  ;;  %s449_s6 = sshll.u32 %s11157_s18, 4  ;;  %s428_s9 = int_to_ptr.vmem [resolvable:$true] %s427_s9  ;;  %s450_s6 = int_to_ptr.vmem [resolvable:$true] %s449_s6 }
 0x15a   :  { %s10363_s0 = scalar_lea.hbm %s11363_s3, 16 }
 0x15b   :  { %p10364_p10 = scmp.ne.s32.totalorder %s11363_s3, %s10363_s0  ;;  %p10367_p11 = scmp.lt.u32.totalorder %s10363_s0, %s11363_s3 }
 0x15d   :  { %p10369_p12 = pnand %p10367_p11, %p10364_p10 }
 0x15f   :  { %10372 = shalt.err (!%p10369_p12)
}
 0x160   :  { %s10373_s22 = scalar_lea.vmem %s428_s9, 16  ;;  %s10377_s23 = scalar_lea.vmem %s428_s9, 32 }
 0x161   :  { %p10374_p13 = scmp.ne.s32.totalorder %s428_s9, %s10373_s22  ;;  %p10378_p0 = scmp.lt.s32.totalorder %s428_s9, %s428_s9 }
 0x162   :  { %p10379_p1 = scmp.lt.s32.totalorder %s10377_s23, %s10373_s22 }
 0x164   :  { %p10380_p2 = por %p10379_p1, %p10378_p0 }
 0x166   :  { %p10381_p3 = pnand %p10380_p2, %p10374_p13 }
 0x168   :  { %10384 = shalt.err (!%p10381_p3)
}
 0x169   :  { %430 = dma.hbm_to_vmem [thread:$0]  %s11363_s3, 16, %s428_s9, [#allocation36]  }
 0x16a   :  { %s10385_s12 = scalar_lea.hbm %s11378_s27, 16 }
 0x16b   :  { %p10386_p4 = scmp.ne.s32.totalorder %s11378_s27, %s10385_s12  ;;  %p10389_p5 = scmp.lt.u32.totalorder %s10385_s12, %s11378_s27 }
 0x16d   :  { %p10391_p6 = pnand %p10389_p5, %p10386_p4 }
 0x16f   :  { %10394 = shalt.err (!%p10391_p6)
}
 0x170   :  { %s10395_s21 = scalar_lea.vmem %s450_s6, 16  ;;  %s10399_s26 = scalar_lea.vmem %s450_s6, 32 }
 0x171   :  { %p10396_p7 = scmp.ne.s32.totalorder %s450_s6, %s10395_s21  ;;  %p10400_p8 = scmp.lt.s32.totalorder %s450_s6, %s450_s6 }
 0x172   :  { %p10401_p9 = scmp.lt.s32.totalorder %s10399_s26, %s10395_s21 }
 0x174   :  { %p10402_p10 = por %p10401_p9, %p10400_p8 }
 0x176   :  { %p10403_p11 = pnand %p10402_p10, %p10396_p7 }
 0x178   :  { %10406 = shalt.err (!%p10403_p11)
}
 0x179   :  { %452 = dma.hbm_to_vmem [thread:$0]  %s11378_s27, 16, %s450_s6, [#allocation39]  }
 0x17a   :  { %s11158_s20 = smov [#allocation41]   ;;  %s11159_s28 = smov [#allocation44]  }
 0x17b   :  { %s477_s3 = sshll.u32 %s11158_s20, 4  ;;  %s529_s1 = sshll.u32 %s11159_s28, 4  ;;  %s478_s3 = int_to_ptr.vmem [resolvable:$true] %s477_s3  ;;  %s530_s1 = int_to_ptr.vmem [resolvable:$true] %s529_s1 }
 0x17c   :  { %s10407_s14 = scalar_lea.hbm %s11408_s4, 16 }
 0x17d   :  { %p10408_p12 = scmp.ne.s32.totalorder %s11408_s4, %s10407_s14  ;;  %p10411_p13 = scmp.lt.u32.totalorder %s10407_s14, %s11408_s4 }
 0x17f   :  { %p10413_p0 = pnand %p10411_p13, %p10408_p12 }
 0x181   :  { %10416 = shalt.err (!%p10413_p0)
}
 0x182   :  { %s10417_s25 = scalar_lea.vmem %s478_s3, 16  ;;  %s10421_s2 = scalar_lea.vmem %s478_s3, 32 }
 0x183   :  { %p10418_p1 = scmp.ne.s32.totalorder %s478_s3, %s10417_s25  ;;  %p10422_p2 = scmp.lt.s32.totalorder %s478_s3, %s478_s3 }
 0x184   :  { %p10423_p3 = scmp.lt.s32.totalorder %s10421_s2, %s10417_s25 }
 0x186   :  { %p10424_p4 = por %p10423_p3, %p10422_p2 }
 0x188   :  { %p10425_p5 = pnand %p10424_p4, %p10418_p1 }
 0x18a   :  { %10428 = shalt.err (!%p10425_p5)
}
 0x18b   :  { %480 = dma.hbm_to_vmem [thread:$0]  %s11408_s4, 16, %s478_s3, [#allocation42]  }
 0x18c   :  { %s10429_s27 = scalar_lea.hbm %s11498_s29, 16 }
 0x18d   :  { %p10430_p6 = scmp.ne.s32.totalorder %s11498_s29, %s10429_s27  ;;  %p10433_p7 = scmp.lt.u32.totalorder %s10429_s27, %s11498_s29 }
 0x18f   :  { %p10435_p8 = pnand %p10433_p7, %p10430_p6 }
 0x191   :  { %10438 = shalt.err (!%p10435_p8)
}
 0x192   :  { %s10439_s7 = scalar_lea.vmem %s530_s1, 16  ;;  %s10443_s10 = scalar_lea.vmem %s530_s1, 32 }
 0x193   :  { %p10440_p9 = scmp.ne.s32.totalorder %s530_s1, %s10439_s7  ;;  %p10444_p10 = scmp.lt.s32.totalorder %s530_s1, %s530_s1 }
 0x194   :  { %p10445_p11 = scmp.lt.s32.totalorder %s10443_s10, %s10439_s7 }
 0x196   :  { %p10446_p12 = por %p10445_p11, %p10444_p10 }
 0x198   :  { %p10447_p13 = pnand %p10446_p12, %p10440_p9 }
 0x19a   :  { %10450 = shalt.err (!%p10447_p13)
}
 0x19b   :  { %s12662_s11 = sld [smem:[#allocation133_spill]]  ;;  %s11160_s15 = smov [#allocation47]  }
 0x19c   :  { %532 = dma.hbm_to_vmem [thread:$0]  %s11498_s29, 16, %s530_s1, [#allocation45]  }
 0x19d   :  { %s549_s4 = sshll.u32 %s11160_s15, 4  ;;  %s11161_s8 = smov [#allocation50]   ;;  %s550_s4 = int_to_ptr.vmem [resolvable:$true] %s549_s4 }
 0x19e   :  { %s569_s24 = sshll.u32 %s11161_s8, 4  ;;  %s570_s24 = int_to_ptr.vmem [resolvable:$true] %s569_s24 }
 0x1a1   :  { %s10451_s13 = scalar_lea.hbm %s12662_s11, 16 }
 0x1a2   :  { %p10452_p0 = scmp.ne.s32.totalorder %s12662_s11, %s10451_s13  ;;  %p10455_p1 = scmp.lt.u32.totalorder %s10451_s13, %s12662_s11 }
 0x1a4   :  { %p10457_p2 = pnand %p10455_p1, %p10452_p0 }
 0x1a6   :  { %10460 = shalt.err (!%p10457_p2)
}
 0x1a7   :  { %s10461_s16 = scalar_lea.vmem %s550_s4, 16  ;;  %s10465_s9 = scalar_lea.vmem %s550_s4, 32 }
 0x1a8   :  { %p10462_p3 = scmp.ne.s32.totalorder %s550_s4, %s10461_s16  ;;  %p10466_p4 = scmp.lt.s32.totalorder %s550_s4, %s550_s4 }
 0x1a9   :  { %p10467_p5 = scmp.lt.s32.totalorder %s10465_s9, %s10461_s16 }
 0x1ab   :  { %p10468_p6 = por %p10467_p5, %p10466_p4 }
 0x1ad   :  { %p10469_p7 = pnand %p10468_p6, %p10462_p3 }
 0x1af   :  { %10472 = shalt.err (!%p10469_p7)
}
 0x1b0   :  { %s12663_s29 = sld [smem:[#allocation135_spill]] }
 0x1b1   :  { %552 = dma.hbm_to_vmem [thread:$0]  %s12662_s11, 16, %s550_s4, [#allocation48]  }
 0x1b6   :  { %s10473_s18 = scalar_lea.hbm %s12663_s29, 16 }
 0x1b7   :  { %p10474_p8 = scmp.ne.s32.totalorder %s12663_s29, %s10473_s18  ;;  %p10477_p9 = scmp.lt.u32.totalorder %s10473_s18, %s12663_s29 }
 0x1b9   :  { %p10479_p10 = pnand %p10477_p9, %p10474_p8 }
 0x1bb   :  { %10482 = shalt.err (!%p10479_p10)
}
 0x1bc   :  { %s10483_s6 = scalar_lea.vmem %s570_s24, 16  ;;  %s10487_s0 = scalar_lea.vmem %s570_s24, 32 }
 0x1bd   :  { %p10484_p11 = scmp.ne.s32.totalorder %s570_s24, %s10483_s6  ;;  %p10488_p12 = scmp.lt.s32.totalorder %s570_s24, %s570_s24 }
 0x1be   :  { %p10489_p13 = scmp.lt.s32.totalorder %s10487_s0, %s10483_s6 }
 0x1c0   :  { %p10490_p0 = por %p10489_p13, %p10488_p12 }
 0x1c2   :  { %p10491_p1 = pnand %p10490_p0, %p10484_p11 }
 0x1c4   :  { %10494 = shalt.err (!%p10491_p1)
}
 0x1c5   :  { %s12664_s22 = sld [smem:[#allocation141_spill]]  ;;  %s11162_s23 = smov [#allocation53]  }
 0x1c6   :  { %572 = dma.hbm_to_vmem [thread:$0]  %s12663_s29, 16, %s570_s24, [#allocation51]  }
 0x1c7   :  { %s597_s12 = sshll.u32 %s11162_s23, 4  ;;  %s11163_s21 = smov [#allocation2]   ;;  %s598_s12 = int_to_ptr.vmem [resolvable:$true] %s597_s12 }
 0x1c8   :  { %s192_s26 = sshll.u32 %s11163_s21, 4  ;;  %s11664_s26 = int_to_ptr.vmem [resolvable:$true] %s192_s26 }
 0x1cb   :  { %s10495_s20 = scalar_lea.hbm %s12664_s22, 16 }
 0x1cc   :  { %p10496_p2 = scmp.ne.s32.totalorder %s12664_s22, %s10495_s20  ;;  %p10499_p3 = scmp.lt.u32.totalorder %s10495_s20, %s12664_s22 }
 0x1ce   :  { %p10501_p4 = pnand %p10499_p3, %p10496_p2 }
 0x1d0   :  { %10504 = shalt.err (!%p10501_p4)
}
 0x1d1   :  { %s10505_s3 = scalar_lea.vmem %s598_s12, 16  ;;  %s10509_s28 = scalar_lea.vmem %s598_s12, 32 }
 0x1d2   :  { %p10506_p5 = scmp.ne.s32.totalorder %s598_s12, %s10505_s3  ;;  %p10510_p6 = scmp.lt.s32.totalorder %s598_s12, %s598_s12 }
 0x1d3   :  { %p10511_p7 = scmp.lt.s32.totalorder %s10509_s28, %s10505_s3 }
 0x1d5   :  { %p10512_p8 = por %p10511_p7, %p10510_p6 }
 0x1d7   :  { %p10513_p9 = pnand %p10512_p8, %p10506_p5 }
 0x1d9   :  { %10516 = shalt.err (!%p10513_p9)
}
 0x1da   :  { %s12665_s1 = sld [smem:[#allocation86_spill]] }
 0x1db   :  { %600 = dma.hbm_to_vmem [thread:$0]  %s12664_s22, 16, %s598_s12, [#allocation54]  }
 0x1e0   :  { %s10517_s14 = scalar_lea.hbm %s12665_s1, 256 }
 0x1e1   :  { %p10518_p10 = scmp.ne.s32.totalorder %s12665_s1, %s10517_s14  ;;  %p10521_p11 = scmp.lt.u32.totalorder %s10517_s14, %s12665_s1 }
 0x1e3   :  { %p10523_p12 = pnand %p10521_p11, %p10518_p10 }
 0x1e5   :  { %10526 = shalt.err (!%p10523_p12)
}
 0x1e6   :  { %s10527_s25 = scalar_lea.vmem %s11664_s26, 256  ;;  %p10532_p0 = scmp.lt.s32.totalorder %s11664_s26, %s11664_s26 }
 0x1e7   :  { %p10528_p13 = scmp.ne.s32.totalorder %s11664_s26, %s10527_s25  ;;  %p10533_p1 = scmp.lt.s32.totalorder %s10527_s25, %s10527_s25 }
 0x1e9   :  { %p10534_p2 = por %p10533_p1, %p10532_p0 }
 0x1eb   :  { %p10535_p3 = pnand %p10534_p2, %p10528_p13 }
 0x1ed   :  { %10538 = shalt.err (!%p10535_p3)
}
 0x1ee   :  { %s11164_s2 = smov 128   ;;  %s12666_s27 = sld [smem:[#allocation88_spill]] }
 0x1ef   :  { %s11165_s7 = smov 8   ;;  %s11166_s10 = smov [#allocation7]  }
 0x1f0   :  { %198 = dma.hbm_to_vmem [thread:$0]  %s12665_s1, 256, %s11664_s26, [#allocation3], %s11164_s2, %s11164_s2, %s11165_s7  }
 0x1f1   :  { %s217_s11 = sshll.u32 %s11166_s10, 4  ;;  %s11167_s15 = smov [#allocation10]   ;;  %s218_s11 = int_to_ptr.vmem [resolvable:$true] %s217_s11 }
 0x1f2   :  { %s239_s4 = sshll.u32 %s11167_s15, 4  ;;  %s240_s4 = int_to_ptr.vmem [resolvable:$true] %s239_s4 }
 0x1f4   :  { %s10539_s8 = scalar_lea.hbm %s12666_s27, 16 }
 0x1f5   :  { %p10540_p4 = scmp.ne.s32.totalorder %s12666_s27, %s10539_s8  ;;  %p10543_p5 = scmp.lt.u32.totalorder %s10539_s8, %s12666_s27 }
 0x1f7   :  { %p10545_p6 = pnand %p10543_p5, %p10540_p4 }
 0x1f9   :  { %10548 = shalt.err (!%p10545_p6)
}
 0x1fa   :  { %s10549_s24 = scalar_lea.vmem %s218_s11, 16  ;;  %s10553_s13 = scalar_lea.vmem %s218_s11, 32 }
 0x1fb   :  { %p10550_p7 = scmp.ne.s32.totalorder %s218_s11, %s10549_s24  ;;  %p10554_p8 = scmp.lt.s32.totalorder %s218_s11, %s218_s11 }
 0x1fc   :  { %p10555_p9 = scmp.lt.s32.totalorder %s10553_s13, %s10549_s24 }
 0x1fe   :  { %p10556_p10 = por %p10555_p9, %p10554_p8 }
 0x200   :  { %p10557_p11 = pnand %p10556_p10, %p10550_p7 }
 0x202   :  { %10560 = shalt.err (!%p10557_p11)
}
 0x203   :  { %s12667_s16 = sld [smem:[#allocation90_spill]] }
 0x204   :  { %220 = dma.hbm_to_vmem [thread:$0]  %s12666_s27, 16, %s218_s11, [#allocation6]  }
 0x209   :  { %s10561_s9 = scalar_lea.hbm %s12667_s16, 16 }
 0x20a   :  { %p10562_p12 = scmp.ne.s32.totalorder %s12667_s16, %s10561_s9  ;;  %p10565_p13 = scmp.lt.u32.totalorder %s10561_s9, %s12667_s16 }
 0x20c   :  { %p10567_p0 = pnand %p10565_p13, %p10562_p12 }
 0x20e   :  { %10570 = shalt.err (!%p10567_p0)
}
 0x20f   :  { %s10571_s29 = scalar_lea.vmem %s240_s4, 16  ;;  %s10575_s18 = scalar_lea.vmem %s240_s4, 32 }
 0x210   :  { %p10572_p1 = scmp.ne.s32.totalorder %s240_s4, %s10571_s29  ;;  %p10576_p2 = scmp.lt.s32.totalorder %s240_s4, %s240_s4 }
 0x211   :  { %p10577_p3 = scmp.lt.s32.totalorder %s10575_s18, %s10571_s29 }
 0x213   :  { %p10578_p4 = por %p10577_p3, %p10576_p2 }
 0x215   :  { %p10579_p5 = pnand %p10578_p4, %p10572_p1 }
 0x217   :  { %10582 = shalt.err (!%p10579_p5)
}
 0x218   :  { %s12668_s6 = sld [smem:[#allocation93_spill]]  ;;  %s11168_s0 = smov [#allocation13]  }
 0x219   :  { %242 = dma.hbm_to_vmem [thread:$0]  %s12667_s16, 16, %s240_s4, [#allocation9]  }
 0x21a   :  { %s263_s22 = sshll.u32 %s11168_s0, 4  ;;  %s11169_s23 = smov [#allocation16]   ;;  %s264_s22 = int_to_ptr.vmem [resolvable:$true] %s263_s22 }
 0x21b   :  { %s283_s12 = sshll.u32 %s11169_s23, 4  ;;  %s284_s12 = int_to_ptr.vmem [resolvable:$true] %s283_s12 }
 0x21e   :  { %s10583_s21 = scalar_lea.hbm %s12668_s6, 16 }
 0x21f   :  { %p10584_p6 = scmp.ne.s32.totalorder %s12668_s6, %s10583_s21  ;;  %p10587_p7 = scmp.lt.u32.totalorder %s10583_s21, %s12668_s6 }
 0x221   :  { %p10589_p8 = pnand %p10587_p7, %p10584_p6 }
 0x223   :  { %10592 = shalt.err (!%p10589_p8)
}
 0x224   :  { %s10593_s26 = scalar_lea.vmem %s264_s22, 16  ;;  %s10597_s20 = scalar_lea.vmem %s264_s22, 32 }
 0x225   :  { %p10594_p9 = scmp.ne.s32.totalorder %s264_s22, %s10593_s26  ;;  %p10598_p10 = scmp.lt.s32.totalorder %s264_s22, %s264_s22 }
 0x226   :  { %p10599_p11 = scmp.lt.s32.totalorder %s10597_s20, %s10593_s26 }
 0x228   :  { %p10600_p12 = por %p10599_p11, %p10598_p10 }
 0x22a   :  { %p10601_p13 = pnand %p10600_p12, %p10594_p9 }
 0x22c   :  { %10604 = shalt.err (!%p10601_p13)
}
 0x22d   :  { %s12669_s3 = sld [smem:[#allocation94_spill]] }
 0x22e   :  { %266 = dma.hbm_to_vmem [thread:$0]  %s12668_s6, 16, %s264_s22, [#allocation12]  }
 0x233   :  { %s10605_s28 = scalar_lea.hbm %s12669_s3, 16 }
 0x234   :  { %p10606_p0 = scmp.ne.s32.totalorder %s12669_s3, %s10605_s28  ;;  %p10609_p1 = scmp.lt.u32.totalorder %s10605_s28, %s12669_s3 }
 0x236   :  { %p10611_p2 = pnand %p10609_p1, %p10606_p0 }
 0x238   :  { %10614 = shalt.err (!%p10611_p2)
}
 0x239   :  { %s10615_s1 = scalar_lea.vmem %s284_s12, 16  ;;  %s10619_s14 = scalar_lea.vmem %s284_s12, 32 }
 0x23a   :  { %p10616_p3 = scmp.ne.s32.totalorder %s284_s12, %s10615_s1  ;;  %p10620_p4 = scmp.lt.s32.totalorder %s284_s12, %s284_s12 }
 0x23b   :  { %p10621_p5 = scmp.lt.s32.totalorder %s10619_s14, %s10615_s1 }
 0x23d   :  { %p10622_p6 = por %p10621_p5, %p10620_p4 }
 0x23f   :  { %p10623_p7 = pnand %p10622_p6, %p10616_p3 }
 0x241   :  { %10626 = shalt.err (!%p10623_p7)
}
 0x242   :  { %s12670_s25 = sld [smem:[#allocation95_spill]]  ;;  %s11170_s27 = smov [#allocation19]  }
 0x243   :  { %286 = dma.hbm_to_vmem [thread:$0]  %s12669_s3, 16, %s284_s12, [#allocation15]  }
 0x244   :  { %s303_s10 = sshll.u32 %s11170_s27, 4  ;;  %s11171_s11 = smov [#allocation22]   ;;  %s304_s10 = int_to_ptr.vmem [resolvable:$true] %s303_s10 }
 0x245   :  { %s323_s15 = sshll.u32 %s11171_s11, 4  ;;  %s324_s15 = int_to_ptr.vmem [resolvable:$true] %s323_s15 }
 0x248   :  { %s10627_s4 = scalar_lea.hbm %s12670_s25, 16 }
 0x249   :  { %p10628_p8 = scmp.ne.s32.totalorder %s12670_s25, %s10627_s4  ;;  %p10631_p9 = scmp.lt.u32.totalorder %s10627_s4, %s12670_s25 }
 0x24b   :  { %p10633_p10 = pnand %p10631_p9, %p10628_p8 }
 0x24d   :  { %10636 = shalt.err (!%p10633_p10)
}
 0x24e   :  { %s10637_s8 = scalar_lea.vmem %s304_s10, 16  ;;  %s10641_s24 = scalar_lea.vmem %s304_s10, 32 }
 0x24f   :  { %p10638_p11 = scmp.ne.s32.totalorder %s304_s10, %s10637_s8  ;;  %p10642_p12 = scmp.lt.s32.totalorder %s304_s10, %s304_s10 }
 0x250   :  { %p10643_p13 = scmp.lt.s32.totalorder %s10641_s24, %s10637_s8 }
 0x252   :  { %p10644_p0 = por %p10643_p13, %p10642_p12 }
 0x254   :  { %p10645_p1 = pnand %p10644_p0, %p10638_p11 }
 0x256   :  { %10648 = shalt.err (!%p10645_p1)
}
 0x257   :  { %s12671_s13 = sld [smem:[#allocation96_spill]] }
 0x258   :  { %306 = dma.hbm_to_vmem [thread:$0]  %s12670_s25, 16, %s304_s10, [#allocation18]  }
 0x25d   :  { %s10649_s16 = scalar_lea.hbm %s12671_s13, 16 }
 0x25e   :  { %p10650_p2 = scmp.ne.s32.totalorder %s12671_s13, %s10649_s16  ;;  %p10653_p3 = scmp.lt.u32.totalorder %s10649_s16, %s12671_s13 }
 0x260   :  { %p10655_p4 = pnand %p10653_p3, %p10650_p2 }
 0x262   :  { %10658 = shalt.err (!%p10655_p4)
}
 0x263   :  { %s10659_s9 = scalar_lea.vmem %s324_s15, 16  ;;  %s10663_s29 = scalar_lea.vmem %s324_s15, 32 }
 0x264   :  { %p10660_p5 = scmp.ne.s32.totalorder %s324_s15, %s10659_s9  ;;  %p10664_p6 = scmp.lt.s32.totalorder %s324_s15, %s324_s15 }
 0x265   :  { %p10665_p7 = scmp.lt.s32.totalorder %s10663_s29, %s10659_s9 }
 0x267   :  { %p10666_p8 = por %p10665_p7, %p10664_p6 }
 0x269   :  { %p10667_p9 = pnand %p10666_p8, %p10660_p5 }
 0x26b   :  { %10670 = shalt.err (!%p10667_p9)
}
 0x26c   :  { %s12672_s18 = sld [smem:[#allocation101_spill]]  ;;  %s11172_s6 = smov [#allocation25]  }
 0x26d   :  { %326 = dma.hbm_to_vmem [thread:$0]  %s12671_s13, 16, %s324_s15, [#allocation21]  }
 0x26e   :  { %s351_s0 = sshll.u32 %s11172_s6, 4  ;;  %s11173_s22 = smov [#allocation28]   ;;  %s352_s0 = int_to_ptr.vmem [resolvable:$true] %s351_s0 }
 0x26f   :  { %s371_s23 = sshll.u32 %s11173_s22, 4  ;;  %s372_s23 = int_to_ptr.vmem [resolvable:$true] %s371_s23 }
 0x272   :  { %s10671_s12 = scalar_lea.hbm %s12672_s18, 16 }
 0x273   :  { %p10672_p10 = scmp.ne.s32.totalorder %s12672_s18, %s10671_s12  ;;  %p10675_p11 = scmp.lt.u32.totalorder %s10671_s12, %s12672_s18 }
 0x275   :  { %p10677_p12 = pnand %p10675_p11, %p10672_p10 }
 0x277   :  { %10680 = shalt.err (!%p10677_p12)
}
 0x278   :  { %s10681_s21 = scalar_lea.vmem %s352_s0, 16  ;;  %s10685_s26 = scalar_lea.vmem %s352_s0, 32 }
 0x279   :  { %p10682_p13 = scmp.ne.s32.totalorder %s352_s0, %s10681_s21  ;;  %p10686_p0 = scmp.lt.s32.totalorder %s352_s0, %s352_s0 }
 0x27a   :  { %p10687_p1 = scmp.lt.s32.totalorder %s10685_s26, %s10681_s21 }
 0x27c   :  { %p10688_p2 = por %p10687_p1, %p10686_p0 }
 0x27e   :  { %p10689_p3 = pnand %p10688_p2, %p10682_p13 }
 0x280   :  { %10692 = shalt.err (!%p10689_p3)
}
 0x281   :  { %s12673_s20 = sld [smem:[#allocation102_spill]] }
 0x282   :  { %354 = dma.hbm_to_vmem [thread:$0]  %s12672_s18, 16, %s352_s0, [#allocation24]  }
 0x287   :  { %s10693_s3 = scalar_lea.hbm %s12673_s20, 16 }
 0x288   :  { %p10694_p4 = scmp.ne.s32.totalorder %s12673_s20, %s10693_s3  ;;  %p10697_p5 = scmp.lt.u32.totalorder %s10693_s3, %s12673_s20 }
 0x28a   :  { %p10699_p6 = pnand %p10697_p5, %p10694_p4 }
 0x28c   :  { %10702 = shalt.err (!%p10699_p6)
}
 0x28d   :  { %s10703_s28 = scalar_lea.vmem %s372_s23, 16  ;;  %s10707_s1 = scalar_lea.vmem %s372_s23, 32 }
 0x28e   :  { %p10704_p7 = scmp.ne.s32.totalorder %s372_s23, %s10703_s28  ;;  %p10708_p8 = scmp.lt.s32.totalorder %s372_s23, %s372_s23 }
 0x28f   :  { %p10709_p9 = scmp.lt.s32.totalorder %s10707_s1, %s10703_s28 }
 0x291   :  { %p10710_p10 = por %p10709_p9, %p10708_p8 }
 0x293   :  { %p10711_p11 = pnand %p10710_p10, %p10704_p7 }
 0x295   :  { %10714 = shalt.err (!%p10711_p11)
}
 0x296   :  { %s12674_s14 = sld [smem:[#allocation106_spill]]  ;;  %s11174_s25 = smov [#allocation31]  }
 0x297   :  { %374 = dma.hbm_to_vmem [thread:$0]  %s12673_s20, 16, %s372_s23, [#allocation27]  }
 0x298   :  { %s397_s27 = sshll.u32 %s11174_s25, 4  ;;  %s11175_s10 = smov [#allocation34]   ;;  %s398_s27 = int_to_ptr.vmem [resolvable:$true] %s397_s27 }
 0x299   :  { %s417_s11 = sshll.u32 %s11175_s10, 4  ;;  %s418_s11 = int_to_ptr.vmem [resolvable:$true] %s417_s11 }
 0x29c   :  { %s10715_s15 = scalar_lea.hbm %s12674_s14, 16 }
 0x29d   :  { %p10716_p12 = scmp.ne.s32.totalorder %s12674_s14, %s10715_s15  ;;  %p10719_p13 = scmp.lt.u32.totalorder %s10715_s15, %s12674_s14 }
 0x29f   :  { %p10721_p0 = pnand %p10719_p13, %p10716_p12 }
 0x2a1   :  { %10724 = shalt.err (!%p10721_p0)
}
 0x2a2   :  { %s10725_s4 = scalar_lea.vmem %s398_s27, 16  ;;  %s10729_s8 = scalar_lea.vmem %s398_s27, 32 }
 0x2a3   :  { %p10726_p1 = scmp.ne.s32.totalorder %s398_s27, %s10725_s4  ;;  %p10730_p2 = scmp.lt.s32.totalorder %s398_s27, %s398_s27 }
 0x2a4   :  { %p10731_p3 = scmp.lt.s32.totalorder %s10729_s8, %s10725_s4 }
 0x2a6   :  { %p10732_p4 = por %p10731_p3, %p10730_p2 }
 0x2a8   :  { %p10733_p5 = pnand %p10732_p4, %p10726_p1 }
 0x2aa   :  { %10736 = shalt.err (!%p10733_p5)
}
 0x2ab   :  { %s12675_s24 = sld [smem:[#allocation107_spill]] }
 0x2ac   :  { %400 = dma.hbm_to_vmem [thread:$0]  %s12674_s14, 16, %s398_s27, [#allocation30]  }
 0x2b1   :  { %s10737_s13 = scalar_lea.hbm %s12675_s24, 16 }
 0x2b2   :  { %p10738_p6 = scmp.ne.s32.totalorder %s12675_s24, %s10737_s13  ;;  %p10741_p7 = scmp.lt.u32.totalorder %s10737_s13, %s12675_s24 }
 0x2b4   :  { %p10743_p8 = pnand %p10741_p7, %p10738_p6 }
 0x2b6   :  { %10746 = shalt.err (!%p10743_p8)
}
 0x2b7   :  { %s10747_s16 = scalar_lea.vmem %s418_s11, 16  ;;  %s10751_s9 = scalar_lea.vmem %s418_s11, 32 }
 0x2b8   :  { %p10748_p9 = scmp.ne.s32.totalorder %s418_s11, %s10747_s16  ;;  %p10752_p10 = scmp.lt.s32.totalorder %s418_s11, %s418_s11 }
 0x2b9   :  { %p10753_p11 = scmp.lt.s32.totalorder %s10751_s9, %s10747_s16 }
 0x2bb   :  { %p10754_p12 = por %p10753_p11, %p10752_p10 }
 0x2bd   :  { %p10755_p13 = pnand %p10754_p12, %p10748_p9 }
 0x2bf   :  { %10758 = shalt.err (!%p10755_p13)
}
 0x2c0   :  { %s12676_s29 = sld [smem:[#allocation109_spill]]  ;;  %s11176_s18 = smov [#allocation37]  }
 0x2c1   :  { %420 = dma.hbm_to_vmem [thread:$0]  %s12675_s24, 16, %s418_s11, [#allocation33]  }
 0x2c2   :  { %s439_s6 = sshll.u32 %s11176_s18, 4  ;;  %s11177_s0 = smov [#allocation40]   ;;  %s440_s6 = int_to_ptr.vmem [resolvable:$true] %s439_s6 }
 0x2c3   :  { %s459_s22 = sshll.u32 %s11177_s0, 4  ;;  %s460_s22 = int_to_ptr.vmem [resolvable:$true] %s459_s22 }
 0x2c6   :  { %s10759_s23 = scalar_lea.hbm %s12676_s29, 16 }
 0x2c7   :  { %p10760_p0 = scmp.ne.s32.totalorder %s12676_s29, %s10759_s23  ;;  %p10763_p1 = scmp.lt.u32.totalorder %s10759_s23, %s12676_s29 }
 0x2c9   :  { %p10765_p2 = pnand %p10763_p1, %p10760_p0 }
 0x2cb   :  { %10768 = shalt.err (!%p10765_p2)
}
 0x2cc   :  { %s10769_s12 = scalar_lea.vmem %s440_s6, 16  ;;  %s10773_s21 = scalar_lea.vmem %s440_s6, 32 }
 0x2cd   :  { %p10770_p3 = scmp.ne.s32.totalorder %s440_s6, %s10769_s12  ;;  %p10774_p4 = scmp.lt.s32.totalorder %s440_s6, %s440_s6 }
 0x2ce   :  { %p10775_p5 = scmp.lt.s32.totalorder %s10773_s21, %s10769_s12 }
 0x2d0   :  { %p10776_p6 = por %p10775_p5, %p10774_p4 }
 0x2d2   :  { %p10777_p7 = pnand %p10776_p6, %p10770_p3 }
 0x2d4   :  { %10780 = shalt.err (!%p10777_p7)
}
 0x2d5   :  { %s12677_s26 = sld [smem:[#allocation110_spill]] }
 0x2d6   :  { %442 = dma.hbm_to_vmem [thread:$0]  %s12676_s29, 16, %s440_s6, [#allocation36]  }
 0x2db   :  { %s10781_s20 = scalar_lea.hbm %s12677_s26, 16 }
 0x2dc   :  { %p10782_p8 = scmp.ne.s32.totalorder %s12677_s26, %s10781_s20  ;;  %p10785_p9 = scmp.lt.u32.totalorder %s10781_s20, %s12677_s26 }
 0x2de   :  { %p10787_p10 = pnand %p10785_p9, %p10782_p8 }
 0x2e0   :  { %10790 = shalt.err (!%p10787_p10)
}
 0x2e1   :  { %s10791_s3 = scalar_lea.vmem %s460_s22, 16  ;;  %s10795_s28 = scalar_lea.vmem %s460_s22, 32 }
 0x2e2   :  { %p10792_p11 = scmp.ne.s32.totalorder %s460_s22, %s10791_s3  ;;  %p10796_p12 = scmp.lt.s32.totalorder %s460_s22, %s460_s22 }
 0x2e3   :  { %p10797_p13 = scmp.lt.s32.totalorder %s10795_s28, %s10791_s3 }
 0x2e5   :  { %p10798_p0 = por %p10797_p13, %p10796_p12 }
 0x2e7   :  { %p10799_p1 = pnand %p10798_p0, %p10792_p11 }
 0x2e9   :  { %10802 = shalt.err (!%p10799_p1)
}
 0x2ea   :  { %s12678_s1 = sld [smem:[#allocation116_spill]]  ;;  %s11178_s14 = smov [#allocation43]  }
 0x2eb   :  { %462 = dma.hbm_to_vmem [thread:$0]  %s12677_s26, 16, %s460_s22, [#allocation39]  }
 0x2ec   :  { %s489_s25 = sshll.u32 %s11178_s14, 4  ;;  %s11179_s27 = smov [#allocation46]   ;;  %s490_s25 = int_to_ptr.vmem [resolvable:$true] %s489_s25 }
 0x2ed   :  { %s539_s10 = sshll.u32 %s11179_s27, 4  ;;  %s540_s10 = int_to_ptr.vmem [resolvable:$true] %s539_s10 }
 0x2f0   :  { %s10803_s11 = scalar_lea.hbm %s12678_s1, 16 }
 0x2f1   :  { %p10804_p2 = scmp.ne.s32.totalorder %s12678_s1, %s10803_s11  ;;  %p10807_p3 = scmp.lt.u32.totalorder %s10803_s11, %s12678_s1 }
 0x2f3   :  { %p10809_p4 = pnand %p10807_p3, %p10804_p2 }
 0x2f5   :  { %10812 = shalt.err (!%p10809_p4)
}
 0x2f6   :  { %s10813_s15 = scalar_lea.vmem %s490_s25, 16  ;;  %s10817_s4 = scalar_lea.vmem %s490_s25, 32 }
 0x2f7   :  { %p10814_p5 = scmp.ne.s32.totalorder %s490_s25, %s10813_s15  ;;  %p10818_p6 = scmp.lt.s32.totalorder %s490_s25, %s490_s25 }
 0x2f8   :  { %p10819_p7 = scmp.lt.s32.totalorder %s10817_s4, %s10813_s15 }
 0x2fa   :  { %p10820_p8 = por %p10819_p7, %p10818_p6 }
 0x2fc   :  { %p10821_p9 = pnand %p10820_p8, %p10814_p5 }
 0x2fe   :  { %10824 = shalt.err (!%p10821_p9)
}
 0x2ff   :  { %s12679_s8 = sld [smem:[#allocation132_spill]] }
 0x300   :  { %492 = dma.hbm_to_vmem [thread:$0]  %s12678_s1, 16, %s490_s25, [#allocation42]  }
 0x305   :  { %s10825_s24 = scalar_lea.hbm %s12679_s8, 16 }
 0x306   :  { %p10826_p10 = scmp.ne.s32.totalorder %s12679_s8, %s10825_s24  ;;  %p10829_p11 = scmp.lt.u32.totalorder %s10825_s24, %s12679_s8 }
 0x308   :  { %p10831_p12 = pnand %p10829_p11, %p10826_p10 }
 0x30a   :  { %10834 = shalt.err (!%p10831_p12)
}
 0x30b   :  { %s10835_s13 = scalar_lea.vmem %s540_s10, 16  ;;  %s10839_s16 = scalar_lea.vmem %s540_s10, 32 }
 0x30c   :  { %p10836_p13 = scmp.ne.s32.totalorder %s540_s10, %s10835_s13  ;;  %p10840_p0 = scmp.lt.s32.totalorder %s540_s10, %s540_s10 }
 0x30d   :  { %p10841_p1 = scmp.lt.s32.totalorder %s10839_s16, %s10835_s13 }
 0x30f   :  { %p10842_p2 = por %p10841_p1, %p10840_p0 }
 0x311   :  { %p10843_p3 = pnand %p10842_p2, %p10836_p13 }
 0x313   :  { %10846 = shalt.err (!%p10843_p3)
}
 0x314   :  { %s12680_s9 = sld [smem:[#allocation134_spill]]  ;;  %s11180_s29 = smov [#allocation49]  }
 0x315   :  { %542 = dma.hbm_to_vmem [thread:$0]  %s12679_s8, 16, %s540_s10, [#allocation45]  }
 0x316   :  { %s559_s18 = sshll.u32 %s11180_s29, 4  ;;  %s11181_s6 = smov [#allocation52]   ;;  %s560_s18 = int_to_ptr.vmem [resolvable:$true] %s559_s18 }
 0x317   :  { %s579_s0 = sshll.u32 %s11181_s6, 4  ;;  %s580_s0 = int_to_ptr.vmem [resolvable:$true] %s579_s0 }
 0x31a   :  { %s10847_s22 = scalar_lea.hbm %s12680_s9, 16 }
 0x31b   :  { %p10848_p4 = scmp.ne.s32.totalorder %s12680_s9, %s10847_s22  ;;  %p10851_p5 = scmp.lt.u32.totalorder %s10847_s22, %s12680_s9 }
 0x31d   :  { %p10853_p6 = pnand %p10851_p5, %p10848_p4 }
 0x31f   :  { %10856 = shalt.err (!%p10853_p6)
}
 0x320   :  { %s10857_s23 = scalar_lea.vmem %s560_s18, 16  ;;  %s10861_s12 = scalar_lea.vmem %s560_s18, 32 }
 0x321   :  { %p10858_p7 = scmp.ne.s32.totalorder %s560_s18, %s10857_s23  ;;  %p10862_p8 = scmp.lt.s32.totalorder %s560_s18, %s560_s18 }
 0x322   :  { %p10863_p9 = scmp.lt.s32.totalorder %s10861_s12, %s10857_s23 }
 0x324   :  { %p10864_p10 = por %p10863_p9, %p10862_p8 }
 0x326   :  { %p10865_p11 = pnand %p10864_p10, %p10858_p7 }
 0x328   :  { %10868 = shalt.err (!%p10865_p11)
}
 0x329   :  { %s12681_s21 = sld [smem:[#allocation136_spill]] }
 0x32a   :  { %562 = dma.hbm_to_vmem [thread:$0]  %s12680_s9, 16, %s560_s18, [#allocation48]  }
 0x32f   :  { %s10869_s26 = scalar_lea.hbm %s12681_s21, 16 }
 0x330   :  { %p10870_p12 = scmp.ne.s32.totalorder %s12681_s21, %s10869_s26  ;;  %p10873_p13 = scmp.lt.u32.totalorder %s10869_s26, %s12681_s21 }
 0x332   :  { %p10875_p0 = pnand %p10873_p13, %p10870_p12 }
 0x334   :  { %10878 = shalt.err (!%p10875_p0)
}
 0x335   :  { %s10879_s20 = scalar_lea.vmem %s580_s0, 16  ;;  %s10883_s3 = scalar_lea.vmem %s580_s0, 32 }
 0x336   :  { %p10880_p1 = scmp.ne.s32.totalorder %s580_s0, %s10879_s20  ;;  %p10884_p2 = scmp.lt.s32.totalorder %s580_s0, %s580_s0 }
 0x337   :  { %p10885_p3 = scmp.lt.s32.totalorder %s10883_s3, %s10879_s20 }
 0x339   :  { %p10886_p4 = por %p10885_p3, %p10884_p2 }
 0x33b   :  { %p10887_p5 = pnand %p10886_p4, %p10880_p1 }
 0x33d   :  { %10890 = shalt.err (!%p10887_p5)
}
 0x33e   :  { %s12682_s28 = sld [smem:[#allocation143_spill]]  ;;  %s11182_s1 = smov [#allocation55]  }
 0x33f   :  { %582 = dma.hbm_to_vmem [thread:$0]  %s12681_s21, 16, %s580_s0, [#allocation51]  }
 0x340   :  { %s609_s14 = sshll.u32 %s11182_s1, 4  ;;  %s11183_s25 = smov [#allocation56]   ;;  %s610_s14 = int_to_ptr.vmem [resolvable:$true] %s609_s14 }
 0x341   :  { %s621_s27 = sshll.u32 %s11183_s25, 4  ;;  %s622_s27 = int_to_ptr.vmem [resolvable:$true] %s621_s27 }
 0x344   :  { %s10891_s10 = scalar_lea.hbm %s12682_s28, 16 }
 0x345   :  { %p10892_p6 = scmp.ne.s32.totalorder %s12682_s28, %s10891_s10  ;;  %p10895_p7 = scmp.lt.u32.totalorder %s10891_s10, %s12682_s28 }
 0x347   :  { %p10897_p8 = pnand %p10895_p7, %p10892_p6 }
 0x349   :  { %10900 = shalt.err (!%p10897_p8)
}
 0x34a   :  { %s10901_s11 = scalar_lea.vmem %s610_s14, 16  ;;  %s10905_s15 = scalar_lea.vmem %s610_s14, 32 }
 0x34b   :  { %p10902_p9 = scmp.ne.s32.totalorder %s610_s14, %s10901_s11  ;;  %p10906_p10 = scmp.lt.s32.totalorder %s610_s14, %s610_s14 }
 0x34c   :  { %p10907_p11 = scmp.lt.s32.totalorder %s10905_s15, %s10901_s11 }
 0x34e   :  { %p10908_p12 = por %p10907_p11, %p10906_p10 }
 0x350   :  { %p10909_p13 = pnand %p10908_p12, %p10902_p9 }
 0x352   :  { %10912 = shalt.err (!%p10909_p13)
}
 0x353   :  { %s12683_s4 = sld [smem:[#allocation145_spill]] }
 0x354   :  { %612 = dma.hbm_to_vmem [thread:$0]  %s12682_s28, 16, %s610_s14, [#allocation54]  }
 0x359   :  { %s10913_s8 = scalar_lea.hbm %s12683_s4, 16 }
 0x35a   :  { %p10914_p0 = scmp.ne.s32.totalorder %s12683_s4, %s10913_s8  ;;  %p10917_p1 = scmp.lt.u32.totalorder %s10913_s8, %s12683_s4 }
 0x35c   :  { %p10919_p2 = pnand %p10917_p1, %p10914_p0 }
 0x35e   :  { %10922 = shalt.err (!%p10919_p2)
}
 0x35f   :  { %s10923_s24 = scalar_lea.vmem %s622_s27, 16  ;;  %s10927_s13 = scalar_lea.vmem %s622_s27, 32 }
 0x360   :  { %p10924_p3 = scmp.ne.s32.totalorder %s622_s27, %s10923_s24  ;;  %p10928_p4 = scmp.lt.s32.totalorder %s622_s27, %s622_s27 }
 0x361   :  { %p10929_p5 = scmp.lt.s32.totalorder %s10927_s13, %s10923_s24 }
 0x363   :  { %p10930_p6 = por %p10929_p5, %p10928_p4 }
 0x365   :  { %p10931_p7 = pnand %p10930_p6, %p10924_p3 }
 0x367   :  { %10934 = shalt.err (!%p10931_p7)
}
 0x368   :  { %624 = dma.hbm_to_vmem [thread:$0]  %s12683_s4, 16, %s622_s27, [#allocation57]  }
 0x369   :  { %11023 = dma.done.wait [#allocation3], 256  }
 0x36a   :  { %11024 = vsyncadd [#allocation3], 4294967040 }
 0x36b   :  { %11025 = dma.done.wait [#allocation6], 32  }
 0x36c   :  { %11026 = vsyncadd [#allocation6], 4294967264 }
 0x36d   :  { %11027 = dma.done.wait [#allocation9], 32  }
 0x36e   :  { %11028 = vsyncadd [#allocation9], 4294967264 }
 0x36f   :  { %11029 = dma.done.wait [#allocation12], 32  }
 0x370   :  { %11030 = vsyncadd [#allocation12], 4294967264 }
 0x371   :  { %11031 = dma.done.wait [#allocation15], 32  }
 0x372   :  { %11032 = vsyncadd [#allocation15], 4294967264 }
 0x373   :  { %11033 = dma.done.wait [#allocation18], 32  }
 0x374   :  { %11034 = vsyncadd [#allocation18], 4294967264 }
 0x375   :  { %11035 = dma.done.wait [#allocation21], 32  }
 0x376   :  { %11036 = vsyncadd [#allocation21], 4294967264 }
 0x377   :  { %11037 = dma.done.wait [#allocation24], 32  }
 0x378   :  { %11038 = vsyncadd [#allocation24], 4294967264 }
 0x379   :  { %11039 = dma.done.wait [#allocation27], 32  }
 0x37a   :  { %11040 = vsyncadd [#allocation27], 4294967264 }
 0x37b   :  { %11041 = dma.done.wait [#allocation30], 32  }
 0x37c   :  { %11042 = vsyncadd [#allocation30], 4294967264 }
 0x37d   :  { %11043 = dma.done.wait [#allocation33], 32  }
 0x37e   :  { %11044 = vsyncadd [#allocation33], 4294967264 }
 0x37f   :  { %11045 = dma.done.wait [#allocation36], 32  }
 0x380   :  { %11046 = vsyncadd [#allocation36], 4294967264 }
 0x381   :  { %11047 = dma.done.wait [#allocation39], 32  }
 0x382   :  { %11048 = vsyncadd [#allocation39], 4294967264 }
 0x383   :  { %11049 = dma.done.wait [#allocation42], 32  }
 0x384   :  { %11050 = vsyncadd [#allocation42], 4294967264 }
 0x385   :  { %11051 = dma.done.wait [#allocation45], 32  }
 0x386   :  { %11052 = vsyncadd [#allocation45], 4294967264 }
 0x387   :  { %11053 = dma.done.wait [#allocation48], 32  }
 0x388   :  { %11054 = vsyncadd [#allocation48], 4294967264 }
 0x389   :  { %11055 = dma.done.wait [#allocation51], 32  }
 0x38a   :  { %11056 = vsyncadd [#allocation51], 4294967264 }
 0x38b   :  { %11057 = dma.done.wait [#allocation54], 32  }
 0x38c   :  { %11058 = vsyncadd [#allocation54], 4294967264 }
 0x38d   :  { %11059 = dma.done.wait [#allocation57], 16  }
 0x38e   :  { %11060 = vsyncadd [#allocation57], 4294967280  ;;  %s12684_s16 = sld [smem:[#allocation117_spill]]  ;;  %s12685_s9 = sld [smem:[#allocation147_spill]]  ;;  %vm748_vm0 = vcmask 130048   ;;  %v830_v18 = vld [vmem:[#allocation2] sm:$0xff] }
 0x38f   :  { %s12686_s29 = sld [smem:[#allocation144_spill]]  ;;  %s12687_s18 = sld [smem:[#allocation126_spill]]  ;;  %v8403_v14 = vld [vmem:[#allocation43] ss:$0 sm:$0xff]  ;;  %v831_v19 = vld [vmem:[#allocation2 + $0x8] sm:$0xff]  ;;  %vm845_vm1 = vcmask 261120  }
 0x390   :  { %s12688_s6 = sld [smem:[#allocation125_spill]]  ;;  %v8406_v26 = vld [vmem:[#allocation55] ss:$0 sm:$0xff]  ;;  %v11184_v31 = vmov 0.0   ;;  %vm11185_vm2 = vmmov 0   ;;  %s11186_s0 = smov 96  }
 0x391   :  { %8925 = vmatprep.subr.mxu1 %v11184_v31  ;;  %8927 = vmatprep.mubr.msk.f32.mxu1 %vm11185_vm2, %v11184_v31  ;;  %vm1179_vm3 = vcmask 64512   ;;  %s11187_s22 = smov 64   ;;  %s11188_s23 = smov 80  }
 0x392   :  { %s11189_s12 = smov 112   ;;  %s11190_s21 = smov 48  }
 0x393   :  { %s12689_s26 = sld [smem:[#allocation129_spill]]  ;;  %s12690_s20 = sld [smem:[#allocation120_spill]] }
 0x394   :  { %v739_v0 = vld [vmem:[%s12684_s16] sm:$0xff]  ;;  %v740_v1 = vld [vmem:[%s12684_s16 + $0x8] sm:$0xff]  ;;  %s12691_s3 = sld [smem:[#allocation127_spill]]  ;;  %s12692_s28 = sld [smem:[#allocation128_spill]] }
 0x395   :  { %v737_v2 = vld [vmem:[%s12685_s9] sm:$0xff]  ;;  %v9543_v3 = vpack.c.bf16 %v740_v1, %v739_v0  ;;  %v835_v5 = vld [vmem:[%s12686_s29 + $0x8] sm:$0xff]  ;;  %v836_v8 = vld [vmem:[%s12686_s29 + $0x10] sm:$0xff]  ;;  %s12693_s1 = sld [smem:[#allocation122_spill]]  ;;  %s12694_s14 = sld [smem:[#allocation121_spill]] }
 0x396   :  { %8900 = vmatprep.mubr.msk.f32.mxu0 %vm748_vm0, %v737_v2  ;;  %v834_v4 = vld [vmem:[%s12686_s29] sm:$0xff]  ;;  %v738_v7 = vld [vmem:[%s12685_s9 + $0x8] sm:$0xff]  ;;  %v837_v9 = vld [vmem:[%s12686_s29 + $0x18] sm:$0xff]  ;;  %s12695_s25 = sld [smem:[#allocation118_spill]]  ;;  %s12696_s27 = sld [smem:[#allocation119_spill]] }
 0x397   :  { %v9547_v6 = vpack.c.bf16 %v835_v5, %v834_v4  ;;  %9544 = vmatprep.subr.bf16.mxu0 %v9543_v3  ;;  %v9551_v10 = vpack.c.bf16 %v837_v9, %v836_v8  ;;  %v927_v11 = vld [vmem:[%s12687_s18] sm:$0xff]  ;;  %v928_v12 = vld [vmem:[%s12687_s18 + $0x8] sm:$0xff]  ;;  %v929_v23 = vld [vmem:[%s12687_s18 + $0x10] sm:$0xff]  ;;  %s12697_s10 = sld [smem:[#allocation137_spill]]  ;;  %s12698_s11 = sld [smem:[#allocation124_spill]] }
 0x398   :  { %9546 = vmatpush3.bf16.msra.mxu0 %v9543_v3  ;;  %v9555_v13 = vpack.c.bf16 %v928_v12, %v927_v11  ;;  %v930_v24 = vld [vmem:[%s12687_s18 + $0x18] sm:$0xff]  ;;  %v8409_v32 = vld [vmem:[%s12688_s6] ss:$0 sm:$0xff]  ;;  %s12699_s15 = sld [smem:[#allocation123_spill]]  ;;  %s12700_s4 = sld [smem:[#allocation140_spill]] }
 0x399   :  { %9548 = vmatprep.subr.bf16.mxu0 %v9547_v6  ;;  %v9559_v25 = vpack.c.bf16 %v930_v24, %v929_v23  ;;  %s12701_s8 = sld [smem:[#allocation138_spill]]  ;;  %s12702_s24 = sld [smem:[#allocation139_spill]] }
 0x39a   :  { %s12703_s13 = sld [smem:[#allocation130_spill]]  ;;  %s12704_s16 = sld [smem:[#allocation131_spill]] }
 0x39b   :  { %8901 = vmatmul.mubr.msk.f32.vlgmr.msra.gmra.mrb[0].mxu0 %vm748_vm0, %v738_v7  ;;  %s12705_s9 = sld [smem:[#allocation142_spill]]  ;;  %s12706_s29 = sld [smem:[#allocation115_spill]] }
 0x39c   :  { %9550 = vmatpush3.bf16.msra.mxu0 %v9547_v6  ;;  %s12707_s18 = sld [smem:[#allocation97_spill]]  ;;  %s12708_s6 = sld [smem:[#allocation98_spill]] }
 0x39d   :  { %9552 = vmatprep.subr.bf16.mxu0 %v9551_v10 }
 0x3a0   :  { %9554 = vmatpush3.bf16.msra.mxu0 %v9551_v10 }
 0x3a1   :  { %9556 = vmatprep.subr.bf16.mxu0 %v9555_v13 }
 0x46e   :  { %v8902_v15 = vpop.f32.mrb[0].mxu0 }
 0x46f   :  { %v827_v16 = vadd.f32 %v8902_v15, %v8403_v14  ;;  %v821_v17 = vpop.f32.mrb[1].mxu0 }
 0x470   :  { %v822_v20 = vadd.f32 %v8403_v14, %v821_v17 }
 0x471   :  { %v833_v22 = vadd.f32 %v831_v19, %v827_v16 }
 0x472   :  { %v832_v21 = vadd.f32 %v830_v18, %v822_v20 }
 0x474   :  { %8911 = vmatprep.mubr.msk.f32.mxu0 %vm845_vm1, %v832_v21 }
 0x475   :  { %8912 = vmatmul.mubr.msk.f32.vlgmr.msra.gmra.mrb[2].mxu0 %vm845_vm1, %v833_v22 }
 0x476   :  { %9558 = vmatpush3.bf16.msra.mxu0 %v9555_v13 }
 0x477   :  { %9560 = vmatprep.subr.bf16.mxu0 %v9559_v25 }
 0x47a   :  { %9562 = vmatpush3.bf16.msra.mxu0 %v9559_v25 }
 0x47b   :  { %8930 = vmatprep.subr.mxu0 %v11184_v31 }
 0x548   :  { %v8913_v27 = vpop.f32.mrb[2].mxu0 }
 0x549   :  { %v918_v28 = vpop.f32.mrb[3].mxu0  ;;  %v11772_v30 = vadd.f32 %v8913_v27, %v8406_v26 }
 0x54a   :  { %v11770_v29 = vadd.f32 %v8406_v26, %v918_v28 }
 0x54c   :  { %8922 = vmatprep.mubr.msk.f32.mxu0 %vm845_vm1, %v11770_v29 }
 0x54d   :  { %8923 = vmatmul.mubr.msk.f32.vlgmr.msra.gmra.mrb[4].mxu0 %vm845_vm1, %v11772_v30 }
 0x54e   :  { %8932 = vmatprep.mubr.msk.f32.mxu0 %vm11185_vm2, %v11184_v31 }
 0x620   :  { %v8924_v33 = vpop.f32.mrb[4].mxu0 }
 0x621   :  { %v1010_v34 = vpop.f32.mrb[5].mxu0  ;;  %v11789_v36 = vadd.f32 %v8924_v33, %v8409_v32 }
 0x622   :  { %v11785_v35 = vadd.f32 %v8409_v32, %v1010_v34 }
 0x624   :  { %1024 = vrot.lane.b32.xlu0 %v11785_v35, %s11186_s0 }
 0x628   :  { %1101 = vrot.lane.b32.xlu0 %v11789_v36, %s11186_s0 }
 0x696   :  { %v1025_v37 = vpop.permute.xlu0 %1024 }
 0x697   :  { %8926 = vmatpush3.xpose.msk.msra.mxu1 %vm748_vm0, %v1025_v37 }
 0x698   :  { %8935 = vmatprep.subr.mxu1 %v11184_v31 }
 0x69a   :  { %8928 = vmatmul.mubr.msk.f32.vlgmr.msra.gmra.mrb[0].mxu1 %vm748_vm0, %v11785_v35  ;;  %v1102_v38 = vpop.permute.xlu0 %1101 }
 0x69b   :  { %8931 = vmatpush3.xpose.msk.msra.mxu0 %vm748_vm0, %v1102_v38  ;;  %8937 = vmatprep.mubr.msk.f32.mxu1 %vm11185_vm2, %v11184_v31 }
 0x69c   :  { %8940 = vmatprep.subr.mxu0 %v11184_v31 }
 0x69e   :  { %8933 = vmatmul.mubr.msk.f32.vlgmr.msra.gmra.mrb[6].mxu0 %vm748_vm0, %v11789_v36 }
 0x69f   :  { %8942 = vmatprep.mubr.msk.f32.mxu0 %vm11185_vm2, %v11184_v31 }
 0x76d   :  { %v1096_v39 = vpop.f32.mrb[0].mxu1 }
 0x76e   :  { %v1177_v40 = vmul.f32 0.25, %v1096_v39  ;;  %v8929_v41 = vpop.f32.mrb[1].mxu1  ;;  %v1022_v39 = vld [vmem:[%s12689_s26 + $0x18] sm:$0xff] }
 0x76f   :  { %v1019_v41 = vld [vmem:[%s12689_s26] sm:$0xff] }
 0x770   :  { %v1180_v42 = vsel %vm1179_vm3, %v1177_v40, -inf }
 0x771   :  { %1181 = vmax.xlane.f32.xlu1 %v1180_v42  ;;  %v1173_v43 = vpop.f32.mrb[6].mxu0  ;;  %v1020_v42 = vld [vmem:[%s12689_s26 + $0x8] sm:$0xff] }
 0x772   :  { %v1178_v44 = vmul.f32 0.25, %v1173_v43  ;;  %v8934_v45 = vpop.f32.mrb[7].mxu0  ;;  %v9567_v43 = vpack.c.bf16 %v1020_v42, %v1019_v41  ;;  %v2021_v41 = vld [vmem:[%s12692_s28 + $0x50] sm:$0xff]  ;;  %v2022_v42 = vld [vmem:[%s12692_s28 + $0x58] sm:$0xff] }
 0x774   :  { %v1183_v46 = vsel %vm1179_vm3, %v1178_v44, -inf }
 0x775   :  { %1184 = vmax.xlane.f32.xlu1 %v1183_v46 }
 0x786   :  { %1204 = vrot.lane.b32.xlu1 %v11785_v35, %s11187_s22 }
 0x78a   :  { %1280 = vrot.lane.b32.xlu1 %v11789_v36, %s11187_s22 }
 0x78e   :  { %1358 = vrot.lane.b32.xlu1 %v11785_v35, %s11188_s23 }
 0x792   :  { %1436 = vrot.lane.b32.xlu1 %v11789_v36, %s11188_s23 }
 0x7fe   :  { %v1182_v47 = vpop.xlane.xlu1 %1181 }
 0x7ff   :  { %v1186_v48 = vsub.f32 %v1177_v40, %v1182_v47 }
 0x801   :  { %v1188_v49 = vmul.f32 1.442695, %v1186_v48  ;;  %v8428_v48 = vld [vmem:[%s12690_s20] ss:$0 sm:$0xff]  ;;  %s12710_s20 = sld [smem:[#allocation91_spill]] }
 0x802   :  { %v1185_v50 = vpop.xlane.xlu1 %1184 }
 0x803   :  { %9991 = vpow2.f32 %v1188_v49  ;;  %v1187_v51 = vsub.f32 %v1178_v44, %v1185_v50 }
 0x805   :  { %v1190_v52 = vmul.f32 1.442695, %v1187_v51 }
 0x806   :  { %v1205_v53 = vpop.permute.xlu1 %1204 }
 0x807   :  { %9993 = vpow2.f32 %v1190_v52  ;;  %8936 = vmatpush3.msra.mxu1 %v1205_v53 }
 0x808   :  { %8945 = vmatprep.subr.mxu1 %v11184_v31 }
 0x80a   :  { %v1281_v54 = vpop.permute.xlu1 %1280 }
 0x80b   :  { %8941 = vmatpush3.msra.mxu0 %v1281_v54 }
 0x80c   :  { %8950 = vmatprep.subr.mxu0 %v11184_v31 }
 0x80d   :  { %v9992_v55 = vpop.eup %9991 }
 0x80e   :  { %v1192_v56 = vsel %vm1179_vm3, %v9992_v55, 0.0  ;;  %v1359_v59 = vpop.permute.xlu1 %1358 }
 0x80f   :  { %1193 = vadd.xlane.f32.xlu0 %v1192_v56 }
 0x811   :  { %v9994_v57 = vpop.eup %9993 }
 0x812   :  { %v1195_v58 = vsel %vm1179_vm3, %v9994_v57, 0.0  ;;  %v1437_v60 = vpop.permute.xlu1 %1436 }
 0x813   :  { %1196 = vadd.xlane.f32.xlu1 %v1195_v58 }
 0x824   :  { %1434 = vrot.lane.b32.xlu1 %v11789_v36, %s11189_s12 }
 0x825   :  { %1356 = vrot.lane.b32.xlu0 %v11785_v35, %s11189_s12 }
 0x89c   :  { %v1194_v61 = vpop.xlane.xlu0 %1193 }
 0x89d   :  { %9995 = vrcp.f32 %v1194_v61 }
 0x8a0   :  { %v1197_v62 = vpop.xlane.xlu1 %1196  ;;  %v1357_v3 = vpop.permute.xlu0 %1356 }
 0x8a1   :  { %9997 = vrcp.f32 %v1197_v62 }
 0x8a4   :  { %v1435_v4 = vpop.permute.xlu1 %1434 }
 0x8a7   :  { %v9996_v63 = vpop.eup %9995 }
 0x8a8   :  { %v1200_v0 = vmul.f32 %v9996_v63, %v9992_v55 }
 0x8aa   :  { %1202 = vst.msk [vmem:[#allocation59] sm:$0xff] %vm1179_vm3, %v1200_v0  ;;  %8938 = vmatmul.mubr.msk.f32.vlgmr.msra.gmra.mrb[2].mxu1 %vm1179_vm3, %v1200_v0 }
 0x8ab   :  { %v9998_v1 = vpop.eup %9997  ;;  %8946 = vmatpush3.xpose.msk.msra.mxu1 %vm748_vm0, %v1359_v59  ;;  %8947 = vmatprep.mubr.msk.f32.mxu1 %vm11185_vm2, %v11184_v31 }
 0x8ac   :  { %v1201_v2 = vmul.f32 %v9998_v1, %v9994_v57  ;;  %8955 = vmatprep.subr.mxu1 %v11184_v31  ;;  %v1909_v1 = vld [vmem:[%s12691_s3] sm:$0xff] }
 0x8ae   :  { %1203 = vst.msk [vmem:[#allocation59 + $0x8] sm:$0xff] %vm1179_vm3, %v1201_v2  ;;  %8943 = vmatmul.mubr.msk.f32.vlgmr.msra.gmra.mrb[8].mxu0 %vm1179_vm3, %v1201_v2  ;;  %8948 = vmatmul.mubr.msk.f32.vlgmr.msra.gmra.mrb[4].mxu1 %vm748_vm0, %v1357_v3  ;;  %v1910_v2 = vld [vmem:[%s12691_s3 + $0x8] sm:$0xff]  ;;  %v1911_v3 = vld [vmem:[%s12691_s3 + $0x10] sm:$0xff] }
 0x8af   :  { %8951 = vmatpush3.xpose.msk.msra.mxu0 %vm748_vm0, %v1437_v60  ;;  %8952 = vmatprep.mubr.msk.f32.mxu0 %vm11185_vm2, %v11184_v31 }
 0x8b0   :  { %8960 = vmatprep.subr.mxu0 %v11184_v31  ;;  %8957 = vmatprep.mubr.msk.f32.mxu1 %vm11185_vm2, %v11184_v31 }
 0x8b2   :  { %8953 = vmatmul.mubr.msk.f32.vlgmr.msra.gmra.mrb[10].mxu0 %vm748_vm0, %v1435_v4  ;;  %v9571_v4 = vpack.c.bf16 %v1910_v2, %v1909_v1 }
 0x8b3   :  { %8962 = vmatprep.mubr.msk.f32.mxu0 %vm11185_vm2, %v11184_v31 }
 0x97d   :  { %v11841_v5 = vpop.f32.mrb[2].mxu1 }
 0x97e   :  { %v8939_v6 = vpop.f32.mrb[3].mxu1 }
 0x981   :  { %v1352_v7 = vpop.f32.mrb[8].mxu0  ;;  %v1430_v8 = vpop.f32.mrb[4].mxu1 }
 0x982   :  { %v1512_v9 = vmul.f32 0.25, %v1430_v8  ;;  %v8944_v10 = vpop.f32.mrb[9].mxu0  ;;  %v8949_v11 = vpop.f32.mrb[5].mxu1  ;;  %v2012_v8 = vld [vmem:[%s12692_s28 + $0x8] sm:$0xff] }
 0x983   :  { %v2014_v11 = vld [vmem:[%s12692_s28 + $0x18] sm:$0xff] }
 0x984   :  { %v1514_v12 = vsel %vm1179_vm3, %v1512_v9, -inf }
 0x985   :  { %v1508_v13 = vpop.f32.mrb[10].mxu0  ;;  %1515 = vmax.xlane.f32.xlu1 %v1514_v12 }
 0x986   :  { %v1513_v14 = vmul.f32 0.25, %v1508_v13  ;;  %v8954_v15 = vpop.f32.mrb[11].mxu0  ;;  %v2015_v13 = vld [vmem:[%s12692_s28 + $0x20] sm:$0xff] }
 0x988   :  { %v1517_v16 = vsel %vm1179_vm3, %v1513_v14, -inf }
 0x989   :  { %1518 = vmax.xlane.f32.xlu0 %v1517_v16 }
 0x99f   :  { %1615 = vrot.lane.b32.xlu0 %v11789_v36, %s11190_s21 }
 0xa12   :  { %v1516_v17 = vpop.xlane.xlu1 %1515 }
 0xa13   :  { %v1520_v18 = vsub.f32 %v1512_v9, %v1516_v17  ;;  %v2013_v9 = vld [vmem:[%s12692_s28 + $0x10] sm:$0xff] }
 0xa14   :  { %v9583_v12 = vpack.c.bf16 %v2014_v11, %v2013_v9 }
 0xa15   :  { %v1522_v21 = vmul.f32 1.442695, %v1520_v18 }
 0xa16   :  { %v1519_v19 = vpop.xlane.xlu0 %1518 }
 0xa17   :  { %v1521_v20 = vsub.f32 %v1513_v14, %v1519_v19  ;;  %v2016_v14 = vld [vmem:[%s12692_s28 + $0x28] sm:$0xff] }
 0xa18   :  { %v9587_v15 = vpack.c.bf16 %v2016_v14, %v2015_v13 }
 0xa19   :  { %v1524_v22 = vmul.f32 1.442695, %v1521_v20 }
 0xa1a   :  { %v1616_v23 = vpop.permute.xlu0 %1615 }
 0xa1b   :  { %9999 = vpow2.f32 %v1524_v22  ;;  %8961 = vmatpush3.msra.mxu0 %v1616_v23  ;;  %v8429_v23 = vld [vmem:[%s12693_s1] ss:$0 sm:$0xff]  ;;  %s12713_s1 = sld [smem:[#allocation100_spill]] }
 0xa1c   :  { %10001 = vpow2.f32 %v1522_v21  ;;  %9572 = vmatprep.subr.bf16.mxu0 %v9571_v4 }
 0xa25   :  { %v10000_v24 = vpop.eup %9999 }
 0xa26   :  { %v1529_v25 = vsel %vm1179_vm3, %v10000_v24, 0.0  ;;  %v10002_v26 = vpop.eup %10001 }
 0xa27   :  { %1530 = vadd.xlane.f32.xlu1 %v1529_v25  ;;  %v1526_v27 = vsel %vm1179_vm3, %v10002_v26, 0.0 }
 0xa2b   :  { %1527 = vadd.xlane.f32.xlu1 %v1526_v27 }
 0xa3c   :  { %1539 = vrot.lane.b32.xlu1 %v11785_v35, %s11190_s21  ;;  %v1021_v35 = vld [vmem:[%s12689_s26 + $0x10] sm:$0xff]  ;;  %s12709_s26 = sld [smem:[#allocation89_spill]] }
 0xa3d   :  { %v9563_v40 = vpack.c.bf16 %v1022_v39, %v1021_v35  ;;  %v2019_v35 = vld [vmem:[%s12692_s28 + $0x40] sm:$0xff]  ;;  %v2020_v39 = vld [vmem:[%s12692_s28 + $0x48] sm:$0xff] }
 0xab4   :  { %v1531_v28 = vpop.xlane.xlu1 %1530 }
 0xab5   :  { %10003 = vrcp.f32 %v1531_v28  ;;  %v8430_v28 = vld [vmem:[%s12694_s14] ss:$0 sm:$0xff]  ;;  %s12714_s14 = sld [smem:[#allocation87_spill]] }
 0xab8   :  { %v1528_v32 = vpop.xlane.xlu1 %1527 }
 0xab9   :  { %10005 = vrcp.f32 %v1528_v32 }
 0xabc   :  { %v1540_v33 = vpop.permute.xlu1 %1539 }
 0xabd   :  { %8956 = vmatpush3.msra.mxu1 %v1540_v33 }
 0xabe   :  { %9564 = vmatprep.subr.bf16.mxu1 %v9563_v40 }
 0xabf   :  { %v10004_v34 = vpop.eup %10003 }
 0xac0   :  { %v1535_v36 = vmul.f32 %v10004_v34, %v10000_v24 }
 0xac2   :  { %1538 = vst.msk [vmem:[#allocation59 + $0x18] sm:$0xff] %vm1179_vm3, %v1535_v36  ;;  %8963 = vmatmul.mubr.msk.f32.vlgmr.msra.gmra.mrb[12].mxu0 %vm1179_vm3, %v1535_v36  ;;  %v2017_v36 = vld [vmem:[%s12692_s28 + $0x30] sm:$0xff] }
 0xac3   :  { %v10006_v37 = vpop.eup %10005  ;;  %9574 = vmatpush3.bf16.msra.mxu0 %v9571_v4 }
 0xac4   :  { %v1534_v38 = vmul.f32 %v10006_v37, %v10002_v26  ;;  %v2018_v37 = vld [vmem:[%s12692_s28 + $0x38] sm:$0xff] }
 0xac6   :  { %1537 = vst.msk [vmem:[#allocation59 + $0x10] sm:$0xff] %vm1179_vm3, %v1534_v38  ;;  %8958 = vmatmul.mubr.msk.f32.vlgmr.msra.gmra.mrb[6].mxu1 %vm1179_vm3, %v1534_v38  ;;  %v9591_v38 = vpack.c.bf16 %v2018_v37, %v2017_v36 }
 0xac7   :  { %9566 = vmatpush3.bf16.msra.mxu1 %v9563_v40  ;;  %v9595_v40 = vpack.c.bf16 %v2020_v39, %v2019_v35  ;;  %v8436_v39 = vld [vmem:[%s12699_s15] ss:$0 sm:$0xff]  ;;  %s11191_s15 = smov [#allocation59]  }
 0xac8   :  { %9568 = vmatprep.subr.bf16.mxu1 %v9567_v43 }
 0xb95   :  { %v1687_v44 = vpop.f32.mrb[12].mxu0 }
 0xb96   :  { %v8964_v45 = vpop.f32.mrb[13].mxu0 }
 0xb97   :  { %v2024_v45 = vld [vmem:[%s12692_s28 + $0x68] sm:$0xff] }
 0xb99   :  { %v1611_v46 = vpop.f32.mrb[6].mxu1 }
 0xb9a   :  { %v8959_v47 = vpop.f32.mrb[7].mxu1  ;;  %8969 = vmatprep.mubr.msk.f32.mxu1 %vm748_vm0, %v1611_v46 }
 0xb9b   :  { %8970 = vmatmul.mubr.msk.f32.vlgmr.msra.gmra.mrb[8].mxu1 %vm748_vm0, %v1687_v44  ;;  %v2023_v44 = vld [vmem:[%s12692_s28 + $0x60] sm:$0xff]  ;;  %v2025_v47 = vld [vmem:[%s12692_s28 + $0x70] sm:$0xff] }
 0xb9c   :  { %9570 = vmatpush3.bf16.msra.mxu1 %v9567_v43  ;;  %8976 = vmatprep.mubr.msk.f32.mxu1 %vm748_vm0, %v11841_v5  ;;  %v1912_v5 = vld [vmem:[%s12691_s3 + $0x18] sm:$0xff]  ;;  %v9599_v43 = vpack.c.bf16 %v2022_v42, %v2021_v41  ;;  %v9603_v46 = vpack.c.bf16 %v2024_v45, %v2023_v44  ;;  %s12711_s3 = sld [smem:[#allocation92_spill]] }
 0xb9d   :  { %v9575_v6 = vpack.c.bf16 %v1912_v5, %v1911_v3 }
 0xb9f   :  { %9576 = vmatprep.subr.bf16.mxu0 %v9575_v6 }
 0xba0   :  { %9578 = vmatpush3.bf16.msra.mxu0 %v9575_v6 }
 0xba3   :  { %8977 = vmatmul.mubr.msk.f32.vlgmr.msra.gmra.mrb[8].mxu1 %vm748_vm0, %v1352_v7  ;;  %v2011_v7 = vld [vmem:[%s12692_s28] sm:$0xff] }
 0xba4   :  { %v9579_v10 = vpack.c.bf16 %v2012_v8, %v2011_v7 }
 0xba6   :  { %9580 = vmatprep.subr.bf16.mxu1 %v9579_v10 }
 0xba7   :  { %9582 = vmatpush3.bf16.msra.mxu1 %v9579_v10 }
 0xba8   :  { %9584 = vmatprep.subr.bf16.mxu1 %v9583_v12 }
 0xbab   :  { %9586 = vmatpush3.bf16.msra.mxu1 %v9583_v12 }
 0xbac   :  { %9588 = vmatprep.subr.bf16.mxu1 %v9587_v15 }
 0xbaf   :  { %9590 = vmatpush3.bf16.msra.mxu1 %v9587_v15 }
 0xbb0   :  { %9592 = vmatprep.subr.bf16.mxu1 %v9591_v38 }
 0xbb3   :  { %9594 = vmatpush3.bf16.msra.mxu1 %v9591_v38 }
 0xbb4   :  { %9596 = vmatprep.subr.bf16.mxu1 %v9595_v40 }
 0xbb7   :  { %9598 = vmatpush3.bf16.msra.mxu1 %v9595_v40 }
 0xbb8   :  { %9600 = vmatprep.subr.bf16.mxu1 %v9599_v43 }
 0xbbb   :  { %9602 = vmatpush3.bf16.msra.mxu1 %v9599_v43  ;;  %v8437_v43 = vld [vmem:[#allocation52] ss:$0 sm:$0xff] }
 0xbbc   :  { %9604 = vmatprep.subr.bf16.mxu1 %v9603_v46 }
 0xbbf   :  { %9606 = vmatpush3.bf16.msra.mxu1 %v9603_v46 }
 0xc76   :  { %v8978_v49 = vpop.f32.mrb[8].mxu1 }
 0xc77   :  { %v1861_v50 = vadd.f32 %v8978_v49, %v8428_v48  ;;  %v1844_v51 = vpop.f32.mrb[9].mxu1 }
 0xc78   :  { %v1860_v52 = vadd.f32 %v8428_v48, %v1844_v51  ;;  %v2026_v48 = vld [vmem:[%s12692_s28 + $0x78] sm:$0xff]  ;;  %s12712_s28 = sld [smem:[#allocation99_spill]] }
 0xc79   :  { %v1863_v53 = vadd.f32 %v1861_v50, %v11772_v30  ;;  %v9607_v49 = vpack.c.bf16 %v2026_v48, %v2025_v47  ;;  %v8431_v50 = vld [vmem:[%s12695_s25] ss:$0 sm:$0xff]  ;;  %s12715_s25 = sld [smem:[#allocation111_spill]] }
 0xc7a   :  { %v1862_v54 = vadd.f32 %v1860_v52, %v11770_v29 }
 0xc7b   :  { %v1867_v55 = vsel %vm845_vm1, %v1863_v53, 0.0  ;;  %9608 = vmatprep.subr.bf16.mxu1 %v9607_v49 }
 0xc7c   :  { %1868 = vadd.xlane.f32.xlu0 %v1867_v55  ;;  %v1864_v56 = vsel %vm845_vm1, %v1862_v54, 0.0  ;;  %9610 = vmatpush3.bf16.msra.mxu1 %v9607_v49 }
 0xc7d   :  { %1865 = vadd.xlane.f32.xlu1 %v1864_v56  ;;  %9066 = vmatprep.subr.mxu1 %v11184_v31 }
 0xd09   :  { %v1869_v57 = vpop.xlane.xlu0 %1868 }
 0xd0a   :  { %v1872_v58 = vmul.f32 0.03125, %v1869_v57  ;;  %v1866_v59 = vpop.xlane.xlu1 %1865 }
 0xd0b   :  { %v1871_v60 = vmul.f32 0.03125, %v1866_v59 }
 0xd0c   :  { %v1874_v61 = vsub.f32 %v1863_v53, %v1872_v58 }
 0xd0d   :  { %v1873_v62 = vsub.f32 %v1862_v54, %v1871_v60 }
 0xd0e   :  { %v1876_v63 = vmul.f32 %v1874_v61, %v1874_v61 }
 0xd0f   :  { %v1875_v30 = vmul.f32 %v1873_v62, %v1873_v62 }
 0xd10   :  { %v1880_v29 = vsel %vm845_vm1, %v1876_v63, 0.0 }
 0xd11   :  { %1881 = vadd.xlane.f32.xlu0 %v1880_v29  ;;  %v1877_v0 = vsel %vm845_vm1, %v1875_v30, 0.0  ;;  %v8434_v29 = vld [vmem:[%s12696_s27] ss:$0 sm:$0xff]  ;;  %s12717_s27 = sld [smem:[#allocation103_spill]] }
 0xd12   :  { %1878 = vadd.xlane.f32.xlu1 %v1877_v0 }
 0xd9e   :  { %v1882_v16 = vpop.xlane.xlu0 %1881 }
 0xd9f   :  { %v1884_v17 = vmul.f32 0.03125, %v1882_v16  ;;  %v1879_v18 = vpop.xlane.xlu1 %1878 }
 0xda0   :  { %v1883_v19 = vmul.f32 0.03125, %v1879_v18  ;;  %v2155_v18 = vld [vmem:[%s12697_s10] sm:$0xff] }
 0xda1   :  { %v1886_v20 = vadd.f32 1e-06, %v1884_v17 }
 0xda2   :  { %v1885_v21 = vadd.f32 1e-06, %v1883_v19  ;;  %v2156_v19 = vld [vmem:[%s12697_s10 + $0x8] sm:$0xff] }
 0xda3   :  { %10007 = vrsqrt.f32 %v1886_v20  ;;  %v2157_v20 = vld [vmem:[%s12697_s10 + $0x10] sm:$0xff] }
 0xda4   :  { %10009 = vrsqrt.f32 %v1885_v21  ;;  %v9611_v21 = vpack.c.bf16 %v2156_v19, %v2155_v18 }
 0xda6   :  { %9612 = vmatprep.subr.bf16.mxu0 %v9611_v21 }
 0xdad   :  { %v10008_v22 = vpop.eup %10007 }
 0xdae   :  { %v10010_v24 = vpop.eup %10009  ;;  %v1890_v25 = vmul.f32 %v10008_v22, %v1874_v61  ;;  %v2158_v22 = vld [vmem:[%s12697_s10 + $0x18] sm:$0xff]  ;;  %s12722_s10 = sld [smem:[#allocation146_spill]] }
 0xdaf   :  { %v1889_v26 = vmul.f32 %v10010_v24, %v1873_v62 }
 0xdb0   :  { %v1899_v27 = vmul.f32 %v8429_v23, %v1890_v25 }
 0xdb1   :  { %v1898_v32 = vmul.f32 %v8429_v23, %v1889_v26  ;;  %v9615_v23 = vpack.c.bf16 %v2158_v22, %v2157_v20 }
 0xdb2   :  { %v1908_v34 = vadd.f32 %v8430_v28, %v1899_v27 }
 0xdb3   :  { %v1907_v33 = vadd.f32 %v8430_v28, %v1898_v32 }
 0xdb5   :  { %8987 = vmatprep.mubr.msk.f32.mxu0 %vm845_vm1, %v1907_v33 }
 0xdb6   :  { %8988 = vmatmul.mubr.msk.f32.vlgmr.msra.gmra.mrb[14].mxu0 %vm845_vm1, %v1908_v34 }
 0xdb7   :  { %9614 = vmatpush3.bf16.msra.mxu0 %v9611_v21 }
 0xdb8   :  { %9616 = vmatprep.subr.bf16.mxu0 %v9615_v23 }
 0xdbb   :  { %9618 = vmatpush3.bf16.msra.mxu0 %v9615_v23 }
 0xdbc   :  { %9036 = vmatprep.subr.mxu0 %v11184_v31 }
 0xe89   :  { %v8989_v51 = vpop.f32.mrb[14].mxu0 }
 0xe8a   :  { %v1998_v52 = vadd.f32 %v8989_v51, %v8431_v50  ;;  %v1992_v53 = vpop.f32.mrb[15].mxu0 }
 0xe8b   :  { %v1993_v54 = vadd.f32 %v8431_v50, %v1992_v53 }
 0xe8c   :  { %v2004_v55 = vmul.f32 0.70710677, %v1998_v52  ;;  %v2002_v62 = vmul.f32 0.5, %v1998_v52 }
 0xe8d   :  { %v2003_v56 = vmul.f32 0.70710677, %v1993_v54  ;;  %v2001_v60 = vmul.f32 0.5, %v1993_v54 }
 0xe8e   :  { %10011 = verf.f32 %v2004_v55 }
 0xe8f   :  { %10013 = verf.f32 %v2003_v56 }
 0xe98   :  { %v10012_v57 = vpop.eup %10011 }
 0xe99   :  { %v10014_v58 = vpop.eup %10013  ;;  %v2008_v59 = vadd.f32 1.0, %v10012_v57 }
 0xe9a   :  { %v2007_v61 = vadd.f32 1.0, %v10014_v58 }
 0xe9b   :  { %v2010_v30 = vmul.f32 %v2008_v59, %v2002_v62 }
 0xe9c   :  { %v2009_v63 = vmul.f32 %v2007_v61, %v2001_v60 }
 0xe9e   :  { %9022 = vmatprep.mubr.f32.mxu1 %v2009_v63 }
 0xe9f   :  { %9023 = vmatmul.mubr.f32.vlgmr.msra.gmra.mrb[10].mxu1 %v2010_v30 }
 0xea0   :  { %9068 = vmatprep.mubr.msk.f32.mxu1 %vm11185_vm2, %v11184_v31 }
 0xf72   :  { %v9024_v0 = vpop.f32.mrb[10].mxu1 }
 0xf73   :  { %v2106_v1 = vadd.f32 %v9024_v0, %v8434_v29  ;;  %v2100_v2 = vpop.f32.mrb[11].mxu1 }
 0xf74   :  { %v2101_v3 = vadd.f32 %v8434_v29, %v2100_v2 }
 0xf75   :  { %v2110_v4 = vadd.f32 %v2106_v1, %v1908_v34  ;;  %v8435_v34 = vld [vmem:[%s12698_s11] ss:$0 sm:$0xff]  ;;  %s12723_s11 = sld [smem:[#allocation108_spill]] }
 0xf76   :  { %v2109_v5 = vadd.f32 %v2101_v3, %v1907_v33 }
 0xf77   :  { %v2114_v6 = vsel %vm845_vm1, %v2110_v4, 0.0 }
 0xf78   :  { %2115 = vadd.xlane.f32.xlu0 %v2114_v6  ;;  %v2111_v7 = vsel %vm845_vm1, %v2109_v5, 0.0 }
 0xf79   :  { %2112 = vadd.xlane.f32.xlu1 %v2111_v7 }
0x1005   :  { %v2116_v8 = vpop.xlane.xlu0 %2115 }
0x1006   :  { %v2118_v9 = vmul.f32 0.03125, %v2116_v8  ;;  %v2113_v10 = vpop.xlane.xlu1 %2112 }
0x1007   :  { %v2117_v11 = vmul.f32 0.03125, %v2113_v10 }
0x1008   :  { %v2120_v12 = vsub.f32 %v2110_v4, %v2118_v9 }
0x1009   :  { %v2119_v13 = vsub.f32 %v2109_v5, %v2117_v11 }
0x100a   :  { %v2122_v14 = vmul.f32 %v2120_v12, %v2120_v12 }
0x100b   :  { %v2121_v15 = vmul.f32 %v2119_v13, %v2119_v13 }
0x100c   :  { %v2126_v16 = vsel %vm845_vm1, %v2122_v14, 0.0 }
0x100d   :  { %2127 = vadd.xlane.f32.xlu0 %v2126_v16  ;;  %v2123_v17 = vsel %vm845_vm1, %v2121_v15, 0.0 }
0x100e   :  { %2124 = vadd.xlane.f32.xlu1 %v2123_v17 }
0x109a   :  { %v2128_v24 = vpop.xlane.xlu0 %2127 }
0x109b   :  { %v2130_v25 = vmul.f32 0.03125, %v2128_v24  ;;  %v2125_v26 = vpop.xlane.xlu1 %2124 }
0x109c   :  { %v2129_v27 = vmul.f32 0.03125, %v2125_v26 }
0x109d   :  { %v2132_v28 = vadd.f32 1e-06, %v2130_v25 }
0x109e   :  { %v2131_v32 = vadd.f32 1e-06, %v2129_v27 }
0x109f   :  { %10015 = vrsqrt.f32 %v2132_v28 }
0x10a0   :  { %10017 = vrsqrt.f32 %v2131_v32 }
0x10a9   :  { %v10016_v33 = vpop.eup %10015 }
0x10aa   :  { %v10018_v36 = vpop.eup %10017  ;;  %v2136_v37 = vmul.f32 %v10016_v33, %v2120_v12 }
0x10ab   :  { %v2135_v38 = vmul.f32 %v10018_v36, %v2119_v13 }
0x10ac   :  { %v2145_v35 = vmul.f32 %v8435_v34, %v2136_v37 }
0x10ad   :  { %v2144_v40 = vmul.f32 %v8435_v34, %v2135_v38 }
0x10ae   :  { %v11913_v42 = vadd.f32 %v8436_v39, %v2145_v35 }
0x10af   :  { %v11911_v41 = vadd.f32 %v8436_v39, %v2144_v40 }
0x10b1   :  { %9033 = vmatprep.mubr.msk.f32.mxu0 %vm845_vm1, %v11911_v41 }
0x10b2   :  { %9034 = vmatmul.mubr.msk.f32.vlgmr.msra.gmra.mrb[16].mxu0 %vm845_vm1, %v11913_v42 }
0x10b3   :  { %9038 = vmatprep.mubr.msk.f32.mxu0 %vm11185_vm2, %v11184_v31 }
0x1185   :  { %v9035_v44 = vpop.f32.mrb[16].mxu0 }
0x1186   :  { %v11921_v45 = vadd.f32 %v9035_v44, %v8437_v43  ;;  %v2238_v46 = vpop.f32.mrb[17].mxu0 }
0x1187   :  { %v11923_v47 = vadd.f32 %v8437_v43, %v2238_v46 }
0x1188   :  { %2329 = vrot.lane.b32.xlu0 %v11921_v45, %s11186_s0 }
0x1189   :  { %2252 = vrot.lane.b32.xlu1 %v11923_v47, %s11186_s0 }
0x11fa   :  { %v2330_v49 = vpop.permute.xlu0 %2329 }
0x11fb   :  { %v2253_v48 = vpop.permute.xlu1 %2252 }
0x11fc   :  { %9037 = vmatpush3.xpose.msk.msra.mxu0 %vm748_vm0, %v2253_v48 }
0x11fd   :  { %9041 = vmatprep.subr.mxu0 %v11184_v31 }
0x11ff   :  { %9039 = vmatmul.mubr.msk.f32.vlgmr.msra.gmra.mrb[18].mxu0 %vm748_vm0, %v11923_v47 }
0x1200   :  { %9042 = vmatpush3.xpose.msk.msra.mxu0 %vm748_vm0, %v2330_v49  ;;  %9043 = vmatprep.mubr.msk.f32.mxu0 %vm11185_vm2, %v11184_v31 }
0x1201   :  { %9046 = vmatprep.subr.mxu0 %v11184_v31 }
0x1203   :  { %9044 = vmatmul.mubr.msk.f32.vlgmr.msra.gmra.mrb[20].mxu0 %vm748_vm0, %v11921_v45 }
0x1204   :  { %9048 = vmatprep.mubr.msk.f32.mxu0 %vm11185_vm2, %v11184_v31 }
0x12d2   :  { %v2324_v50 = vpop.f32.mrb[18].mxu0 }
0x12d3   :  { %v2405_v51 = vmul.f32 0.25, %v2324_v50  ;;  %v9040_v52 = vpop.f32.mrb[19].mxu0  ;;  %v2250_v50 = vld [vmem:[%s12700_s4 + $0x18] sm:$0xff] }
0x12d4   :  { %v2247_v52 = vld [vmem:[%s12700_s4] sm:$0xff] }
0x12d5   :  { %v2407_v53 = vsel %vm1179_vm3, %v2405_v51, -inf }
0x12d6   :  { %2408 = vmax.xlane.f32.xlu1 %v2407_v53  ;;  %v2401_v54 = vpop.f32.mrb[20].mxu0  ;;  %v2248_v53 = vld [vmem:[%s12700_s4 + $0x8] sm:$0xff] }
0x12d7   :  { %v2406_v55 = vmul.f32 0.25, %v2401_v54  ;;  %v9045_v56 = vpop.f32.mrb[21].mxu0  ;;  %v9623_v54 = vpack.c.bf16 %v2248_v53, %v2247_v52  ;;  %v3248_v52 = vld [vmem:[%s12702_s24 + $0x50] sm:$0xff]  ;;  %v3249_v53 = vld [vmem:[%s12702_s24 + $0x58] sm:$0xff] }
0x12d9   :  { %v2410_v57 = vsel %vm1179_vm3, %v2406_v55, -inf }
0x12da   :  { %2411 = vmax.xlane.f32.xlu0 %v2410_v57 }
0x12e7   :  { %2432 = vrot.lane.b32.xlu1 %v11923_v47, %s11187_s22 }
0x1363   :  { %v2409_v58 = vpop.xlane.xlu1 %2408 }
0x1364   :  { %v2413_v59 = vsub.f32 %v2405_v51, %v2409_v58 }
0x1366   :  { %v2415_v60 = vmul.f32 1.442695, %v2413_v59  ;;  %v8456_v59 = vld [vmem:[#allocation44] ss:$0 sm:$0xff] }
0x1367   :  { %v2433_v61 = vpop.permute.xlu1 %2432  ;;  %v2412_v62 = vpop.xlane.xlu0 %2411 }
0x1368   :  { %10019 = vpow2.f32 %v2415_v60  ;;  %v2414_v63 = vsub.f32 %v2406_v55, %v2412_v62  ;;  %9047 = vmatpush3.msra.mxu0 %v2433_v61 }
0x1369   :  { %9051 = vmatprep.subr.mxu0 %v11184_v31 }
0x136a   :  { %v2417_v30 = vmul.f32 1.442695, %v2414_v63 }
0x136c   :  { %10021 = vpow2.f32 %v2417_v30 }
0x1372   :  { %v10020_v29 = vpop.eup %10019 }
0x1373   :  { %v2419_v0 = vsel %vm1179_vm3, %v10020_v29, 0.0 }
0x1374   :  { %2420 = vadd.xlane.f32.xlu1 %v2419_v0 }
0x1376   :  { %v10022_v1 = vpop.eup %10021 }
0x1377   :  { %v2422_v2 = vsel %vm1179_vm3, %v10022_v1, 0.0 }
0x1378   :  { %2423 = vadd.xlane.f32.xlu0 %v2422_v2 }
0x1385   :  { %2586 = vrot.lane.b32.xlu1 %v11923_v47, %s11188_s23 }
0x1389   :  { %2584 = vrot.lane.b32.xlu1 %v11923_v47, %s11189_s12 }
0x138d   :  { %2662 = vrot.lane.b32.xlu1 %v11921_v45, %s11189_s12 }
0x138e   :  { %2508 = vrot.lane.b32.xlu0 %v11921_v45, %s11187_s22 }
0x1392   :  { %2664 = vrot.lane.b32.xlu0 %v11921_v45, %s11188_s23 }
0x1401   :  { %v2421_v3 = vpop.xlane.xlu1 %2420 }
0x1402   :  { %10023 = vrcp.f32 %v2421_v3 }
0x1405   :  { %v2424_v4 = vpop.xlane.xlu0 %2423  ;;  %v2587_v9 = vpop.permute.xlu1 %2586 }
0x1406   :  { %10025 = vrcp.f32 %v2424_v4 }
0x1409   :  { %v2509_v7 = vpop.permute.xlu0 %2508  ;;  %v2585_v11 = vpop.permute.xlu1 %2584 }
0x140c   :  { %v10024_v5 = vpop.eup %10023 }
0x140d   :  { %v2427_v6 = vmul.f32 %v10024_v5, %v10020_v29  ;;  %v2665_v12 = vpop.permute.xlu0 %2664  ;;  %v2663_v13 = vpop.permute.xlu1 %2662 }
0x140f   :  { %2430 = vst.msk [vmem:[#allocation59 + $0x20] sm:$0xff] %vm1179_vm3, %v2427_v6  ;;  %9049 = vmatmul.mubr.msk.f32.vlgmr.msra.gmra.mrb[22].mxu0 %vm1179_vm3, %v2427_v6 }
0x1410   :  { %v10026_v8 = vpop.eup %10025  ;;  %9052 = vmatpush3.msra.mxu0 %v2509_v7  ;;  %9053 = vmatprep.mubr.msk.f32.mxu0 %vm11185_vm2, %v11184_v31 }
0x1411   :  { %v2428_v10 = vmul.f32 %v10026_v8, %v10022_v1  ;;  %9056 = vmatprep.subr.mxu0 %v11184_v31 }
0x1413   :  { %2431 = vst.msk [vmem:[#allocation59 + $0x28] sm:$0xff] %vm1179_vm3, %v2428_v10  ;;  %9054 = vmatmul.mubr.msk.f32.vlgmr.msra.gmra.mrb[24].mxu0 %vm1179_vm3, %v2428_v10  ;;  %v3136_v10 = vld [vmem:[%s12701_s8] sm:$0xff] }
0x1414   :  { %9058 = vmatprep.mubr.msk.f32.mxu0 %vm11185_vm2, %v11184_v31 }
0x1417   :  { %9057 = vmatpush3.xpose.msk.msra.mxu0 %vm748_vm0, %v2587_v9 }
0x1418   :  { %9061 = vmatprep.subr.mxu0 %v11184_v31 }
0x141a   :  { %9059 = vmatmul.mubr.msk.f32.vlgmr.msra.gmra.mrb[26].mxu0 %vm748_vm0, %v2585_v11  ;;  %v3137_v11 = vld [vmem:[%s12701_s8 + $0x8] sm:$0xff] }
0x141b   :  { %9062 = vmatpush3.xpose.msk.msra.mxu0 %vm748_vm0, %v2665_v12  ;;  %9063 = vmatprep.mubr.msk.f32.mxu0 %vm11185_vm2, %v11184_v31  ;;  %v9627_v12 = vpack.c.bf16 %v3137_v11, %v3136_v10 }
0x141c   :  { %9071 = vmatprep.subr.mxu0 %v11184_v31 }
0x141e   :  { %9064 = vmatmul.mubr.msk.f32.vlgmr.msra.gmra.mrb[28].mxu0 %vm748_vm0, %v2663_v13  ;;  %v3138_v13 = vld [vmem:[%s12701_s8 + $0x10] sm:$0xff] }
0x141f   :  { %9073 = vmatprep.mubr.msk.f32.mxu0 %vm11185_vm2, %v11184_v31 }
0x14e2   :  { %v2504_v14 = vpop.f32.mrb[22].mxu0 }
0x14e3   :  { %v9050_v15 = vpop.f32.mrb[23].mxu0 }
0x14e6   :  { %v2580_v16 = vpop.f32.mrb[24].mxu0 }
0x14e7   :  { %v9055_v17 = vpop.f32.mrb[25].mxu0 }
0x14e8   :  { %v3239_v17 = vld [vmem:[%s12702_s24 + $0x8] sm:$0xff] }
0x14ed   :  { %v2658_v18 = vpop.f32.mrb[26].mxu0 }
0x14ee   :  { %v2740_v19 = vmul.f32 0.25, %v2658_v18  ;;  %v9060_v20 = vpop.f32.mrb[27].mxu0  ;;  %v3240_v18 = vld [vmem:[%s12702_s24 + $0x10] sm:$0xff] }
0x14ef   :  { %v3241_v20 = vld [vmem:[%s12702_s24 + $0x18] sm:$0xff] }
0x14f0   :  { %v2742_v21 = vsel %vm1179_vm3, %v2740_v19, -inf }
0x14f1   :  { %2743 = vmax.xlane.f32.xlu0 %v2742_v21  ;;  %v2736_v22 = vpop.f32.mrb[28].mxu0  ;;  %v9639_v21 = vpack.c.bf16 %v3241_v20, %v3240_v18 }
0x14f2   :  { %v2741_v23 = vmul.f32 0.25, %v2736_v22  ;;  %v9065_v24 = vpop.f32.mrb[29].mxu0  ;;  %v3242_v22 = vld [vmem:[%s12702_s24 + $0x20] sm:$0xff] }
0x14f4   :  { %v2745_v25 = vsel %vm1179_vm3, %v2741_v23, -inf }
0x14f5   :  { %2746 = vmax.xlane.f32.xlu1 %v2745_v25 }
0x1506   :  { %2767 = vrot.lane.b32.xlu1 %v11923_v47, %s11190_s21 }
0x157e   :  { %v2744_v26 = vpop.xlane.xlu0 %2743 }
0x157f   :  { %v2748_v27 = vsub.f32 %v2740_v19, %v2744_v26 }
0x1581   :  { %v2750_v28 = vmul.f32 1.442695, %v2748_v27 }
0x1582   :  { %v2747_v32 = vpop.xlane.xlu1 %2746 }
0x1583   :  { %10027 = vpow2.f32 %v2750_v28  ;;  %v2749_v33 = vsub.f32 %v2741_v23, %v2747_v32  ;;  %v3243_v23 = vld [vmem:[%s12702_s24 + $0x28] sm:$0xff] }
0x1584   :  { %v9643_v24 = vpack.c.bf16 %v3243_v23, %v3242_v22 }
0x1585   :  { %v2752_v34 = vmul.f32 1.442695, %v2749_v33 }
0x1586   :  { %v2768_v36 = vpop.permute.xlu1 %2767 }
0x1587   :  { %10029 = vpow2.f32 %v2752_v34  ;;  %9067 = vmatpush3.msra.mxu1 %v2768_v36  ;;  %v8457_v36 = vld [vmem:[#allocation47] ss:$0 sm:$0xff] }
0x158d   :  { %v10028_v37 = vpop.eup %10027 }
0x158e   :  { %v2754_v38 = vsel %vm1179_vm3, %v10028_v37, 0.0 }
0x158f   :  { %2755 = vadd.xlane.f32.xlu0 %v2754_v38 }
0x1591   :  { %v10030_v35 = vpop.eup %10029 }
0x1592   :  { %v2757_v39 = vsel %vm1179_vm3, %v10030_v35, 0.0 }
0x1593   :  { %2758 = vadd.xlane.f32.xlu0 %v2757_v39 }
0x15a9   :  { %2843 = vrot.lane.b32.xlu0 %v11921_v45, %s11190_s21  ;;  %v2249_v45 = vld [vmem:[%s12700_s4 + $0x10] sm:$0xff]  ;;  %s8259_s4 = sshll.u32 %s11191_s15, 4  ;;  %s8260_s4 = int_to_ptr.vmem [resolvable:$true] %s8259_s4 }
0x15aa   :  { %v9619_v51 = vpack.c.bf16 %v2250_v50, %v2249_v45  ;;  %v3246_v45 = vld [vmem:[%s12702_s24 + $0x40] sm:$0xff]  ;;  %v3247_v50 = vld [vmem:[%s12702_s24 + $0x48] sm:$0xff]  ;;  %p10940_p9 = scmp.lt.s32.totalorder %s8260_s4, %s8260_s4 }
0x15ac   :  { %9620 = vmatprep.subr.bf16.mxu1 %v9619_v51 }
0x161c   :  { %v2756_v40 = vpop.xlane.xlu0 %2755 }
0x161d   :  { %10031 = vrcp.f32 %v2756_v40  ;;  %v8458_v40 = vld [vmem:[#allocation46] ss:$0 sm:$0xff] }
0x1620   :  { %v2759_v43 = vpop.xlane.xlu0 %2758 }
0x1621   :  { %10033 = vrcp.f32 %v2759_v43 }
0x1624   :  { %v2844_v44 = vpop.permute.xlu0 %2843 }
0x1625   :  { %9072 = vmatpush3.msra.mxu0 %v2844_v44 }
0x1626   :  { %9628 = vmatprep.subr.bf16.mxu0 %v9627_v12 }
0x1627   :  { %v10032_v46 = vpop.eup %10031 }
0x1628   :  { %v2762_v47 = vmul.f32 %v10032_v46, %v10028_v37 }
0x162a   :  { %2765 = vst.msk [vmem:[#allocation59 + $0x30] sm:$0xff] %vm1179_vm3, %v2762_v47  ;;  %9069 = vmatmul.mubr.msk.f32.vlgmr.msra.gmra.mrb[12].mxu1 %vm1179_vm3, %v2762_v47  ;;  %v3244_v47 = vld [vmem:[%s12702_s24 + $0x30] sm:$0xff] }
0x162b   :  { %v10034_v48 = vpop.eup %10033  ;;  %9622 = vmatpush3.bf16.msra.mxu1 %v9619_v51  ;;  %v9651_v51 = vpack.c.bf16 %v3247_v50, %v3246_v45 }
0x162c   :  { %v2763_v49 = vmul.f32 %v10034_v48, %v10030_v35  ;;  %9624 = vmatprep.subr.bf16.mxu1 %v9623_v54  ;;  %v3245_v48 = vld [vmem:[%s12702_s24 + $0x38] sm:$0xff] }
0x162e   :  { %2766 = vst.msk [vmem:[#allocation59 + $0x38] sm:$0xff] %vm1179_vm3, %v2763_v49  ;;  %9074 = vmatmul.mubr.msk.f32.vlgmr.msra.gmra.mrb[30].mxu0 %vm1179_vm3, %v2763_v49  ;;  %v9647_v49 = vpack.c.bf16 %v3245_v48, %v3244_v47 }
0x162f   :  { %9630 = vmatpush3.bf16.msra.mxu0 %v9627_v12 }
0x16fd   :  { %v2839_v55 = vpop.f32.mrb[12].mxu1 }
0x16fe   :  { %v9070_v56 = vpop.f32.mrb[13].mxu1  ;;  %9080 = vmatprep.mubr.msk.f32.mxu1 %vm748_vm0, %v2839_v55  ;;  %v3250_v55 = vld [vmem:[%s12702_s24 + $0x60] sm:$0xff] }
0x16ff   :  { %v3251_v56 = vld [vmem:[%s12702_s24 + $0x68] sm:$0xff] }
0x1701   :  { %v2915_v57 = vpop.f32.mrb[30].mxu0 }
0x1702   :  { %v9075_v58 = vpop.f32.mrb[31].mxu0  ;;  %9081 = vmatmul.mubr.msk.f32.vlgmr.msra.gmra.mrb[14].mxu1 %vm748_vm0, %v2915_v57  ;;  %v9659_v57 = vpack.c.bf16 %v3251_v56, %v3250_v55 }
0x1703   :  { %9626 = vmatpush3.bf16.msra.mxu1 %v9623_v54  ;;  %9087 = vmatprep.mubr.msk.f32.mxu1 %vm748_vm0, %v2504_v14  ;;  %v3139_v14 = vld [vmem:[%s12701_s8 + $0x18] sm:$0xff]  ;;  %v9655_v54 = vpack.c.bf16 %v3249_v53, %v3248_v52  ;;  %v3252_v58 = vld [vmem:[%s12702_s24 + $0x70] sm:$0xff]  ;;  %v8464_v53 = vld [vmem:[#allocation49] ss:$0 sm:$0xff]  ;;  %s10935_s8 = scalar_lea.vmem %s8260_s4, 1024 }
0x1704   :  { %v9631_v15 = vpack.c.bf16 %v3139_v14, %v3138_v13  ;;  %p10936_p8 = scmp.ne.s32.totalorder %s8260_s4, %s10935_s8  ;;  %p10941_p10 = scmp.lt.s32.totalorder %s10935_s8, %s10935_s8 }
0x1706   :  { %9632 = vmatprep.subr.bf16.mxu0 %v9631_v15  ;;  %p10942_p11 = por %p10941_p10, %p10940_p9 }
0x1707   :  { %9634 = vmatpush3.bf16.msra.mxu0 %v9631_v15 }
0x1708   :  { %p10943_p12 = pnand %p10942_p11, %p10936_p8 }
0x170a   :  { %9088 = vmatmul.mubr.msk.f32.vlgmr.msra.gmra.mrb[14].mxu1 %vm748_vm0, %v2580_v16  ;;  %v3238_v16 = vld [vmem:[%s12702_s24] sm:$0xff] }
0x170b   :  { %v9635_v19 = vpack.c.bf16 %v3239_v17, %v3238_v16 }
0x170d   :  { %9636 = vmatprep.subr.bf16.mxu1 %v9635_v19 }
0x170e   :  { %9638 = vmatpush3.bf16.msra.mxu1 %v9635_v19 }
0x170f   :  { %9640 = vmatprep.subr.bf16.mxu1 %v9639_v21 }
0x1712   :  { %9642 = vmatpush3.bf16.msra.mxu1 %v9639_v21 }
0x1713   :  { %9644 = vmatprep.subr.bf16.mxu1 %v9643_v24 }
0x1716   :  { %9646 = vmatpush3.bf16.msra.mxu1 %v9643_v24 }
0x1717   :  { %9648 = vmatprep.subr.bf16.mxu1 %v9647_v49 }
0x171a   :  { %9650 = vmatpush3.bf16.msra.mxu1 %v9647_v49  ;;  %v8463_v49 = vld [vmem:[#allocation50] ss:$0 sm:$0xff] }
0x171b   :  { %9652 = vmatprep.subr.bf16.mxu1 %v9651_v51 }
0x171e   :  { %9654 = vmatpush3.bf16.msra.mxu1 %v9651_v51 }
0x171f   :  { %9656 = vmatprep.subr.bf16.mxu1 %v9655_v54 }
0x1722   :  { %9658 = vmatpush3.bf16.msra.mxu1 %v9655_v54 }
0x1723   :  { %9660 = vmatprep.subr.bf16.mxu1 %v9659_v57 }
0x1726   :  { %9662 = vmatpush3.bf16.msra.mxu1 %v9659_v57  ;;  %v3476_v57 = vld [vmem:[%s12706_s29 + $0x10] sm:$0xff] }
0x17dd   :  { %v9089_v60 = vpop.f32.mrb[14].mxu1 }
0x17de   :  { %v3089_v61 = vadd.f32 %v9089_v60, %v8456_v59  ;;  %v3072_v62 = vpop.f32.mrb[15].mxu1 }
0x17df   :  { %v3088_v63 = vadd.f32 %v8456_v59, %v3072_v62  ;;  %v3253_v59 = vld [vmem:[%s12702_s24 + $0x78] sm:$0xff] }
0x17e0   :  { %v3091_v30 = vadd.f32 %v3089_v61, %v11913_v42  ;;  %v9663_v60 = vpack.c.bf16 %v3253_v59, %v3252_v58  ;;  %v8459_v61 = vld [vmem:[%s12703_s13] ss:$0 sm:$0xff]  ;;  %v3477_v58 = vld [vmem:[%s12706_s29 + $0x18] sm:$0xff] }
0x17e1   :  { %v3090_v29 = vadd.f32 %v3088_v63, %v11911_v41  ;;  %v9679_v59 = vpack.c.bf16 %v3477_v58, %v3476_v57 }
0x17e2   :  { %v3095_v0 = vsel %vm845_vm1, %v3091_v30, 0.0  ;;  %9664 = vmatprep.subr.bf16.mxu1 %v9663_v60 }
0x17e3   :  { %3096 = vadd.xlane.f32.xlu0 %v3095_v0  ;;  %v3092_v1 = vsel %vm845_vm1, %v3090_v29, 0.0  ;;  %9666 = vmatpush3.bf16.msra.mxu1 %v9663_v60  ;;  %v3566_v60 = vld [vmem:[%s12707_s18] sm:$0xff] }
0x17e4   :  { %3093 = vadd.xlane.f32.xlu1 %v3092_v1  ;;  %9179 = vmatprep.subr.mxu1 %v11184_v31 }
0x1870   :  { %v3097_v2 = vpop.xlane.xlu0 %3096 }
0x1871   :  { %v3099_v3 = vmul.f32 0.03125, %v3097_v2  ;;  %v3094_v4 = vpop.xlane.xlu1 %3093 }
0x1872   :  { %v3098_v5 = vmul.f32 0.03125, %v3094_v4 }
0x1873   :  { %v3101_v6 = vsub.f32 %v3091_v30, %v3099_v3 }
0x1874   :  { %v3100_v7 = vsub.f32 %v3090_v29, %v3098_v5 }
0x1875   :  { %v3103_v8 = vmul.f32 %v3101_v6, %v3101_v6 }
0x1876   :  { %v3102_v42 = vmul.f32 %v3100_v7, %v3100_v7 }
0x1877   :  { %v3107_v41 = vsel %vm845_vm1, %v3103_v8, 0.0 }
0x1878   :  { %3108 = vadd.xlane.f32.xlu0 %v3107_v41  ;;  %v3104_v9 = vsel %vm845_vm1, %v3102_v42, 0.0  ;;  %v8462_v41 = vld [vmem:[%s12704_s16] ss:$0 sm:$0xff] }
0x1879   :  { %3105 = vadd.xlane.f32.xlu1 %v3104_v9 }
0x1905   :  { %v3109_v25 = vpop.xlane.xlu0 %3108 }
0x1906   :  { %v3111_v26 = vmul.f32 0.03125, %v3109_v25  ;;  %v3106_v27 = vpop.xlane.xlu1 %3105 }
0x1907   :  { %v3110_v28 = vmul.f32 0.03125, %v3106_v27  ;;  %v3382_v27 = vld [vmem:[%s12705_s9] sm:$0xff] }
0x1908   :  { %v3113_v32 = vadd.f32 1e-06, %v3111_v26 }
0x1909   :  { %v3112_v33 = vadd.f32 1e-06, %v3110_v28  ;;  %v3383_v28 = vld [vmem:[%s12705_s9 + $0x8] sm:$0xff] }
0x190a   :  { %10035 = vrsqrt.f32 %v3113_v32  ;;  %v9667_v32 = vpack.c.bf16 %v3383_v28, %v3382_v27 }
0x190b   :  { %10037 = vrsqrt.f32 %v3112_v33  ;;  %v3384_v33 = vld [vmem:[%s12705_s9 + $0x10] sm:$0xff] }
0x190c   :  { %9668 = vmatprep.subr.bf16.mxu0 %v9667_v32 }
0x1914   :  { %v10036_v34 = vpop.eup %10035 }
0x1915   :  { %v10038_v37 = vpop.eup %10037  ;;  %v3117_v38 = vmul.f32 %v10036_v34, %v3101_v6  ;;  %v3385_v34 = vld [vmem:[%s12705_s9 + $0x18] sm:$0xff] }
0x1916   :  { %v3116_v35 = vmul.f32 %v10038_v37, %v3100_v7  ;;  %v3474_v37 = vld [vmem:[%s12706_s29] sm:$0xff] }
0x1917   :  { %v3126_v39 = vmul.f32 %v8457_v36, %v3117_v38  ;;  %v3475_v38 = vld [vmem:[%s12706_s29 + $0x8] sm:$0xff] }
0x1918   :  { %v3125_v43 = vmul.f32 %v8457_v36, %v3116_v35  ;;  %v9671_v36 = vpack.c.bf16 %v3385_v34, %v3384_v33  ;;  %v9675_v35 = vpack.c.bf16 %v3475_v38, %v3474_v37 }
0x1919   :  { %v3135_v46 = vadd.f32 %v8458_v40, %v3126_v39 }
0x191a   :  { %v3134_v44 = vadd.f32 %v8458_v40, %v3125_v43 }
0x191c   :  { %9098 = vmatprep.mubr.msk.f32.mxu0 %vm845_vm1, %v3134_v44 }
0x191d   :  { %9099 = vmatmul.mubr.msk.f32.vlgmr.msra.gmra.mrb[32].mxu0 %vm845_vm1, %v3135_v46 }
0x191e   :  { %9670 = vmatpush3.bf16.msra.mxu0 %v9667_v32 }
0x191f   :  { %9672 = vmatprep.subr.bf16.mxu0 %v9671_v36 }
0x1922   :  { %9674 = vmatpush3.bf16.msra.mxu0 %v9671_v36 }
0x1923   :  { %9676 = vmatprep.subr.bf16.mxu0 %v9675_v35 }
0x19f0   :  { %v9100_v62 = vpop.f32.mrb[32].mxu0 }
0x19f1   :  { %v3225_v63 = vadd.f32 %v9100_v62, %v8459_v61  ;;  %v3219_v30 = vpop.f32.mrb[33].mxu0 }
0x19f2   :  { %v3220_v29 = vadd.f32 %v8459_v61, %v3219_v30  ;;  %v3567_v61 = vld [vmem:[%s12707_s18 + $0x8] sm:$0xff] }
0x19f3   :  { %v3231_v0 = vmul.f32 0.70710677, %v3225_v63  ;;  %v3229_v7 = vmul.f32 0.5, %v3225_v63  ;;  %v9683_v62 = vpack.c.bf16 %v3567_v61, %v3566_v60  ;;  %v8465_v63 = vld [vmem:[#allocation53] ss:$0 sm:$0xff] }
0x19f4   :  { %v3230_v1 = vmul.f32 0.70710677, %v3220_v29  ;;  %v3228_v5 = vmul.f32 0.5, %v3220_v29 }
0x19f5   :  { %10039 = verf.f32 %v3231_v0 }
0x19f6   :  { %10041 = verf.f32 %v3230_v1 }
0x19ff   :  { %v10040_v2 = vpop.eup %10039 }
0x1a00   :  { %v10042_v3 = vpop.eup %10041  ;;  %v3235_v4 = vadd.f32 1.0, %v10040_v2  ;;  %v3568_v2 = vld [vmem:[%s12707_s18 + $0x10] sm:$0xff] }
0x1a01   :  { %v3234_v6 = vadd.f32 1.0, %v10042_v3  ;;  %v3569_v3 = vld [vmem:[%s12707_s18 + $0x18] sm:$0xff] }
0x1a02   :  { %v3237_v42 = vmul.f32 %v3235_v4, %v3229_v7  ;;  %v9687_v4 = vpack.c.bf16 %v3569_v3, %v3568_v2 }
0x1a03   :  { %v3236_v8 = vmul.f32 %v3234_v6, %v3228_v5  ;;  %v8468_v5 = vld [vmem:[#allocation41] ss:$0 sm:$0xff] }
0x1a05   :  { %9133 = vmatprep.mubr.f32.mxu1 %v3236_v8 }
0x1a06   :  { %9134 = vmatmul.mubr.f32.vlgmr.msra.gmra.mrb[16].mxu1 %v3237_v42 }
0x1a07   :  { %9181 = vmatprep.mubr.msk.f32.mxu1 %vm11185_vm2, %v11184_v31 }
0x1ad9   :  { %v9135_v9 = vpop.f32.mrb[16].mxu1 }
0x1ada   :  { %v3333_v10 = vadd.f32 %v9135_v9, %v8462_v41  ;;  %v3327_v11 = vpop.f32.mrb[17].mxu1 }
0x1adb   :  { %v3328_v12 = vadd.f32 %v8462_v41, %v3327_v11  ;;  %v8471_v41 = vld [vmem:[#allocation22] ss:$0 sm:$0xff] }
0x1adc   :  { %v3337_v13 = vadd.f32 %v3333_v10, %v3135_v46 }
0x1add   :  { %v3336_v14 = vadd.f32 %v3328_v12, %v3134_v44 }
0x1ade   :  { %v3341_v15 = vsel %vm845_vm1, %v3337_v13, 0.0 }
0x1adf   :  { %3342 = vadd.xlane.f32.xlu0 %v3341_v15  ;;  %v3338_v16 = vsel %vm845_vm1, %v3336_v14, 0.0 }
0x1ae0   :  { %3339 = vadd.xlane.f32.xlu1 %v3338_v16 }
0x1b6c   :  { %v3343_v17 = vpop.xlane.xlu0 %3342 }
0x1b6d   :  { %v3345_v18 = vmul.f32 0.03125, %v3343_v17  ;;  %v3340_v19 = vpop.xlane.xlu1 %3339 }
0x1b6e   :  { %v3344_v20 = vmul.f32 0.03125, %v3340_v19 }
0x1b6f   :  { %v3347_v21 = vsub.f32 %v3337_v13, %v3345_v18 }
0x1b70   :  { %v3346_v22 = vsub.f32 %v3336_v14, %v3344_v20 }
0x1b71   :  { %v3349_v23 = vmul.f32 %v3347_v21, %v3347_v21 }
0x1b72   :  { %v3348_v24 = vmul.f32 %v3346_v22, %v3346_v22 }
0x1b73   :  { %v3353_v25 = vsel %vm845_vm1, %v3349_v23, 0.0 }
0x1b74   :  { %3354 = vadd.xlane.f32.xlu0 %v3353_v25  ;;  %v3350_v26 = vsel %vm845_vm1, %v3348_v24, 0.0 }
0x1b75   :  { %3351 = vadd.xlane.f32.xlu1 %v3350_v26 }
0x1c01   :  { %v3355_v39 = vpop.xlane.xlu0 %3354 }
0x1c02   :  { %v3357_v40 = vmul.f32 0.03125, %v3355_v39  ;;  %v3352_v43 = vpop.xlane.xlu1 %3351 }
0x1c03   :  { %v3356_v44 = vmul.f32 0.03125, %v3352_v43 }
0x1c04   :  { %v3359_v46 = vadd.f32 1e-06, %v3357_v40 }
0x1c05   :  { %v3358_v47 = vadd.f32 1e-06, %v3356_v44 }
0x1c06   :  { %10043 = vrsqrt.f32 %v3359_v46 }
0x1c07   :  { %10045 = vrsqrt.f32 %v3358_v47 }
0x1c10   :  { %v10044_v48 = vpop.eup %10043 }
0x1c11   :  { %v10046_v45 = vpop.eup %10045  ;;  %v3363_v50 = vmul.f32 %v10044_v48, %v3347_v21 }
0x1c12   :  { %v3362_v51 = vmul.f32 %v10046_v45, %v3346_v22 }
0x1c13   :  { %v3372_v52 = vmul.f32 %v8463_v49, %v3363_v50 }
0x1c14   :  { %v3371_v54 = vmul.f32 %v8463_v49, %v3362_v51 }
0x1c15   :  { %v3381_v56 = vadd.f32 %v8464_v53, %v3372_v52 }
0x1c16   :  { %v3380_v55 = vadd.f32 %v8464_v53, %v3371_v54 }
0x1c18   :  { %9144 = vmatprep.mubr.msk.f32.mxu0 %vm845_vm1, %v3380_v55 }
0x1c19   :  { %9145 = vmatmul.mubr.msk.f32.vlgmr.msra.gmra.mrb[34].mxu0 %vm845_vm1, %v3381_v56 }
0x1c1a   :  { %9678 = vmatpush3.bf16.msra.mxu0 %v9675_v35 }
0x1c1b   :  { %9680 = vmatprep.subr.bf16.mxu0 %v9679_v59 }
0x1c1e   :  { %9682 = vmatpush3.bf16.msra.mxu0 %v9679_v59 }
0x1c1f   :  { %9684 = vmatprep.subr.bf16.mxu0 %v9683_v62 }
0x1cec   :  { %v9146_v30 = vpop.f32.mrb[34].mxu0 }
0x1ced   :  { %v3465_v29 = vpop.f32.mrb[35].mxu0  ;;  %v3471_v1 = vadd.f32 %v9146_v30, %v8465_v63 }
0x1cee   :  { %v3466_v0 = vadd.f32 %v8465_v63, %v3465_v29 }
0x1cf0   :  { %9155 = vmatprep.mubr.msk.f32.mxu0 %vm845_vm1, %v3466_v0 }
0x1cf1   :  { %9156 = vmatmul.mubr.msk.f32.vlgmr.msra.gmra.mrb[36].mxu0 %vm845_vm1, %v3471_v1 }
0x1cf2   :  { %9686 = vmatpush3.bf16.msra.mxu0 %v9683_v62 }
0x1cf3   :  { %9688 = vmatprep.subr.bf16.mxu0 %v9687_v4 }
0x1cf6   :  { %9690 = vmatpush3.bf16.msra.mxu0 %v9687_v4 }
0x1cf7   :  { %9169 = vmatprep.subr.mxu0 %v11184_v31 }
0x1dc4   :  { %v9157_v6 = vpop.f32.mrb[36].mxu0 }
0x1dc5   :  { %v3557_v7 = vpop.f32.mrb[37].mxu0  ;;  %v12053_v42 = vadd.f32 %v9157_v6, %v8468_v5 }
0x1dc6   :  { %v12051_v8 = vadd.f32 %v8468_v5, %v3557_v7 }
0x1dc8   :  { %9166 = vmatprep.mubr.msk.f32.mxu0 %vm845_vm1, %v12051_v8 }
0x1dc9   :  { %9167 = vmatmul.mubr.msk.f32.vlgmr.msra.gmra.mrb[38].mxu0 %vm845_vm1, %v12053_v42 }
0x1dca   :  { %9171 = vmatprep.mubr.msk.f32.mxu0 %vm11185_vm2, %v11184_v31 }
0x1e9c   :  { %v9168_v9 = vpop.f32.mrb[38].mxu0 }
0x1e9d   :  { %v12061_v10 = vadd.f32 %v9168_v9, %v8471_v41  ;;  %v3649_v11 = vpop.f32.mrb[39].mxu0 }
0x1e9e   :  { %v12063_v12 = vadd.f32 %v8471_v41, %v3649_v11 }
0x1e9f   :  { %3740 = vrot.lane.b32.xlu0 %v12061_v10, %s11186_s0 }
0x1ea0   :  { %3663 = vrot.lane.b32.xlu1 %v12063_v12, %s11186_s0 }
0x1f11   :  { %v3741_v14 = vpop.permute.xlu0 %3740 }
0x1f12   :  { %v3664_v13 = vpop.permute.xlu1 %3663 }
0x1f13   :  { %9170 = vmatpush3.xpose.msk.msra.mxu0 %vm748_vm0, %v3664_v13 }
0x1f14   :  { %9174 = vmatprep.subr.mxu0 %v11184_v31 }
0x1f16   :  { %9172 = vmatmul.mubr.msk.f32.vlgmr.msra.gmra.mrb[40].mxu0 %vm748_vm0, %v12063_v12 }
0x1f17   :  { %9175 = vmatpush3.xpose.msk.msra.mxu0 %vm748_vm0, %v3741_v14  ;;  %9176 = vmatprep.mubr.msk.f32.mxu0 %vm11185_vm2, %v11184_v31 }
0x1f18   :  { %9184 = vmatprep.subr.mxu0 %v11184_v31 }
0x1f1a   :  { %9177 = vmatmul.mubr.msk.f32.vlgmr.msra.gmra.mrb[42].mxu0 %vm748_vm0, %v12061_v10 }
0x1f1b   :  { %9186 = vmatprep.mubr.msk.f32.mxu0 %vm11185_vm2, %v11184_v31 }
0x1fe9   :  { %v3735_v15 = vpop.f32.mrb[40].mxu0 }
0x1fea   :  { %v3816_v16 = vmul.f32 0.25, %v3735_v15  ;;  %v9173_v17 = vpop.f32.mrb[41].mxu0  ;;  %v3661_v15 = vld [vmem:[%s12708_s6 + $0x18] sm:$0xff] }
0x1feb   :  { %v3658_v17 = vld [vmem:[%s12708_s6] sm:$0xff] }
0x1fec   :  { %v3818_v18 = vsel %vm1179_vm3, %v3816_v16, -inf }
0x1fed   :  { %3819 = vmax.xlane.f32.xlu1 %v3818_v18  ;;  %v3812_v19 = vpop.f32.mrb[42].mxu0  ;;  %v3659_v18 = vld [vmem:[%s12708_s6 + $0x8] sm:$0xff] }
0x1fee   :  { %v3817_v20 = vmul.f32 0.25, %v3812_v19  ;;  %v9178_v21 = vpop.f32.mrb[43].mxu0  ;;  %v9695_v19 = vpack.c.bf16 %v3659_v18, %v3658_v17 }
0x1fef   :  { %v4638_v21 = vld [vmem:[%s12709_s26] sm:$0xff] }
0x1ff0   :  { %v3821_v22 = vsel %vm1179_vm3, %v3817_v20, -inf }
0x1ff1   :  { %3822 = vmax.xlane.f32.xlu0 %v3821_v22  ;;  %v4639_v22 = vld [vmem:[%s12709_s26 + $0x8] sm:$0xff] }
0x1ffe   :  { %3842 = vrot.lane.b32.xlu1 %v12063_v12, %s11187_s22 }
0x2002   :  { %3996 = vrot.lane.b32.xlu1 %v12063_v12, %s11188_s23 }
0x2006   :  { %4074 = vrot.lane.b32.xlu1 %v12061_v10, %s11188_s23 }
0x2007   :  { %3918 = vrot.lane.b32.xlu0 %v12061_v10, %s11187_s22 }
0x207a   :  { %v3820_v23 = vpop.xlane.xlu1 %3819 }
0x207b   :  { %v3824_v24 = vsub.f32 %v3816_v16, %v3820_v23 }
0x207d   :  { %v3826_v25 = vmul.f32 1.442695, %v3824_v24  ;;  %v9707_v24 = vpack.c.bf16 %v4639_v22, %v4638_v21 }
0x207e   :  { %v3843_v26 = vpop.permute.xlu1 %3842  ;;  %v3823_v27 = vpop.xlane.xlu0 %3822 }
0x207f   :  { %10047 = vpow2.f32 %v3826_v25  ;;  %v3825_v28 = vsub.f32 %v3817_v20, %v3823_v27  ;;  %9180 = vmatpush3.msra.mxu1 %v3843_v26  ;;  %v4640_v27 = vld [vmem:[%s12709_s26 + $0x10] sm:$0xff] }
0x2080   :  { %9189 = vmatprep.subr.mxu1 %v11184_v31 }
0x2081   :  { %v3828_v32 = vmul.f32 1.442695, %v3825_v28  ;;  %v4641_v28 = vld [vmem:[%s12709_s26 + $0x18] sm:$0xff] }
0x2082   :  { %v3919_v33 = vpop.permute.xlu0 %3918  ;;  %v3997_v35 = vpop.permute.xlu1 %3996 }
0x2083   :  { %10049 = vpow2.f32 %v3828_v32  ;;  %9185 = vmatpush3.msra.mxu0 %v3919_v33  ;;  %v9711_v32 = vpack.c.bf16 %v4641_v28, %v4640_v27  ;;  %v8490_v33 = vld [vmem:[#allocation20] ss:$0 sm:$0xff] }
0x2084   :  { %9194 = vmatprep.subr.mxu0 %v11184_v31 }
0x2086   :  { %v4075_v39 = vpop.permute.xlu1 %4074 }
0x2089   :  { %v10048_v34 = vpop.eup %10047 }
0x208a   :  { %v3830_v36 = vsel %vm1179_vm3, %v10048_v34, 0.0 }
0x208b   :  { %3831 = vadd.xlane.f32.xlu1 %v3830_v36 }
0x208d   :  { %v10050_v37 = vpop.eup %10049 }
0x208e   :  { %v3833_v38 = vsel %vm1179_vm3, %v10050_v37, 0.0 }
0x208f   :  { %3834 = vadd.xlane.f32.xlu0 %v3833_v38 }
0x209c   :  { %4072 = vrot.lane.b32.xlu1 %v12061_v10, %s11189_s12 }
0x20a5   :  { %3994 = vrot.lane.b32.xlu0 %v12063_v12, %s11189_s12 }
0x2118   :  { %v3832_v40 = vpop.xlane.xlu1 %3831 }
0x2119   :  { %10051 = vrcp.f32 %v3832_v40 }
0x211c   :  { %v3835_v43 = vpop.xlane.xlu0 %3834  ;;  %v4073_v45 = vpop.permute.xlu1 %4072 }
0x211d   :  { %10053 = vrcp.f32 %v3835_v43  ;;  %v8496_v43 = vld [vmem:[#allocation8] ss:$0 sm:$0xff] }
0x2120   :  { %v3995_v49 = vpop.permute.xlu0 %3994 }
0x2123   :  { %v10052_v44 = vpop.eup %10051 }
0x2124   :  { %v3838_v46 = vmul.f32 %v10052_v44, %v10048_v34 }
0x2126   :  { %3840 = vst.msk [vmem:[#allocation61] sm:$0xff] %vm1179_vm3, %v3838_v46  ;;  %9182 = vmatmul.mubr.msk.f32.vlgmr.msra.gmra.mrb[18].mxu1 %vm1179_vm3, %v3838_v46 }
0x2127   :  { %v10054_v47 = vpop.eup %10053  ;;  %9190 = vmatpush3.xpose.msk.msra.mxu1 %vm748_vm0, %v3997_v35  ;;  %9191 = vmatprep.mubr.msk.f32.mxu1 %vm11185_vm2, %v11184_v31 }
0x2128   :  { %v3839_v48 = vmul.f32 %v10054_v47, %v10050_v37  ;;  %9199 = vmatprep.subr.mxu1 %v11184_v31 }
0x212a   :  { %3841 = vst.msk [vmem:[#allocation61 + $0x8] sm:$0xff] %vm1179_vm3, %v3839_v48  ;;  %9187 = vmatmul.mubr.msk.f32.vlgmr.msra.gmra.mrb[44].mxu0 %vm1179_vm3, %v3839_v48  ;;  %9192 = vmatmul.mubr.msk.f32.vlgmr.msra.gmra.mrb[20].mxu1 %vm748_vm0, %v3995_v49 }
0x212b   :  { %9195 = vmatpush3.xpose.msk.msra.mxu0 %vm748_vm0, %v4075_v39  ;;  %9196 = vmatprep.mubr.msk.f32.mxu0 %vm11185_vm2, %v11184_v31 }
0x212c   :  { %9204 = vmatprep.subr.mxu0 %v11184_v31  ;;  %9201 = vmatprep.mubr.msk.f32.mxu1 %vm11185_vm2, %v11184_v31 }
0x212e   :  { %9197 = vmatmul.mubr.msk.f32.vlgmr.msra.gmra.mrb[46].mxu0 %vm748_vm0, %v4073_v45 }
0x212f   :  { %9206 = vmatprep.mubr.msk.f32.mxu0 %vm11185_vm2, %v11184_v31 }
0x21f9   :  { %v12117_v50 = vpop.f32.mrb[18].mxu1 }
0x21fa   :  { %v9183_v51 = vpop.f32.mrb[19].mxu1 }
0x21fd   :  { %v12119_v52 = vpop.f32.mrb[44].mxu0  ;;  %v4068_v53 = vpop.f32.mrb[20].mxu1 }
0x21fe   :  { %v4150_v54 = vmul.f32 0.25, %v4068_v53  ;;  %v9188_v55 = vpop.f32.mrb[45].mxu0  ;;  %v9193_v56 = vpop.f32.mrb[21].mxu1 }
0x2200   :  { %v4152_v57 = vsel %vm1179_vm3, %v4150_v54, -inf }
0x2201   :  { %4153 = vmax.xlane.f32.xlu0 %v4152_v57  ;;  %v4146_v58 = vpop.f32.mrb[46].mxu0 }
0x2202   :  { %v4151_v59 = vmul.f32 0.25, %v4146_v58  ;;  %v9198_v60 = vpop.f32.mrb[47].mxu0  ;;  %v4546_v58 = vld [vmem:[%s12710_s20] sm:$0xff] }
0x2204   :  { %v4155_v61 = vsel %vm1179_vm3, %v4151_v59, -inf }
0x2205   :  { %4156 = vmax.xlane.f32.xlu1 %v4155_v61  ;;  %v4548_v61 = vld [vmem:[%s12710_s20 + $0x10] sm:$0xff] }
0x2216   :  { %4177 = vrot.lane.b32.xlu1 %v12063_v12, %s11190_s21 }
0x228e   :  { %v4154_v62 = vpop.xlane.xlu0 %4153 }
0x228f   :  { %v4158_v63 = vsub.f32 %v4150_v54, %v4154_v62  ;;  %v4549_v62 = vld [vmem:[%s12710_s20 + $0x18] sm:$0xff] }
0x2291   :  { %v4160_v30 = vmul.f32 1.442695, %v4158_v63  ;;  %v9703_v63 = vpack.c.bf16 %v4549_v62, %v4548_v61 }
0x2292   :  { %v4157_v29 = vpop.xlane.xlu1 %4156 }
0x2293   :  { %10055 = vpow2.f32 %v4160_v30  ;;  %v4159_v0 = vsub.f32 %v4151_v59, %v4157_v29  ;;  %v4547_v59 = vld [vmem:[%s12710_s20 + $0x8] sm:$0xff] }
0x2294   :  { %v9699_v60 = vpack.c.bf16 %v4547_v59, %v4546_v58 }
0x2295   :  { %v4162_v1 = vmul.f32 1.442695, %v4159_v0 }
0x2296   :  { %v4178_v2 = vpop.permute.xlu1 %4177 }
0x2297   :  { %10057 = vpow2.f32 %v4162_v1  ;;  %9200 = vmatpush3.msra.mxu1 %v4178_v2 }
0x229d   :  { %v10056_v3 = vpop.eup %10055 }
0x229e   :  { %v4164_v4 = vsel %vm1179_vm3, %v10056_v3, 0.0 }
0x229f   :  { %4165 = vadd.xlane.f32.xlu0 %v4164_v4 }
0x22a1   :  { %v10058_v5 = vpop.eup %10057 }
0x22a2   :  { %v4167_v6 = vsel %vm1179_vm3, %v10058_v5, 0.0 }
0x22a3   :  { %4168 = vadd.xlane.f32.xlu0 %v4167_v6 }
0x22b9   :  { %4253 = vrot.lane.b32.xlu0 %v12061_v10, %s11190_s21  ;;  %v3660_v10 = vld [vmem:[%s12708_s6 + $0x10] sm:$0xff] }
0x22ba   :  { %v9691_v16 = vpack.c.bf16 %v3661_v15, %v3660_v10  ;;  %v8493_v15 = vld [vmem:[#allocation10] ss:$0 sm:$0xff] }
0x22bc   :  { %9692 = vmatprep.subr.bf16.mxu1 %v9691_v16 }
0x232c   :  { %v4166_v7 = vpop.xlane.xlu0 %4165 }
0x232d   :  { %10059 = vrcp.f32 %v4166_v7 }
0x2330   :  { %v4169_v41 = vpop.xlane.xlu0 %4168 }
0x2331   :  { %10061 = vrcp.f32 %v4169_v41 }
0x2334   :  { %v4254_v9 = vpop.permute.xlu0 %4253 }
0x2335   :  { %9205 = vmatpush3.msra.mxu0 %v4254_v9 }
0x2336   :  { %9700 = vmatprep.subr.bf16.mxu0 %v9699_v60 }
0x2337   :  { %v10060_v11 = vpop.eup %10059 }
0x2338   :  { %v4172_v12 = vmul.f32 %v10060_v11, %v10056_v3  ;;  %v8492_v11 = vld [vmem:[#allocation11] ss:$0 sm:$0xff] }
0x233a   :  { %4175 = vst.msk [vmem:[#allocation61 + $0x10] sm:$0xff] %vm1179_vm3, %v4172_v12  ;;  %9202 = vmatmul.mubr.msk.f32.vlgmr.msra.gmra.mrb[22].mxu1 %vm1179_vm3, %v4172_v12 }
0x233b   :  { %v10062_v13 = vpop.eup %10061  ;;  %9694 = vmatpush3.bf16.msra.mxu1 %v9691_v16 }
0x233c   :  { %v4173_v14 = vmul.f32 %v10062_v13, %v10058_v5  ;;  %9696 = vmatprep.subr.bf16.mxu1 %v9695_v19  ;;  %v8491_v5 = vld [vmem:[#allocation13] ss:$0 sm:$0xff] }
0x233e   :  { %4176 = vst.msk [vmem:[#allocation61 + $0x18] sm:$0xff] %vm1179_vm3, %v4173_v14  ;;  %9207 = vmatmul.mubr.msk.f32.vlgmr.msra.gmra.mrb[48].mxu0 %vm1179_vm3, %v4173_v14 }
0x233f   :  { %9702 = vmatpush3.bf16.msra.mxu0 %v9699_v60 }
0x2340   :  { %9704 = vmatprep.subr.bf16.mxu0 %v9703_v63 }
0x2343   :  { %9706 = vmatpush3.bf16.msra.mxu0 %v9703_v63 }
0x2344   :  { %9245 = vmatprep.subr.mxu0 %v11184_v31 }
0x240d   :  { %v4249_v20 = vpop.f32.mrb[22].mxu1 }
0x240e   :  { %v9203_v23 = vpop.f32.mrb[23].mxu1  ;;  %9213 = vmatprep.mubr.msk.f32.mxu1 %vm748_vm0, %v4249_v20 }
0x2411   :  { %v4325_v25 = vpop.f32.mrb[48].mxu0 }
0x2412   :  { %v9208_v26 = vpop.f32.mrb[49].mxu0  ;;  %9214 = vmatmul.mubr.msk.f32.vlgmr.msra.gmra.mrb[24].mxu1 %vm748_vm0, %v4325_v25 }
0x2413   :  { %9698 = vmatpush3.bf16.msra.mxu1 %v9695_v19  ;;  %9220 = vmatprep.mubr.msk.f32.mxu1 %vm748_vm0, %v12117_v50 }
0x2414   :  { %9708 = vmatprep.subr.bf16.mxu1 %v9707_v24 }
0x241a   :  { %9221 = vmatmul.mubr.msk.f32.vlgmr.msra.gmra.mrb[24].mxu1 %vm748_vm0, %v12119_v52 }
0x241b   :  { %9710 = vmatpush3.bf16.msra.mxu1 %v9707_v24  ;;  %9242 = vmatprep.mubr.msk.f32.mxu1 %vm845_vm1, %v12051_v8 }
0x241c   :  { %9712 = vmatprep.subr.bf16.mxu1 %v9711_v32 }
0x241f   :  { %9714 = vmatpush3.bf16.msra.mxu1 %v9711_v32 }
0x2420   :  { %9255 = vmatprep.subr.mxu1 %v11184_v31 }
0x2422   :  { %9243 = vmatmul.mubr.msk.f32.vlgmr.msra.gmra.mrb[26].mxu1 %vm845_vm1, %v12053_v42 }
0x2423   :  { %9257 = vmatprep.mubr.msk.f32.mxu1 %vm11185_vm2, %v11184_v31 }
0x24ed   :  { %v9222_v34 = vpop.f32.mrb[24].mxu1 }
0x24ee   :  { %v4499_v36 = vadd.f32 %v9222_v34, %v8490_v33  ;;  %v4482_v37 = vpop.f32.mrb[25].mxu1 }
0x24ef   :  { %v4498_v38 = vadd.f32 %v8490_v33, %v4482_v37 }
0x24f0   :  { %v4501_v35 = vadd.f32 %v4499_v36, %v12053_v42 }
0x24f1   :  { %v4500_v39 = vadd.f32 %v4498_v38, %v12051_v8 }
0x24f2   :  { %v4505_v40 = vsel %vm845_vm1, %v4501_v35, 0.0 }
0x24f3   :  { %4506 = vadd.xlane.f32.xlu0 %v4505_v40  ;;  %v4502_v44 = vsel %vm845_vm1, %v4500_v39, 0.0 }
0x24f4   :  { %4503 = vadd.xlane.f32.xlu1 %v4502_v44 }
0x24f5   :  { %v9244_v46 = vpop.f32.mrb[26].mxu1 }
0x24f6   :  { %v12158_v47 = vadd.f32 %v9244_v46, %v8496_v43  ;;  %v4715_v48 = vpop.f32.mrb[27].mxu1 }
0x24f7   :  { %v12171_v10 = vadd.f32 %v8496_v43, %v4715_v48 }
0x2580   :  { %v4507_v49 = vpop.xlane.xlu0 %4506 }
0x2581   :  { %v4509_v45 = vmul.f32 0.03125, %v4507_v49  ;;  %v4504_v50 = vpop.xlane.xlu1 %4503 }
0x2582   :  { %v4508_v51 = vmul.f32 0.03125, %v4504_v50 }
0x2583   :  { %v4511_v52 = vsub.f32 %v4501_v35, %v4509_v45 }
0x2584   :  { %v4510_v53 = vsub.f32 %v4500_v39, %v4508_v51 }
0x2585   :  { %v4513_v54 = vmul.f32 %v4511_v52, %v4511_v52 }
0x2586   :  { %v4512_v55 = vmul.f32 %v4510_v53, %v4510_v53 }
0x2587   :  { %v4517_v56 = vsel %vm845_vm1, %v4513_v54, 0.0 }
0x2588   :  { %4518 = vadd.xlane.f32.xlu0 %v4517_v56  ;;  %v4514_v57 = vsel %vm845_vm1, %v4512_v55, 0.0 }
0x2589   :  { %4515 = vadd.xlane.f32.xlu1 %v4514_v57 }
0x2615   :  { %v4519_v30 = vpop.xlane.xlu0 %4518 }
0x2616   :  { %v4521_v29 = vmul.f32 0.03125, %v4519_v30  ;;  %v4516_v0 = vpop.xlane.xlu1 %4515 }
0x2617   :  { %v4520_v1 = vmul.f32 0.03125, %v4516_v0 }
0x2618   :  { %v4523_v2 = vadd.f32 1e-06, %v4521_v29 }
0x2619   :  { %v4522_v3 = vadd.f32 1e-06, %v4520_v1 }
0x261a   :  { %10063 = vrsqrt.f32 %v4523_v2 }
0x261b   :  { %10065 = vrsqrt.f32 %v4522_v3 }
0x2624   :  { %v10064_v4 = vpop.eup %10063 }
0x2625   :  { %v10066_v6 = vpop.eup %10065  ;;  %v4527_v7 = vmul.f32 %v10064_v4, %v4511_v52 }
0x2626   :  { %v4526_v41 = vmul.f32 %v10066_v6, %v4510_v53 }
0x2627   :  { %v4536_v9 = vmul.f32 %v8491_v5, %v4527_v7 }
0x2628   :  { %v4535_v12 = vmul.f32 %v8491_v5, %v4526_v41 }
0x2629   :  { %v12169_v14 = vadd.f32 %v8492_v11, %v4536_v9 }
0x262a   :  { %v12167_v13 = vadd.f32 %v8492_v11, %v4535_v12 }
0x262c   :  { %9231 = vmatprep.mubr.msk.f32.mxu0 %vm845_vm1, %v12167_v13 }
0x262d   :  { %9232 = vmatmul.mubr.msk.f32.vlgmr.msra.gmra.mrb[50].mxu0 %vm845_vm1, %v12169_v14 }
0x262e   :  { %9246 = vmatpush3.xpose.msk.msra.mxu0 %vm748_vm0, %v12171_v10  ;;  %9247 = vmatprep.mubr.msk.f32.mxu0 %vm11185_vm2, %v11184_v31 }
0x262f   :  { %9250 = vmatprep.subr.mxu0 %v11184_v31 }
0x2700   :  { %v9233_v16 = vpop.f32.mrb[50].mxu0 }
0x2701   :  { %v4629_v17 = vpop.f32.mrb[51].mxu0  ;;  %v4635_v19 = vadd.f32 %v9233_v16, %v8493_v15 }
0x2702   :  { %v4630_v18 = vadd.f32 %v8493_v15, %v4629_v17 }
0x2704   :  { %9248 = vmatmul.mubr.msk.f32.vlgmr.msra.gmra.mrb[52].mxu0 %vm748_vm0, %v4630_v18 }
0x2705   :  { %9251 = vmatpush3.xpose.msk.msra.mxu0 %vm748_vm0, %v12158_v47  ;;  %9252 = vmatprep.mubr.msk.f32.mxu0 %vm11185_vm2, %v11184_v31 }
0x2706   :  { %9260 = vmatprep.subr.mxu0 %v11184_v31 }
0x2708   :  { %9253 = vmatmul.mubr.msk.f32.vlgmr.msra.gmra.mrb[54].mxu0 %vm748_vm0, %v4635_v19 }
0x2709   :  { %9262 = vmatprep.mubr.msk.f32.mxu0 %vm11185_vm2, %v11184_v31 }
0x27d7   :  { %v4800_v20 = vpop.f32.mrb[52].mxu0 }
0x27d8   :  { %v4880_v21 = vmul.f32 0.25, %v4800_v20  ;;  %v9249_v22 = vpop.f32.mrb[53].mxu0 }
0x27d9   :  { %v4727_v22 = vld [vmem:[%s12711_s3 + $0x18] sm:$0xff] }
0x27da   :  { %v4882_v23 = vsel %vm1179_vm3, %v4880_v21, -inf }
0x27db   :  { %4883 = vmax.xlane.f32.xlu1 %v4882_v23  ;;  %v4876_v24 = vpop.f32.mrb[54].mxu0 }
0x27dc   :  { %v4881_v25 = vmul.f32 0.25, %v4876_v24  ;;  %v9254_v26 = vpop.f32.mrb[55].mxu0  ;;  %v4724_v24 = vld [vmem:[%s12711_s3] sm:$0xff] }
0x27de   :  { %v4885_v27 = vsel %vm1179_vm3, %v4881_v25, -inf }
0x27df   :  { %4886 = vmax.xlane.f32.xlu0 %v4885_v27 }
0x27ec   :  { %4906 = vrot.lane.b32.xlu1 %v12171_v10, %s11186_s0 }
0x27f0   :  { %5060 = vrot.lane.b32.xlu1 %v12171_v10, %s11189_s12 }
0x27f4   :  { %5138 = vrot.lane.b32.xlu1 %v12158_v47, %s11189_s12 }
0x27f5   :  { %4982 = vrot.lane.b32.xlu0 %v12158_v47, %s11186_s0 }
0x2868   :  { %v4884_v28 = vpop.xlane.xlu1 %4883 }
0x2869   :  { %v4888_v32 = vsub.f32 %v4880_v21, %v4884_v28 }
0x286b   :  { %v4890_v33 = vmul.f32 1.442695, %v4888_v32 }
0x286c   :  { %v4907_v34 = vpop.permute.xlu1 %4906  ;;  %v4887_v36 = vpop.xlane.xlu0 %4886 }
0x286d   :  { %10067 = vpow2.f32 %v4890_v33  ;;  %v4889_v37 = vsub.f32 %v4881_v25, %v4887_v36  ;;  %9256 = vmatpush3.msra.mxu1 %v4907_v34  ;;  %v4725_v25 = vld [vmem:[%s12711_s3 + $0x8] sm:$0xff]  ;;  %v8515_v34 = vld [vmem:[#allocation7] ss:$0 sm:$0xff] }
0x286e   :  { %9265 = vmatprep.subr.mxu1 %v11184_v31  ;;  %v9719_v26 = vpack.c.bf16 %v4725_v25, %v4724_v24  ;;  %v5721_v24 = vld [vmem:[%s12713_s1 + $0x48] sm:$0xff] }
0x286f   :  { %v4892_v38 = vmul.f32 1.442695, %v4889_v37 }
0x2870   :  { %v4983_v35 = vpop.permute.xlu0 %4982  ;;  %v5061_v46 = vpop.permute.xlu1 %5060 }
0x2871   :  { %10069 = vpow2.f32 %v4892_v38  ;;  %9261 = vmatpush3.msra.mxu0 %v4983_v35 }
0x2872   :  { %9270 = vmatprep.subr.mxu0 %v11184_v31 }
0x2874   :  { %v5139_v48 = vpop.permute.xlu1 %5138 }
0x2877   :  { %v10068_v39 = vpop.eup %10067 }
0x2878   :  { %v4894_v40 = vsel %vm1179_vm3, %v10068_v39, 0.0 }
0x2879   :  { %4895 = vadd.xlane.f32.xlu1 %v4894_v40 }
0x287b   :  { %v10070_v43 = vpop.eup %10069 }
0x287c   :  { %v4897_v44 = vsel %vm1179_vm3, %v10070_v43, 0.0 }
0x287d   :  { %4898 = vadd.xlane.f32.xlu0 %v4897_v44 }
0x288a   :  { %5136 = vrot.lane.b32.xlu1 %v4635_v19, %s11189_s12 }
0x2893   :  { %5058 = vrot.lane.b32.xlu0 %v4630_v18, %s11189_s12 }
0x2906   :  { %v4896_v49 = vpop.xlane.xlu1 %4895 }
0x2907   :  { %10071 = vrcp.f32 %v4896_v49 }
0x290a   :  { %v4899_v45 = vpop.xlane.xlu0 %4898  ;;  %v5137_v55 = vpop.permute.xlu1 %5136 }
0x290b   :  { %10073 = vrcp.f32 %v4899_v45 }
0x290e   :  { %v5059_v54 = vpop.permute.xlu0 %5058 }
0x2911   :  { %v10072_v50 = vpop.eup %10071 }
0x2912   :  { %v4902_v51 = vmul.f32 %v10072_v50, %v10068_v39 }
0x2914   :  { %4904 = vst.msk [vmem:[#allocation62] sm:$0xff] %vm1179_vm3, %v4902_v51  ;;  %9258 = vmatmul.mubr.msk.f32.vlgmr.msra.gmra.mrb[28].mxu1 %vm1179_vm3, %v4902_v51 }
0x2915   :  { %v10074_v52 = vpop.eup %10073  ;;  %9266 = vmatpush3.xpose.msk.msra.mxu1 %vm748_vm0, %v5061_v46  ;;  %9267 = vmatprep.mubr.msk.f32.mxu1 %vm11185_vm2, %v11184_v31 }
0x2916   :  { %v4903_v53 = vmul.f32 %v10074_v52, %v10070_v43  ;;  %9275 = vmatprep.subr.mxu1 %v11184_v31 }
0x2918   :  { %4905 = vst.msk [vmem:[#allocation62 + $0x8] sm:$0xff] %vm1179_vm3, %v4903_v53  ;;  %9263 = vmatmul.mubr.msk.f32.vlgmr.msra.gmra.mrb[56].mxu0 %vm1179_vm3, %v4903_v53  ;;  %9268 = vmatmul.mubr.msk.f32.vlgmr.msra.gmra.mrb[30].mxu1 %vm748_vm0, %v5059_v54  ;;  %v5610_v54 = vld [vmem:[%s12712_s28] sm:$0xff] }
0x2919   :  { %9271 = vmatpush3.xpose.msk.msra.mxu0 %vm748_vm0, %v5139_v48  ;;  %9272 = vmatprep.mubr.msk.f32.mxu0 %vm11185_vm2, %v11184_v31 }
0x291a   :  { %9280 = vmatprep.subr.mxu0 %v11184_v31  ;;  %9277 = vmatprep.mubr.msk.f32.mxu1 %vm11185_vm2, %v11184_v31 }
0x291c   :  { %9273 = vmatmul.mubr.msk.f32.vlgmr.msra.gmra.mrb[58].mxu0 %vm748_vm0, %v5137_v55  ;;  %v5611_v55 = vld [vmem:[%s12712_s28 + $0x8] sm:$0xff] }
0x291d   :  { %9282 = vmatprep.mubr.msk.f32.mxu0 %vm11185_vm2, %v11184_v31 }
0x29e7   :  { %v4978_v56 = vpop.f32.mrb[28].mxu1 }
0x29e8   :  { %v9259_v57 = vpop.f32.mrb[29].mxu1 }
0x29e9   :  { %v5612_v57 = vld [vmem:[%s12712_s28 + $0x10] sm:$0xff] }
0x29eb   :  { %v5054_v58 = vpop.f32.mrb[56].mxu0  ;;  %v5132_v59 = vpop.f32.mrb[30].mxu1 }
0x29ec   :  { %v5214_v60 = vmul.f32 0.25, %v5132_v59  ;;  %v9264_v61 = vpop.f32.mrb[57].mxu0  ;;  %v9269_v62 = vpop.f32.mrb[31].mxu1 }
0x29ed   :  { %v5713_v61 = vld [vmem:[%s12713_s1 + $0x8] sm:$0xff]  ;;  %v5714_v62 = vld [vmem:[%s12713_s1 + $0x10] sm:$0xff] }
0x29ee   :  { %v5216_v63 = vsel %vm1179_vm3, %v5214_v60, -inf }
0x29ef   :  { %5217 = vmax.xlane.f32.xlu0 %v5216_v63  ;;  %v5210_v30 = vpop.f32.mrb[58].mxu0 }
0x29f0   :  { %v5215_v29 = vmul.f32 0.25, %v5210_v30  ;;  %v9274_v0 = vpop.f32.mrb[59].mxu0  ;;  %v5715_v30 = vld [vmem:[%s12713_s1 + $0x18] sm:$0xff] }
0x29f1   :  { %v5716_v0 = vld [vmem:[%s12713_s1 + $0x20] sm:$0xff] }
0x29f2   :  { %v5219_v1 = vsel %vm1179_vm3, %v5215_v29, -inf }
0x29f3   :  { %5220 = vmax.xlane.f32.xlu1 %v5219_v1  ;;  %v5717_v1 = vld [vmem:[%s12713_s1 + $0x28] sm:$0xff] }
0x2a04   :  { %5241 = vrot.lane.b32.xlu1 %v12171_v10, %s11188_s23 }
0x2a7c   :  { %v5218_v2 = vpop.xlane.xlu0 %5217 }
0x2a7d   :  { %v5222_v3 = vsub.f32 %v5214_v60, %v5218_v2  ;;  %v5712_v60 = vld [vmem:[%s12713_s1] sm:$0xff]  ;;  %v9739_v2 = vpack.c.bf16 %v5717_v1, %v5716_v0 }
0x2a7e   :  { %v9731_v63 = vpack.c.bf16 %v5713_v61, %v5712_v60 }
0x2a7f   :  { %v5224_v4 = vmul.f32 1.442695, %v5222_v3 }
0x2a80   :  { %v5221_v5 = vpop.xlane.xlu1 %5220 }
0x2a81   :  { %10075 = vpow2.f32 %v5224_v4  ;;  %v5223_v6 = vsub.f32 %v5215_v29, %v5221_v5  ;;  %v9735_v29 = vpack.c.bf16 %v5715_v30, %v5714_v62 }
0x2a83   :  { %v5226_v7 = vmul.f32 1.442695, %v5223_v6 }
0x2a84   :  { %v5242_v41 = vpop.permute.xlu1 %5241 }
0x2a85   :  { %10077 = vpow2.f32 %v5226_v7  ;;  %9276 = vmatpush3.msra.mxu1 %v5242_v41 }
0x2a8b   :  { %v10076_v9 = vpop.eup %10075 }
0x2a8c   :  { %v5228_v11 = vsel %vm1179_vm3, %v10076_v9, 0.0 }
0x2a8d   :  { %5229 = vadd.xlane.f32.xlu0 %v5228_v11  ;;  %v8516_v11 = vld [vmem:[#allocation16] ss:$0 sm:$0xff] }
0x2a8f   :  { %v10078_v12 = vpop.eup %10077 }
0x2a90   :  { %v5231_v15 = vsel %vm1179_vm3, %v10078_v12, 0.0 }
0x2a91   :  { %5232 = vadd.xlane.f32.xlu0 %v5231_v15 }
0x2aa7   :  { %5317 = vrot.lane.b32.xlu0 %v12158_v47, %s11188_s23  ;;  %v4726_v47 = vld [vmem:[%s12711_s3 + $0x10] sm:$0xff] }
0x2aa8   :  { %v9715_v23 = vpack.c.bf16 %v4727_v22, %v4726_v47  ;;  %v5719_v47 = vld [vmem:[%s12713_s1 + $0x38] sm:$0xff] }
0x2aaa   :  { %9716 = vmatprep.subr.bf16.mxu1 %v9715_v23 }
0x2b1a   :  { %v5230_v10 = vpop.xlane.xlu0 %5229 }
0x2b1b   :  { %10079 = vrcp.f32 %v5230_v10 }
0x2b1e   :  { %v5233_v16 = vpop.xlane.xlu0 %5232 }
0x2b1f   :  { %10081 = vrcp.f32 %v5233_v16 }
0x2b22   :  { %v5318_v17 = vpop.permute.xlu0 %5317 }
0x2b23   :  { %9281 = vmatpush3.msra.mxu0 %v5318_v17  ;;  %v8517_v17 = vld [vmem:[#allocation14] ss:$0 sm:$0xff] }
0x2b25   :  { %v10080_v18 = vpop.eup %10079 }
0x2b26   :  { %v5236_v19 = vmul.f32 %v10080_v18, %v10076_v9 }
0x2b28   :  { %5239 = vst.msk [vmem:[#allocation62 + $0x10] sm:$0xff] %vm1179_vm3, %v5236_v19  ;;  %9278 = vmatmul.mubr.msk.f32.vlgmr.msra.gmra.mrb[32].mxu1 %vm1179_vm3, %v5236_v19 }
0x2b29   :  { %v10082_v20 = vpop.eup %10081  ;;  %9718 = vmatpush3.bf16.msra.mxu1 %v9715_v23  ;;  %v5720_v23 = vld [vmem:[%s12713_s1 + $0x40] sm:$0xff] }
0x2b2a   :  { %v5237_v21 = vmul.f32 %v10082_v20, %v10078_v12  ;;  %9720 = vmatprep.subr.bf16.mxu1 %v9719_v26  ;;  %v9747_v25 = vpack.c.bf16 %v5721_v24, %v5720_v23 }
0x2b2c   :  { %5240 = vst.msk [vmem:[#allocation62 + $0x18] sm:$0xff] %vm1179_vm3, %v5237_v21  ;;  %9283 = vmatmul.mubr.msk.f32.vlgmr.msra.gmra.mrb[60].mxu0 %vm1179_vm3, %v5237_v21  ;;  %v5718_v21 = vld [vmem:[%s12713_s1 + $0x30] sm:$0xff] }
0x2b2d   :  { %v9743_v22 = vpack.c.bf16 %v5719_v47, %v5718_v21  ;;  %v8522_v47 = vld [vmem:[#allocation19] ss:$0 sm:$0xff] }
0x2bfb   :  { %v5313_v27 = vpop.f32.mrb[32].mxu1 }
0x2bfc   :  { %v9279_v28 = vpop.f32.mrb[33].mxu1  ;;  %9289 = vmatprep.mubr.msk.f32.mxu1 %vm748_vm0, %v5313_v27  ;;  %v5723_v27 = vld [vmem:[%s12713_s1 + $0x58] sm:$0xff] }
0x2bff   :  { %v5389_v32 = vpop.f32.mrb[60].mxu0 }
0x2c00   :  { %v9284_v33 = vpop.f32.mrb[61].mxu0  ;;  %9290 = vmatmul.mubr.msk.f32.vlgmr.msra.gmra.mrb[34].mxu1 %vm748_vm0, %v5389_v32  ;;  %v5724_v32 = vld [vmem:[%s12713_s1 + $0x60] sm:$0xff] }
0x2c01   :  { %9722 = vmatpush3.bf16.msra.mxu1 %v9719_v26  ;;  %9296 = vmatprep.mubr.msk.f32.mxu1 %vm748_vm0, %v4978_v56  ;;  %v9723_v56 = vpack.c.bf16 %v5611_v55, %v5610_v54  ;;  %v5722_v26 = vld [vmem:[%s12713_s1 + $0x50] sm:$0xff]  ;;  %v5725_v33 = vld [vmem:[%s12713_s1 + $0x68] sm:$0xff] }
0x2c02   :  { %9732 = vmatprep.subr.bf16.mxu1 %v9731_v63  ;;  %v9751_v28 = vpack.c.bf16 %v5723_v27, %v5722_v26  ;;  %v8521_v54 = vld [vmem:[#allocation5] ss:$0 sm:$0xff]  ;;  %v8523_v26 = vld [vmem:[#allocation17] ss:$0 sm:$0xff] }
0x2c03   :  { %9724 = vmatprep.subr.bf16.mxu0 %v9723_v56 }
0x2c04   :  { %9726 = vmatpush3.bf16.msra.mxu0 %v9723_v56 }
0x2c08   :  { %9297 = vmatmul.mubr.msk.f32.vlgmr.msra.gmra.mrb[34].mxu1 %vm748_vm0, %v5054_v58  ;;  %v5613_v58 = vld [vmem:[%s12712_s28 + $0x18] sm:$0xff] }
0x2c09   :  { %v9727_v59 = vpack.c.bf16 %v5613_v58, %v5612_v57  ;;  %9734 = vmatpush3.bf16.msra.mxu1 %v9731_v63 }
0x2c0a   :  { %9736 = vmatprep.subr.bf16.mxu1 %v9735_v29 }
0x2c0b   :  { %9728 = vmatprep.subr.bf16.mxu0 %v9727_v59 }
0x2c0c   :  { %9730 = vmatpush3.bf16.msra.mxu0 %v9727_v59 }
0x2c0d   :  { %9738 = vmatpush3.bf16.msra.mxu1 %v9735_v29 }
0x2c0e   :  { %9740 = vmatprep.subr.bf16.mxu1 %v9739_v2 }
0x2c11   :  { %9742 = vmatpush3.bf16.msra.mxu1 %v9739_v2 }
0x2c12   :  { %9744 = vmatprep.subr.bf16.mxu1 %v9743_v22 }
0x2c15   :  { %9746 = vmatpush3.bf16.msra.mxu1 %v9743_v22 }
0x2c16   :  { %9748 = vmatprep.subr.bf16.mxu1 %v9747_v25 }
0x2c19   :  { %9750 = vmatpush3.bf16.msra.mxu1 %v9747_v25 }
0x2c1a   :  { %9752 = vmatprep.subr.bf16.mxu1 %v9751_v28 }
0x2c1d   :  { %9754 = vmatpush3.bf16.msra.mxu1 %v9751_v28 }
0x2cdb   :  { %v9298_v36 = vpop.f32.mrb[34].mxu1 }
0x2cdc   :  { %v5563_v37 = vadd.f32 %v9298_v36, %v8515_v34  ;;  %v5546_v38 = vpop.f32.mrb[35].mxu1  ;;  %v5726_v36 = vld [vmem:[%s12713_s1 + $0x70] sm:$0xff] }
0x2cdd   :  { %v5562_v35 = vadd.f32 %v8515_v34, %v5546_v38  ;;  %v9755_v34 = vpack.c.bf16 %v5725_v33, %v5724_v32  ;;  %v8524_v33 = vld [vmem:[#allocation40] ss:$0 sm:$0xff] }
0x2cde   :  { %v5565_v39 = vadd.f32 %v5563_v37, %v12169_v14  ;;  %v5727_v37 = vld [vmem:[%s12713_s1 + $0x78] sm:$0xff] }
0x2cdf   :  { %v5564_v40 = vadd.f32 %v5562_v35, %v12167_v13  ;;  %9756 = vmatprep.subr.bf16.mxu1 %v9755_v34  ;;  %v9759_v38 = vpack.c.bf16 %v5727_v37, %v5726_v36  ;;  %v8518_v35 = vld [vmem:[%s12714_s14] ss:$0 sm:$0xff] }
0x2ce0   :  { %v5569_v43 = vsel %vm845_vm1, %v5565_v39, 0.0  ;;  %9758 = vmatpush3.bf16.msra.mxu1 %v9755_v34 }
0x2ce1   :  { %5570 = vadd.xlane.f32.xlu0 %v5569_v43  ;;  %v5566_v44 = vsel %vm845_vm1, %v5564_v40, 0.0  ;;  %9760 = vmatprep.subr.bf16.mxu1 %v9759_v38 }
0x2ce2   :  { %5567 = vadd.xlane.f32.xlu1 %v5566_v44 }
0x2ce4   :  { %9762 = vmatpush3.bf16.msra.mxu1 %v9759_v38 }
0x2ce5   :  { %9386 = vmatprep.subr.mxu1 %v11184_v31 }
0x2d6e   :  { %v5571_v46 = vpop.xlane.xlu0 %5570 }
0x2d6f   :  { %v5573_v48 = vmul.f32 0.03125, %v5571_v46  ;;  %v5568_v49 = vpop.xlane.xlu1 %5567 }
0x2d70   :  { %v5572_v45 = vmul.f32 0.03125, %v5568_v49 }
0x2d71   :  { %v5575_v50 = vsub.f32 %v5565_v39, %v5573_v48 }
0x2d72   :  { %v5574_v51 = vsub.f32 %v5564_v40, %v5572_v45 }
0x2d73   :  { %v5577_v52 = vmul.f32 %v5575_v50, %v5575_v50 }
0x2d74   :  { %v5576_v14 = vmul.f32 %v5574_v51, %v5574_v51 }
0x2d75   :  { %v5581_v13 = vsel %vm845_vm1, %v5577_v52, 0.0 }
0x2d76   :  { %5582 = vadd.xlane.f32.xlu0 %v5581_v13  ;;  %v5578_v53 = vsel %vm845_vm1, %v5576_v14, 0.0 }
0x2d77   :  { %5579 = vadd.xlane.f32.xlu1 %v5578_v53 }
0x2e03   :  { %v5583_v3 = vpop.xlane.xlu0 %5582 }
0x2e04   :  { %v5585_v4 = vmul.f32 0.03125, %v5583_v3  ;;  %v5580_v5 = vpop.xlane.xlu1 %5579 }
0x2e05   :  { %v5584_v6 = vmul.f32 0.03125, %v5580_v5 }
0x2e06   :  { %v5587_v7 = vadd.f32 1e-06, %v5585_v4 }
0x2e07   :  { %v5586_v41 = vadd.f32 1e-06, %v5584_v6 }
0x2e08   :  { %10083 = vrsqrt.f32 %v5587_v7  ;;  %v5856_v7 = vld [vmem:[%s12715_s25] sm:$0xff] }
0x2e09   :  { %10085 = vrsqrt.f32 %v5586_v41  ;;  %v5857_v41 = vld [vmem:[%s12715_s25 + $0x8] sm:$0xff] }
0x2e12   :  { %v10084_v9 = vpop.eup %10083 }
0x2e13   :  { %v10086_v12 = vpop.eup %10085  ;;  %v5591_v15 = vmul.f32 %v10084_v9, %v5575_v50  ;;  %v9763_v9 = vpack.c.bf16 %v5857_v41, %v5856_v7 }
0x2e14   :  { %v5590_v10 = vmul.f32 %v10086_v12, %v5574_v51  ;;  %v5859_v12 = vld [vmem:[%s12715_s25 + $0x18] sm:$0xff] }
0x2e15   :  { %v5600_v16 = vmul.f32 %v8516_v11, %v5591_v15  ;;  %9764 = vmatprep.subr.bf16.mxu0 %v9763_v9 }
0x2e16   :  { %v5599_v18 = vmul.f32 %v8516_v11, %v5590_v10  ;;  %v5858_v11 = vld [vmem:[%s12715_s25 + $0x10] sm:$0xff] }
0x2e17   :  { %v5609_v20 = vadd.f32 %v8517_v17, %v5600_v16  ;;  %v9767_v15 = vpack.c.bf16 %v5859_v12, %v5858_v11 }
0x2e18   :  { %v5608_v19 = vadd.f32 %v8517_v17, %v5599_v18 }
0x2e1a   :  { %9307 = vmatprep.mubr.msk.f32.mxu0 %vm845_vm1, %v5608_v19 }
0x2e1b   :  { %9308 = vmatmul.mubr.msk.f32.vlgmr.msra.gmra.mrb[62].mxu0 %vm845_vm1, %v5609_v20 }
0x2e1c   :  { %9766 = vmatpush3.bf16.msra.mxu0 %v9763_v9 }
0x2e1d   :  { %9768 = vmatprep.subr.bf16.mxu0 %v9767_v15 }
0x2e20   :  { %9770 = vmatpush3.bf16.msra.mxu0 %v9767_v15 }
0x2e21   :  { %9356 = vmatprep.subr.mxu0 %v11184_v31 }
0x2eee   :  { %v9309_v39 = vpop.f32.mrb[62].mxu0 }
0x2eef   :  { %v5699_v40 = vadd.f32 %v9309_v39, %v8518_v35  ;;  %v5693_v43 = vpop.f32.mrb[63].mxu0 }
0x2ef0   :  { %v5694_v44 = vadd.f32 %v8518_v35, %v5693_v43 }
0x2ef1   :  { %v5705_v46 = vmul.f32 0.70710677, %v5699_v40  ;;  %v5703_v14 = vmul.f32 0.5, %v5699_v40 }
0x2ef2   :  { %v5704_v48 = vmul.f32 0.70710677, %v5694_v44  ;;  %v5702_v51 = vmul.f32 0.5, %v5694_v44 }
0x2ef3   :  { %10087 = verf.f32 %v5705_v46 }
0x2ef4   :  { %10089 = verf.f32 %v5704_v48 }
0x2efd   :  { %v10088_v49 = vpop.eup %10087 }
0x2efe   :  { %v10090_v45 = vpop.eup %10089  ;;  %v5709_v50 = vadd.f32 1.0, %v10088_v49 }
0x2eff   :  { %v5708_v52 = vadd.f32 1.0, %v10090_v45 }
0x2f00   :  { %v5711_v53 = vmul.f32 %v5709_v50, %v5703_v14 }
0x2f01   :  { %v5710_v13 = vmul.f32 %v5708_v52, %v5702_v51 }
0x2f03   :  { %9342 = vmatprep.mubr.f32.mxu1 %v5710_v13 }
0x2f04   :  { %9343 = vmatmul.mubr.f32.vlgmr.msra.gmra.mrb[36].mxu1 %v5711_v53 }
0x2f05   :  { %9388 = vmatprep.mubr.msk.f32.mxu1 %vm11185_vm2, %v11184_v31 }
0x2fd7   :  { %v9344_v55 = vpop.f32.mrb[36].mxu1 }
0x2fd8   :  { %v5807_v56 = vadd.f32 %v9344_v55, %v8521_v54  ;;  %v5801_v57 = vpop.f32.mrb[37].mxu1 }
0x2fd9   :  { %v5802_v58 = vadd.f32 %v8521_v54, %v5801_v57 }
0x2fda   :  { %v5811_v59 = vadd.f32 %v5807_v56, %v5609_v20 }
0x2fdb   :  { %v5810_v60 = vadd.f32 %v5802_v58, %v5608_v19 }
0x2fdc   :  { %v5815_v61 = vsel %vm845_vm1, %v5811_v59, 0.0 }
0x2fdd   :  { %5816 = vadd.xlane.f32.xlu0 %v5815_v61  ;;  %v5812_v62 = vsel %vm845_vm1, %v5810_v60, 0.0 }
0x2fde   :  { %5813 = vadd.xlane.f32.xlu1 %v5812_v62 }
0x306a   :  { %v5817_v63 = vpop.xlane.xlu0 %5816 }
0x306b   :  { %v5819_v30 = vmul.f32 0.03125, %v5817_v63  ;;  %v5814_v29 = vpop.xlane.xlu1 %5813 }
0x306c   :  { %v5818_v0 = vmul.f32 0.03125, %v5814_v29 }
0x306d   :  { %v5821_v1 = vsub.f32 %v5811_v59, %v5819_v30 }
0x306e   :  { %v5820_v2 = vsub.f32 %v5810_v60, %v5818_v0 }
0x306f   :  { %v5823_v3 = vmul.f32 %v5821_v1, %v5821_v1 }
0x3070   :  { %v5822_v4 = vmul.f32 %v5820_v2, %v5820_v2 }
0x3071   :  { %v5827_v5 = vsel %vm845_vm1, %v5823_v3, 0.0 }
0x3072   :  { %5828 = vadd.xlane.f32.xlu0 %v5827_v5  ;;  %v5824_v6 = vsel %vm845_vm1, %v5822_v4, 0.0 }
0x3073   :  { %5825 = vadd.xlane.f32.xlu1 %v5824_v6 }
0x30ff   :  { %v5829_v10 = vpop.xlane.xlu0 %5828 }
0x3100   :  { %v5831_v16 = vmul.f32 0.03125, %v5829_v10  ;;  %v5826_v17 = vpop.xlane.xlu1 %5825 }
0x3101   :  { %v5830_v18 = vmul.f32 0.03125, %v5826_v17 }
0x3102   :  { %v5833_v19 = vadd.f32 1e-06, %v5831_v16 }
0x3103   :  { %v5832_v20 = vadd.f32 1e-06, %v5830_v18 }
0x3104   :  { %10091 = vrsqrt.f32 %v5833_v19 }
0x3105   :  { %10093 = vrsqrt.f32 %v5832_v20 }
0x310e   :  { %v10092_v21 = vpop.eup %10091 }
0x310f   :  { %v10094_v22 = vpop.eup %10093  ;;  %v5837_v23 = vmul.f32 %v10092_v21, %v5821_v1 }
0x3110   :  { %v5836_v24 = vmul.f32 %v10094_v22, %v5820_v2 }
0x3111   :  { %v5846_v25 = vmul.f32 %v8522_v47, %v5837_v23 }
0x3112   :  { %v5845_v27 = vmul.f32 %v8522_v47, %v5836_v24 }
0x3113   :  { %v12288_v32 = vadd.f32 %v8523_v26, %v5846_v25 }
0x3114   :  { %v12286_v28 = vadd.f32 %v8523_v26, %v5845_v27 }
0x3116   :  { %9353 = vmatprep.mubr.msk.f32.mxu0 %vm845_vm1, %v12286_v28 }
0x3117   :  { %9354 = vmatmul.mubr.msk.f32.vlgmr.msra.gmra.mrb[64].mxu0 %vm845_vm1, %v12288_v32 }
0x3118   :  { %9358 = vmatprep.mubr.msk.f32.mxu0 %vm11185_vm2, %v11184_v31 }
0x31ea   :  { %v9355_v34 = vpop.f32.mrb[64].mxu0 }
0x31eb   :  { %v12296_v36 = vadd.f32 %v9355_v34, %v8524_v33  ;;  %v5939_v37 = vpop.f32.mrb[65].mxu0 }
0x31ec   :  { %v12298_v38 = vadd.f32 %v8524_v33, %v5939_v37 }
0x31ed   :  { %6030 = vrot.lane.b32.xlu0 %v12296_v36, %s11186_s0 }
0x31ee   :  { %5953 = vrot.lane.b32.xlu1 %v12298_v38, %s11186_s0 }
0x325f   :  { %v6031_v39 = vpop.permute.xlu0 %6030 }
0x3260   :  { %v5954_v35 = vpop.permute.xlu1 %5953 }
0x3261   :  { %9357 = vmatpush3.xpose.msk.msra.mxu0 %vm748_vm0, %v5954_v35 }
0x3262   :  { %9361 = vmatprep.subr.mxu0 %v11184_v31 }
0x3264   :  { %9359 = vmatmul.mubr.msk.f32.vlgmr.msra.gmra.mrb[66].mxu0 %vm748_vm0, %v12298_v38 }
0x3265   :  { %9362 = vmatpush3.xpose.msk.msra.mxu0 %vm748_vm0, %v6031_v39  ;;  %9363 = vmatprep.mubr.msk.f32.mxu0 %vm11185_vm2, %v11184_v31 }
0x3266   :  { %9366 = vmatprep.subr.mxu0 %v11184_v31 }
0x3268   :  { %9364 = vmatmul.mubr.msk.f32.vlgmr.msra.gmra.mrb[68].mxu0 %vm748_vm0, %v12296_v36 }
0x3269   :  { %9368 = vmatprep.mubr.msk.f32.mxu0 %vm11185_vm2, %v11184_v31 }
0x3337   :  { %v6025_v40 = vpop.f32.mrb[66].mxu0 }
0x3338   :  { %v6106_v43 = vmul.f32 0.25, %v6025_v40  ;;  %v9360_v44 = vpop.f32.mrb[67].mxu0 }
0x333a   :  { %v6108_v46 = vsel %vm1179_vm3, %v6106_v43, -inf }
0x333b   :  { %6109 = vmax.xlane.f32.xlu1 %v6108_v46  ;;  %v6102_v48 = vpop.f32.mrb[68].mxu0 }
0x333c   :  { %v6107_v49 = vmul.f32 0.25, %v6102_v48  ;;  %v9365_v45 = vpop.f32.mrb[69].mxu0 }
0x333e   :  { %v6111_v50 = vsel %vm1179_vm3, %v6107_v49, -inf }
0x333f   :  { %6112 = vmax.xlane.f32.xlu0 %v6111_v50 }
0x334c   :  { %6133 = vrot.lane.b32.xlu1 %v12298_v38, %s11187_s22 }
0x33c8   :  { %v6110_v51 = vpop.xlane.xlu1 %6109 }
0x33c9   :  { %v6114_v52 = vsub.f32 %v6106_v43, %v6110_v51  ;;  %v6929_v51 = vld [vmem:[%s12717_s27] sm:$0xff] }
0x33cb   :  { %v6116_v14 = vmul.f32 1.442695, %v6114_v52  ;;  %v6930_v52 = vld [vmem:[%s12717_s27 + $0x8] sm:$0xff] }
0x33cc   :  { %v6134_v13 = vpop.permute.xlu1 %6133  ;;  %v6113_v53 = vpop.xlane.xlu0 %6112 }
0x33cd   :  { %10095 = vpow2.f32 %v6116_v14  ;;  %v6115_v54 = vsub.f32 %v6107_v49, %v6113_v53  ;;  %9367 = vmatpush3.msra.mxu0 %v6134_v13  ;;  %v9787_v13 = vpack.c.bf16 %v6930_v52, %v6929_v51 }
0x33ce   :  { %9371 = vmatprep.subr.mxu0 %v11184_v31 }
0x33cf   :  { %v6118_v55 = vmul.f32 1.442695, %v6115_v54 }
0x33d1   :  { %10097 = vpow2.f32 %v6118_v55  ;;  %v6931_v55 = vld [vmem:[%s12717_s27 + $0x10] sm:$0xff] }
0x33d7   :  { %v10096_v56 = vpop.eup %10095 }
0x33d8   :  { %v6120_v57 = vsel %vm1179_vm3, %v10096_v56, 0.0 }
0x33d9   :  { %6121 = vadd.xlane.f32.xlu1 %v6120_v57 }
0x33db   :  { %v10098_v58 = vpop.eup %10097 }
0x33dc   :  { %v6123_v59 = vsel %vm1179_vm3, %v10098_v58, 0.0 }
0x33dd   :  { %6124 = vadd.xlane.f32.xlu0 %v6123_v59 }
0x33ea   :  { %6287 = vrot.lane.b32.xlu1 %v12298_v38, %s11188_s23 }
0x33ee   :  { %6285 = vrot.lane.b32.xlu1 %v12298_v38, %s11189_s12 }
0x33f2   :  { %6363 = vrot.lane.b32.xlu1 %v12296_v36, %s11189_s12 }
0x33f3   :  { %6209 = vrot.lane.b32.xlu0 %v12296_v36, %s11187_s22  ;;  %s12716_s22 = sld [smem:[#allocation112_spill]] }
0x33f7   :  { %6365 = vrot.lane.b32.xlu0 %v12296_v36, %s11188_s23 }
0x33f9   :  { %v5951_v44 = vld [vmem:[%s12716_s22 + $0x18] sm:$0xff]  ;;  %v5948_v48 = vld [vmem:[%s12716_s22] sm:$0xff]  ;;  %v5949_v49 = vld [vmem:[%s12716_s22 + $0x8] sm:$0xff] }
0x33fa   :  { %v9775_v45 = vpack.c.bf16 %v5949_v49, %v5948_v48 }
0x3466   :  { %v6122_v60 = vpop.xlane.xlu1 %6121 }
0x3467   :  { %10099 = vrcp.f32 %v6122_v60 }
0x346a   :  { %v6125_v61 = vpop.xlane.xlu0 %6124  ;;  %v6288_v0 = vpop.permute.xlu1 %6287 }
0x346b   :  { %10101 = vrcp.f32 %v6125_v61 }
0x346e   :  { %v6210_v30 = vpop.permute.xlu0 %6209  ;;  %v6286_v2 = vpop.permute.xlu1 %6285 }
0x3471   :  { %v10100_v62 = vpop.eup %10099 }
0x3472   :  { %v6128_v63 = vmul.f32 %v10100_v62, %v10096_v56  ;;  %v6366_v3 = vpop.permute.xlu0 %6365  ;;  %v6364_v4 = vpop.permute.xlu1 %6363  ;;  %v6932_v56 = vld [vmem:[%s12717_s27 + $0x18] sm:$0xff] }
0x3473   :  { %v9791_v57 = vpack.c.bf16 %v6932_v56, %v6931_v55 }
0x3474   :  { %6131 = vst.msk [vmem:[#allocation61 + $0x20] sm:$0xff] %vm1179_vm3, %v6128_v63  ;;  %9369 = vmatmul.mubr.msk.f32.vlgmr.msra.gmra.mrb[70].mxu0 %vm1179_vm3, %v6128_v63 }
0x3475   :  { %v10102_v29 = vpop.eup %10101  ;;  %9372 = vmatpush3.msra.mxu0 %v6210_v30  ;;  %9373 = vmatprep.mubr.msk.f32.mxu0 %vm11185_vm2, %v11184_v31 }
0x3476   :  { %v6129_v1 = vmul.f32 %v10102_v29, %v10098_v58  ;;  %9376 = vmatprep.subr.mxu0 %v11184_v31  ;;  %v8543_v58 = vld [vmem:[#allocation38] ss:$0 sm:$0xff]  ;;  %v8549_v29 = vld [vmem:[#allocation28] ss:$0 sm:$0xff] }
0x3478   :  { %6132 = vst.msk [vmem:[#allocation61 + $0x28] sm:$0xff] %vm1179_vm3, %v6129_v1  ;;  %9374 = vmatmul.mubr.msk.f32.vlgmr.msra.gmra.mrb[72].mxu0 %vm1179_vm3, %v6129_v1 }
0x3479   :  { %9378 = vmatprep.mubr.msk.f32.mxu0 %vm11185_vm2, %v11184_v31 }
0x347c   :  { %9377 = vmatpush3.xpose.msk.msra.mxu0 %vm748_vm0, %v6288_v0 }
0x347d   :  { %9381 = vmatprep.subr.mxu0 %v11184_v31 }
0x347f   :  { %9379 = vmatmul.mubr.msk.f32.vlgmr.msra.gmra.mrb[74].mxu0 %vm748_vm0, %v6286_v2 }
0x3480   :  { %9382 = vmatpush3.xpose.msk.msra.mxu0 %vm748_vm0, %v6366_v3  ;;  %9383 = vmatprep.mubr.msk.f32.mxu0 %vm11185_vm2, %v11184_v31 }
0x3481   :  { %9391 = vmatprep.subr.mxu0 %v11184_v31 }
0x3483   :  { %9384 = vmatmul.mubr.msk.f32.vlgmr.msra.gmra.mrb[76].mxu0 %vm748_vm0, %v6364_v4 }
0x3484   :  { %9393 = vmatprep.mubr.msk.f32.mxu0 %vm11185_vm2, %v11184_v31 }
0x3547   :  { %v12352_v5 = vpop.f32.mrb[70].mxu0 }
0x3548   :  { %v9370_v6 = vpop.f32.mrb[71].mxu0 }
0x354b   :  { %v12354_v7 = vpop.f32.mrb[72].mxu0 }
0x354c   :  { %v9375_v41 = vpop.f32.mrb[73].mxu0 }
0x3552   :  { %v6359_v9 = vpop.f32.mrb[74].mxu0 }
0x3553   :  { %v6441_v11 = vmul.f32 0.25, %v6359_v9  ;;  %v9380_v12 = vpop.f32.mrb[75].mxu0 }
0x3555   :  { %v6443_v15 = vsel %vm1179_vm3, %v6441_v11, -inf }
0x3556   :  { %6444 = vmax.xlane.f32.xlu0 %v6443_v15  ;;  %v6437_v10 = vpop.f32.mrb[76].mxu0 }
0x3557   :  { %v6442_v16 = vmul.f32 0.25, %v6437_v10  ;;  %v9385_v17 = vpop.f32.mrb[77].mxu0 }
0x3559   :  { %v6446_v18 = vsel %vm1179_vm3, %v6442_v16, -inf }
0x355a   :  { %6447 = vmax.xlane.f32.xlu1 %v6446_v18 }
0x356b   :  { %6468 = vrot.lane.b32.xlu1 %v12298_v38, %s11190_s21 }
0x35e3   :  { %v6445_v19 = vpop.xlane.xlu0 %6444 }
0x35e4   :  { %v6449_v20 = vsub.f32 %v6441_v11, %v6445_v19 }
0x35e6   :  { %v6451_v21 = vmul.f32 1.442695, %v6449_v20 }
0x35e7   :  { %v6448_v47 = vpop.xlane.xlu1 %6447 }
0x35e8   :  { %10103 = vpow2.f32 %v6451_v21  ;;  %v6450_v22 = vsub.f32 %v6442_v16, %v6448_v47 }
0x35ea   :  { %v6453_v23 = vmul.f32 1.442695, %v6450_v22 }
0x35eb   :  { %v6469_v24 = vpop.permute.xlu1 %6468 }
0x35ec   :  { %10105 = vpow2.f32 %v6453_v23  ;;  %9387 = vmatpush3.msra.mxu1 %v6469_v24 }
0x35f2   :  { %v10104_v25 = vpop.eup %10103 }
0x35f3   :  { %v6455_v26 = vsel %vm1179_vm3, %v10104_v25, 0.0 }
0x35f4   :  { %6456 = vadd.xlane.f32.xlu0 %v6455_v26 }
0x35f6   :  { %v10106_v27 = vpop.eup %10105 }
0x35f7   :  { %v6458_v33 = vsel %vm1179_vm3, %v10106_v27, 0.0 }
0x35f8   :  { %6459 = vadd.xlane.f32.xlu0 %v6458_v33 }
0x360e   :  { %6544 = vrot.lane.b32.xlu0 %v12296_v36, %s11190_s21  ;;  %v5950_v36 = vld [vmem:[%s12716_s22 + $0x10] sm:$0xff]  ;;  %s12718_s21 = sld [smem:[#allocation104_spill]] }
0x360f   :  { %v9771_v46 = vpack.c.bf16 %v5951_v44, %v5950_v36 }
0x3611   :  { %9772 = vmatprep.subr.bf16.mxu1 %v9771_v46 }
0x3614   :  { %v6837_v12 = vld [vmem:[%s12718_s21] sm:$0xff]  ;;  %v6838_v15 = vld [vmem:[%s12718_s21 + $0x8] sm:$0xff]  ;;  %v6839_v16 = vld [vmem:[%s12718_s21 + $0x10] sm:$0xff] }
0x3615   :  { %v9779_v10 = vpack.c.bf16 %v6838_v15, %v6837_v12  ;;  %v6840_v17 = vld [vmem:[%s12718_s21 + $0x18] sm:$0xff] }
0x3616   :  { %v9783_v18 = vpack.c.bf16 %v6840_v17, %v6839_v16 }
0x3681   :  { %v6457_v34 = vpop.xlane.xlu0 %6456 }
0x3682   :  { %10107 = vrcp.f32 %v6457_v34 }
0x3685   :  { %v6460_v37 = vpop.xlane.xlu0 %6459 }
0x3686   :  { %10109 = vrcp.f32 %v6460_v37  ;;  %v8545_v37 = vld [vmem:[#allocation31] ss:$0 sm:$0xff] }
0x3689   :  { %v6545_v38 = vpop.permute.xlu0 %6544 }
0x368a   :  { %9392 = vmatpush3.msra.mxu0 %v6545_v38 }
0x368b   :  { %9780 = vmatprep.subr.bf16.mxu0 %v9779_v10 }
0x368c   :  { %v10108_v35 = vpop.eup %10107 }
0x368d   :  { %v6463_v39 = vmul.f32 %v10108_v35, %v10104_v25  ;;  %v8544_v25 = vld [vmem:[#allocation32] ss:$0 sm:$0xff] }
0x368f   :  { %6466 = vst.msk [vmem:[#allocation61 + $0x30] sm:$0xff] %vm1179_vm3, %v6463_v39  ;;  %9389 = vmatmul.mubr.msk.f32.vlgmr.msra.gmra.mrb[38].mxu1 %vm1179_vm3, %v6463_v39 }
0x3690   :  { %v10110_v40 = vpop.eup %10109  ;;  %9774 = vmatpush3.bf16.msra.mxu1 %v9771_v46 }
0x3691   :  { %v6464_v43 = vmul.f32 %v10110_v40, %v10106_v27  ;;  %9776 = vmatprep.subr.bf16.mxu1 %v9775_v45 }
0x3693   :  { %6467 = vst.msk [vmem:[#allocation61 + $0x38] sm:$0xff] %vm1179_vm3, %v6464_v43  ;;  %9394 = vmatmul.mubr.msk.f32.vlgmr.msra.gmra.mrb[78].mxu0 %vm1179_vm3, %v6464_v43  ;;  %v8546_v43 = vld [vmem:[#allocation29] ss:$0 sm:$0xff] }
0x3694   :  { %9782 = vmatpush3.bf16.msra.mxu0 %v9779_v10 }
0x3695   :  { %9784 = vmatprep.subr.bf16.mxu0 %v9783_v18 }
0x3698   :  { %9786 = vmatpush3.bf16.msra.mxu0 %v9783_v18 }
0x3699   :  { %9432 = vmatprep.subr.mxu0 %v11184_v31 }
0x3762   :  { %v6540_v50 = vpop.f32.mrb[38].mxu1 }
0x3763   :  { %v9390_v14 = vpop.f32.mrb[39].mxu1  ;;  %9400 = vmatprep.mubr.msk.f32.mxu1 %vm748_vm0, %v6540_v50 }
0x3766   :  { %v6616_v53 = vpop.f32.mrb[78].mxu0 }
0x3767   :  { %v9395_v54 = vpop.f32.mrb[79].mxu0  ;;  %9401 = vmatmul.mubr.msk.f32.vlgmr.msra.gmra.mrb[40].mxu1 %vm748_vm0, %v6616_v53 }
0x3768   :  { %9778 = vmatpush3.bf16.msra.mxu1 %v9775_v45  ;;  %9407 = vmatprep.mubr.msk.f32.mxu1 %vm748_vm0, %v12352_v5 }
0x3769   :  { %9788 = vmatprep.subr.bf16.mxu1 %v9787_v13 }
0x376f   :  { %9408 = vmatmul.mubr.msk.f32.vlgmr.msra.gmra.mrb[40].mxu1 %vm748_vm0, %v12354_v7 }
0x3770   :  { %9790 = vmatpush3.bf16.msra.mxu1 %v9787_v13  ;;  %9429 = vmatprep.mubr.msk.f32.mxu1 %vm845_vm1, %v12051_v8 }
0x3771   :  { %9792 = vmatprep.subr.bf16.mxu1 %v9791_v57 }
0x3774   :  { %9794 = vmatpush3.bf16.msra.mxu1 %v9791_v57 }
0x3775   :  { %9442 = vmatprep.subr.mxu1 %v11184_v31 }
0x3777   :  { %9430 = vmatmul.mubr.msk.f32.vlgmr.msra.gmra.mrb[42].mxu1 %vm845_vm1, %v12053_v42 }
0x3778   :  { %9444 = vmatprep.mubr.msk.f32.mxu1 %vm11185_vm2, %v11184_v31 }
0x3842   :  { %v9409_v59 = vpop.f32.mrb[40].mxu1 }
0x3843   :  { %v6790_v60 = vadd.f32 %v9409_v59, %v8543_v58  ;;  %v6773_v61 = vpop.f32.mrb[41].mxu1 }
0x3844   :  { %v6789_v62 = vadd.f32 %v8543_v58, %v6773_v61 }
0x3845   :  { %v6792_v63 = vadd.f32 %v6790_v60, %v12288_v32 }
0x3846   :  { %v6791_v30 = vadd.f32 %v6789_v62, %v12286_v28 }
0x3847   :  { %v6796_v8 = vsel %vm845_vm1, %v6792_v63, 0.0 }
0x3848   :  { %6797 = vadd.xlane.f32.xlu0 %v6796_v8  ;;  %v6793_v0 = vsel %vm845_vm1, %v6791_v30, 0.0 }
0x3849   :  { %6794 = vadd.xlane.f32.xlu1 %v6793_v0 }
0x384a   :  { %v9431_v42 = vpop.f32.mrb[42].mxu1 }
0x384b   :  { %v12393_v1 = vadd.f32 %v9431_v42, %v8549_v29  ;;  %v7006_v2 = vpop.f32.mrb[43].mxu1 }
0x384c   :  { %v12406_v40 = vadd.f32 %v8549_v29, %v7006_v2 }
0x38d5   :  { %v6798_v3 = vpop.xlane.xlu0 %6797 }
0x38d6   :  { %v6800_v4 = vmul.f32 0.03125, %v6798_v3  ;;  %v6795_v5 = vpop.xlane.xlu1 %6794 }
0x38d7   :  { %v6799_v32 = vmul.f32 0.03125, %v6795_v5 }
0x38d8   :  { %v6802_v28 = vsub.f32 %v6792_v63, %v6800_v4 }
0x38d9   :  { %v6801_v6 = vsub.f32 %v6791_v30, %v6799_v32 }
0x38da   :  { %v6804_v7 = vmul.f32 %v6802_v28, %v6802_v28 }
0x38db   :  { %v6803_v41 = vmul.f32 %v6801_v6, %v6801_v6 }
0x38dc   :  { %v6808_v9 = vsel %vm845_vm1, %v6804_v7, 0.0 }
0x38dd   :  { %6809 = vadd.xlane.f32.xlu0 %v6808_v9  ;;  %v6805_v11 = vsel %vm845_vm1, %v6803_v41, 0.0 }
0x38de   :  { %6806 = vadd.xlane.f32.xlu1 %v6805_v11 }
0x396a   :  { %v6810_v19 = vpop.xlane.xlu0 %6809 }
0x396b   :  { %v6812_v20 = vmul.f32 0.03125, %v6810_v19  ;;  %v6807_v21 = vpop.xlane.xlu1 %6806 }
0x396c   :  { %v6811_v47 = vmul.f32 0.03125, %v6807_v21 }
0x396d   :  { %v6814_v22 = vadd.f32 1e-06, %v6812_v20 }
0x396e   :  { %v6813_v23 = vadd.f32 1e-06, %v6811_v47 }
0x396f   :  { %10111 = vrsqrt.f32 %v6814_v22 }
0x3970   :  { %10113 = vrsqrt.f32 %v6813_v23 }
0x3979   :  { %v10112_v24 = vpop.eup %10111 }
0x397a   :  { %v10114_v26 = vpop.eup %10113  ;;  %v6818_v27 = vmul.f32 %v10112_v24, %v6802_v28 }
0x397b   :  { %v6817_v33 = vmul.f32 %v10114_v26, %v6801_v6 }
0x397c   :  { %v6827_v34 = vmul.f32 %v8544_v25, %v6818_v27 }
0x397d   :  { %v6826_v38 = vmul.f32 %v8544_v25, %v6817_v33 }
0x397e   :  { %v12404_v39 = vadd.f32 %v8545_v37, %v6827_v34 }
0x397f   :  { %v12402_v35 = vadd.f32 %v8545_v37, %v6826_v38 }
0x3981   :  { %9418 = vmatprep.mubr.msk.f32.mxu0 %vm845_vm1, %v12402_v35 }
0x3982   :  { %9419 = vmatmul.mubr.msk.f32.vlgmr.msra.gmra.mrb[80].mxu0 %vm845_vm1, %v12404_v39 }
0x3983   :  { %9433 = vmatpush3.xpose.msk.msra.mxu0 %vm748_vm0, %v12406_v40  ;;  %9434 = vmatprep.mubr.msk.f32.mxu0 %vm11185_vm2, %v11184_v31 }
0x3984   :  { %9437 = vmatprep.subr.mxu0 %v11184_v31 }
0x3a55   :  { %v9420_v36 = vpop.f32.mrb[80].mxu0 }
0x3a56   :  { %v6920_v44 = vpop.f32.mrb[81].mxu0  ;;  %v6926_v48 = vadd.f32 %v9420_v36, %v8546_v43 }
0x3a57   :  { %v6921_v46 = vadd.f32 %v8546_v43, %v6920_v44 }
0x3a59   :  { %9435 = vmatmul.mubr.msk.f32.vlgmr.msra.gmra.mrb[82].mxu0 %vm748_vm0, %v6921_v46 }
0x3a5a   :  { %9438 = vmatpush3.xpose.msk.msra.mxu0 %vm748_vm0, %v12393_v1  ;;  %9439 = vmatprep.mubr.msk.f32.mxu0 %vm11185_vm2, %v11184_v31 }
0x3a5b   :  { %9447 = vmatprep.subr.mxu0 %v11184_v31 }
0x3a5d   :  { %9440 = vmatmul.mubr.msk.f32.vlgmr.msra.gmra.mrb[84].mxu0 %vm748_vm0, %v6926_v48 }
0x3a5e   :  { %9449 = vmatprep.mubr.msk.f32.mxu0 %vm11185_vm2, %v11184_v31 }
0x3b2c   :  { %v7091_v49 = vpop.f32.mrb[82].mxu0 }
0x3b2d   :  { %v7171_v45 = vmul.f32 0.25, %v7091_v49  ;;  %v9436_v50 = vpop.f32.mrb[83].mxu0 }
0x3b2f   :  { %v7173_v51 = vsel %vm1179_vm3, %v7171_v45, -inf }
0x3b30   :  { %7174 = vmax.xlane.f32.xlu1 %v7173_v51  ;;  %v7167_v52 = vpop.f32.mrb[84].mxu0 }
0x3b31   :  { %v7172_v14 = vmul.f32 0.25, %v7167_v52  ;;  %v9441_v13 = vpop.f32.mrb[85].mxu0 }
0x3b33   :  { %v7176_v53 = vsel %vm1179_vm3, %v7172_v14, -inf }
0x3b34   :  { %7177 = vmax.xlane.f32.xlu0 %v7176_v53 }
0x3b41   :  { %7198 = vrot.lane.b32.xlu1 %v12406_v40, %s11186_s0 }
0x3b45   :  { %7352 = vrot.lane.b32.xlu1 %v12406_v40, %s11189_s12 }
0x3b49   :  { %7430 = vrot.lane.b32.xlu1 %v12393_v1, %s11189_s12 }
0x3b4a   :  { %7274 = vrot.lane.b32.xlu0 %v12393_v1, %s11186_s0  ;;  %s12719_s0 = sld [smem:[#allocation105_spill]] }
0x3b50   :  { %v7016_v50 = vld [vmem:[%s12719_s0 + $0x8] sm:$0xff] }
0x3bbd   :  { %v7175_v54 = vpop.xlane.xlu1 %7174 }
0x3bbe   :  { %v7179_v55 = vsub.f32 %v7171_v45, %v7175_v54  ;;  %v7015_v45 = vld [vmem:[%s12719_s0] sm:$0xff]  ;;  %v8568_v54 = vld [vmem:[#allocation26] ss:$0 sm:$0xff] }
0x3bbf   :  { %v9799_v51 = vpack.c.bf16 %v7016_v50, %v7015_v45 }
0x3bc0   :  { %v7181_v56 = vmul.f32 1.442695, %v7179_v55 }
0x3bc1   :  { %v7199_v57 = vpop.permute.xlu1 %7198  ;;  %v7178_v58 = vpop.xlane.xlu0 %7177 }
0x3bc2   :  { %10115 = vpow2.f32 %v7181_v56  ;;  %v7180_v59 = vsub.f32 %v7172_v14, %v7178_v58  ;;  %9443 = vmatpush3.msra.mxu1 %v7199_v57 }
0x3bc3   :  { %9452 = vmatprep.subr.mxu1 %v11184_v31 }
0x3bc4   :  { %v7183_v60 = vmul.f32 1.442695, %v7180_v59 }
0x3bc5   :  { %v7275_v61 = vpop.permute.xlu0 %7274  ;;  %v7353_v29 = vpop.permute.xlu1 %7352 }
0x3bc6   :  { %10117 = vpow2.f32 %v7183_v60  ;;  %9448 = vmatpush3.msra.mxu0 %v7275_v61 }
0x3bc7   :  { %9457 = vmatprep.subr.mxu0 %v11184_v31 }
0x3bc9   :  { %v7431_v0 = vpop.permute.xlu1 %7430 }
0x3bcc   :  { %v10116_v62 = vpop.eup %10115 }
0x3bcd   :  { %v7185_v63 = vsel %vm1179_vm3, %v10116_v62, 0.0 }
0x3bce   :  { %7186 = vadd.xlane.f32.xlu1 %v7185_v63 }
0x3bd0   :  { %v10118_v30 = vpop.eup %10117 }
0x3bd1   :  { %v7188_v8 = vsel %vm1179_vm3, %v10118_v30, 0.0 }
0x3bd2   :  { %7189 = vadd.xlane.f32.xlu0 %v7188_v8 }
0x3bdf   :  { %7428 = vrot.lane.b32.xlu1 %v6926_v48, %s11189_s12  ;;  %v7018_v48 = vld [vmem:[%s12719_s0 + $0x18] sm:$0xff] }
0x3be8   :  { %7350 = vrot.lane.b32.xlu0 %v6921_v46, %s11189_s12  ;;  %s12721_s12 = sld [smem:[#allocation114_spill]] }
0x3bee   :  { %v8015_v45 = vld [vmem:[%s12721_s12 + $0x58] sm:$0xff] }
0x3c5b   :  { %v7187_v42 = vpop.xlane.xlu1 %7186 }
0x3c5c   :  { %10119 = vrcp.f32 %v7187_v42 }
0x3c5f   :  { %v7190_v2 = vpop.xlane.xlu0 %7189  ;;  %v7429_v6 = vpop.permute.xlu1 %7428 }
0x3c60   :  { %10121 = vrcp.f32 %v7190_v2 }
0x3c63   :  { %v7351_v28 = vpop.permute.xlu0 %7350 }
0x3c66   :  { %v10120_v3 = vpop.eup %10119 }
0x3c67   :  { %v7193_v4 = vmul.f32 %v10120_v3, %v10116_v62 }
0x3c69   :  { %7196 = vst.msk [vmem:[#allocation62 + $0x20] sm:$0xff] %vm1179_vm3, %v7193_v4  ;;  %9445 = vmatmul.mubr.msk.f32.vlgmr.msra.gmra.mrb[44].mxu1 %vm1179_vm3, %v7193_v4 }
0x3c6a   :  { %v10122_v5 = vpop.eup %10121  ;;  %9453 = vmatpush3.xpose.msk.msra.mxu1 %vm748_vm0, %v7353_v29  ;;  %9454 = vmatprep.mubr.msk.f32.mxu1 %vm11185_vm2, %v11184_v31 }
0x3c6b   :  { %v7194_v32 = vmul.f32 %v10122_v5, %v10118_v30  ;;  %9462 = vmatprep.subr.mxu1 %v11184_v31 }
0x3c6d   :  { %7197 = vst.msk [vmem:[#allocation62 + $0x28] sm:$0xff] %vm1179_vm3, %v7194_v32  ;;  %9450 = vmatmul.mubr.msk.f32.vlgmr.msra.gmra.mrb[86].mxu0 %vm1179_vm3, %v7194_v32  ;;  %9455 = vmatmul.mubr.msk.f32.vlgmr.msra.gmra.mrb[46].mxu1 %vm748_vm0, %v7351_v28 }
0x3c6e   :  { %9458 = vmatpush3.xpose.msk.msra.mxu0 %vm748_vm0, %v7431_v0  ;;  %9459 = vmatprep.mubr.msk.f32.mxu0 %vm11185_vm2, %v11184_v31 }
0x3c6f   :  { %9467 = vmatprep.subr.mxu0 %v11184_v31  ;;  %9464 = vmatprep.mubr.msk.f32.mxu1 %vm11185_vm2, %v11184_v31 }
0x3c71   :  { %9460 = vmatmul.mubr.msk.f32.vlgmr.msra.gmra.mrb[88].mxu0 %vm748_vm0, %v7429_v6 }
0x3c72   :  { %9469 = vmatprep.mubr.msk.f32.mxu0 %vm11185_vm2, %v11184_v31 }
0x3d3c   :  { %v7270_v7 = vpop.f32.mrb[44].mxu1 }
0x3d3d   :  { %v9446_v41 = vpop.f32.mrb[45].mxu1 }
0x3d3e   :  { %v8004_v41 = vld [vmem:[%s12721_s12] sm:$0xff] }
0x3d40   :  { %v7346_v9 = vpop.f32.mrb[86].mxu0  ;;  %v7424_v11 = vpop.f32.mrb[46].mxu1 }
0x3d41   :  { %v7506_v12 = vmul.f32 0.25, %v7424_v11  ;;  %v9451_v15 = vpop.f32.mrb[87].mxu0  ;;  %v9456_v10 = vpop.f32.mrb[47].mxu1  ;;  %v8006_v11 = vld [vmem:[%s12721_s12 + $0x10] sm:$0xff] }
0x3d42   :  { %v8007_v15 = vld [vmem:[%s12721_s12 + $0x18] sm:$0xff] }
0x3d43   :  { %v7508_v16 = vsel %vm1179_vm3, %v7506_v12, -inf  ;;  %v9815_v10 = vpack.c.bf16 %v8007_v15, %v8006_v11 }
0x3d44   :  { %7509 = vmax.xlane.f32.xlu0 %v7508_v16  ;;  %v7502_v17 = vpop.f32.mrb[88].mxu0  ;;  %v8008_v16 = vld [vmem:[%s12721_s12 + $0x20] sm:$0xff] }
0x3d45   :  { %v7507_v18 = vmul.f32 0.25, %v7502_v17  ;;  %v9461_v19 = vpop.f32.mrb[89].mxu0  ;;  %v8009_v17 = vld [vmem:[%s12721_s12 + $0x28] sm:$0xff] }
0x3d47   :  { %v7511_v20 = vsel %vm1179_vm3, %v7507_v18, -inf }
0x3d48   :  { %7512 = vmax.xlane.f32.xlu1 %v7511_v20 }
0x3d59   :  { %7533 = vrot.lane.b32.xlu1 %v12406_v40, %s11188_s23 }
0x3dd1   :  { %v7510_v31 = vpop.xlane.xlu0 %7509 }
0x3dd2   :  { %v7514_v21 = vsub.f32 %v7506_v12, %v7510_v31 }
0x3dd4   :  { %v7516_v47 = vmul.f32 1.442695, %v7514_v21 }
0x3dd5   :  { %v7513_v22 = vpop.xlane.xlu1 %7512 }
0x3dd6   :  { %10123 = vpow2.f32 %v7516_v47  ;;  %v7515_v23 = vsub.f32 %v7507_v18, %v7513_v22  ;;  %v9819_v18 = vpack.c.bf16 %v8009_v17, %v8008_v16 }
0x3dd8   :  { %v7518_v24 = vmul.f32 1.442695, %v7515_v23 }
0x3dd9   :  { %v7534_v25 = vpop.permute.xlu1 %7533 }
0x3dda   :  { %10125 = vpow2.f32 %v7518_v24  ;;  %9463 = vmatpush3.msra.mxu1 %v7534_v25  ;;  %v8569_v24 = vld [vmem:[#allocation35] ss:$0 sm:$0xff] }
0x3de0   :  { %v10124_v26 = vpop.eup %10123 }
0x3de1   :  { %v7520_v27 = vsel %vm1179_vm3, %v10124_v26, 0.0 }
0x3de2   :  { %7521 = vadd.xlane.f32.xlu0 %v7520_v27 }
0x3de4   :  { %v10126_v33 = vpop.eup %10125 }
0x3de5   :  { %v7523_v34 = vsel %vm1179_vm3, %v10126_v33, 0.0 }
0x3de6   :  { %7524 = vadd.xlane.f32.xlu0 %v7523_v34  ;;  %v8570_v34 = vld [vmem:[#allocation34] ss:$0 sm:$0xff] }
0x3dfc   :  { %7609 = vrot.lane.b32.xlu0 %v12393_v1, %s11188_s23  ;;  %v7017_v1 = vld [vmem:[%s12719_s0 + $0x10] sm:$0xff]  ;;  %s12720_s23 = sld [smem:[#allocation113_spill]] }
0x3dfd   :  { %v9795_v49 = vpack.c.bf16 %v7018_v48, %v7017_v1  ;;  %v8013_v1 = vld [vmem:[%s12721_s12 + $0x48] sm:$0xff] }
0x3dff   :  { %9796 = vmatprep.subr.bf16.mxu1 %v9795_v49 }
0x3e02   :  { %v7902_v4 = vld [vmem:[%s12720_s23] sm:$0xff]  ;;  %v7903_v5 = vld [vmem:[%s12720_s23 + $0x8] sm:$0xff]  ;;  %v7904_v28 = vld [vmem:[%s12720_s23 + $0x10] sm:$0xff] }
0x3e03   :  { %v9803_v32 = vpack.c.bf16 %v7903_v5, %v7902_v4  ;;  %v7905_v6 = vld [vmem:[%s12720_s23 + $0x18] sm:$0xff] }
0x3e6f   :  { %v7522_v37 = vpop.xlane.xlu0 %7521 }
0x3e70   :  { %10127 = vrcp.f32 %v7522_v37 }
0x3e73   :  { %v7525_v38 = vpop.xlane.xlu0 %7524 }
0x3e74   :  { %10129 = vrcp.f32 %v7525_v38 }
0x3e77   :  { %v7610_v40 = vpop.permute.xlu0 %7609 }
0x3e78   :  { %9468 = vmatpush3.msra.mxu0 %v7610_v40 }
0x3e79   :  { %9804 = vmatprep.subr.bf16.mxu0 %v9803_v32 }
0x3e7a   :  { %v10128_v43 = vpop.eup %10127 }
0x3e7b   :  { %v7528_v36 = vmul.f32 %v10128_v43, %v10124_v26  ;;  %v8010_v43 = vld [vmem:[%s12721_s12 + $0x30] sm:$0xff] }
0x3e7d   :  { %7531 = vst.msk [vmem:[#allocation62 + $0x30] sm:$0xff] %vm1179_vm3, %v7528_v36  ;;  %9465 = vmatmul.mubr.msk.f32.vlgmr.msra.gmra.mrb[48].mxu1 %vm1179_vm3, %v7528_v36  ;;  %v8011_v36 = vld [vmem:[%s12721_s12 + $0x38] sm:$0xff] }
0x3e7e   :  { %v10130_v44 = vpop.eup %10129  ;;  %9798 = vmatpush3.bf16.msra.mxu1 %v9795_v49  ;;  %v8014_v49 = vld [vmem:[%s12721_s12 + $0x50] sm:$0xff] }
0x3e7f   :  { %v7529_v46 = vmul.f32 %v10130_v44, %v10126_v33  ;;  %9800 = vmatprep.subr.bf16.mxu1 %v9799_v51  ;;  %v9823_v44 = vpack.c.bf16 %v8011_v36, %v8010_v43  ;;  %v9831_v50 = vpack.c.bf16 %v8015_v45, %v8014_v49 }
0x3e81   :  { %7532 = vst.msk [vmem:[#allocation62 + $0x38] sm:$0xff] %vm1179_vm3, %v7529_v46  ;;  %9470 = vmatmul.mubr.msk.f32.vlgmr.msra.gmra.mrb[90].mxu0 %vm1179_vm3, %v7529_v46  ;;  %v8012_v46 = vld [vmem:[%s12721_s12 + $0x40] sm:$0xff] }
0x3e82   :  { %9806 = vmatpush3.bf16.msra.mxu0 %v9803_v32  ;;  %v9827_v48 = vpack.c.bf16 %v8013_v1, %v8012_v46  ;;  %v8576_v46 = vld [vmem:[%s12723_s11] ss:$0 sm:$0xff] }
0x3f50   :  { %v7605_v52 = vpop.f32.mrb[48].mxu1 }
0x3f51   :  { %v9466_v14 = vpop.f32.mrb[49].mxu1  ;;  %9476 = vmatprep.mubr.msk.f32.mxu1 %vm748_vm0, %v7605_v52  ;;  %v8017_v52 = vld [vmem:[%s12721_s12 + $0x68] sm:$0xff] }
0x3f54   :  { %v7681_v13 = vpop.f32.mrb[90].mxu0 }
0x3f55   :  { %v9471_v53 = vpop.f32.mrb[91].mxu0  ;;  %9477 = vmatmul.mubr.msk.f32.vlgmr.msra.gmra.mrb[50].mxu1 %vm748_vm0, %v7681_v13  ;;  %v8018_v13 = vld [vmem:[%s12721_s12 + $0x70] sm:$0xff] }
0x3f56   :  { %9802 = vmatpush3.bf16.msra.mxu1 %v9799_v51  ;;  %9483 = vmatprep.mubr.msk.f32.mxu1 %vm748_vm0, %v7270_v7  ;;  %v9807_v7 = vpack.c.bf16 %v7905_v6, %v7904_v28  ;;  %v8016_v51 = vld [vmem:[%s12721_s12 + $0x60] sm:$0xff]  ;;  %v8019_v53 = vld [vmem:[%s12721_s12 + $0x78] sm:$0xff] }
0x3f57   :  { %v9835_v14 = vpack.c.bf16 %v8017_v52, %v8016_v51 }
0x3f58   :  { %9808 = vmatprep.subr.bf16.mxu0 %v9807_v7 }
0x3f59   :  { %9810 = vmatpush3.bf16.msra.mxu0 %v9807_v7 }
0x3f5d   :  { %9484 = vmatmul.mubr.msk.f32.vlgmr.msra.gmra.mrb[50].mxu1 %vm748_vm0, %v7346_v9  ;;  %v8005_v9 = vld [vmem:[%s12721_s12 + $0x8] sm:$0xff] }
0x3f5e   :  { %v9811_v12 = vpack.c.bf16 %v8005_v9, %v8004_v41 }
0x3f60   :  { %9812 = vmatprep.subr.bf16.mxu1 %v9811_v12 }
0x3f61   :  { %9814 = vmatpush3.bf16.msra.mxu1 %v9811_v12 }
0x3f62   :  { %9816 = vmatprep.subr.bf16.mxu1 %v9815_v10 }
0x3f65   :  { %9818 = vmatpush3.bf16.msra.mxu1 %v9815_v10 }
0x3f66   :  { %9820 = vmatprep.subr.bf16.mxu1 %v9819_v18 }
0x3f69   :  { %9822 = vmatpush3.bf16.msra.mxu1 %v9819_v18 }
0x3f6a   :  { %9824 = vmatprep.subr.bf16.mxu1 %v9823_v44 }
0x3f6d   :  { %9826 = vmatpush3.bf16.msra.mxu1 %v9823_v44 }
0x3f6e   :  { %9828 = vmatprep.subr.bf16.mxu1 %v9827_v48 }
0x3f71   :  { %9830 = vmatpush3.bf16.msra.mxu1 %v9827_v48 }
0x3f72   :  { %9832 = vmatprep.subr.bf16.mxu1 %v9831_v50 }
0x3f75   :  { %9834 = vmatpush3.bf16.msra.mxu1 %v9831_v50 }
0x3f76   :  { %9836 = vmatprep.subr.bf16.mxu1 %v9835_v14 }
0x3f79   :  { %9838 = vmatpush3.bf16.msra.mxu1 %v9835_v14 }
0x4030   :  { %v9485_v55 = vpop.f32.mrb[50].mxu1 }
0x4031   :  { %v7855_v56 = vadd.f32 %v9485_v55, %v8568_v54  ;;  %v7838_v57 = vpop.f32.mrb[51].mxu1  ;;  %v8571_v55 = vld [vmem:[#allocation23] ss:$0 sm:$0xff] }
0x4032   :  { %v7854_v58 = vadd.f32 %v8568_v54, %v7838_v57  ;;  %v9839_v54 = vpack.c.bf16 %v8019_v53, %v8018_v13 }
0x4033   :  { %v7857_v59 = vadd.f32 %v7855_v56, %v12404_v39 }
0x4034   :  { %v7856_v60 = vadd.f32 %v7854_v58, %v12402_v35  ;;  %9840 = vmatprep.subr.bf16.mxu1 %v9839_v54 }
0x4035   :  { %v7861_v61 = vsel %vm845_vm1, %v7857_v59, 0.0  ;;  %9842 = vmatpush3.bf16.msra.mxu1 %v9839_v54 }
0x4036   :  { %7862 = vadd.xlane.f32.xlu0 %v7861_v61  ;;  %v7858_v62 = vsel %vm845_vm1, %v7856_v60, 0.0 }
0x4037   :  { %7859 = vadd.xlane.f32.xlu1 %v7858_v62 }
0x40c3   :  { %v7863_v63 = vpop.xlane.xlu0 %7862 }
0x40c4   :  { %v7865_v30 = vmul.f32 0.03125, %v7863_v63  ;;  %v7860_v8 = vpop.xlane.xlu1 %7859 }
0x40c5   :  { %v7864_v29 = vmul.f32 0.03125, %v7860_v8 }
0x40c6   :  { %v7867_v0 = vsub.f32 %v7857_v59, %v7865_v30 }
0x40c7   :  { %v7866_v42 = vsub.f32 %v7856_v60, %v7864_v29 }
0x40c8   :  { %v7869_v2 = vmul.f32 %v7867_v0, %v7867_v0 }
0x40c9   :  { %v7868_v39 = vmul.f32 %v7866_v42, %v7866_v42 }
0x40ca   :  { %v7873_v35 = vsel %vm845_vm1, %v7869_v2, 0.0 }
0x40cb   :  { %7874 = vadd.xlane.f32.xlu0 %v7873_v35  ;;  %v7870_v3 = vsel %vm845_vm1, %v7868_v39, 0.0  ;;  %v8574_v39 = vld [vmem:[#allocation25] ss:$0 sm:$0xff] }
0x40cc   :  { %7871 = vadd.xlane.f32.xlu1 %v7870_v3 }
0x4158   :  { %v7875_v19 = vpop.xlane.xlu0 %7874 }
0x4159   :  { %v7877_v20 = vmul.f32 0.03125, %v7875_v19  ;;  %v7872_v31 = vpop.xlane.xlu1 %7871 }
0x415a   :  { %v7876_v21 = vmul.f32 0.03125, %v7872_v31  ;;  %v8149_v31 = vld [vmem:[%s12722_s10 + $0x8] sm:$0xff] }
0x415b   :  { %v7879_v47 = vadd.f32 1e-06, %v7877_v20  ;;  %v8148_v20 = vld [vmem:[%s12722_s10] sm:$0xff] }
0x415c   :  { %v7878_v22 = vadd.f32 1e-06, %v7876_v21  ;;  %v9843_v21 = vpack.c.bf16 %v8149_v31, %v8148_v20 }
0x415d   :  { %10131 = vrsqrt.f32 %v7879_v47  ;;  %v8150_v47 = vld [vmem:[%s12722_s10 + $0x10] sm:$0xff] }
0x415e   :  { %10133 = vrsqrt.f32 %v7878_v22  ;;  %v8151_v22 = vld [vmem:[%s12722_s10 + $0x18] sm:$0xff]  ;;  %9844 = vmatprep.subr.bf16.mxu0 %v9843_v21 }
0x4167   :  { %v10132_v23 = vpop.eup %10131 }
0x4168   :  { %v10134_v25 = vpop.eup %10133  ;;  %v7883_v26 = vmul.f32 %v10132_v23, %v7867_v0  ;;  %v9847_v23 = vpack.c.bf16 %v8151_v22, %v8150_v47 }
0x4169   :  { %v7882_v27 = vmul.f32 %v10134_v25, %v7866_v42 }
0x416a   :  { %v7892_v33 = vmul.f32 %v8569_v24, %v7883_v26 }
0x416b   :  { %v7891_v37 = vmul.f32 %v8569_v24, %v7882_v27 }
0x416c   :  { %v7901_v40 = vadd.f32 %v8570_v34, %v7892_v33 }
0x416d   :  { %v7900_v38 = vadd.f32 %v8570_v34, %v7891_v37 }
0x416f   :  { %9494 = vmatprep.mubr.msk.f32.mxu0 %vm845_vm1, %v7900_v38 }
0x4170   :  { %9495 = vmatmul.mubr.msk.f32.vlgmr.msra.gmra.mrb[92].mxu0 %vm845_vm1, %v7901_v40 }
0x4171   :  { %9846 = vmatpush3.bf16.msra.mxu0 %v9843_v21 }
0x4172   :  { %9848 = vmatprep.subr.bf16.mxu0 %v9847_v23 }
0x4175   :  { %9850 = vmatpush3.bf16.msra.mxu0 %v9847_v23 }
0x4243   :  { %v9496_v56 = vpop.f32.mrb[92].mxu0 }
0x4244   :  { %v7991_v57 = vadd.f32 %v9496_v56, %v8571_v55  ;;  %v7985_v58 = vpop.f32.mrb[93].mxu0 }
0x4245   :  { %v7986_v59 = vadd.f32 %v8571_v55, %v7985_v58 }
0x4246   :  { %v7997_v60 = vmul.f32 0.70710677, %v7991_v57  ;;  %v7995_v0 = vmul.f32 0.5, %v7991_v57 }
0x4247   :  { %v7996_v61 = vmul.f32 0.70710677, %v7986_v59  ;;  %v7994_v8 = vmul.f32 0.5, %v7986_v59 }
0x4248   :  { %10135 = verf.f32 %v7997_v60 }
0x4249   :  { %10137 = verf.f32 %v7996_v61 }
0x4252   :  { %v10136_v62 = vpop.eup %10135 }
0x4253   :  { %v10138_v63 = vpop.eup %10137  ;;  %v8001_v30 = vadd.f32 1.0, %v10136_v62 }
0x4254   :  { %v8000_v29 = vadd.f32 1.0, %v10138_v63 }
0x4255   :  { %v8003_v2 = vmul.f32 %v8001_v30, %v7995_v0 }
0x4256   :  { %v8002_v42 = vmul.f32 %v8000_v29, %v7994_v8 }
0x4258   :  { %9529 = vmatprep.mubr.f32.mxu1 %v8002_v42 }
0x4259   :  { %9530 = vmatmul.mubr.f32.vlgmr.msra.gmra.mrb[52].mxu1 %v8003_v2 }
0x432c   :  { %v9531_v35 = vpop.f32.mrb[52].mxu1 }
0x432d   :  { %v8099_v3 = vadd.f32 %v9531_v35, %v8574_v39  ;;  %v8093_v4 = vpop.f32.mrb[53].mxu1 }
0x432e   :  { %v8094_v5 = vadd.f32 %v8574_v39, %v8093_v4 }
0x432f   :  { %v8103_v32 = vadd.f32 %v8099_v3, %v7901_v40 }
0x4330   :  { %v8102_v28 = vadd.f32 %v8094_v5, %v7900_v38  ;;  %v8575_v38 = vld [vmem:[#allocation37] ss:$0 sm:$0xff] }
0x4331   :  { %v8107_v6 = vsel %vm845_vm1, %v8103_v32, 0.0 }
0x4332   :  { %8108 = vadd.xlane.f32.xlu0 %v8107_v6  ;;  %v8104_v7 = vsel %vm845_vm1, %v8102_v28, 0.0 }
0x4333   :  { %8105 = vadd.xlane.f32.xlu1 %v8104_v7 }
0x43bf   :  { %v8109_v41 = vpop.xlane.xlu0 %8108 }
0x43c0   :  { %v8111_v9 = vmul.f32 0.03125, %v8109_v41  ;;  %v8106_v11 = vpop.xlane.xlu1 %8105 }
0x43c1   :  { %v8110_v12 = vmul.f32 0.03125, %v8106_v11 }
0x43c2   :  { %v8113_v15 = vsub.f32 %v8103_v32, %v8111_v9 }
0x43c3   :  { %v8112_v10 = vsub.f32 %v8102_v28, %v8110_v12 }
0x43c4   :  { %v8115_v16 = vmul.f32 %v8113_v15, %v8113_v15 }
0x43c5   :  { %v8114_v17 = vmul.f32 %v8112_v10, %v8112_v10 }
0x43c6   :  { %v8119_v18 = vsel %vm845_vm1, %v8115_v16, 0.0 }
0x43c7   :  { %8120 = vadd.xlane.f32.xlu0 %v8119_v18  ;;  %v8116_v19 = vsel %vm845_vm1, %v8114_v17, 0.0 }
0x43c8   :  { %8117 = vadd.xlane.f32.xlu1 %v8116_v19 }
0x4454   :  { %v8121_v24 = vpop.xlane.xlu0 %8120 }
0x4455   :  { %v8123_v25 = vmul.f32 0.03125, %v8121_v24  ;;  %v8118_v26 = vpop.xlane.xlu1 %8117 }
0x4456   :  { %v8122_v27 = vmul.f32 0.03125, %v8118_v26 }
0x4457   :  { %v8125_v33 = vadd.f32 1e-06, %v8123_v25 }
0x4458   :  { %v8124_v34 = vadd.f32 1e-06, %v8122_v27 }
0x4459   :  { %10139 = vrsqrt.f32 %v8125_v33 }
0x445a   :  { %10141 = vrsqrt.f32 %v8124_v34 }
0x4463   :  { %v10140_v37 = vpop.eup %10139 }
0x4464   :  { %v10142_v40 = vpop.eup %10141  ;;  %v8129_v43 = vmul.f32 %v10140_v37, %v8113_v15 }
0x4465   :  { %v8128_v36 = vmul.f32 %v10142_v40, %v8112_v10 }
0x4466   :  { %v8138_v44 = vmul.f32 %v8575_v38, %v8129_v43 }
0x4467   :  { %v8137_v1 = vmul.f32 %v8575_v38, %v8128_v36 }
0x4468   :  { %v8147_v49 = vadd.f32 %v8576_v46, %v8138_v44 }
0x4469   :  { %v8146_v48 = vadd.f32 %v8576_v46, %v8137_v1 }
0x446b   :  { %9540 = vmatprep.mubr.msk.f32.mxu0 %vm845_vm1, %v8146_v48 }
0x446c   :  { %9541 = vmatmul.mubr.msk.f32.vlgmr.msra.gmra.mrb[94].mxu0 %vm845_vm1, %v8147_v49 }
0x446d   :  { %10946 = shalt.err (!%p10943_p12)
}
0x446e   :  { %s10947_s24 = scalar_lea.hbm %s11588_s17, 1024 }
0x446f   :  { %p10948_p13 = scmp.ne.s32.totalorder %s11588_s17, %s10947_s24  ;;  %p10951_p0 = scmp.lt.u32.totalorder %s10947_s24, %s11588_s17 }
0x4471   :  { %p10953_p1 = pnand %p10951_p0, %p10948_p13 }
0x4473   :  { %10956 = shalt.err (!%p10953_p1)
}
0x4474   :  { %8265 = dma.vmem_to_hbm [thread:$0]  %s8260_s4, 1024, %s11588_s17, [#allocation60], %s11164_s2, %s11164_s2, %s11165_s7  }
0x4475   :  { %s11192_s13 = smov [#allocation61]   ;;  %s11193_s9 = smov [#allocation62]  }
0x4476   :  { %s8271_s16 = sshll.u32 %s11192_s13, 4  ;;  %s8283_s29 = sshll.u32 %s11193_s9, 4  ;;  %s8272_s16 = int_to_ptr.vmem [resolvable:$true] %s8271_s16  ;;  %s8284_s29 = int_to_ptr.vmem [resolvable:$true] %s8283_s29 }
0x4477   :  { %s10957_s18 = scalar_lea.vmem %s8272_s16, 1024  ;;  %p10962_p3 = scmp.lt.s32.totalorder %s8272_s16, %s8272_s16 }
0x4478   :  { %p10958_p2 = scmp.ne.s32.totalorder %s8272_s16, %s10957_s18  ;;  %p10963_p4 = scmp.lt.s32.totalorder %s10957_s18, %s10957_s18 }
0x447a   :  { %p10964_p5 = por %p10963_p4, %p10962_p3 }
0x447c   :  { %p10965_p6 = pnand %p10964_p5, %p10958_p2 }
0x447e   :  { %10968 = shalt.err (!%p10965_p6)
}
0x447f   :  { %s10969_s6 = scalar_lea.hbm %s11593_s30, 1024 }
0x4480   :  { %p10970_p7 = scmp.ne.s32.totalorder %s11593_s30, %s10969_s6  ;;  %p10973_p8 = scmp.lt.u32.totalorder %s10969_s6, %s11593_s30 }
0x4482   :  { %p10975_p9 = pnand %p10973_p8, %p10970_p7 }
0x4484   :  { %10978 = shalt.err (!%p10975_p9)
}
0x4485   :  { %8277 = dma.vmem_to_hbm [thread:$0]  %s8272_s16, 1024, %s11593_s30, [#allocation60], %s11164_s2, %s11164_s2, %s11165_s7  }
0x4486   :  { %s10979_s17 = scalar_lea.vmem %s8284_s29, 1024  ;;  %p10984_p11 = scmp.lt.s32.totalorder %s8284_s29, %s8284_s29 }
0x4487   :  { %p10980_p10 = scmp.ne.s32.totalorder %s8284_s29, %s10979_s17  ;;  %p10985_p12 = scmp.lt.s32.totalorder %s10979_s17, %s10979_s17 }
0x4489   :  { %p10986_p13 = por %p10985_p12, %p10984_p11 }
0x448b   :  { %p10987_p0 = pnand %p10986_p13, %p10980_p10 }
0x448d   :  { %10990 = shalt.err (!%p10987_p0)
}
0x448e   :  { %s10991_s26 = scalar_lea.hbm %s11598_s5, 1024 }
0x448f   :  { %p10992_p1 = scmp.ne.s32.totalorder %s11598_s5, %s10991_s26  ;;  %p10995_p2 = scmp.lt.u32.totalorder %s10991_s26, %s11598_s5 }
0x4491   :  { %p10997_p3 = pnand %p10995_p2, %p10992_p1 }
0x4493   :  { %11000 = shalt.err (!%p10997_p3)
}
0x4494   :  { %8289 = dma.vmem_to_hbm [thread:$0]  %s8284_s29, 1024, %s11598_s5, [#allocation63], %s11164_s2, %s11164_s2, %s11165_s7   ;;  %v8577_v45 = vld [vmem:[#allocation56] ss:$0 sm:$0xff] }
0x4495   :  { %s11194_s30 = smov [#allocation58]  }
0x4496   :  { %s8247_s20 = sshll.u32 %s11194_s30, 4  ;;  %s8248_s20 = int_to_ptr.vmem [resolvable:$true] %s8247_s20 }
0x4497   :  { %s11001_s3 = scalar_lea.vmem %s8248_s20, 256  ;;  %p11006_p5 = scmp.lt.s32.totalorder %s8248_s20, %s8248_s20 }
0x4498   :  { %p11002_p4 = scmp.ne.s32.totalorder %s8248_s20, %s11001_s3  ;;  %p11007_p6 = scmp.lt.s32.totalorder %s11001_s3, %s11001_s3 }
0x449a   :  { %p11008_p7 = por %p11007_p6, %p11006_p5 }
0x449c   :  { %p11009_p8 = pnand %p11008_p7, %p11002_p4 }
0x453f   :  { %v9542_v50 = vpop.f32.mrb[94].mxu0 }
0x4540   :  { %v8237_v51 = vadd.f32 %v9542_v50, %v8577_v45  ;;  %v8231_v52 = vpop.f32.mrb[95].mxu0 }
0x4541   :  { %v8232_v14 = vadd.f32 %v8577_v45, %v8231_v52 }
0x4542   :  { %8241 = vst.msk [vmem:[#allocation58 + $0x8] sm:$0xff] %vm748_vm0, %v8237_v51 }
0x4543   :  { %8240 = vst.msk [vmem:[#allocation58] sm:$0xff] %vm748_vm0, %v8232_v14 }
0x4544   :  { %11012 = shalt.err (!%p11009_p8)
}
0x4545   :  { %s11013_s5 = scalar_lea.hbm %s11583_s19, 256 }
0x4546   :  { %p11014_p9 = scmp.ne.s32.totalorder %s11583_s19, %s11013_s5  ;;  %p11017_p10 = scmp.lt.u32.totalorder %s11013_s5, %s11583_s19 }
0x4548   :  { %p11019_p11 = pnand %p11017_p10, %p11014_p9 }
0x454a   :  { %11022 = shalt.err (!%p11019_p11)
}
0x454b   :  { %8253 = dma.vmem_to_hbm [thread:$0]  %s8248_s20, 256, %s11583_s19, [#allocation4], %s11164_s2, %s11164_s2, %s11165_s7  }
0x454c   :  { %11061 = dma.done.wait [#allocation4], 256  }
0x454d   :  { %11062 = vsyncadd [#allocation4], 4294967040 }
0x454e   :  { %11063 = dma.done.wait [#allocation60], 2048  }
0x454f   :  { %11064 = vsyncadd [#allocation60], 4294965248 }
0x4550   :  { %11065 = dma.done.wait [#allocation63], 1024  }
0x4551   :  { %11066 = vsyncadd [#allocation63], 4294966272 }
0x4552   :  { %8302 = vsyncpa [#allocation3], 1 }
0x4553   :  { %8303 = vsyncpa [#allocation6], 1 }
0x4554   :  { %8304 = vsyncpa [#allocation9], 1 }
0x4555   :  { %8305 = vsyncpa [#allocation12], 1 }
0x4556   :  { %8306 = vsyncpa [#allocation15], 1 }
0x4557   :  { %8307 = vsyncpa [#allocation18], 1 }
0x4558   :  { %8308 = vsyncpa [#allocation21], 1 }
0x4559   :  { %8309 = vsyncpa [#allocation24], 1 }
0x455a   :  { %8310 = vsyncpa [#allocation27], 1 }
0x455b   :  { %8311 = vsyncpa [#allocation30], 1 }
0x455c   :  { %8312 = vsyncpa [#allocation33], 1 }
0x455d   :  { %8313 = vsyncpa [#allocation36], 1 }
0x455e   :  { %8314 = vsyncpa [#allocation39], 1 }
0x455f   :  { %8315 = vsyncpa [#allocation42], 1 }
0x4560   :  { %8316 = vsyncpa [#allocation45], 1 }
0x4561   :  { %8317 = vsyncpa [#allocation48], 1 }
0x4562   :  { %8318 = vsyncpa [#allocation51], 1 }
0x4563   :  { %8319 = vsyncpa [#allocation54], 1 }
0x4564   :  { %8320 = vsyncpa [#allocation57], 1 }
0x4565   :  { %8321 = vsyncpa [#allocation4], 1 }
0x4566   :  { %8322 = vsyncpa [#allocation60], 1 }
0x4567   :  { %8323 = vsyncpa [#allocation63], 1 }

</bundles_post_ra>
